<compile_context>
chip_gen: v6e
topology: v6e:2x2x1
jax: 0.10.0
libtpu: 0.0.40
codegen_flags: <defaults>
</compile_context>

<pallas_src>
import functools

import jax
import jax.numpy as jnp
from jax import lax
from jax.experimental import pallas as pl
from jax.experimental.pallas import tpu as pltpu

NUM_BITS = 8
QMAX = 2.0 ** NUM_BITS - 1.0
LANE = 128
VMEM_LIMIT = 48 * 1024 * 1024   # safe on v5e/v6e (128 MiB) and v7x (64 MiB)


# -------------------- QParam bookkeeping (scalar glue, plain JAX) ------------

def calc_scale_zero_point(min_val, max_val, num_bits=NUM_BITS):
    qmax = 2.0 ** num_bits - 1.0
    scale = (max_val - min_val) / qmax
    scale = jnp.maximum(scale, 1e-12)          # guard all-zero tensors
    zero_point = qmax - max_val / scale
    zero_point = jnp.clip(zero_point, 0.0, qmax)
    zero_point = jnp.round(zero_point)
    return scale, zero_point


def qparam_from_minmax(min_val, max_val):
    # QParam.update on fresh buffers: max >= 0, min <= 0
    return calc_scale_zero_point(jnp.minimum(min_val, 0.0),
                                 jnp.maximum(max_val, 0.0))


def qparam_update(tensor):
    return qparam_from_minmax(jnp.min(tensor), jnp.max(tensor))


# -------------------- Pallas kernels -----------------------------------------

def _qconv_kernel(params_ref, x_ref, w_ref, b_ref,
                  o_ref, mx_ref, mn_ref, xf_scratch,
                  *, tap_offsets, mr, wp, ow, oc_pad):
    """Implicit-GEMM conv (shifted-window taps) + bias + fused qo statistics."""
    total_scale = params_ref[0]                       # scale_i * scale_w

    # One aligned full-block load of the bf16 pre-quantized (q - zp_i) image,
    # widened once to f32 in VMEM scratch so all shifted-window reads below are
    # plain unpacked slices.
    xf_scratch[...] = x_ref[0].astype(jnp.float32)    # (L, C)

    acc = jnp.zeros((mr, oc_pad), jnp.float32)
    for t, off in enumerate(tap_offsets):             # static unroll, KH*KW taps
        a = xf_scratch[off:off + mr, :].astype(jnp.bfloat16)   # small ints, exact
        acc = acc + jnp.dot(a, w_ref[t], preferred_element_type=jnp.float32)

    out = total_scale * acc + b_ref[...]              # (MR, OC_pad) + (1, OC_pad)
    o_ref[0] = out

    # Fused qo statistics: per-lane (per output channel) partial min/max over
    # valid rows only.  Rows whose width-position >= OW are sliding-window junk
    # (they are sliced off in the wrapper); padded OC columns are exactly zero
    # and harmless because qparam_from_minmax clamps min<=0 / max>=0.
    w_pos = lax.broadcasted_iota(jnp.int32, (mr, 1), 0) % wp
    valid = w_pos < ow
    mx = jnp.max(jnp.where(valid, out, -jnp.inf), axis=0, keepdims=True)
    mn = jnp.min(jnp.where(valid, out, jnp.inf), axis=0, keepdims=True)
    mx_ref[0] = jnp.broadcast_to(mx, (8, oc_pad))
    mn_ref[0] = jnp.broadcast_to(mn, (8, oc_pad))


def _fake_quant_kernel(params_ref, x_ref, o_ref):
    # q = round(clamp(zp + x * (1/scale), 0, qmax)); out = scale * (q - zp)
    scale = params_ref[0]
    inv_scale = params_ref[1]
    zp = params_ref[2]
    q = jnp.round(jnp.clip(zp + x_ref[...] * inv_scale, 0.0, QMAX))
    o_ref[...] = scale * (q - zp)


def _const_spec(shape, index_map, single_buffer):
    """Grid-invariant operand: single-buffered to halve its VMEM footprint."""
    if single_buffer:
        return pl.BlockSpec(shape, index_map, pipeline_mode=pl.Buffered(1))
    return pl.BlockSpec(shape, index_map)


def fake_quantize_inplace(x3, scale, zero_point):
    """Lane-dense elementwise fake-quant, aliased in place over its input."""
    N, R, Cp = x3.shape
    params = jnp.stack([scale, 1.0 / scale, zero_point]).astype(jnp.float32)
    return pl.pallas_call(
        _fake_quant_kernel,
        out_shape=jax.ShapeDtypeStruct((N, R, Cp), jnp.float32),
        grid=(N,),
        in_specs=[
            pl.BlockSpec(memory_space=pltpu.MemorySpace.SMEM),   # scale/inv/zp
            pl.BlockSpec((1, R, Cp), lambda n: (n, 0, 0)),
        ],
        out_specs=pl.BlockSpec((1, R, Cp), lambda n: (n, 0, 0)),
        input_output_aliases={1: 0},                             # in place
        compiler_params=pltpu.CompilerParams(
            dimension_semantics=("parallel",),
            vmem_limit_bytes=VMEM_LIMIT),
        cost_estimate=pl.CostEstimate(flops=6 * N * R * Cp, transcendentals=0,
                                      bytes_accessed=2 * N * R * Cp * 4),
    )(params, x3)


# -------------------- QConv2d.forward ----------------------------------------

def qconv2d_forward(x, weight, bias, padding=1, single_buffer_consts=True):
    """Fake-quant QAT forward of QConv2d (stride=1, dilation=1, groups=1), NCHW."""
    N, C, H, W = x.shape
    OC, _, KH, KW = weight.shape
    Hp, Wp = H + 2 * padding, W + 2 * padding
    OH, OW = Hp - KH + 1, Wp - KW + 1

    # --- qi from the raw activations; qw + weight fake-quant in plain JAX
    #     (weights are tiny; keep integer (q - zp_w), exact in bf16).
    scale_i, zp_i = qparam_update(x)
    scale_w, zp_w = qparam_update(weight)
    w_int = jnp.round(jnp.clip(zp_w + weight / scale_w, 0.0, QMAX)) - zp_w

    # --- pre-quantize activations to integer (q - zp_i), fused by XLA with the
    #     NCHW->NHWC transpose + zero padding, shipped as bf16 (exact).
    x_int = jnp.round(jnp.clip(zp_i + x / scale_i, 0.0, QMAX)) - zp_i
    x_nhwc = jnp.transpose(x_int, (0, 2, 3, 1)).astype(jnp.bfloat16)
    xpad = jnp.pad(x_nhwc, ((0, 0), (padding, padding), (padding, padding), (0, 0)))
    # Flatten spatial dims; KW-1 extra zero rows keep the last tap's window in
    # bounds (they only ever feed junk rows that are masked / sliced away).
    xflat = jnp.pad(xpad.reshape(N, Hp * Wp, C), ((0, 0), (0, KW - 1), (0, 0)))
    L = Hp * Wp + KW - 1

    OC_pad = max(LANE, pl.cdiv(OC, LANE) * LANE)            # lane-dense output
    # Per-tap weight slabs: tap t = kh*KW + kw -> (C, OC_pad), bf16 integers.
    w_taps = jnp.transpose(w_int, (2, 3, 1, 0)).reshape(KH * KW, C, OC)
    w_taps = jnp.pad(w_taps, ((0, 0), (0, 0), (0, OC_pad - OC))).astype(jnp.bfloat16)
    bias_row = jnp.pad(bias, (0, OC_pad - OC)).reshape(1, OC_pad).astype(jnp.float32)

    MR = OH * Wp                                            # rows per image (incl. junk cols)
    tap_offsets = tuple(kh * Wp + kw for kh in range(KH) for kw in range(KW))
    params = (scale_i * scale_w).reshape(1).astype(jnp.float32)

    kernel = functools.partial(_qconv_kernel, tap_offsets=tap_offsets, mr=MR,
                               wp=Wp, ow=OW, oc_pad=OC_pad)

    flops = 2 * N * MR * KH * KW * C * OC_pad
    bytes_accessed = (N * L * C * 2 + KH * KW * C * OC_pad * 2 + OC_pad * 4
                      + N * MR * OC_pad * 4 + 2 * N * 8 * OC_pad * 4)

    out3, tmax, tmin = pl.pallas_call(
        kernel,
        out_shape=(
            jax.ShapeDtypeStruct((N, MR, OC_pad), jnp.float32),   # conv output
            jax.ShapeDtypeStruct((N, 8, OC_pad), jnp.float32),    # per-step per-lane max
            jax.ShapeDtypeStruct((N, 8, OC_pad), jnp.float32),    # per-step per-lane min
        ),
        grid=(N,),
        in_specs=[
            pl.BlockSpec(memory_space=pltpu.MemorySpace.SMEM),               # scale_i*scale_w
            pl.BlockSpec((1, L, C), lambda n: (n, 0, 0)),                     # bf16 image
            _const_spec((KH * KW, C, OC_pad), lambda n: (0, 0, 0),
                        single_buffer_consts),                               # weights
            _const_spec((1, OC_pad), lambda n: (0, 0), single_buffer_consts),  # bias
        ],
        out_specs=(
            pl.BlockSpec((1, MR, OC_pad), lambda n: (n, 0, 0)),
            pl.BlockSpec((1, 8, OC_pad), lambda n: (n, 0, 0)),
            pl.BlockSpec((1, 8, OC_pad), lambda n: (n, 0, 0)),
        ),
        scratch_shapes=[pltpu.VMEM((L, C), jnp.float32)],
        compiler_params=pltpu.CompilerParams(
            dimension_semantics=("parallel",),
            vmem_limit_bytes=VMEM_LIMIT),
        cost_estimate=pl.CostEstimate(flops=flops, transcendentals=0,
                                      bytes_accessed=bytes_accessed),
    )(params, xflat, w_taps, bias_row)

    # --- qo from the fused statistics, then an in-place lane-dense fake-quant.
    scale_o, zp_o = qparam_from_minmax(jnp.min(tmin), jnp.max(tmax))
    out_fq = fake_quantize_inplace(out3, scale_o, zp_o)

    # Drop junk columns (w >= OW) and padded channels, back to NCHW.
    out = out_fq.reshape(N, OH, Wp, OC_pad)[:, :, :OW, :OC]
    return jnp.transpose(out, (0, 3, 1, 2))


# -------------------- plain-JAX reference (sanity check) ---------------------

def _reference_forward(x, weight, bias, padding=1):
    scale_i, zp_i = qparam_update(x)
    x_fq = scale_i * (jnp.round(jnp.clip(zp_i + x / scale_i, 0.0, QMAX)) - zp_i)
    scale_w, zp_w = qparam_update(weight)
    w_fq = scale_w * (jnp.round(jnp.clip(zp_w + weight / scale_w, 0.0, QMAX)) - zp_w)
    out = lax.conv_general_dilated(
        x_fq, w_fq, window_strides=(1, 1),
        padding=[(padding, padding), (padding, padding)],
        dimension_numbers=("NCHW", "OIHW", "NCHW"),
        precision=lax.Precision.HIGHEST)
    out = out + bias.reshape(1, -1, 1, 1)
    scale_o, zp_o = qparam_update(out)
    out_fq = scale_o * (jnp.round(jnp.clip(zp_o + out / scale_o, 0.0, QMAX)) - zp_o)
    return out_fq, scale_o


if __name__ == "__main__":
    key = jax.random.PRNGKey(0)
    kx, kw, kb = jax.random.split(key, 3)

    # conv_module = nn.Conv2d(4, 8, kernel_size=3, stride=1, padding=1)
    N, C, H, W = 2, 4, 16, 16
    OC, KH, KW = 8, 3, 3

    x = jax.random.normal(kx, (N, C, H, W), dtype=jnp.float32)
    fan_in = C * KH * KW
    bound = 1.0 / (fan_in ** 0.5)
    weight = jax.random.uniform(kw, (OC, C, KH, KW), minval=-bound, maxval=bound,
                                dtype=jnp.float32)
    bias = jax.random.uniform(kb, (OC,), minval=-bound, maxval=bound,
                              dtype=jnp.float32)

    fwd = jax.jit(qconv2d_forward,
                  static_argnames=("padding", "single_buffer_consts"))
    try:
        out = fwd(x, weight, bias, padding=1, single_buffer_consts=True)
        out = jax.block_until_ready(out)
    except Exception:
        # Fallback if this JAX build rejects pl.Buffered(1) on grid-invariant specs.
        out = fwd(x, weight, bias, padding=1, single_buffer_consts=False)
        out = jax.block_until_ready(out)

    assert out.shape == (N, OC, H, W)
    assert out.dtype == jnp.float32

    # Sanity check vs a plain-JAX reference (differences bounded by ~1 output
    # quantization step due to fp summation-order / rounding-boundary effects).
    ref, scale_o_ref = _reference_forward(x, weight, bias, padding=1)
    max_err = float(jnp.max(jnp.abs(out - ref)))
    assert max_err <= 1.5 * float(scale_o_ref) + 1e-4, f"max_err={max_err}"

    print("KERNEL_OK")
</pallas_src>

<mosaic_0001>
module attributes {stable_mosaic.version = 11 : i64} {
  func.func @_qconv_kernel(%arg0: i32, %arg1: memref<1xf32, #tpu.memory_space<smem>>, %arg2: memref<1x326x4xbf16, #tpu.memory_space<vmem>>, %arg3: memref<9x4x128xbf16, #tpu.memory_space<vmem>>, %arg4: memref<1x128xf32, #tpu.memory_space<vmem>>, %arg5: memref<1x288x128xf32, #tpu.memory_space<vmem>>, %arg6: memref<1x8x128xf32, #tpu.memory_space<vmem>>, %arg7: memref<1x8x128xf32, #tpu.memory_space<vmem>>, %arg8: memref<326x4xf32, #tpu.memory_space<vmem>>) attributes {dimension_semantics = [#tpu.dimension_semantics<parallel>], iteration_bounds = array<i64: 2>, scalar_prefetch = 0 : i64, scratch_operands = 1 : i64, tpu.core_type = #tpu.core_type<tc>, window_params = [{transform_indices = @transform_0, window_bounds = array<i64: 1>}, {transform_indices = @transform_1, window_bounds = array<i64: 1, 326, 4>}, {pipeline_mode = #tpu.pipeline_mode<synchronous>, transform_indices = @transform_2, window_bounds = array<i64: 9, 4, 128>}, {pipeline_mode = #tpu.pipeline_mode<synchronous>, transform_indices = @transform_3, window_bounds = array<i64: 1, 128>}, {transform_indices = @transform_4, window_bounds = array<i64: 1, 288, 128>}, {transform_indices = @transform_5, window_bounds = array<i64: 1, 8, 128>}, {transform_indices = @transform_6, window_bounds = array<i64: 1, 8, 128>}]} {
    %c0 = arith.constant 0 : index
    %0 = memref.load %arg1[%c0] : memref<1xf32, #tpu.memory_space<smem>>
    %c0_0 = arith.constant 0 : index
    %c0_1 = arith.constant 0 : index
    %c0_2 = arith.constant 0 : index
    %1 = vector.load %arg2[%c0_0, %c0_1, %c0_2] : memref<1x326x4xbf16, #tpu.memory_space<vmem>>, vector<1x326x4xbf16>
    %2 = vector.shape_cast %1 : vector<1x326x4xbf16> to vector<326x4xbf16>
    %3 = arith.extf %2 : vector<326x4xbf16> to vector<326x4xf32>
    %c0_3 = arith.constant 0 : index
    %c0_4 = arith.constant 0 : index
    %4 = vector.load %arg8[%c0_3, %c0_4] : memref<326x4xf32, #tpu.memory_space<vmem>>, vector<326x4xf32>
    tpu.vector_store %arg8[%c0_3, %c0_4], %3 {strides = array<i32>} : memref<326x4xf32, #tpu.memory_space<vmem>>, vector<326x4xf32>,
    %cst = arith.constant 0.000000e+00 : f32
    %5 = vector.broadcast %cst : f32 to vector<288x128xf32>
    %c0_5 = arith.constant 0 : index
    %c0_6 = arith.constant 0 : index
    %6 = vector.load %arg8[%c0_5, %c0_6] : memref<326x4xf32, #tpu.memory_space<vmem>>, vector<288x4xf32>
    %7 = arith.truncf %6 : vector<288x4xf32> to vector<288x4xbf16>
    %c0_7 = arith.constant 0 : index
    %c0_8 = arith.constant 0 : index
    %c0_9 = arith.constant 0 : index
    %8 = vector.load %arg3[%c0_7, %c0_8, %c0_9] : memref<9x4x128xbf16, #tpu.memory_space<vmem>>, vector<1x4x128xbf16>
    %9 = vector.shape_cast %8 : vector<1x4x128xbf16> to vector<4x128xbf16>
    %cst_10 = arith.constant dense<0.000000e+00> : vector<288x128xf32>
    %10 = tpu.matmul %7, %9, %cst_10 {dimension_numbers = #tpu.dot_dimension_numbers<[1], [0], [0], [1], [0, 0, 1, 1], [], []>} : vector<288x4xbf16>, vector<4x128xbf16>, vector<288x128xf32> -> vector<288x128xf32>
    %11 = arith.addf %5, %10 : vector<288x128xf32>
    %c1 = arith.constant 1 : index
    %c0_11 = arith.constant 0 : index
    %12 = vector.load %arg8[%c1, %c0_11] : memref<326x4xf32, #tpu.memory_space<vmem>>, vector<288x4xf32>
    %13 = arith.truncf %12 : vector<288x4xf32> to vector<288x4xbf16>
    %c1_12 = arith.constant 1 : index
    %c0_13 = arith.constant 0 : index
    %c0_14 = arith.constant 0 : index
    %14 = vector.load %arg3[%c1_12, %c0_13, %c0_14] : memref<9x4x128xbf16, #tpu.memory_space<vmem>>, vector<1x4x128xbf16>
    %15 = vector.shape_cast %14 : vector<1x4x128xbf16> to vector<4x128xbf16>
    %cst_15 = arith.constant dense<0.000000e+00> : vector<288x128xf32>
    %16 = tpu.matmul %13, %15, %cst_15 {dimension_numbers = #tpu.dot_dimension_numbers<[1], [0], [0], [1], [0, 0, 1, 1], [], []>} : vector<288x4xbf16>, vector<4x128xbf16>, vector<288x128xf32> -> vector<288x128xf32>
    %17 = arith.addf %11, %16 : vector<288x128xf32>
    %c2 = arith.constant 2 : index
    %c0_16 = arith.constant 0 : index
    %18 = vector.load %arg8[%c2, %c0_16] : memref<326x4xf32, #tpu.memory_space<vmem>>, vector<288x4xf32>
    %19 = arith.truncf %18 : vector<288x4xf32> to vector<288x4xbf16>
    %c2_17 = arith.constant 2 : index
    %c0_18 = arith.constant 0 : index
    %c0_19 = arith.constant 0 : index
    %20 = vector.load %arg3[%c2_17, %c0_18, %c0_19] : memref<9x4x128xbf16, #tpu.memory_space<vmem>>, vector<1x4x128xbf16>
    %21 = vector.shape_cast %20 : vector<1x4x128xbf16> to vector<4x128xbf16>
    %cst_20 = arith.constant dense<0.000000e+00> : vector<288x128xf32>
    %22 = tpu.matmul %19, %21, %cst_20 {dimension_numbers = #tpu.dot_dimension_numbers<[1], [0], [0], [1], [0, 0, 1, 1], [], []>} : vector<288x4xbf16>, vector<4x128xbf16>, vector<288x128xf32> -> vector<288x128xf32>
    %23 = arith.addf %17, %22 : vector<288x128xf32>
    %c18 = arith.constant 18 : index
    %c0_21 = arith.constant 0 : index
    %24 = vector.load %arg8[%c18, %c0_21] : memref<326x4xf32, #tpu.memory_space<vmem>>, vector<288x4xf32>
    %25 = arith.truncf %24 : vector<288x4xf32> to vector<288x4xbf16>
    %c3 = arith.constant 3 : index
    %c0_22 = arith.constant 0 : index
    %c0_23 = arith.constant 0 : index
    %26 = vector.load %arg3[%c3, %c0_22, %c0_23] : memref<9x4x128xbf16, #tpu.memory_space<vmem>>, vector<1x4x128xbf16>
    %27 = vector.shape_cast %26 : vector<1x4x128xbf16> to vector<4x128xbf16>
    %cst_24 = arith.constant dense<0.000000e+00> : vector<288x128xf32>
    %28 = tpu.matmul %25, %27, %cst_24 {dimension_numbers = #tpu.dot_dimension_numbers<[1], [0], [0], [1], [0, 0, 1, 1], [], []>} : vector<288x4xbf16>, vector<4x128xbf16>, vector<288x128xf32> -> vector<288x128xf32>
    %29 = arith.addf %23, %28 : vector<288x128xf32>
    %c19 = arith.constant 19 : index
    %c0_25 = arith.constant 0 : index
    %30 = vector.load %arg8[%c19, %c0_25] : memref<326x4xf32, #tpu.memory_space<vmem>>, vector<288x4xf32>
    %31 = arith.truncf %30 : vector<288x4xf32> to vector<288x4xbf16>
    %c4 = arith.constant 4 : index
    %c0_26 = arith.constant 0 : index
    %c0_27 = arith.constant 0 : index
    %32 = vector.load %arg3[%c4, %c0_26, %c0_27] : memref<9x4x128xbf16, #tpu.memory_space<vmem>>, vector<1x4x128xbf16>
    %33 = vector.shape_cast %32 : vector<1x4x128xbf16> to vector<4x128xbf16>
    %cst_28 = arith.constant dense<0.000000e+00> : vector<288x128xf32>
    %34 = tpu.matmul %31, %33, %cst_28 {dimension_numbers = #tpu.dot_dimension_numbers<[1], [0], [0], [1], [0, 0, 1, 1], [], []>} : vector<288x4xbf16>, vector<4x128xbf16>, vector<288x128xf32> -> vector<288x128xf32>
    %35 = arith.addf %29, %34 : vector<288x128xf32>
    %c20 = arith.constant 20 : index
    %c0_29 = arith.constant 0 : index
    %36 = vector.load %arg8[%c20, %c0_29] : memref<326x4xf32, #tpu.memory_space<vmem>>, vector<288x4xf32>
    %37 = arith.truncf %36 : vector<288x4xf32> to vector<288x4xbf16>
    %c5 = arith.constant 5 : index
    %c0_30 = arith.constant 0 : index
    %c0_31 = arith.constant 0 : index
    %38 = vector.load %arg3[%c5, %c0_30, %c0_31] : memref<9x4x128xbf16, #tpu.memory_space<vmem>>, vector<1x4x128xbf16>
    %39 = vector.shape_cast %38 : vector<1x4x128xbf16> to vector<4x128xbf16>
    %cst_32 = arith.constant dense<0.000000e+00> : vector<288x128xf32>
    %40 = tpu.matmul %37, %39, %cst_32 {dimension_numbers = #tpu.dot_dimension_numbers<[1], [0], [0], [1], [0, 0, 1, 1], [], []>} : vector<288x4xbf16>, vector<4x128xbf16>, vector<288x128xf32> -> vector<288x128xf32>
    %41 = arith.addf %35, %40 : vector<288x128xf32>
    %c36 = arith.constant 36 : index
    %c0_33 = arith.constant 0 : index
    %42 = vector.load %arg8[%c36, %c0_33] : memref<326x4xf32, #tpu.memory_space<vmem>>, vector<288x4xf32>
    %43 = arith.truncf %42 : vector<288x4xf32> to vector<288x4xbf16>
    %c6 = arith.constant 6 : index
    %c0_34 = arith.constant 0 : index
    %c0_35 = arith.constant 0 : index
    %44 = vector.load %arg3[%c6, %c0_34, %c0_35] : memref<9x4x128xbf16, #tpu.memory_space<vmem>>, vector<1x4x128xbf16>
    %45 = vector.shape_cast %44 : vector<1x4x128xbf16> to vector<4x128xbf16>
    %cst_36 = arith.constant dense<0.000000e+00> : vector<288x128xf32>
    %46 = tpu.matmul %43, %45, %cst_36 {dimension_numbers = #tpu.dot_dimension_numbers<[1], [0], [0], [1], [0, 0, 1, 1], [], []>} : vector<288x4xbf16>, vector<4x128xbf16>, vector<288x128xf32> -> vector<288x128xf32>
    %47 = arith.addf %41, %46 : vector<288x128xf32>
    %c37 = arith.constant 37 : index
    %c0_37 = arith.constant 0 : index
    %48 = vector.load %arg8[%c37, %c0_37] : memref<326x4xf32, #tpu.memory_space<vmem>>, vector<288x4xf32>
    %49 = arith.truncf %48 : vector<288x4xf32> to vector<288x4xbf16>
    %c7 = arith.constant 7 : index
    %c0_38 = arith.constant 0 : index
    %c0_39 = arith.constant 0 : index
    %50 = vector.load %arg3[%c7, %c0_38, %c0_39] : memref<9x4x128xbf16, #tpu.memory_space<vmem>>, vector<1x4x128xbf16>
    %51 = vector.shape_cast %50 : vector<1x4x128xbf16> to vector<4x128xbf16>
    %cst_40 = arith.constant dense<0.000000e+00> : vector<288x128xf32>
    %52 = tpu.matmul %49, %51, %cst_40 {dimension_numbers = #tpu.dot_dimension_numbers<[1], [0], [0], [1], [0, 0, 1, 1], [], []>} : vector<288x4xbf16>, vector<4x128xbf16>, vector<288x128xf32> -> vector<288x128xf32>
    %53 = arith.addf %47, %52 : vector<288x128xf32>
    %c38 = arith.constant 38 : index
    %c0_41 = arith.constant 0 : index
    %54 = vector.load %arg8[%c38, %c0_41] : memref<326x4xf32, #tpu.memory_space<vmem>>, vector<288x4xf32>
    %55 = arith.truncf %54 : vector<288x4xf32> to vector<288x4xbf16>
    %c8 = arith.constant 8 : index
    %c0_42 = arith.constant 0 : index
    %c0_43 = arith.constant 0 : index
    %56 = vector.load %arg3[%c8, %c0_42, %c0_43] : memref<9x4x128xbf16, #tpu.memory_space<vmem>>, vector<1x4x128xbf16>
    %57 = vector.shape_cast %56 : vector<1x4x128xbf16> to vector<4x128xbf16>
    %cst_44 = arith.constant dense<0.000000e+00> : vector<288x128xf32>
    %58 = tpu.matmul %55, %57, %cst_44 {dimension_numbers = #tpu.dot_dimension_numbers<[1], [0], [0], [1], [0, 0, 1, 1], [], []>} : vector<288x4xbf16>, vector<4x128xbf16>, vector<288x128xf32> -> vector<288x128xf32>
    %59 = arith.addf %53, %58 : vector<288x128xf32>
    %60 = vector.broadcast %0 : f32 to vector<288x128xf32>
    %61 = arith.mulf %60, %59 : vector<288x128xf32>
    %c0_45 = arith.constant 0 : index
    %c0_46 = arith.constant 0 : index
    %62 = vector.load %arg4[%c0_45, %c0_46] : memref<1x128xf32, #tpu.memory_space<vmem>>, vector<1x128xf32>
    %63 = vector.broadcast %62 : vector<1x128xf32> to vector<288x128xf32>
    %64 = arith.addf %61, %63 : vector<288x128xf32>
    %c0_47 = arith.constant 0 : index
    %c0_48 = arith.constant 0 : index
    %c0_49 = arith.constant 0 : index
    %65 = vector.load %arg5[%c0_47, %c0_48, %c0_49] : memref<1x288x128xf32, #tpu.memory_space<vmem>>, vector<1x288x128xf32>
    %66 = vector.shape_cast %65 : vector<1x288x128xf32> to vector<288x128xf32>
    %67 = vector.shape_cast %64 : vector<288x128xf32> to vector<1x288x128xf32>
    tpu.vector_store %arg5[%c0_47, %c0_48, %c0_49], %67 {strides = array<i32>} : memref<1x288x128xf32, #tpu.memory_space<vmem>>, vector<1x288x128xf32>,
    %68 = tpu.iota {dimensions = array<i32: 0>} : vector<288x1xi32>
    %c18_i32 = arith.constant 18 : i32
    %c0_i32 = arith.constant 0 : i32
    %69 = arith.cmpi eq, %c18_i32, %c0_i32 : i32
    %c1_i32 = arith.constant 1 : i32
    %70 = arith.select %69, %c1_i32, %c18_i32 : i32
    %71 = vector.broadcast %70 : i32 to vector<288x1xi32>
    %72 = arith.remsi %68, %71 : vector<288x1xi32>
    %c0_i32_50 = arith.constant 0 : i32
    %73 = vector.broadcast %c0_i32_50 : i32 to vector<288x1xi32>
    %74 = arith.cmpi ne, %72, %73 : vector<288x1xi32>
    %c0_i32_51 = arith.constant 0 : i32
    %75 = vector.broadcast %c0_i32_51 : i32 to vector<288x1xi32>
    %76 = arith.cmpi slt, %72, %75 : vector<288x1xi32>
    %c0_i32_52 = arith.constant 0 : i32
    %77 = arith.cmpi slt, %70, %c0_i32_52 : i32
    %78 = vector.broadcast %77 : i1 to vector<288x1xi1>
    %79 = vector.broadcast %78 : vector<288x1xi1> to vector<288x1xi1>
    %80 = arith.xori %76, %79 : vector<288x1xi1>
    %81 = arith.andi %80, %74 : vector<288x1xi1>
    %82 = vector.broadcast %70 : i32 to vector<288x1xi32>
    %83 = arith.addi %72, %82 : vector<288x1xi32>
    %84 = arith.select %81, %83, %72 : vector<288x1xi1>, vector<288x1xi32>
    %c16_i32 = arith.constant 16 : i32
    %85 = vector.broadcast %c16_i32 : i32 to vector<288x1xi32>
    %86 = arith.cmpi slt, %84, %85 : vector<288x1xi32>
    %cst_53 = arith.constant 0xFF800000 : f32
    %87 = vector.shape_cast %86 : vector<288x1xi1> to vector<288x1xi1>
    %88 = vector.broadcast %87 : vector<288x1xi1> to vector<288x128xi1>
    %89 = vector.broadcast %cst_53 : f32 to vector<288x128xf32>
    %90 = arith.select %88, %64, %89 : vector<288x128xi1>, vector<288x128xf32>
    %cst_54 = arith.constant dense<0xFF800000> : vector<128xf32>
    %91 = vector.multi_reduction <maximumf>, %90, %cst_54 [0] : vector<288x128xf32> to vector<128xf32>
    %92 = vector.shape_cast %91 : vector<128xf32> to vector<1x128xf32>
    %cst_55 = arith.constant 0x7F800000 : f32
    %93 = vector.shape_cast %86 : vector<288x1xi1> to vector<288x1xi1>
    %94 = vector.broadcast %93 : vector<288x1xi1> to vector<288x128xi1>
    %95 = vector.broadcast %cst_55 : f32 to vector<288x128xf32>
    %96 = arith.select %94, %64, %95 : vector<288x128xi1>, vector<288x128xf32>
    %cst_56 = arith.constant dense<0x7F800000> : vector<128xf32>
    %97 = vector.multi_reduction <minimumf>, %96, %cst_56 [0] : vector<288x128xf32> to vector<128xf32>
    %98 = vector.shape_cast %97 : vector<128xf32> to vector<1x128xf32>
    %99 = vector.shape_cast %92 : vector<1x128xf32> to vector<1x128xf32>
    %100 = vector.broadcast %99 : vector<1x128xf32> to vector<8x128xf32>
    %c0_57 = arith.constant 0 : index
    %c0_58 = arith.constant 0 : index
    %c0_59 = arith.constant 0 : index
    %101 = vector.load %arg6[%c0_57, %c0_58, %c0_59] : memref<1x8x128xf32, #tpu.memory_space<vmem>>, vector<1x8x128xf32>
    %102 = vector.shape_cast %101 : vector<1x8x128xf32> to vector<8x128xf32>
    %103 = vector.shape_cast %100 : vector<8x128xf32> to vector<1x8x128xf32>
    tpu.vector_store %arg6[%c0_57, %c0_58, %c0_59], %103 {strides = array<i32>} : memref<1x8x128xf32, #tpu.memory_space<vmem>>, vector<1x8x128xf32>,
    %104 = vector.shape_cast %98 : vector<1x128xf32> to vector<1x128xf32>
    %105 = vector.broadcast %104 : vector<1x128xf32> to vector<8x128xf32>
    %c0_60 = arith.constant 0 : index
    %c0_61 = arith.constant 0 : index
    %c0_62 = arith.constant 0 : index
    %106 = vector.load %arg7[%c0_60, %c0_61, %c0_62] : memref<1x8x128xf32, #tpu.memory_space<vmem>>, vector<1x8x128xf32>
    %107 = vector.shape_cast %106 : vector<1x8x128xf32> to vector<8x128xf32>
    %108 = vector.shape_cast %105 : vector<8x128xf32> to vector<1x8x128xf32>
    tpu.vector_store %arg7[%c0_60, %c0_61, %c0_62], %108 {strides = array<i32>} : memref<1x8x128xf32, #tpu.memory_space<vmem>>, vector<1x8x128xf32>,
    return
  }
  func.func @transform_0(%arg0: i32) -> i32 {
    %c0_i32 = arith.constant 0 : i32
    %c0_i32_0 = arith.constant 0 : i32
    return %c0_i32 : i32
  }
  func.func @transform_1(%arg0: i32) -> (i32, i32, i32) {
    %c0_i32 = arith.constant 0 : i32
    %c0_i32_0 = arith.constant 0 : i32
    %c0_i32_1 = arith.constant 0 : i32
    return %arg0, %c0_i32, %c0_i32_0 : i32, i32, i32
  }
  func.func @transform_2(%arg0: i32) -> (i32, i32, i32) {
    %c0_i32 = arith.constant 0 : i32
    %c0_i32_0 = arith.constant 0 : i32
    %c0_i32_1 = arith.constant 0 : i32
    %c0_i32_2 = arith.constant 0 : i32
    return %c0_i32, %c0_i32_0, %c0_i32_1 : i32, i32, i32
  }
  func.func @transform_3(%arg0: i32) -> (i32, i32) {
    %c0_i32 = arith.constant 0 : i32
    %c0_i32_0 = arith.constant 0 : i32
    %c0_i32_1 = arith.constant 0 : i32
    return %c0_i32, %c0_i32_0 : i32, i32
  }
  func.func @transform_4(%arg0: i32) -> (i32, i32, i32) {
    %c0_i32 = arith.constant 0 : i32
    %c0_i32_0 = arith.constant 0 : i32
    %c0_i32_1 = arith.constant 0 : i32
    return %arg0, %c0_i32, %c0_i32_0 : i32, i32, i32
  }
  func.func @transform_5(%arg0: i32) -> (i32, i32, i32) {
    %c0_i32 = arith.constant 0 : i32
    %c0_i32_0 = arith.constant 0 : i32
    %c0_i32_1 = arith.constant 0 : i32
    return %arg0, %c0_i32, %c0_i32_0 : i32, i32, i32
  }
  func.func @transform_6(%arg0: i32) -> (i32, i32, i32) {
    %c0_i32 = arith.constant 0 : i32
    %c0_i32_0 = arith.constant 0 : i32
    %c0_i32_1 = arith.constant 0 : i32
    return %arg0, %c0_i32, %c0_i32_0 : i32, i32, i32
  }
}

module attributes {stable_mosaic.version = 11 : i64} {
  func.func @_fake_quant_kernel(%arg0: i32, %arg1: memref<3xf32, #tpu.memory_space<smem>>, %arg2: memref<1x288x128xf32, #tpu.memory_space<vmem>>, %arg3: memref<1x288x128xf32, #tpu.memory_space<vmem>>) attributes {dimension_semantics = [#tpu.dimension_semantics<parallel>], iteration_bounds = array<i64: 2>, scalar_prefetch = 0 : i64, scratch_operands = 0 : i64, tpu.core_type = #tpu.core_type<tc>, window_params = [{transform_indices = @transform_0, window_bounds = array<i64: 3>}, {transform_indices = @transform_1, window_bounds = array<i64: 1, 288, 128>}, {transform_indices = @transform_2, window_bounds = array<i64: 1, 288, 128>}]} {
    %c0 = arith.constant 0 : index
    %0 = memref.load %arg1[%c0] : memref<3xf32, #tpu.memory_space<smem>>
    %c1 = arith.constant 1 : index
    %1 = memref.load %arg1[%c1] : memref<3xf32, #tpu.memory_space<smem>>
    %c2 = arith.constant 2 : index
    %2 = memref.load %arg1[%c2] : memref<3xf32, #tpu.memory_space<smem>>
    %c0_0 = arith.constant 0 : index
    %c0_1 = arith.constant 0 : index
    %c0_2 = arith.constant 0 : index
    %3 = vector.load %arg2[%c0_0, %c0_1, %c0_2] : memref<1x288x128xf32, #tpu.memory_space<vmem>>, vector<1x288x128xf32>
    %4 = vector.broadcast %1 : f32 to vector<1x288x128xf32>
    %5 = arith.mulf %3, %4 : vector<1x288x128xf32>
    %6 = vector.broadcast %2 : f32 to vector<1x288x128xf32>
    %7 = arith.addf %6, %5 : vector<1x288x128xf32>
    %cst = arith.constant 0.000000e+00 : f32
    %cst_3 = arith.constant 2.550000e+02 : f32
    %8 = vector.broadcast %cst : f32 to vector<1x288x128xf32>
    %9 = arith.maximumf %8, %7 : vector<1x288x128xf32>
    %10 = vector.broadcast %cst_3 : f32 to vector<1x288x128xf32>
    %11 = arith.minimumf %10, %9 : vector<1x288x128xf32>
    %12 = math.roundeven %11 : vector<1x288x128xf32>
    %13 = vector.broadcast %2 : f32 to vector<1x288x128xf32>
    %14 = arith.subf %12, %13 : vector<1x288x128xf32>
    %15 = vector.broadcast %0 : f32 to vector<1x288x128xf32>
    %16 = arith.mulf %15, %14 : vector<1x288x128xf32>
    %c0_4 = arith.constant 0 : index
    %c0_5 = arith.constant 0 : index
    %c0_6 = arith.constant 0 : index
    %17 = vector.load %arg3[%c0_4, %c0_5, %c0_6] : memref<1x288x128xf32, #tpu.memory_space<vmem>>, vector<1x288x128xf32>
    tpu.vector_store %arg3[%c0_4, %c0_5, %c0_6], %16 {strides = array<i32>} : memref<1x288x128xf32, #tpu.memory_space<vmem>>, vector<1x288x128xf32>,
    return
  }
  func.func @transform_0(%arg0: i32) -> i32 {
    %c0_i32 = arith.constant 0 : i32
    %c0_i32_0 = arith.constant 0 : i32
    return %c0_i32 : i32
  }
  func.func @transform_1(%arg0: i32) -> (i32, i32, i32) {
    %c0_i32 = arith.constant 0 : i32
    %c0_i32_0 = arith.constant 0 : i32
    %c0_i32_1 = arith.constant 0 : i32
    return %arg0, %c0_i32, %c0_i32_0 : i32, i32, i32
  }
  func.func @transform_2(%arg0: i32) -> (i32, i32, i32) {
    %c0_i32 = arith.constant 0 : i32
    %c0_i32_0 = arith.constant 0 : i32
    %c0_i32_1 = arith.constant 0 : i32
    return %arg0, %c0_i32, %c0_i32_0 : i32, i32, i32
  }
}

module attributes {stable_mosaic.version = 11 : i64} {
  func.func @_qconv_kernel(%arg0: i32, %arg1: memref<1xf32, #tpu.memory_space<smem>>, %arg2: memref<1x326x4xbf16, #tpu.memory_space<vmem>>, %arg3: memref<9x4x128xbf16, #tpu.memory_space<vmem>>, %arg4: memref<1x128xf32, #tpu.memory_space<vmem>>, %arg5: memref<1x288x128xf32, #tpu.memory_space<vmem>>, %arg6: memref<1x8x128xf32, #tpu.memory_space<vmem>>, %arg7: memref<1x8x128xf32, #tpu.memory_space<vmem>>, %arg8: memref<326x4xf32, #tpu.memory_space<vmem>>) attributes {dimension_semantics = [#tpu.dimension_semantics<parallel>], iteration_bounds = array<i64: 2>, scalar_prefetch = 0 : i64, scratch_operands = 1 : i64, tpu.core_type = #tpu.core_type<tc>, window_params = [{transform_indices = @transform_0, window_bounds = array<i64: 1>}, {transform_indices = @transform_1, window_bounds = array<i64: 1, 326, 4>}, {pipeline_mode = #tpu.pipeline_mode<synchronous>, transform_indices = @transform_2, window_bounds = array<i64: 9, 4, 128>}, {pipeline_mode = #tpu.pipeline_mode<synchronous>, transform_indices = @transform_3, window_bounds = array<i64: 1, 128>}, {transform_indices = @transform_4, window_bounds = array<i64: 1, 288, 128>}, {transform_indices = @transform_5, window_bounds = array<i64: 1, 8, 128>}, {transform_indices = @transform_6, window_bounds = array<i64: 1, 8, 128>}]} {
    %c0 = arith.constant 0 : index
    %0 = memref.load %arg1[%c0] : memref<1xf32, #tpu.memory_space<smem>>
    %c0_0 = arith.constant 0 : index
    %c0_1 = arith.constant 0 : index
    %c0_2 = arith.constant 0 : index
    %1 = vector.load %arg2[%c0_0, %c0_1, %c0_2] : memref<1x326x4xbf16, #tpu.memory_space<vmem>>, vector<1x326x4xbf16>
    %2 = vector.shape_cast %1 : vector<1x326x4xbf16> to vector<326x4xbf16>
    %3 = arith.extf %2 : vector<326x4xbf16> to vector<326x4xf32>
    %c0_3 = arith.constant 0 : index
    %c0_4 = arith.constant 0 : index
    %4 = vector.load %arg8[%c0_3, %c0_4] : memref<326x4xf32, #tpu.memory_space<vmem>>, vector<326x4xf32>
    tpu.vector_store %arg8[%c0_3, %c0_4], %3 {strides = array<i32>} : memref<326x4xf32, #tpu.memory_space<vmem>>, vector<326x4xf32>,
    %cst = arith.constant 0.000000e+00 : f32
    %5 = vector.broadcast %cst : f32 to vector<288x128xf32>
    %c0_5 = arith.constant 0 : index
    %c0_6 = arith.constant 0 : index
    %6 = vector.load %arg8[%c0_5, %c0_6] : memref<326x4xf32, #tpu.memory_space<vmem>>, vector<288x4xf32>
    %7 = arith.truncf %6 : vector<288x4xf32> to vector<288x4xbf16>
    %c0_7 = arith.constant 0 : index
    %c0_8 = arith.constant 0 : index
    %c0_9 = arith.constant 0 : index
    %8 = vector.load %arg3[%c0_7, %c0_8, %c0_9] : memref<9x4x128xbf16, #tpu.memory_space<vmem>>, vector<1x4x128xbf16>
    %9 = vector.shape_cast %8 : vector<1x4x128xbf16> to vector<4x128xbf16>
    %cst_10 = arith.constant dense<0.000000e+00> : vector<288x128xf32>
    %10 = tpu.matmul %7, %9, %cst_10 {dimension_numbers = #tpu.dot_dimension_numbers<[1], [0], [0], [1], [0, 0, 1, 1], [], []>} : vector<288x4xbf16>, vector<4x128xbf16>, vector<288x128xf32> -> vector<288x128xf32>
    %11 = arith.addf %5, %10 : vector<288x128xf32>
    %c1 = arith.constant 1 : index
    %c0_11 = arith.constant 0 : index
    %12 = vector.load %arg8[%c1, %c0_11] : memref<326x4xf32, #tpu.memory_space<vmem>>, vector<288x4xf32>
    %13 = arith.truncf %12 : vector<288x4xf32> to vector<288x4xbf16>
    %c1_12 = arith.constant 1 : index
    %c0_13 = arith.constant 0 : index
    %c0_14 = arith.constant 0 : index
    %14 = vector.load %arg3[%c1_12, %c0_13, %c0_14] : memref<9x4x128xbf16, #tpu.memory_space<vmem>>, vector<1x4x128xbf16>
    %15 = vector.shape_cast %14 : vector<1x4x128xbf16> to vector<4x128xbf16>
    %cst_15 = arith.constant dense<0.000000e+00> : vector<288x128xf32>
    %16 = tpu.matmul %13, %15, %cst_15 {dimension_numbers = #tpu.dot_dimension_numbers<[1], [0], [0], [1], [0, 0, 1, 1], [], []>} : vector<288x4xbf16>, vector<4x128xbf16>, vector<288x128xf32> -> vector<288x128xf32>
    %17 = arith.addf %11, %16 : vector<288x128xf32>
    %c2 = arith.constant 2 : index
    %c0_16 = arith.constant 0 : index
    %18 = vector.load %arg8[%c2, %c0_16] : memref<326x4xf32, #tpu.memory_space<vmem>>, vector<288x4xf32>
    %19 = arith.truncf %18 : vector<288x4xf32> to vector<288x4xbf16>
    %c2_17 = arith.constant 2 : index
    %c0_18 = arith.constant 0 : index
    %c0_19 = arith.constant 0 : index
    %20 = vector.load %arg3[%c2_17, %c0_18, %c0_19] : memref<9x4x128xbf16, #tpu.memory_space<vmem>>, vector<1x4x128xbf16>
    %21 = vector.shape_cast %20 : vector<1x4x128xbf16> to vector<4x128xbf16>
    %cst_20 = arith.constant dense<0.000000e+00> : vector<288x128xf32>
    %22 = tpu.matmul %19, %21, %cst_20 {dimension_numbers = #tpu.dot_dimension_numbers<[1], [0], [0], [1], [0, 0, 1, 1], [], []>} : vector<288x4xbf16>, vector<4x128xbf16>, vector<288x128xf32> -> vector<288x128xf32>
    %23 = arith.addf %17, %22 : vector<288x128xf32>
    %c18 = arith.constant 18 : index
    %c0_21 = arith.constant 0 : index
    %24 = vector.load %arg8[%c18, %c0_21] : memref<326x4xf32, #tpu.memory_space<vmem>>, vector<288x4xf32>
    %25 = arith.truncf %24 : vector<288x4xf32> to vector<288x4xbf16>
    %c3 = arith.constant 3 : index
    %c0_22 = arith.constant 0 : index
    %c0_23 = arith.constant 0 : index
    %26 = vector.load %arg3[%c3, %c0_22, %c0_23] : memref<9x4x128xbf16, #tpu.memory_space<vmem>>, vector<1x4x128xbf16>
    %27 = vector.shape_cast %26 : vector<1x4x128xbf16> to vector<4x128xbf16>
    %cst_24 = arith.constant dense<0.000000e+00> : vector<288x128xf32>
    %28 = tpu.matmul %25, %27, %cst_24 {dimension_numbers = #tpu.dot_dimension_numbers<[1], [0], [0], [1], [0, 0, 1, 1], [], []>} : vector<288x4xbf16>, vector<4x128xbf16>, vector<288x128xf32> -> vector<288x128xf32>
    %29 = arith.addf %23, %28 : vector<288x128xf32>
    %c19 = arith.constant 19 : index
    %c0_25 = arith.constant 0 : index
    %30 = vector.load %arg8[%c19, %c0_25] : memref<326x4xf32, #tpu.memory_space<vmem>>, vector<288x4xf32>
    %31 = arith.truncf %30 : vector<288x4xf32> to vector<288x4xbf16>
    %c4 = arith.constant 4 : index
    %c0_26 = arith.constant 0 : index
    %c0_27 = arith.constant 0 : index
    %32 = vector.load %arg3[%c4, %c0_26, %c0_27] : memref<9x4x128xbf16, #tpu.memory_space<vmem>>, vector<1x4x128xbf16>
    %33 = vector.shape_cast %32 : vector<1x4x128xbf16> to vector<4x128xbf16>
    %cst_28 = arith.constant dense<0.000000e+00> : vector<288x128xf32>
    %34 = tpu.matmul %31, %33, %cst_28 {dimension_numbers = #tpu.dot_dimension_numbers<[1], [0], [0], [1], [0, 0, 1, 1], [], []>} : vector<288x4xbf16>, vector<4x128xbf16>, vector<288x128xf32> -> vector<288x128xf32>
    %35 = arith.addf %29, %34 : vector<288x128xf32>
    %c20 = arith.constant 20 : index
    %c0_29 = arith.constant 0 : index
    %36 = vector.load %arg8[%c20, %c0_29] : memref<326x4xf32, #tpu.memory_space<vmem>>, vector<288x4xf32>
    %37 = arith.truncf %36 : vector<288x4xf32> to vector<288x4xbf16>
    %c5 = arith.constant 5 : index
    %c0_30 = arith.constant 0 : index
    %c0_31 = arith.constant 0 : index
    %38 = vector.load %arg3[%c5, %c0_30, %c0_31] : memref<9x4x128xbf16, #tpu.memory_space<vmem>>, vector<1x4x128xbf16>
    %39 = vector.shape_cast %38 : vector<1x4x128xbf16> to vector<4x128xbf16>
    %cst_32 = arith.constant dense<0.000000e+00> : vector<288x128xf32>
    %40 = tpu.matmul %37, %39, %cst_32 {dimension_numbers = #tpu.dot_dimension_numbers<[1], [0], [0], [1], [0, 0, 1, 1], [], []>} : vector<288x4xbf16>, vector<4x128xbf16>, vector<288x128xf32> -> vector<288x128xf32>
    %41 = arith.addf %35, %40 : vector<288x128xf32>
    %c36 = arith.constant 36 : index
    %c0_33 = arith.constant 0 : index
    %42 = vector.load %arg8[%c36, %c0_33] : memref<326x4xf32, #tpu.memory_space<vmem>>, vector<288x4xf32>
    %43 = arith.truncf %42 : vector<288x4xf32> to vector<288x4xbf16>
    %c6 = arith.constant 6 : index
    %c0_34 = arith.constant 0 : index
    %c0_35 = arith.constant 0 : index
    %44 = vector.load %arg3[%c6, %c0_34, %c0_35] : memref<9x4x128xbf16, #tpu.memory_space<vmem>>, vector<1x4x128xbf16>
    %45 = vector.shape_cast %44 : vector<1x4x128xbf16> to vector<4x128xbf16>
    %cst_36 = arith.constant dense<0.000000e+00> : vector<288x128xf32>
    %46 = tpu.matmul %43, %45, %cst_36 {dimension_numbers = #tpu.dot_dimension_numbers<[1], [0], [0], [1], [0, 0, 1, 1], [], []>} : vector<288x4xbf16>, vector<4x128xbf16>, vector<288x128xf32> -> vector<288x128xf32>
    %47 = arith.addf %41, %46 : vector<288x128xf32>
    %c37 = arith.constant 37 : index
    %c0_37 = arith.constant 0 : index
    %48 = vector.load %arg8[%c37, %c0_37] : memref<326x4xf32, #tpu.memory_space<vmem>>, vector<288x4xf32>
    %49 = arith.truncf %48 : vector<288x4xf32> to vector<288x4xbf16>
    %c7 = arith.constant 7 : index
    %c0_38 = arith.constant 0 : index
    %c0_39 = arith.constant 0 : index
    %50 = vector.load %arg3[%c7, %c0_38, %c0_39] : memref<9x4x128xbf16, #tpu.memory_space<vmem>>, vector<1x4x128xbf16>
    %51 = vector.shape_cast %50 : vector<1x4x128xbf16> to vector<4x128xbf16>
    %cst_40 = arith.constant dense<0.000000e+00> : vector<288x128xf32>
    %52 = tpu.matmul %49, %51, %cst_40 {dimension_numbers = #tpu.dot_dimension_numbers<[1], [0], [0], [1], [0, 0, 1, 1], [], []>} : vector<288x4xbf16>, vector<4x128xbf16>, vector<288x128xf32> -> vector<288x128xf32>
    %53 = arith.addf %47, %52 : vector<288x128xf32>
    %c38 = arith.constant 38 : index
    %c0_41 = arith.constant 0 : index
    %54 = vector.load %arg8[%c38, %c0_41] : memref<326x4xf32, #tpu.memory_space<vmem>>, vector<288x4xf32>
    %55 = arith.truncf %54 : vector<288x4xf32> to vector<288x4xbf16>
    %c8 = arith.constant 8 : index
    %c0_42 = arith.constant 0 : index
    %c0_43 = arith.constant 0 : index
    %56 = vector.load %arg3[%c8, %c0_42, %c0_43] : memref<9x4x128xbf16, #tpu.memory_space<vmem>>, vector<1x4x128xbf16>
    %57 = vector.shape_cast %56 : vector<1x4x128xbf16> to vector<4x128xbf16>
    %cst_44 = arith.constant dense<0.000000e+00> : vector<288x128xf32>
    %58 = tpu.matmul %55, %57, %cst_44 {dimension_numbers = #tpu.dot_dimension_numbers<[1], [0], [0], [1], [0, 0, 1, 1], [], []>} : vector<288x4xbf16>, vector<4x128xbf16>, vector<288x128xf32> -> vector<288x128xf32>
    %59 = arith.addf %53, %58 : vector<288x128xf32>
    %60 = vector.broadcast %0 : f32 to vector<288x128xf32>
    %61 = arith.mulf %60, %59 : vector<288x128xf32>
    %c0_45 = arith.constant 0 : index
    %c0_46 = arith.constant 0 : index
    %62 = vector.load %arg4[%c0_45, %c0_46] : memref<1x128xf32, #tpu.memory_space<vmem>>, vector<1x128xf32>
    %63 = vector.broadcast %62 : vector<1x128xf32> to vector<288x128xf32>
    %64 = arith.addf %61, %63 : vector<288x128xf32>
    %c0_47 = arith.constant 0 : index
    %c0_48 = arith.constant 0 : index
    %c0_49 = arith.constant 0 : index
    %65 = vector.load %arg5[%c0_47, %c0_48, %c0_49] : memref<1x288x128xf32, #tpu.memory_space<vmem>>, vector<1x288x128xf32>
    %66 = vector.shape_cast %65 : vector<1x288x128xf32> to vector<288x128xf32>
    %67 = vector.shape_cast %64 : vector<288x128xf32> to vector<1x288x128xf32>
    tpu.vector_store %arg5[%c0_47, %c0_48, %c0_49], %67 {strides = array<i32>} : memref<1x288x128xf32, #tpu.memory_space<vmem>>, vector<1x288x128xf32>,
    %68 = tpu.iota {dimensions = array<i32: 0>} : vector<288x1xi32>
    %c18_i32 = arith.constant 18 : i32
    %c0_i32 = arith.constant 0 : i32
    %69 = arith.cmpi eq, %c18_i32, %c0_i32 : i32
    %c1_i32 = arith.constant 1 : i32
    %70 = arith.select %69, %c1_i32, %c18_i32 : i32
    %71 = vector.broadcast %70 : i32 to vector<288x1xi32>
    %72 = arith.remsi %68, %71 : vector<288x1xi32>
    %c0_i32_50 = arith.constant 0 : i32
    %73 = vector.broadcast %c0_i32_50 : i32 to vector<288x1xi32>
    %74 = arith.cmpi ne, %72, %73 : vector<288x1xi32>
    %c0_i32_51 = arith.constant 0 : i32
    %75 = vector.broadcast %c0_i32_51 : i32 to vector<288x1xi32>
    %76 = arith.cmpi slt, %72, %75 : vector<288x1xi32>
    %c0_i32_52 = arith.constant 0 : i32
    %77 = arith.cmpi slt, %70, %c0_i32_52 : i32
    %78 = vector.broadcast %77 : i1 to vector<288x1xi1>
    %79 = vector.broadcast %78 : vector<288x1xi1> to vector<288x1xi1>
    %80 = arith.xori %76, %79 : vector<288x1xi1>
    %81 = arith.andi %80, %74 : vector<288x1xi1>
    %82 = vector.broadcast %70 : i32 to vector<288x1xi32>
    %83 = arith.addi %72, %82 : vector<288x1xi32>
    %84 = arith.select %81, %83, %72 : vector<288x1xi1>, vector<288x1xi32>
    %c16_i32 = arith.constant 16 : i32
    %85 = vector.broadcast %c16_i32 : i32 to vector<288x1xi32>
    %86 = arith.cmpi slt, %84, %85 : vector<288x1xi32>
    %cst_53 = arith.constant 0xFF800000 : f32
    %87 = vector.shape_cast %86 : vector<288x1xi1> to vector<288x1xi1>
    %88 = vector.broadcast %87 : vector<288x1xi1> to vector<288x128xi1>
    %89 = vector.broadcast %cst_53 : f32 to vector<288x128xf32>
    %90 = arith.select %88, %64, %89 : vector<288x128xi1>, vector<288x128xf32>
    %cst_54 = arith.constant dense<0xFF800000> : vector<128xf32>
    %91 = vector.multi_reduction <maximumf>, %90, %cst_54 [0] : vector<288x128xf32> to vector<128xf32>
    %92 = vector.shape_cast %91 : vector<128xf32> to vector<1x128xf32>
    %cst_55 = arith.constant 0x7F800000 : f32
    %93 = vector.shape_cast %86 : vector<288x1xi1> to vector<288x1xi1>
    %94 = vector.broadcast %93 : vector<288x1xi1> to vector<288x128xi1>
    %95 = vector.broadcast %cst_55 : f32 to vector<288x128xf32>
    %96 = arith.select %94, %64, %95 : vector<288x128xi1>, vector<288x128xf32>
    %cst_56 = arith.constant dense<0x7F800000> : vector<128xf32>
    %97 = vector.multi_reduction <minimumf>, %96, %cst_56 [0] : vector<288x128xf32> to vector<128xf32>
    %98 = vector.shape_cast %97 : vector<128xf32> to vector<1x128xf32>
    %99 = vector.shape_cast %92 : vector<1x128xf32> to vector<1x128xf32>
    %100 = vector.broadcast %99 : vector<1x128xf32> to vector<8x128xf32>
    %c0_57 = arith.constant 0 : index
    %c0_58 = arith.constant 0 : index
    %c0_59 = arith.constant 0 : index
    %101 = vector.load %arg6[%c0_57, %c0_58, %c0_59] : memref<1x8x128xf32, #tpu.memory_space<vmem>>, vector<1x8x128xf32>
    %102 = vector.shape_cast %101 : vector<1x8x128xf32> to vector<8x128xf32>
    %103 = vector.shape_cast %100 : vector<8x128xf32> to vector<1x8x128xf32>
    tpu.vector_store %arg6[%c0_57, %c0_58, %c0_59], %103 {strides = array<i32>} : memref<1x8x128xf32, #tpu.memory_space<vmem>>, vector<1x8x128xf32>,
    %104 = vector.shape_cast %98 : vector<1x128xf32> to vector<1x128xf32>
    %105 = vector.broadcast %104 : vector<1x128xf32> to vector<8x128xf32>
    %c0_60 = arith.constant 0 : index
    %c0_61 = arith.constant 0 : index
    %c0_62 = arith.constant 0 : index
    %106 = vector.load %arg7[%c0_60, %c0_61, %c0_62] : memref<1x8x128xf32, #tpu.memory_space<vmem>>, vector<1x8x128xf32>
    %107 = vector.shape_cast %106 : vector<1x8x128xf32> to vector<8x128xf32>
    %108 = vector.shape_cast %105 : vector<8x128xf32> to vector<1x8x128xf32>
    tpu.vector_store %arg7[%c0_60, %c0_61, %c0_62], %108 {strides = array<i32>} : memref<1x8x128xf32, #tpu.memory_space<vmem>>, vector<1x8x128xf32>,
    return
  }
  func.func @transform_0(%arg0: i32) -> i32 {
    %c0_i32 = arith.constant 0 : i32
    %c0_i32_0 = arith.constant 0 : i32
    return %c0_i32 : i32
  }
  func.func @transform_1(%arg0: i32) -> (i32, i32, i32) {
    %c0_i32 = arith.constant 0 : i32
    %c0_i32_0 = arith.constant 0 : i32
    %c0_i32_1 = arith.constant 0 : i32
    return %arg0, %c0_i32, %c0_i32_0 : i32, i32, i32
  }
  func.func @transform_2(%arg0: i32) -> (i32, i32, i32) {
    %c0_i32 = arith.constant 0 : i32
    %c0_i32_0 = arith.constant 0 : i32
    %c0_i32_1 = arith.constant 0 : i32
    %c0_i32_2 = arith.constant 0 : i32
    return %c0_i32, %c0_i32_0, %c0_i32_1 : i32, i32, i32
  }
  func.func @transform_3(%arg0: i32) -> (i32, i32) {
    %c0_i32 = arith.constant 0 : i32
    %c0_i32_0 = arith.constant 0 : i32
    %c0_i32_1 = arith.constant 0 : i32
    return %c0_i32, %c0_i32_0 : i32, i32
  }
  func.func @transform_4(%arg0: i32) -> (i32, i32, i32) {
    %c0_i32 = arith.constant 0 : i32
    %c0_i32_0 = arith.constant 0 : i32
    %c0_i32_1 = arith.constant 0 : i32
    return %arg0, %c0_i32, %c0_i32_0 : i32, i32, i32
  }
  func.func @transform_5(%arg0: i32) -> (i32, i32, i32) {
    %c0_i32 = arith.constant 0 : i32
    %c0_i32_0 = arith.constant 0 : i32
    %c0_i32_1 = arith.constant 0 : i32
    return %arg0, %c0_i32, %c0_i32_0 : i32, i32, i32
  }
  func.func @transform_6(%arg0: i32) -> (i32, i32, i32) {
    %c0_i32 = arith.constant 0 : i32
    %c0_i32_0 = arith.constant 0 : i32
    %c0_i32_1 = arith.constant 0 : i32
    return %arg0, %c0_i32, %c0_i32_0 : i32, i32, i32
  }
}

module attributes {stable_mosaic.version = 11 : i64} {
  func.func @_fake_quant_kernel(%arg0: i32, %arg1: memref<3xf32, #tpu.memory_space<smem>>, %arg2: memref<1x288x128xf32, #tpu.memory_space<vmem>>, %arg3: memref<1x288x128xf32, #tpu.memory_space<vmem>>) attributes {dimension_semantics = [#tpu.dimension_semantics<parallel>], iteration_bounds = array<i64: 2>, scalar_prefetch = 0 : i64, scratch_operands = 0 : i64, tpu.core_type = #tpu.core_type<tc>, window_params = [{transform_indices = @transform_0, window_bounds = array<i64: 3>}, {transform_indices = @transform_1, window_bounds = array<i64: 1, 288, 128>}, {transform_indices = @transform_2, window_bounds = array<i64: 1, 288, 128>}]} {
    %c0 = arith.constant 0 : index
    %0 = memref.load %arg1[%c0] : memref<3xf32, #tpu.memory_space<smem>>
    %c1 = arith.constant 1 : index
    %1 = memref.load %arg1[%c1] : memref<3xf32, #tpu.memory_space<smem>>
    %c2 = arith.constant 2 : index
    %2 = memref.load %arg1[%c2] : memref<3xf32, #tpu.memory_space<smem>>
    %c0_0 = arith.constant 0 : index
    %c0_1 = arith.constant 0 : index
    %c0_2 = arith.constant 0 : index
    %3 = vector.load %arg2[%c0_0, %c0_1, %c0_2] : memref<1x288x128xf32, #tpu.memory_space<vmem>>, vector<1x288x128xf32>
    %4 = vector.broadcast %1 : f32 to vector<1x288x128xf32>
    %5 = arith.mulf %3, %4 : vector<1x288x128xf32>
    %6 = vector.broadcast %2 : f32 to vector<1x288x128xf32>
    %7 = arith.addf %6, %5 : vector<1x288x128xf32>
    %cst = arith.constant 0.000000e+00 : f32
    %cst_3 = arith.constant 2.550000e+02 : f32
    %8 = vector.broadcast %cst : f32 to vector<1x288x128xf32>
    %9 = arith.maximumf %8, %7 : vector<1x288x128xf32>
    %10 = vector.broadcast %cst_3 : f32 to vector<1x288x128xf32>
    %11 = arith.minimumf %10, %9 : vector<1x288x128xf32>
    %12 = math.roundeven %11 : vector<1x288x128xf32>
    %13 = vector.broadcast %2 : f32 to vector<1x288x128xf32>
    %14 = arith.subf %12, %13 : vector<1x288x128xf32>
    %15 = vector.broadcast %0 : f32 to vector<1x288x128xf32>
    %16 = arith.mulf %15, %14 : vector<1x288x128xf32>
    %c0_4 = arith.constant 0 : index
    %c0_5 = arith.constant 0 : index
    %c0_6 = arith.constant 0 : index
    %17 = vector.load %arg3[%c0_4, %c0_5, %c0_6] : memref<1x288x128xf32, #tpu.memory_space<vmem>>, vector<1x288x128xf32>
    tpu.vector_store %arg3[%c0_4, %c0_5, %c0_6], %16 {strides = array<i32>} : memref<1x288x128xf32, #tpu.memory_space<vmem>>, vector<1x288x128xf32>,
    return
  }
  func.func @transform_0(%arg0: i32) -> i32 {
    %c0_i32 = arith.constant 0 : i32
    %c0_i32_0 = arith.constant 0 : i32
    return %c0_i32 : i32
  }
  func.func @transform_1(%arg0: i32) -> (i32, i32, i32) {
    %c0_i32 = arith.constant 0 : i32
    %c0_i32_0 = arith.constant 0 : i32
    %c0_i32_1 = arith.constant 0 : i32
    return %arg0, %c0_i32, %c0_i32_0 : i32, i32, i32
  }
  func.func @transform_2(%arg0: i32) -> (i32, i32, i32) {
    %c0_i32 = arith.constant 0 : i32
    %c0_i32_0 = arith.constant 0 : i32
    %c0_i32_1 = arith.constant 0 : i32
    return %arg0, %c0_i32, %c0_i32_0 : i32, i32, i32
  }
}

</mosaic_0001>

<bundles_post_ra>
// kernel: qconv2d_forward.3
= control target key start
LH: loop header
LB: loop body
LE: loop exit
PB: predicated region body
PF: predicated region fallthrough
CT: control target
= control target key end

     0   :  { %7 = vsyncpa [#allocation3], 0  ;;  %s919_s9 = smov 0   ;;  %s1498_s0 = inlined_call_operand.vmem [shape: f32[3], index: 0, kind: input, shape index: {}]   ;;  %s1499_s1 = inlined_call_operand.vmem [shape: f32[2,288,128], index: 1, kind: input, shape index: {}, may-alias: {1,2}]   ;;  %s1500_s2 = inlined_call_operand.vmem [shape: f32[2,288,128], index: 2, kind: output, shape index: {}, may-alias: {1,2}]  }
   0x1 LB: > { %s555_s10 = sadd.s32 4294967295, %s901_s9   ;;  %p557_p0 = scmp.ge.s32.totalorder %s901_s9, 1  ;;  %s901_s9 = sphi %s919_s9, %s13_s9  }
   0x2   : > { %p91_p1 = scmp.lt.s32.totalorder %s901_s9, 3  ;;  %s104_s13 = sshll.u32 %s1498_s0, 4  ;;  %s105_s13 = int_to_ptr.vmem [resolvable:$true] %s104_s13 }
   0x3   : > { %p865_p3 = scmp.eq.s32.totalorder %s555_s10, 0  ;;  %s876_s15 = scalar_lea.vmem %s105_s13, 16 }
   0x4   : > { %p930_p2 = pnand %p557_p0, %p91_p1  ;;  %p877_p6 = scmp.ne.s32.totalorder %s105_s13, %s876_s15 }
   0x5   : > { %p884_p10 = scmp.lt.s32.totalorder %s105_s13, %s105_s13  ;;  %p885_p11 = scmp.lt.s32.totalorder %s876_s15, %s876_s15 }
   0x6   : > { %p861_p4 = pneg %p930_p2 }
   0x7   : > { %p886_p12 = por %p885_p11, %p884_p10 }
   0x8   : > { %p862_p5 = pnand %p865_p3, %p861_p4 }
   0xa   : > { %p878_p7 = pneg %p862_p5 }
   0xc   : > { %p879_p8 = pnand %p878_p7, %p877_p6 }
   0xe   : > { %p880_p9 = pneg %p879_p8 }
  0x10   : > { %p887_p13 = pnand %p886_p12, %p880_p9 }
  0x12   : > { %890 = shalt.err (!%p887_p13)
}
  0x13   : > { %s903_s16 = smov [#allocation2]   ;;  %125 = sbr.rel (%p930_p2) target bundleno = 172 (0xac), region = 28 }
  0x14   : > { %864 = dma.vmem_to_smem (!%p862_p5), %s105_s13, 16, %s903_s16, [#allocation3]  }
  0x18   : > { %896 = dma.done.wait (%p865_p3), [#allocation3], 16  }
  0x19   : > { %898 = vsyncadd (%p865_p3), [#allocation3], 4294967280 }
  0x1a   : > { %131 = sfence }
  0x1b   : > { %p148_p0 = scmp.lt.s32.totalorder %s555_s10, 1  ;;  %s158_s17 = sld [smem:[#allocation2]] }
  0x1c   : > { %s564_s18 = sld [smem:[#allocation2 + $0x1]] }
  0x1d   : > { %s1571_s10 = smov (!%p148_p0, %s555_s10), 1  ;;  %s565_s19 = sld [smem:[#allocation2 + $0x2]] }
  0x1e   : > { %s568_s20 = smul.u32 288, %s1571_s10 }
  0x20   : > { %s949_s23 = scalar_lea.vmem %s1499_s1, %s568_s20  ;;  %s1050_s26 = scalar_lea.vmem %s1500_s2, %s568_s20 }
  0x21   : > { %v161_v0 = vld [vmem:[%s949_s23] sm:$0xff]  ;;  %v162_v1 = vld [vmem:[%s949_s23 + $0x8] sm:$0xff]  ;;  %v163_v2 = vld [vmem:[%s949_s23 + $0x10] sm:$0xff]  ;;  %v960_v8 = vstv %s158_s17 }
  0x22   : > { %v954_v3 = vstv %s564_s18  ;;  %v164_v4 = vld [vmem:[%s949_s23 + $0x18] sm:$0xff]  ;;  %v165_v5 = vld [vmem:[%s949_s23 + $0x20] sm:$0xff]  ;;  %v166_v6 = vld [vmem:[%s949_s23 + $0x28] sm:$0xff] }
  0x23   : > { %v198_v7 = vmul.f32 %v954_v3, %v161_v0  ;;  %v199_v9 = vmul.f32 %v954_v3, %v162_v1  ;;  %v200_v10 = vmul.f32 %v954_v3, %v163_v2  ;;  %v167_v11 = vld [vmem:[%s949_s23 + $0x30] sm:$0xff]  ;;  %v168_v12 = vld [vmem:[%s949_s23 + $0x38] sm:$0xff]  ;;  %v966_v13 = vstv %s565_s19  ;;  %v169_v21 = vld [vmem:[%s949_s23 + $0x40] sm:$0xff] }
  0x24   : > { %v201_v14 = vmul.f32 %v954_v3, %v164_v4  ;;  %v202_v15 = vmul.f32 %v954_v3, %v165_v5  ;;  %v203_v16 = vmul.f32 %v954_v3, %v166_v6  ;;  %v204_v20 = vmul.f32 %v954_v3, %v167_v11  ;;  %v170_v26 = vld [vmem:[%s949_s23 + $0x48] sm:$0xff]  ;;  %v1121_v55 = vld [vmem:[%s949_s23 + $0x100] sm:$0xff]  ;;  %v1134_v61 = vld [vmem:[%s949_s23 + $0x118] sm:$0xff] }
  0x25   : > { %v235_v17 = vadd.f32 %v966_v13, %v198_v7  ;;  %v236_v18 = vadd.f32 %v966_v13, %v199_v9  ;;  %v237_v19 = vadd.f32 %v966_v13, %v200_v10  ;;  %v205_v25 = vmul.f32 %v954_v3, %v168_v12 }
  0x26   : > { %v238_v22 = vadd.f32 %v966_v13, %v201_v14  ;;  %v239_v23 = vadd.f32 %v966_v13, %v202_v15  ;;  %v240_v24 = vadd.f32 %v966_v13, %v203_v16  ;;  %v982_v30 = vadd.f32 %v966_v13, %v204_v20 }
  0x27   : > { %v271_v27 = vmax.f32 %v235_v17, 0.0  ;;  %v272_v28 = vmax.f32 %v236_v18, 0.0  ;;  %v273_v29 = vmax.f32 %v237_v19, 0.0  ;;  %v985_v34 = vadd.f32 %v966_v13, %v205_v25  ;;  %v171_v18 = vld [vmem:[%s949_s23 + $0x50] sm:$0xff]  ;;  %v1059_v25 = vld [vmem:[%s949_s23 + $0x68] sm:$0xff] }
  0x28   : > { %v274_v31 = vmax.f32 %v238_v22, 0.0  ;;  %v275_v32 = vmax.f32 %v239_v23, 0.0  ;;  %v276_v33 = vmax.f32 %v240_v24, 0.0  ;;  %v990_v38 = vmul.f32 %v954_v3, %v169_v21  ;;  %v1053_v23 = vld [vmem:[%s949_s23 + $0x58] sm:$0xff]  ;;  %v1056_v24 = vld [vmem:[%s949_s23 + $0x60] sm:$0xff] }
  0x29   : > { %v307_v35 = vmin.f32 %v271_v27, 255.0  ;;  %v308_v36 = vmin.f32 %v272_v28, 255.0  ;;  %v987_v37 = vmin.f32 %v273_v29, 255.0  ;;  %v999_v42 = vmul.f32 %v954_v3, %v170_v26  ;;  %v1062_v26 = vld [vmem:[%s949_s23 + $0x70] sm:$0xff]  ;;  %v1065_v27 = vld [vmem:[%s949_s23 + $0x78] sm:$0xff]  ;;  %v1068_v28 = vld [vmem:[%s949_s23 + $0x80] sm:$0xff] }
  0x2a   : > { %v992_v39 = vmin.f32 %v274_v31, 255.0  ;;  %v994_v40 = vmin.f32 %v275_v32, 255.0  ;;  %v996_v41 = vmin.f32 %v276_v33, 255.0  ;;  %v1071_v29 = vld [vmem:[%s949_s23 + $0x88] sm:$0xff]  ;;  %v1074_v31 = vld [vmem:[%s949_s23 + $0x90] sm:$0xff]  ;;  %v1077_v32 = vld [vmem:[%s949_s23 + $0x98] sm:$0xff] }
  0x2b   : > { %v569_v43 = vand.u32 2147483647, %v307_v35  ;;  %v571_v44 = vcvt.f32.s32 %v307_v35  ;;  %v574_v45 = vand.u32 2147483648, %v307_v35  ;;  %v579_v46 = vcvt.f32.s32 %v308_v36  ;;  %v1080_v33 = vld [vmem:[%s949_s23 + $0xa0] sm:$0xff] }
  0x2c   : > { %v577_v47 = vand.u32 2147483647, %v308_v36  ;;  %v582_v48 = vand.u32 2147483648, %v308_v36  ;;  %v587_v49 = vcvt.f32.s32 %v987_v37  ;;  %v595_v50 = vcvt.f32.s32 %v992_v39 }
  0x2d   : > { %vm1003_vm0 = vcmp.lt.f32.partialorder %v569_v43, 8388608.0  ;;  %v572_v52 = vcvt.s32.f32 %v571_v44  ;;  %v580_v53 = vcvt.s32.f32 %v579_v46  ;;  %v585_v54 = vand.u32 2147483647, %v987_v37  ;;  %v1092_v43 = vld [vmem:[%s949_s23 + $0xc0] sm:$0xff]  ;;  %v1095_v44 = vld [vmem:[%s949_s23 + $0xc8] sm:$0xff]  ;;  %v1101_v46 = vld [vmem:[%s949_s23 + $0xd8] sm:$0xff] }
  0x2e   : > { %vm1008_vm1 = vcmp.lt.f32.partialorder %v577_v47, 8388608.0  ;;  %v588_v56 = vcvt.s32.f32 %v587_v49  ;;  %v590_v57 = vand.u32 2147483648, %v987_v37  ;;  %v593_v58 = vand.u32 2147483647, %v992_v39  ;;  %v1104_v47 = vld [vmem:[%s949_s23 + $0xe0] sm:$0xff] }
  0x2f   : > { %v573_v59 = vand.u32 2147483647, %v572_v52  ;;  %v581_v60 = vand.u32 2147483647, %v580_v53  ;;  %vm1014_vm2 = vcmp.lt.f32.partialorder %v585_v54, 8388608.0  ;;  %v596_v62 = vcvt.s32.f32 %v595_v50  ;;  %v1115_v53 = vld [vmem:[%s949_s23 + $0xf0] sm:$0xff] }
  0x30   : > { %v589_v63 = vand.u32 2147483647, %v588_v56  ;;  %vm1018_vm3 = vcmp.lt.f32.partialorder %v593_v58, 8388608.0  ;;  %v598_v1 = vand.u32 2147483648, %v992_v39  ;;  %v601_v2 = vand.u32 2147483647, %v994_v40 }
  0x31   : > { %v575_v4 = vor.u32 %v574_v45, %v573_v59  ;;  %v583_v5 = vor.u32 %v582_v48, %v581_v60  ;;  %v597_v6 = vand.u32 2147483647, %v596_v62  ;;  %v603_v7 = vcvt.f32.s32 %v994_v40  ;;  %v1098_v45 = vld [vmem:[%s949_s23 + $0xd0] sm:$0xff]  ;;  %v1107_v48 = vld [vmem:[%s949_s23 + $0xe8] sm:$0xff]  ;;  %v1118_v54 = vld [vmem:[%s949_s23 + $0xf8] sm:$0xff] }
  0x32   : > { %v591_v9 = vor.u32 %v590_v57, %v589_v63  ;;  %vm1025_vm4 = vcmp.lt.f32.partialorder %v601_v2, 8388608.0  ;;  %v606_v11 = vand.u32 2147483648, %v994_v40  ;;  %v609_v12 = vand.u32 2147483647, %v996_v41  ;;  %v1128_v59 = vld [vmem:[%s949_s23 + $0x108] sm:$0xff]  ;;  %v1131_v60 = vld [vmem:[%s949_s23 + $0x110] sm:$0xff] }
  0x33   : > { %v576_v14 = vsel %vm1003_vm0, %v575_v4, %v307_v35  ;;  %v584_v15 = vsel %vm1008_vm1, %v583_v5, %v308_v36  ;;  %v599_v16 = vor.u32 %v598_v1, %v597_v6  ;;  %v604_v17 = vcvt.s32.f32 %v603_v7  ;;  %v1083_v35 = vld [vmem:[%s949_s23 + $0xa8] sm:$0xff]  ;;  %v1086_v36 = vld [vmem:[%s949_s23 + $0xb0] sm:$0xff] }
  0x34   : > { %v379_v19 = vsub.f32 %v576_v14, %v966_v13  ;;  %v380_v20 = vsub.f32 %v584_v15, %v966_v13  ;;  %v592_v21 = vsel %vm1014_vm2, %v591_v9, %v987_v37  ;;  %vm1041_vm5 = vcmp.lt.f32.partialorder %v609_v12, 8388608.0  ;;  %v1089_v37 = vld [vmem:[%s949_s23 + $0xb8] sm:$0xff] }
  0x35   : > { %v381_v49 = vsub.f32 %v592_v21, %v966_v13  ;;  %v600_v50 = vsel %vm1018_vm3, %v599_v16, %v992_v39  ;;  %v605_v51 = vand.u32 2147483647, %v604_v17  ;;  %v611_v52 = vcvt.f32.s32 %v996_v41 }
  0x36   : > { %v416_v56 = vmul.f32 %v960_v8, %v379_v19  ;;  %v417_v57 = vmul.f32 %v960_v8, %v380_v20  ;;  %v382_v58 = vsub.f32 %v600_v50, %v966_v13  ;;  %v614_v39 = vand.u32 2147483648, %v996_v41 }
  0x37   : > { %v418_v62 = vmul.f32 %v960_v8, %v381_v49  ;;  %v607_v63 = vor.u32 %v606_v11, %v605_v51  ;;  %v612_v0 = vcvt.s32.f32 %v611_v52  ;;  %v277_v1 = vmax.f32 %v982_v30, 0.0 }
  0x38   : > { %452 = vst [vmem:[%s1050_s26] sm:$0xff] %v416_v56  ;;  %453 = vst [vmem:[%s1050_s26 + $0x8] sm:$0xff] %v417_v57  ;;  %v419_v2 = vmul.f32 %v960_v8, %v382_v58  ;;  %v278_v4 = vmax.f32 %v985_v34, 0.0  ;;  %v243_v5 = vadd.f32 %v966_v13, %v990_v38  ;;  %v244_v6 = vadd.f32 %v966_v13, %v999_v42 }
  0x39   : > { %454 = vst [vmem:[%s1050_s26 + $0x10] sm:$0xff] %v418_v62  ;;  %v608_v7 = vsel %vm1025_vm4, %v607_v63, %v994_v40  ;;  %v613_v9 = vand.u32 2147483647, %v612_v0  ;;  %v313_v11 = vmin.f32 %v277_v1, 255.0  ;;  %v208_v30 = vmul.f32 %v954_v3, %v171_v18 }
  0x3a   : > { %455 = vst [vmem:[%s1050_s26 + $0x18] sm:$0xff] %v419_v2  ;;  %v383_v12 = vsub.f32 %v608_v7, %v966_v13  ;;  %v314_v34 = vmin.f32 %v278_v4, 255.0  ;;  %v279_v14 = vmax.f32 %v243_v5, 0.0  ;;  %v280_v15 = vmax.f32 %v244_v6, 0.0 }
  0x3b   : > { %v615_v38 = vor.u32 %v614_v39, %v613_v9  ;;  %v617_v16 = vand.u32 2147483647, %v313_v11  ;;  %v619_v17 = vcvt.f32.s32 %v313_v11  ;;  %v622_v42 = vand.u32 2147483648, %v313_v11 }
  0x3c   : > { %v420_v19 = vmul.f32 %v960_v8, %v383_v12  ;;  %v625_v20 = vand.u32 2147483647, %v314_v34  ;;  %v627_v10 = vcvt.f32.s32 %v314_v34  ;;  %v630_v40 = vand.u32 2147483648, %v314_v34 }
  0x3d   : > { %v616_v18 = vsel %vm1041_vm5, %v615_v38, %v996_v41  ;;  %vm1157_vm6 = vcmp.lt.f32.partialorder %v617_v16, 8388608.0  ;;  %v620_v49 = vcvt.s32.f32 %v619_v17  ;;  %v315_v50 = vmin.f32 %v279_v14, 255.0 }
  0x3e   : > { %456 = vst [vmem:[%s1050_s26 + $0x20] sm:$0xff] %v420_v19  ;;  %v384_v51 = vsub.f32 %v616_v18, %v966_v13  ;;  %vm1163_vm7 = vcmp.lt.f32.partialorder %v625_v20, 8388608.0  ;;  %v628_v56 = vcvt.s32.f32 %v627_v10  ;;  %v316_v57 = vmin.f32 %v280_v15, 255.0 }
  0x3f   : > { %v621_v58 = vand.u32 2147483647, %v620_v49  ;;  %v633_v39 = vand.u32 2147483647, %v315_v50  ;;  %v635_v22 = vcvt.f32.s32 %v315_v50  ;;  %v638_v41 = vand.u32 2147483648, %v315_v50 }
  0x40   : > { %v421_v62 = vmul.f32 %v960_v8, %v384_v51  ;;  %v629_v63 = vand.u32 2147483647, %v628_v56  ;;  %v641_v0 = vand.u32 2147483647, %v316_v57  ;;  %v643_v1 = vcvt.f32.s32 %v316_v57 }
  0x41   : > { %v623_v2 = vor.u32 %v622_v42, %v621_v58  ;;  %vm1168_vm8 = vcmp.lt.f32.partialorder %v633_v39, 8388608.0  ;;  %v636_v5 = vcvt.s32.f32 %v635_v22  ;;  %v646_v6 = vand.u32 2147483648, %v316_v57 }
  0x42   : > { %457 = vst [vmem:[%s1050_s26 + $0x28] sm:$0xff] %v421_v62  ;;  %v631_v7 = vor.u32 %v630_v40, %v629_v63  ;;  %vm1173_vm9 = vcmp.lt.f32.partialorder %v641_v0, 8388608.0  ;;  %v644_v12 = vcvt.s32.f32 %v643_v1  ;;  %v245_v14 = vadd.f32 %v966_v13, %v208_v30 }
  0x43   : > { %v624_v15 = vsel %vm1157_vm6, %v623_v2, %v313_v11  ;;  %v637_v38 = vand.u32 2147483647, %v636_v5  ;;  %v209_v16 = vmul.f32 %v954_v3, %v1053_v23  ;;  %v210_v17 = vmul.f32 %v954_v3, %v1056_v24 }
  0x44   : > { %v385_v42 = vsub.f32 %v624_v15, %v966_v13  ;;  %v632_v19 = vsel %vm1163_vm7, %v631_v7, %v314_v34  ;;  %v645_v20 = vand.u32 2147483647, %v644_v12  ;;  %v281_v10 = vmax.f32 %v245_v14, 0.0 }
  0x45   : > { %v386_v30 = vsub.f32 %v632_v19, %v966_v13  ;;  %v639_v40 = vor.u32 %v638_v41, %v637_v38  ;;  %v246_v11 = vadd.f32 %v966_v13, %v209_v16  ;;  %v247_v18 = vadd.f32 %v966_v13, %v210_v17 }
  0x46   : > { %v422_v23 = vmul.f32 %v960_v8, %v385_v42  ;;  %v647_v21 = vor.u32 %v646_v6, %v645_v20  ;;  %v317_v24 = vmin.f32 %v281_v10, 255.0  ;;  %v211_v49 = vmul.f32 %v954_v3, %v1059_v25 }
  0x47   : > { %v423_v51 = vmul.f32 %v960_v8, %v386_v30  ;;  %v640_v34 = vsel %vm1168_vm8, %v639_v40, %v315_v50  ;;  %v282_v52 = vmax.f32 %v246_v11, 0.0  ;;  %v283_v56 = vmax.f32 %v247_v18, 0.0 }
  0x48   : > { %458 = vst [vmem:[%s1050_s26 + $0x30] sm:$0xff] %v422_v23  ;;  %v387_v58 = vsub.f32 %v640_v34, %v966_v13  ;;  %v648_v39 = vsel %vm1173_vm9, %v647_v21, %v316_v57  ;;  %v649_v22 = vand.u32 2147483647, %v317_v24  ;;  %v651_v41 = vcvt.f32.s32 %v317_v24 }
  0x49   : > { %459 = vst [vmem:[%s1050_s26 + $0x38] sm:$0xff] %v423_v51  ;;  %v388_v62 = vsub.f32 %v648_v39, %v966_v13  ;;  %v654_v25 = vand.u32 2147483648, %v317_v24  ;;  %v318_v63 = vmin.f32 %v282_v52, 255.0  ;;  %v319_v0 = vmin.f32 %v283_v56, 255.0 }
  0x4a   : > { %v424_v50 = vmul.f32 %v960_v8, %v387_v58  ;;  %vm1203_vm10 = vcmp.lt.f32.partialorder %v649_v22, 8388608.0  ;;  %v652_v2 = vcvt.s32.f32 %v651_v41  ;;  %v248_v4 = vadd.f32 %v966_v13, %v211_v49 }
  0x4b   : > { %v425_v57 = vmul.f32 %v960_v8, %v388_v62  ;;  %v657_v5 = vand.u32 2147483647, %v318_v63  ;;  %v659_v6 = vcvt.f32.s32 %v318_v63  ;;  %v662_v7 = vand.u32 2147483648, %v318_v63 }
  0x4c   : > { %460 = vst [vmem:[%s1050_s26 + $0x40] sm:$0xff] %v424_v50  ;;  %v653_v9 = vand.u32 2147483647, %v652_v2  ;;  %v665_v12 = vand.u32 2147483647, %v319_v0  ;;  %v667_v14 = vcvt.f32.s32 %v319_v0  ;;  %v670_v15 = vand.u32 2147483648, %v319_v0 }
  0x4d   : > { %461 = vst [vmem:[%s1050_s26 + $0x48] sm:$0xff] %v425_v57  ;;  %vm1211_vm11 = vcmp.lt.f32.partialorder %v657_v5, 8388608.0  ;;  %v660_v16 = vcvt.s32.f32 %v659_v6  ;;  %v284_v17 = vmax.f32 %v248_v4, 0.0  ;;  %v212_v42 = vmul.f32 %v954_v3, %v1062_v26 }
  0x4e   : > { %v655_v19 = vor.u32 %v654_v25, %v653_v9  ;;  %vm1217_vm12 = vcmp.lt.f32.partialorder %v665_v12, 8388608.0  ;;  %v668_v10 = vcvt.s32.f32 %v667_v14  ;;  %v213_v30 = vmul.f32 %v954_v3, %v1065_v27 }
  0x4f   : > { %v661_v40 = vand.u32 2147483647, %v660_v16  ;;  %v320_v11 = vmin.f32 %v284_v17, 255.0  ;;  %v249_v18 = vadd.f32 %v966_v13, %v212_v42  ;;  %v214_v23 = vmul.f32 %v954_v3, %v1068_v28 }
  0x50   : > { %v656_v21 = vsel %vm1203_vm10, %v655_v19, %v317_v24  ;;  %v669_v26 = vand.u32 2147483647, %v668_v10  ;;  %v250_v49 = vadd.f32 %v966_v13, %v213_v30  ;;  %v215_v51 = vmul.f32 %v954_v3, %v1071_v29 }
  0x51   : > { %v389_v34 = vsub.f32 %v656_v21, %v966_v13  ;;  %v663_v27 = vor.u32 %v662_v7, %v661_v40  ;;  %v673_v52 = vand.u32 2147483647, %v320_v11  ;;  %v675_v56 = vcvt.f32.s32 %v320_v11 }
  0x52   : > { %v671_v58 = vor.u32 %v670_v15, %v669_v26  ;;  %v678_v39 = vand.u32 2147483648, %v320_v11  ;;  %v285_v22 = vmax.f32 %v249_v18, 0.0  ;;  %v286_v41 = vmax.f32 %v250_v49, 0.0 }
  0x53   : > { %v426_v28 = vmul.f32 %v960_v8, %v389_v34  ;;  %v664_v24 = vsel %vm1211_vm11, %v663_v27, %v318_v63  ;;  %vm1235_vm13 = vcmp.lt.f32.partialorder %v673_v52, 8388608.0  ;;  %v676_v29 = vcvt.s32.f32 %v675_v56 }
  0x54   : > { %v390_v25 = vsub.f32 %v664_v24, %v966_v13  ;;  %v672_v50 = vsel %vm1217_vm12, %v671_v58, %v319_v0  ;;  %v321_v1 = vmin.f32 %v285_v22, 255.0  ;;  %v322_v2 = vmin.f32 %v286_v41, 255.0 }
  0x55   : > { %462 = vst [vmem:[%s1050_s26 + $0x50] sm:$0xff] %v426_v28  ;;  %v391_v4 = vsub.f32 %v672_v50, %v966_v13  ;;  %v677_v57 = vand.u32 2147483647, %v676_v29  ;;  %v251_v63 = vadd.f32 %v966_v13, %v214_v23  ;;  %v252_v5 = vadd.f32 %v966_v13, %v215_v51 }
  0x56   : > { %v427_v6 = vmul.f32 %v960_v8, %v390_v25  ;;  %v681_v7 = vand.u32 2147483647, %v321_v1  ;;  %v683_v9 = vcvt.f32.s32 %v321_v1  ;;  %v686_v12 = vand.u32 2147483648, %v321_v1 }
  0x57   : > { %v428_v14 = vmul.f32 %v960_v8, %v391_v4  ;;  %v679_v0 = vor.u32 %v678_v39, %v677_v57  ;;  %v689_v15 = vand.u32 2147483647, %v322_v2  ;;  %v691_v38 = vcvt.f32.s32 %v322_v2 }
  0x58   : > { %463 = vst [vmem:[%s1050_s26 + $0x58] sm:$0xff] %v427_v6  ;;  %vm1249_vm14 = vcmp.lt.f32.partialorder %v681_v7, 8388608.0  ;;  %v684_v17 = vcvt.s32.f32 %v683_v9  ;;  %v694_v42 = vand.u32 2147483648, %v322_v2  ;;  %v287_v19 = vmax.f32 %v251_v63, 0.0 }
  0x59   : > { %464 = vst [vmem:[%s1050_s26 + $0x60] sm:$0xff] %v428_v14  ;;  %v680_v20 = vsel %vm1235_vm13, %v679_v0, %v320_v11  ;;  %vm1256_vm15 = vcmp.lt.f32.partialorder %v689_v15, 8388608.0  ;;  %v692_v30 = vcvt.s32.f32 %v691_v38  ;;  %v288_v40 = vmax.f32 %v252_v5, 0.0 }
  0x5a   : > { %v392_v18 = vsub.f32 %v680_v20, %v966_v13  ;;  %v685_v23 = vand.u32 2147483647, %v684_v17  ;;  %v323_v21 = vmin.f32 %v287_v19, 255.0  ;;  %v216_v26 = vmul.f32 %v954_v3, %v1074_v31 }
  0x5b   : > { %v693_v49 = vand.u32 2147483647, %v692_v30  ;;  %v324_v51 = vmin.f32 %v288_v40, 255.0  ;;  %v217_v34 = vmul.f32 %v954_v3, %v1077_v32  ;;  %v218_v11 = vmul.f32 %v954_v3, %v1080_v33 }
  0x5c   : > { %v429_v27 = vmul.f32 %v960_v8, %v392_v18  ;;  %v687_v52 = vor.u32 %v686_v12, %v685_v23  ;;  %v697_v56 = vand.u32 2147483647, %v323_v21  ;;  %v699_v58 = vcvt.f32.s32 %v323_v21 }
  0x5d   : > { %v695_v39 = vor.u32 %v694_v42, %v693_v49  ;;  %v702_v22 = vand.u32 2147483648, %v323_v21  ;;  %v705_v41 = vand.u32 2147483647, %v324_v51  ;;  %v707_v28 = vcvt.f32.s32 %v324_v51 }
  0x5e   : > { %465 = vst [vmem:[%s1050_s26 + $0x68] sm:$0xff] %v429_v27  ;;  %v688_v31 = vsel %vm1249_vm14, %v687_v52, %v321_v1  ;;  %vm1271_vm0 = vcmp.lt.f32.partialorder %v697_v56, 8388608.0  ;;  %v700_v32 = vcvt.s32.f32 %v699_v58  ;;  %v710_v62 = vand.u32 2147483648, %v324_v51 }
  0x5f   : > { %v393_v33 = vsub.f32 %v688_v31, %v966_v13  ;;  %v696_v29 = vsel %vm1256_vm15, %v695_v39, %v322_v2  ;;  %vm1278_vm1 = vcmp.lt.f32.partialorder %v705_v41, 8388608.0  ;;  %v708_v50 = vcvt.s32.f32 %v707_v28 }
  0x60   : > { %v394_v4 = vsub.f32 %v696_v29, %v966_v13  ;;  %v701_v1 = vand.u32 2147483647, %v700_v32  ;;  %v253_v57 = vadd.f32 %v966_v13, %v216_v26  ;;  %v254_v63 = vadd.f32 %v966_v13, %v217_v34 }
  0x61   : > { %v430_v5 = vmul.f32 %v960_v8, %v393_v33  ;;  %v709_v6 = vand.u32 2147483647, %v708_v50  ;;  %v255_v7 = vadd.f32 %v966_v13, %v218_v11  ;;  %v219_v2 = vmul.f32 %v954_v3, %v1083_v35 }
  0x62   : > { %v431_v9 = vmul.f32 %v960_v8, %v394_v4  ;;  %v703_v12 = vor.u32 %v702_v22, %v701_v1  ;;  %v289_v14 = vmax.f32 %v253_v57, 0.0  ;;  %v290_v0 = vmax.f32 %v254_v63, 0.0 }
  0x63   : > { %466 = vst [vmem:[%s1050_s26 + $0x70] sm:$0xff] %v430_v5  ;;  %v711_v15 = vor.u32 %v710_v62, %v709_v6  ;;  %v291_v38 = vmax.f32 %v255_v7, 0.0  ;;  %v256_v16 = vadd.f32 %v966_v13, %v219_v2  ;;  %v220_v17 = vmul.f32 %v954_v3, %v1086_v36 }
  0x64   : > { %467 = vst [vmem:[%s1050_s26 + $0x78] sm:$0xff] %v431_v9  ;;  %v704_v42 = vsel %vm1271_vm0, %v703_v12, %v323_v21  ;;  %v325_v19 = vmin.f32 %v289_v14, 255.0  ;;  %v326_v20 = vmin.f32 %v290_v0, 255.0  ;;  %v221_v35 = vmul.f32 %v954_v3, %v1089_v37 }
  0x65   : > { %v395_v10 = vsub.f32 %v704_v42, %v966_v13  ;;  %v712_v30 = vsel %vm1278_vm1, %v711_v15, %v324_v51  ;;  %v327_v40 = vmin.f32 %v291_v38, 255.0  ;;  %v292_v18 = vmax.f32 %v256_v16, 0.0 }
  0x66   : > { %v396_v23 = vsub.f32 %v712_v30, %v966_v13  ;;  %v713_v36 = vand.u32 2147483647, %v325_v19  ;;  %v715_v26 = vcvt.f32.s32 %v325_v19  ;;  %v718_v49 = vand.u32 2147483648, %v325_v19 }
  0x67   : > { %v432_v21 = vmul.f32 %v960_v8, %v395_v10  ;;  %v721_v34 = vand.u32 2147483647, %v326_v20  ;;  %v723_v11 = vcvt.f32.s32 %v326_v20  ;;  %v726_v27 = vand.u32 2147483648, %v326_v20 }
  0x68   : > { %v433_v37 = vmul.f32 %v960_v8, %v396_v23  ;;  %vm1305_vm2 = vcmp.lt.f32.partialorder %v713_v36, 8388608.0  ;;  %v716_v51 = vcvt.s32.f32 %v715_v26  ;;  %v729_v56 = vand.u32 2147483647, %v327_v40 }
  0x69   : > { %468 = vst [vmem:[%s1050_s26 + $0x80] sm:$0xff] %v432_v21  ;;  %vm1310_vm3 = vcmp.lt.f32.partialorder %v721_v34, 8388608.0  ;;  %v724_v39 = vcvt.s32.f32 %v723_v11  ;;  %v731_v22 = vcvt.f32.s32 %v327_v40  ;;  %v734_v41 = vand.u32 2147483648, %v327_v40 }
  0x6a   : > { %469 = vst [vmem:[%s1050_s26 + $0x88] sm:$0xff] %v433_v37  ;;  %v717_v28 = vand.u32 2147483647, %v716_v51  ;;  %vm1315_vm4 = vcmp.lt.f32.partialorder %v729_v56, 8388608.0  ;;  %v328_v24 = vmin.f32 %v292_v18, 255.0  ;;  %v257_v32 = vadd.f32 %v966_v13, %v220_v17 }
  0x6b   : > { %v725_v62 = vand.u32 2147483647, %v724_v39  ;;  %v732_v33 = vcvt.s32.f32 %v731_v22  ;;  %v258_v29 = vadd.f32 %v966_v13, %v221_v35  ;;  %v222_v25 = vmul.f32 %v954_v3, %v1092_v43 }
  0x6c   : > { %v719_v50 = vor.u32 %v718_v49, %v717_v28  ;;  %v737_v4 = vand.u32 2147483647, %v328_v24  ;;  %v739_v1 = vcvt.f32.s32 %v328_v24  ;;  %v742_v57 = vand.u32 2147483648, %v328_v24 }
  0x6d   : > { %v727_v63 = vor.u32 %v726_v27, %v725_v62  ;;  %v733_v5 = vand.u32 2147483647, %v732_v33  ;;  %v293_v6 = vmax.f32 %v257_v32, 0.0  ;;  %v294_v7 = vmax.f32 %v258_v29, 0.0 }
  0x6e   : > { %v720_v2 = vsel %vm1305_vm2, %v719_v50, %v325_v19  ;;  %vm1325_vm5 = vcmp.lt.f32.partialorder %v737_v4, 8388608.0  ;;  %v740_v12 = vcvt.s32.f32 %v739_v1  ;;  %v259_v14 = vadd.f32 %v966_v13, %v222_v25 }
  0x6f   : > { %v397_v43 = vsub.f32 %v720_v2, %v966_v13  ;;  %v728_v0 = vsel %vm1310_vm3, %v727_v63, %v326_v20  ;;  %v735_v15 = vor.u32 %v734_v41, %v733_v5  ;;  %v329_v38 = vmin.f32 %v293_v6, 255.0 }
  0x70   : > { %v398_v16 = vsub.f32 %v728_v0, %v966_v13  ;;  %v741_v17 = vand.u32 2147483647, %v740_v12  ;;  %v330_v42 = vmin.f32 %v294_v7, 255.0  ;;  %v295_v19 = vmax.f32 %v259_v14, 0.0 }
  0x71   : > { %v434_v35 = vmul.f32 %v960_v8, %v397_v43  ;;  %v736_v10 = vsel %vm1315_vm4, %v735_v15, %v327_v40  ;;  %v745_v30 = vand.u32 2147483647, %v329_v38  ;;  %v747_v18 = vcvt.f32.s32 %v329_v38 }
  0x72   : > { %v435_v23 = vmul.f32 %v960_v8, %v398_v16  ;;  %v399_v36 = vsub.f32 %v736_v10, %v966_v13  ;;  %v743_v20 = vor.u32 %v742_v57, %v741_v17  ;;  %v750_v26 = vand.u32 2147483648, %v329_v38 }
  0x73   : > { %470 = vst [vmem:[%s1050_s26 + $0x90] sm:$0xff] %v434_v35  ;;  %vm1340_vm6 = vcmp.lt.f32.partialorder %v745_v30, 8388608.0  ;;  %v748_v21 = vcvt.s32.f32 %v747_v18  ;;  %v753_v34 = vand.u32 2147483647, %v330_v42  ;;  %v755_v11 = vcvt.f32.s32 %v330_v42 }
  0x74   : > { %471 = vst [vmem:[%s1050_s26 + $0x98] sm:$0xff] %v435_v23  ;;  %v436_v40 = vmul.f32 %v960_v8, %v399_v36  ;;  %v744_v27 = vsel %vm1325_vm5, %v743_v20, %v328_v24  ;;  %v758_v37 = vand.u32 2147483648, %v330_v42  ;;  %v331_v52 = vmin.f32 %v295_v19, 255.0 }
  0x75   : > { %v400_v51 = vsub.f32 %v744_v27, %v966_v13  ;;  %v749_v56 = vand.u32 2147483647, %v748_v21  ;;  %vm1349_vm7 = vcmp.lt.f32.partialorder %v753_v34, 8388608.0  ;;  %v756_v39 = vcvt.s32.f32 %v755_v11 }
  0x76   : > { %472 = vst [vmem:[%s1050_s26 + $0xa0] sm:$0xff] %v436_v40  ;;  %v761_v22 = vand.u32 2147483647, %v331_v52  ;;  %v763_v41 = vcvt.f32.s32 %v331_v52  ;;  %v766_v28 = vand.u32 2147483648, %v331_v52  ;;  %v223_v31 = vmul.f32 %v954_v3, %v1095_v44 }
  0x77   : > { %v437_v24 = vmul.f32 %v960_v8, %v400_v51  ;;  %v751_v32 = vor.u32 %v750_v26, %v749_v56  ;;  %v757_v62 = vand.u32 2147483647, %v756_v39  ;;  %v224_v33 = vmul.f32 %v954_v3, %v1098_v45 }
  0x78   : > { %vm1359_vm8 = vcmp.lt.f32.partialorder %v761_v22, 8388608.0  ;;  %v764_v25 = vcvt.s32.f32 %v763_v41  ;;  %v260_v50 = vadd.f32 %v966_v13, %v223_v31  ;;  %v225_v4 = vmul.f32 %v954_v3, %v1101_v46 }
  0x79   : > { %473 = vst [vmem:[%s1050_s26 + $0xa8] sm:$0xff] %v437_v24  ;;  %v752_v44 = vsel %vm1340_vm6, %v751_v32, %v329_v38  ;;  %v759_v1 = vor.u32 %v758_v37, %v757_v62  ;;  %v261_v57 = vadd.f32 %v966_v13, %v224_v33  ;;  %v226_v45 = vmul.f32 %v954_v3, %v1104_v47 }
  0x7a   : > { %v401_v63 = vsub.f32 %v752_v44, %v966_v13  ;;  %v765_v5 = vand.u32 2147483647, %v764_v25  ;;  %v296_v6 = vmax.f32 %v260_v50, 0.0  ;;  %v262_v7 = vadd.f32 %v966_v13, %v225_v4 }
  0x7b   : > { %v760_v46 = vsel %vm1349_vm7, %v759_v1, %v330_v42  ;;  %v297_v2 = vmax.f32 %v261_v57, 0.0  ;;  %v263_v9 = vadd.f32 %v966_v13, %v226_v45  ;;  %v227_v12 = vmul.f32 %v954_v3, %v1107_v48 }
  0x7c   : > { %v438_v14 = vmul.f32 %v960_v8, %v401_v63  ;;  %v402_v47 = vsub.f32 %v760_v46, %v966_v13  ;;  %v767_v43 = vor.u32 %v766_v28, %v765_v5  ;;  %v332_v0 = vmin.f32 %v296_v6, 255.0 }
  0x7d   : > { %v333_v15 = vmin.f32 %v297_v2, 255.0  ;;  %v298_v38 = vmax.f32 %v262_v7, 0.0  ;;  %v299_v16 = vmax.f32 %v263_v9, 0.0  ;;  %v264_v18 = vadd.f32 %v966_v13, %v227_v12 }
  0x7e   : > { %474 = vst [vmem:[%s1050_s26 + $0xb0] sm:$0xff] %v438_v14  ;;  %v439_v17 = vmul.f32 %v960_v8, %v402_v47  ;;  %v768_v42 = vsel %vm1359_vm8, %v767_v43, %v331_v52  ;;  %v769_v19 = vand.u32 2147483647, %v332_v0  ;;  %v771_v35 = vcvt.f32.s32 %v332_v0 }
  0x7f   : > { %v403_v48 = vsub.f32 %v768_v42, %v966_v13  ;;  %v777_v10 = vand.u32 2147483647, %v333_v15  ;;  %v779_v30 = vcvt.f32.s32 %v333_v15  ;;  %v774_v20 = vand.u32 2147483648, %v332_v0 }
  0x80   : > { %475 = vst [vmem:[%s1050_s26 + $0xb8] sm:$0xff] %v439_v17  ;;  %vm1388_vm9 = vcmp.lt.f32.partialorder %v769_v19, 8388608.0  ;;  %v772_v36 = vcvt.s32.f32 %v771_v35  ;;  %v334_v26 = vmin.f32 %v298_v38, 255.0  ;;  %v782_v34 = vand.u32 2147483648, %v333_v15 }
  0x81   : > { %v440_v49 = vmul.f32 %v960_v8, %v403_v48  ;;  %v780_v21 = vcvt.s32.f32 %v779_v30  ;;  %v335_v11 = vmin.f32 %v299_v16, 255.0  ;;  %vm1393_vm10 = vcmp.lt.f32.partialorder %v777_v10, 8388608.0 }
  0x82   : > { %v773_v40 = vand.u32 2147483647, %v772_v36  ;;  %v785_v37 = vand.u32 2147483647, %v334_v26  ;;  %v787_v52 = vcvt.f32.s32 %v334_v26  ;;  %v790_v56 = vand.u32 2147483648, %v334_v26 }
  0x83   : > { %476 = vst [vmem:[%s1050_s26 + $0xc0] sm:$0xff] %v440_v49  ;;  %v781_v51 = vand.u32 2147483647, %v780_v21  ;;  %v793_v58 = vand.u32 2147483647, %v335_v11  ;;  %v795_v39 = vcvt.f32.s32 %v335_v11  ;;  %v798_v28 = vand.u32 2147483648, %v335_v11 }
  0x84   : > { %v775_v22 = vor.u32 %v774_v20, %v773_v40  ;;  %v788_v41 = vcvt.s32.f32 %v787_v52  ;;  %v300_v31 = vmax.f32 %v264_v18, 0.0  ;;  %vm1398_vm11 = vcmp.lt.f32.partialorder %v785_v37, 8388608.0 }
  0x85   : > { %v783_v24 = vor.u32 %v782_v34, %v781_v51  ;;  %v796_v62 = vcvt.s32.f32 %v795_v39  ;;  %v228_v33 = vmul.f32 %v954_v3, %v1115_v53  ;;  %v229_v4 = vmul.f32 %v954_v3, %v1118_v54 }
  0x86   : > { %v776_v29 = vsel %vm1388_vm9, %v775_v22, %v332_v0  ;;  %v789_v25 = vand.u32 2147483647, %v788_v41  ;;  %v336_v50 = vmin.f32 %v300_v31, 255.0  ;;  %vm1413_vm12 = vcmp.lt.f32.partialorder %v793_v58, 8388608.0 }
  0x87   : > { %v404_v44 = vsub.f32 %v776_v29, %v966_v13  ;;  %v784_v1 = vsel %vm1393_vm10, %v783_v24, %v333_v15  ;;  %v797_v57 = vand.u32 2147483647, %v796_v62  ;;  %v265_v45 = vadd.f32 %v966_v13, %v228_v33 }
  0x88   : > { %v405_v63 = vsub.f32 %v784_v1, %v966_v13  ;;  %v791_v53 = vor.u32 %v790_v56, %v789_v25  ;;  %v803_v6 = vcvt.f32.s32 %v336_v50  ;;  %v801_v46 = vand.u32 2147483647, %v336_v50 }
  0x89   : > { %v441_v54 = vmul.f32 %v960_v8, %v404_v44  ;;  %v799_v7 = vor.u32 %v798_v28, %v797_v57  ;;  %v301_v2 = vmax.f32 %v265_v45, 0.0  ;;  %v806_v47 = vand.u32 2147483648, %v336_v50 }
  0x8a   : > { %v442_v9 = vmul.f32 %v960_v8, %v405_v63  ;;  %v792_v12 = vsel %vm1398_vm11, %v791_v53, %v334_v26  ;;  %v804_v14 = vcvt.s32.f32 %v803_v6  ;;  %v266_v38 = vadd.f32 %v966_v13, %v229_v4 }
  0x8b   : > { %477 = vst [vmem:[%s1050_s26 + $0xc8] sm:$0xff] %v441_v54  ;;  %v406_v43 = vsub.f32 %v792_v12, %v966_v13  ;;  %v800_v0 = vsel %vm1413_vm12, %v799_v7, %v335_v11  ;;  %v337_v15 = vmin.f32 %v301_v2, 255.0  ;;  %v230_v42 = vmul.f32 %v954_v3, %v1121_v55 }
  0x8c   : > { %478 = vst [vmem:[%s1050_s26 + $0xd0] sm:$0xff] %v442_v9  ;;  %v407_v16 = vsub.f32 %v800_v0, %v966_v13  ;;  %v805_v17 = vand.u32 2147483647, %v804_v14  ;;  %v231_v19 = vmul.f32 %v954_v3, %v1128_v59  ;;  %vm1433_vm13 = vcmp.lt.f32.partialorder %v801_v46, 8388608.0 }
  0x8d   : > { %v443_v35 = vmul.f32 %v960_v8, %v406_v43  ;;  %v809_v10 = vand.u32 2147483647, %v337_v15  ;;  %v811_v30 = vcvt.f32.s32 %v337_v15  ;;  %v302_v36 = vmax.f32 %v266_v38, 0.0 }
  0x8e   : > { %v444_v18 = vmul.f32 %v960_v8, %v407_v16  ;;  %v807_v23 = vor.u32 %v806_v47, %v805_v17  ;;  %v267_v20 = vadd.f32 %v966_v13, %v230_v42  ;;  %v814_v55 = vand.u32 2147483648, %v337_v15 }
  0x8f   : > { %479 = vst [vmem:[%s1050_s26 + $0xd8] sm:$0xff] %v443_v35  ;;  %v812_v26 = vcvt.s32.f32 %v811_v30  ;;  %v268_v49 = vadd.f32 %v966_v13, %v231_v19  ;;  %v232_v59 = vmul.f32 %v954_v3, %v1131_v60  ;;  %v338_v34 = vmin.f32 %v302_v36, 255.0 }
  0x90   : > { %480 = vst [vmem:[%s1050_s26 + $0xe0] sm:$0xff] %v444_v18  ;;  %v808_v21 = vsel %vm1433_vm13, %v807_v23, %v336_v50  ;;  %v303_v11 = vmax.f32 %v267_v20, 0.0  ;;  %vm1448_vm14 = vcmp.lt.f32.partialorder %v809_v10, 8388608.0  ;;  %v233_v62 = vmul.f32 %v954_v3, %v1134_v61 }
  0x91   : > { %v408_v40 = vsub.f32 %v808_v21, %v966_v13  ;;  %v813_v27 = vand.u32 2147483647, %v812_v26  ;;  %v304_v37 = vmax.f32 %v268_v49, 0.0  ;;  %v269_v52 = vadd.f32 %v966_v13, %v232_v59 }
  0x92   : > { %v817_v56 = vand.u32 2147483647, %v338_v34  ;;  %v819_v58 = vcvt.f32.s32 %v338_v34  ;;  %v339_v60 = vmin.f32 %v303_v11, 255.0  ;;  %v822_v24 = vand.u32 2147483648, %v338_v34 }
  0x93   : > { %v445_v39 = vmul.f32 %v960_v8, %v408_v40  ;;  %v815_v22 = vor.u32 %v814_v55, %v813_v27  ;;  %v340_v41 = vmin.f32 %v304_v37, 255.0  ;;  %v305_v28 = vmax.f32 %v269_v52, 0.0 }
  0x94   : > { %v820_v31 = vcvt.s32.f32 %v819_v58  ;;  %v827_v32 = vcvt.f32.s32 %v339_v60  ;;  %v825_v29 = vand.u32 2147483647, %v339_v60  ;;  %v830_v57 = vand.u32 2147483648, %v339_v60 }
  0x95   : > { %481 = vst [vmem:[%s1050_s26 + $0xe8] sm:$0xff] %v445_v39  ;;  %v816_v33 = vsel %vm1448_vm14, %v815_v22, %v337_v15  ;;  %v833_v25 = vand.u32 2147483647, %v340_v41  ;;  %v835_v50 = vcvt.f32.s32 %v340_v41  ;;  %vm1459_vm15 = vcmp.lt.f32.partialorder %v817_v56, 8388608.0 }
  0x96   : > { %v409_v4 = vsub.f32 %v816_v33, %v966_v13  ;;  %v821_v44 = vand.u32 2147483647, %v820_v31  ;;  %v828_v1 = vcvt.s32.f32 %v827_v32  ;;  %v838_v53 = vand.u32 2147483648, %v340_v41 }
  0x97   : > { %v836_v63 = vcvt.s32.f32 %v835_v50  ;;  %v341_v3 = vmin.f32 %v305_v28, 255.0  ;;  %v270_v54 = vadd.f32 %v966_v13, %v233_v62  ;;  %vm1465_vm0 = vcmp.lt.f32.partialorder %v825_v29, 8388608.0 }
  0x98   : > { %v446_v61 = vmul.f32 %v960_v8, %v409_v4  ;;  %v823_v5 = vor.u32 %v822_v24, %v821_v44  ;;  %v829_v6 = vand.u32 2147483647, %v828_v1  ;;  %vm1469_vm1 = vcmp.lt.f32.partialorder %v833_v25, 8388608.0 }
  0x99   : > { %v837_v2 = vand.u32 2147483647, %v836_v63  ;;  %v843_v9 = vcvt.f32.s32 %v341_v3  ;;  %v841_v47 = vand.u32 2147483647, %v341_v3  ;;  %v306_v43 = vmax.f32 %v270_v54, 0.0 }
  0x9a   : > { %482 = vst [vmem:[%s1050_s26 + $0xf0] sm:$0xff] %v446_v61  ;;  %v824_v12 = vsel %vm1459_vm15, %v823_v5, %v338_v34  ;;  %v831_v14 = vor.u32 %v830_v57, %v829_v6  ;;  %v846_v16 = vand.u32 2147483648, %v341_v3 }
  0x9b   : > { %v410_v0 = vsub.f32 %v824_v12, %v966_v13  ;;  %v839_v15 = vor.u32 %v838_v53, %v837_v2  ;;  %v844_v38 = vcvt.s32.f32 %v843_v9  ;;  %v342_v42 = vmin.f32 %v306_v43, 255.0 }
  0x9c   : > { %v832_v17 = vsel %vm1465_vm0, %v831_v14, %v339_v60  ;;  %vm842_vm2 = vcmp.lt.f32.partialorder %v841_v47, 8388608.0 }
  0x9d   : > { %v447_v19 = vmul.f32 %v960_v8, %v410_v0  ;;  %v411_v35 = vsub.f32 %v832_v17, %v966_v13  ;;  %v840_v48 = vsel %vm1469_vm1, %v839_v15, %v340_v41  ;;  %v845_v10 = vand.u32 2147483647, %v844_v38 }
  0x9e   : > { %v412_v30 = vsub.f32 %v840_v48, %v966_v13  ;;  %v851_v18 = vcvt.f32.s32 %v342_v42  ;;  %v849_v20 = vand.u32 2147483647, %v342_v42  ;;  %v854_v49 = vand.u32 2147483648, %v342_v42 }
  0x9f   : > { %483 = vst [vmem:[%s1050_s26 + $0xf8] sm:$0xff] %v447_v19  ;;  %v448_v23 = vmul.f32 %v960_v8, %v411_v35  ;;  %v847_v36 = vor.u32 %v846_v16, %v845_v10 }
  0xa0   : > { %v449_v26 = vmul.f32 %v960_v8, %v412_v30  ;;  %v852_v55 = vcvt.s32.f32 %v851_v18  ;;  %vm850_vm3 = vcmp.lt.f32.partialorder %v849_v20, 8388608.0 }
  0xa1   : > { %484 = vst [vmem:[%s1050_s26 + $0x100] sm:$0xff] %v448_v23  ;;  %v848_v59 = vsel %vm842_vm2, %v847_v36, %v341_v3 }
  0xa2   : > { %485 = vst [vmem:[%s1050_s26 + $0x108] sm:$0xff] %v449_v26  ;;  %v413_v21 = vsub.f32 %v848_v59, %v966_v13  ;;  %v853_v34 = vand.u32 2147483647, %v852_v55 }
  0xa4   : > { %v450_v11 = vmul.f32 %v960_v8, %v413_v21  ;;  %v855_v40 = vor.u32 %v854_v49, %v853_v34 }
  0xa6   : > { %486 = vst [vmem:[%s1050_s26 + $0x110] sm:$0xff] %v450_v11  ;;  %v856_v27 = vsel %vm850_vm3, %v855_v40, %v342_v42 }
  0xa7   : > { %v414_v37 = vsub.f32 %v856_v27, %v966_v13 }
  0xa9   : > { %v451_v52 = vmul.f32 %v960_v8, %v414_v37 }
  0xab   : > { %487 = vst [vmem:[%s1050_s26 + $0x118] sm:$0xff] %v451_v52 }
  0xac PF: > { %s13_s9 = sadd.s32 1, %s901_s9  }
  0xad   : > { %p10_p1 = scmp.ge.s32.totalorder %s13_s9, 4  }
  0xaf   :  { %12 = sbr.rel (!%p10_p1) target bundleno = 1 (0x1), region = 63 }
  0xb4   :  { %509 = vsyncpa [#allocation3], 1 }
  0xb5   :  { %511 = vsyncpa [#allocation3 + $0x1], 1 }

// kernel: qconv2d_forward.2
= control target key start
LH: loop header
LB: loop body
LE: loop exit
PB: predicated region body
PF: predicated region fallthrough
CT: control target
= control target key end

     0   :  { %s5307_s23 = smov 0   ;;  %s7692_s0 = inlined_call_operand.<no memory space> [shape: f32[1], index: 0, kind: input, shape index: {}]   ;;  %s7693_s1 = inlined_call_operand.vmem [shape: bf16[2,326,4], index: 1, kind: input, shape index: {}]   ;;  %s7694_s2 = inlined_call_operand.vmem [shape: bf16[9,4,128], index: 2, kind: input, shape index: {}]   ;;  %s7695_s3 = inlined_call_operand.vmem [shape: f32[1,128], index: 3, kind: input, shape index: {}]   ;;  %s7696_s4 = inlined_call_operand.vmem [shape: f32[2,288,128], index: 4, kind: output, shape index: {0}]   ;;  %s7697_s5 = inlined_call_operand.vmem [shape: f32[2,8,128], index: 5, kind: output, shape index: {1}]   ;;  %s7698_s6 = inlined_call_operand.vmem [shape: f32[2,8,128], index: 6, kind: output, shape index: {2}]  }
   0x1   :  { %12 = sst [smem:[#allocation3]] %s7692_s0 }
   0x2 LB: > { %s4373_s24 = sadd.s32 4294967295, %s5267_s23   ;;  %p4377_p0 = scmp.ge.s32.totalorder %s5267_s23, 1  ;;  %s5267_s23 = sphi %s5307_s23, %s18_s23  }
   0x3   : > { %p218_p1 = scmp.lt.s32.totalorder %s5267_s23, 3 }
   0x5   : > { %p219_p2 = pnand %p4377_p0, %p218_p1 }
   0x7   : > { %222 = sbr.rel (%p219_p2) target bundleno = 608 (0x260), region = 36 }
   0xc   : > { %v4382_v0 = vld [vmem:[%s7694_s2 + $0x2] sm:$0x3]  ;;  %vm566_vm0 = vcmask 1041408   ;;  %p256_p3 = scmp.lt.s32.totalorder %s4373_s24, 1  ;;  %v5324_v2 = vld [vmem:[%s7694_s2 + $0x4] sm:$0x3] }
   0xd   : > { %5169 = vmatprep.subr.msk.bf16.mxu0 %vm566_vm0, %v4382_v0  ;;  %5170 = vmatprep.subr.msk.bf16.mxu1 %vm566_vm0, %v4382_v0  ;;  %v568_v1 = vsel %vm566_vm0, %v4382_v0, 0  ;;  %v5329_v3 = vld [vmem:[%s7694_s2] sm:$0x3]  ;;  %vm358_vm1 = vcmask 31744   ;;  %vm399_vm2 = vcmask 29696   ;;  %s6013_s22 = sld [smem:[#allocation3]] }
   0xe   : > { %4826 = vmatpush3.bf16.msra.mxu0 %v568_v1  ;;  %5168 = vmatpush3.bf16.msra.mxu1 %v568_v1  ;;  %s8249_s24 = smov (!%p256_p3, %s4373_s24), 1 }
   0xf   : > { %5172 = vmatprep.subr.msk.bf16.mxu0 %vm566_vm0, %v5324_v2  ;;  %5171 = vmatprep.subr.msk.bf16.mxu1 %vm566_vm0, %v5329_v3  ;;  %s5179_s30 = smul.u32 164, %s8249_s24 }
  0x10   : > { %s5180_s25 = smul.u32 288, %s8249_s24 }
  0x11   : > { %s5341_s9 = scalar_lea.vmem %s7693_s1, %s5179_s30  ;;  %s4380_s30 = sshll.u32 %s8249_s24, 3 }
  0x12   : > { %v4556_v4 = vld [vmem:[%s5341_s9] sm:$0xff]   ;;  %v4635_v5 = vld [vmem:[%s5341_s9 + $0x8] sm:$0xff]   ;;  %v4644_v6 = vld [vmem:[%s5341_s9 + $0x50] sm:$0xff]   ;;  %s7085_s29 = scalar_lea.vmem %s7696_s4, %s5180_s25  ;;  %s273_s12 = scalar_lea.vmem %s7698_s6, %s4380_s30 }
  0x13   : > { %v4557_v7 = vunpack.c.l.bf16 %v4556_v4  ;;  %v4558_v8 = vunpack.c.h.bf16 %v4556_v4  ;;  %v4561_v9 = vunpack.c.l.bf16 %v4635_v5  ;;  %v4562_v10 = vunpack.c.h.bf16 %v4635_v5  ;;  %v4645_v11 = vld [vmem:[%s5341_s9 + $0x58] sm:$0xff]   ;;  %v4636_v12 = vld [vmem:[%s5341_s9 + $0x10] sm:$0xff]   ;;  %v4646_v13 = vld [vmem:[%s5341_s9 + $0x60] sm:$0xff]  }
  0x14   : > { %v4597_v14 = vunpack.c.l.bf16 %v4644_v6  ;;  %v4598_v15 = vunpack.c.h.bf16 %v4644_v6  ;;  %v4601_v16 = vunpack.c.l.bf16 %v4645_v11  ;;  %v4602_v17 = vunpack.c.h.bf16 %v4645_v11  ;;  %v4637_v18 = vld [vmem:[%s5341_s9 + $0x18] sm:$0xff]   ;;  %v4647_v19 = vld [vmem:[%s5341_s9 + $0x68] sm:$0xff]   ;;  %v4638_v20 = vld [vmem:[%s5341_s9 + $0x20] sm:$0xff]  }
  0x15   : > { %359 = vst.msk [vmem:[#allocation2] sm:$0xff] %vm358_vm1, %v4557_v7  ;;  %360 = vst.msk [vmem:[#allocation2 + $0x8] sm:$0xff] %vm358_vm1, %v4558_v8  ;;  %v4565_v21 = vunpack.c.l.bf16 %v4636_v12  ;;  %v4605_v22 = vunpack.c.l.bf16 %v4646_v13  ;;  %v4566_v23 = vunpack.c.h.bf16 %v4636_v12  ;;  %v4569_v24 = vunpack.c.l.bf16 %v4637_v18  ;;  %v4648_v25 = vld [vmem:[%s5341_s9 + $0x70] sm:$0xff]   ;;  %v4639_v26 = vld [vmem:[%s5341_s9 + $0x28] sm:$0xff]  }
  0x16   : > { %361 = vst.msk [vmem:[#allocation2 + $0x10] sm:$0xff] %vm358_vm1, %v4561_v9  ;;  %362 = vst.msk [vmem:[#allocation2 + $0x18] sm:$0xff] %vm358_vm1, %v4562_v10  ;;  %v4649_v27 = vld [vmem:[%s5341_s9 + $0x78] sm:$0xff]   ;;  %v4606_v28 = vunpack.c.h.bf16 %v4646_v13  ;;  %v4609_v29 = vunpack.c.l.bf16 %v4647_v19  ;;  %v4570_v30 = vunpack.c.h.bf16 %v4637_v18  ;;  %v4573_v31 = vunpack.c.l.bf16 %v4638_v20  ;;  %v4640_v32 = vld [vmem:[%s5341_s9 + $0x30] sm:$0xff]  }
  0x17   : > { %379 = vst.msk [vmem:[#allocation2 + $0xa0] sm:$0xff] %vm358_vm1, %v4597_v14  ;;  %380 = vst.msk [vmem:[#allocation2 + $0xa8] sm:$0xff] %vm358_vm1, %v4598_v15  ;;  %v4650_v33 = vld [vmem:[%s5341_s9 + $0x80] sm:$0xff]   ;;  %v4641_v34 = vld [vmem:[%s5341_s9 + $0x38] sm:$0xff]   ;;  %v4610_v35 = vunpack.c.h.bf16 %v4647_v19  ;;  %v4613_v36 = vunpack.c.l.bf16 %v4648_v25  ;;  %v4574_v37 = vunpack.c.h.bf16 %v4638_v20  ;;  %v4577_v38 = vunpack.c.l.bf16 %v4639_v26 }
  0x18   : > { %381 = vst.msk [vmem:[#allocation2 + $0xb0] sm:$0xff] %vm358_vm1, %v4601_v16  ;;  %382 = vst.msk [vmem:[#allocation2 + $0xb8] sm:$0xff] %vm358_vm1, %v4602_v17  ;;  %v4651_v39 = vld [vmem:[%s5341_s9 + $0x88] sm:$0xff]   ;;  %v4642_v40 = vld [vmem:[%s5341_s9 + $0x40] sm:$0xff]   ;;  %v4614_v41 = vunpack.c.h.bf16 %v4648_v25  ;;  %v4617_v42 = vunpack.c.l.bf16 %v4649_v27  ;;  %v4578_v43 = vunpack.c.h.bf16 %v4639_v26  ;;  %v4581_v44 = vunpack.c.l.bf16 %v4640_v32 }
  0x19   : > { %363 = vst.msk [vmem:[#allocation2 + $0x20] sm:$0xff] %vm358_vm1, %v4565_v21  ;;  %383 = vst.msk [vmem:[#allocation2 + $0xc0] sm:$0xff] %vm358_vm1, %v4605_v22  ;;  %v5377_v45 = vld [vmem:[%s5341_s9 + $0x90] sm:$0xff]   ;;  %v4643_v46 = vld [vmem:[%s5341_s9 + $0x48] sm:$0xff]   ;;  %v4618_v47 = vunpack.c.h.bf16 %v4649_v27  ;;  %v4621_v48 = vunpack.c.l.bf16 %v4650_v33  ;;  %v4582_v49 = vunpack.c.h.bf16 %v4640_v32  ;;  %v4585_v50 = vunpack.c.l.bf16 %v4641_v34 }
  0x1a   : > { %364 = vst.msk [vmem:[#allocation2 + $0x28] sm:$0xff] %vm358_vm1, %v4566_v23  ;;  %365 = vst.msk [vmem:[#allocation2 + $0x30] sm:$0xff] %vm358_vm1, %v4569_v24  ;;  %v4622_v51 = vunpack.c.h.bf16 %v4650_v33  ;;  %v4625_v52 = vunpack.c.l.bf16 %v4651_v39  ;;  %v4586_v53 = vunpack.c.h.bf16 %v4641_v34  ;;  %v4589_v54 = vunpack.c.l.bf16 %v4642_v40  ;;  %v5411_v18 = vld [vmem:[%s7694_s2 + $0x6] sm:$0x3] }
  0x1b   : > { %384 = vst.msk [vmem:[#allocation2 + $0xc8] sm:$0xff] %vm358_vm1, %v4606_v28  ;;  %385 = vst.msk [vmem:[#allocation2 + $0xd0] sm:$0xff] %vm358_vm1, %v4609_v29  ;;  %v4626_v55 = vunpack.c.h.bf16 %v4651_v39  ;;  %v4629_v56 = vunpack.c.l.bf16 %v5377_v45  ;;  %v4590_v57 = vunpack.c.h.bf16 %v4642_v40  ;;  %v4593_v58 = vunpack.c.l.bf16 %v4643_v46 }
  0x1c   : > { %366 = vst.msk [vmem:[#allocation2 + $0x38] sm:$0xff] %vm358_vm1, %v4570_v30  ;;  %367 = vst.msk [vmem:[#allocation2 + $0x40] sm:$0xff] %vm358_vm1, %v4573_v31  ;;  %v456_v59 = vld [vmem:[#allocation2 + $0x1] sm:$0xff]  ;;  %v4594_v62 = vunpack.c.h.bf16 %v4643_v46  ;;  %v1092_v11 = vsel %vm566_vm0, %v5324_v2, 0  ;;  %v802_v12 = vsel %vm566_vm0, %v5329_v3, 0 }
  0x1d   : > { %386 = vst.msk [vmem:[#allocation2 + $0xd8] sm:$0xff] %vm358_vm1, %v4610_v35  ;;  %387 = vst.msk [vmem:[#allocation2 + $0xe0] sm:$0xff] %vm358_vm1, %v4613_v36  ;;  %v457_v60 = vld [vmem:[#allocation2 + $0x9] sm:$0xff]  ;;  %v458_v61 = vld [vmem:[#allocation2 + $0x11] sm:$0xff] }
  0x1e   : > { %368 = vst.msk [vmem:[#allocation2 + $0x48] sm:$0xff] %vm358_vm1, %v4574_v37  ;;  %369 = vst.msk [vmem:[#allocation2 + $0x50] sm:$0xff] %vm358_vm1, %v4577_v38  ;;  %v492_v63 = vpack.c.bf16 %v457_v60, %v456_v59  ;;  %v476_v0 = vld [vmem:[#allocation2 + $0xa1] sm:$0xff] }
  0x1f   : > { %388 = vst.msk [vmem:[#allocation2 + $0xe8] sm:$0xff] %vm358_vm1, %v4614_v41  ;;  %389 = vst.msk [vmem:[#allocation2 + $0xf0] sm:$0xff] %vm358_vm1, %v4617_v42  ;;  %v477_v1 = vld [vmem:[#allocation2 + $0xa9] sm:$0xff]  ;;  %v478_v4 = vld [vmem:[#allocation2 + $0xb1] sm:$0xff] }
  0x20   : > { %370 = vst.msk [vmem:[#allocation2 + $0x58] sm:$0xff] %vm358_vm1, %v4578_v43  ;;  %371 = vst.msk [vmem:[#allocation2 + $0x60] sm:$0xff] %vm358_vm1, %v4581_v44  ;;  %v502_v5 = vpack.c.bf16 %v477_v1, %v476_v0  ;;  %v459_v6 = vld [vmem:[#allocation2 + $0x19] sm:$0xff]  ;;  %4827 = vmatprep.mubr.msk.bf16.mxu0 %vm358_vm1, %v492_v63  ;;  %v4630_v1 = vunpack.c.h.bf16 %v5377_v45 }
  0x21   : > { %390 = vst.msk [vmem:[#allocation2 + $0xf8] sm:$0xff] %vm358_vm1, %v4618_v47  ;;  %391 = vst.msk [vmem:[#allocation2 + $0x100] sm:$0xff] %vm358_vm1, %v4621_v48  ;;  %v479_v7 = vld [vmem:[#allocation2 + $0xb9] sm:$0xff]  ;;  %v460_v8 = vld [vmem:[#allocation2 + $0x21] sm:$0xff]  ;;  %v493_v9 = vpack.c.bf16 %v459_v6, %v458_v61 }
  0x22   : > { %372 = vst.msk [vmem:[#allocation2 + $0x68] sm:$0xff] %vm358_vm1, %v4582_v49  ;;  %373 = vst.msk [vmem:[#allocation2 + $0x70] sm:$0xff] %vm358_vm1, %v4585_v50  ;;  %v503_v10 = vpack.c.bf16 %v479_v7, %v478_v4  ;;  %v461_v13 = vld [vmem:[#allocation2 + $0x29] sm:$0xff]  ;;  %v480_v14 = vld [vmem:[#allocation2 + $0xc1] sm:$0xff]  ;;  %4847 = vmatprep.mubr.msk.bf16.mxu1 %vm358_vm1, %v502_v5  ;;  %v1418_v5 = vsel %vm566_vm0, %v5411_v18, 0 }
  0x23   : > { %392 = vst.msk [vmem:[#allocation2 + $0x108] sm:$0xff] %vm358_vm1, %v4622_v51  ;;  %393 = vst.msk [vmem:[#allocation2 + $0x110] sm:$0xff] %vm358_vm1, %v4625_v52  ;;  %v481_v15 = vld [vmem:[#allocation2 + $0xc9] sm:$0xff]  ;;  %v494_v16 = vpack.c.bf16 %v461_v13, %v460_v8  ;;  %4828 = vmatmul.mubr.msk.bf16.vlgmr.msra.gmra.mxu0 %vm358_vm1, %v493_v9  ;;  %v462_v2 = vld [vmem:[#allocation2 + $0x31] sm:$0xff] }
  0x24   : > { %374 = vst.msk [vmem:[#allocation2 + $0x78] sm:$0xff] %vm358_vm1, %v4586_v53  ;;  %375 = vst.msk [vmem:[#allocation2 + $0x80] sm:$0xff] %vm358_vm1, %v4589_v54  ;;  %v504_v17 = vpack.c.bf16 %v481_v15, %v480_v14  ;;  %4848 = vmatmul.mubr.msk.bf16.vlgmr.msra.gmra.mxu1 %vm358_vm1, %v503_v10  ;;  %v463_v19 = vld [vmem:[#allocation2 + $0x39] sm:$0xff]  ;;  %4902 = vmatpush3.bf16.msra.mxu0 %v1092_v11  ;;  %v482_v20 = vld [vmem:[#allocation2 + $0xd1] sm:$0xff] }
  0x25   : > { %394 = vst.msk [vmem:[#allocation2 + $0x118] sm:$0xff] %vm358_vm1, %v4626_v55  ;;  %395 = vst.msk [vmem:[#allocation2 + $0x120] sm:$0xff] %vm358_vm1, %v4629_v56  ;;  %v5418_v3 = vld [vmem:[%s7694_s2 + $0x8] sm:$0x3]  ;;  %4864 = vmatpush3.bf16.msra.mxu1 %v802_v12  ;;  %4831 = vmatprep.mubr.msk.bf16.mxu0 %vm358_vm1, %v494_v16  ;;  %v465_v23 = vld [vmem:[#allocation2 + $0x49] sm:$0xff]  ;;  %v495_v26 = vpack.c.bf16 %v463_v19, %v462_v2 }
  0x26   : > { %376 = vst.msk [vmem:[#allocation2 + $0x88] sm:$0xff] %vm358_vm1, %v4590_v57  ;;  %377 = vst.msk [vmem:[#allocation2 + $0x90] sm:$0xff] %vm358_vm1, %v4593_v58  ;;  %v483_v21 = vld [vmem:[#allocation2 + $0xd9] sm:$0xff]  ;;  %v464_v22 = vld [vmem:[#allocation2 + $0x41] sm:$0xff]  ;;  %4851 = vmatprep.mubr.msk.bf16.mxu1 %vm358_vm1, %v504_v17  ;;  %5173 = vmatprep.subr.msk.bf16.mxu1 %vm566_vm0, %v5411_v18  ;;  %v1744_v18 = vsel %vm566_vm0, %v5418_v3, 0 }
  0x27   : > { %378 = vst.msk [vmem:[#allocation2 + $0x98] sm:$0xff] %vm358_vm1, %v4594_v62  ;;  %v484_v24 = vld [vmem:[#allocation2 + $0xe1] sm:$0xff]  ;;  %v485_v25 = vld [vmem:[#allocation2 + $0xe9] sm:$0xff]  ;;  %5174 = vmatprep.subr.msk.bf16.mxu0 %vm566_vm0, %v5418_v3  ;;  %v505_v27 = vpack.c.bf16 %v483_v21, %v482_v20  ;;  %v496_v28 = vpack.c.bf16 %v465_v23, %v464_v22  ;;  %v466_v30 = vld [vmem:[#allocation2 + $0x51] sm:$0xff] }
  0x28   : > { %v506_v29 = vpack.c.bf16 %v485_v25, %v484_v24  ;;  %v467_v31 = vld [vmem:[#allocation2 + $0x59] sm:$0xff]  ;;  %v486_v32 = vld [vmem:[#allocation2 + $0xf1] sm:$0xff]  ;;  %v402_v50 = vld [vmem:[#allocation2 + $0x8] sm:$0xff]  ;;  %396 = vst.msk [vmem:[#allocation2 + $0x128] sm:$0xff] %vm358_vm1, %v4630_v1 }
  0x29   : > { %v487_v33 = vld [vmem:[#allocation2 + $0xf9] sm:$0xff]  ;;  %v468_v34 = vld [vmem:[#allocation2 + $0x61] sm:$0xff]  ;;  %v469_v35 = vld [vmem:[#allocation2 + $0x69] sm:$0xff]  ;;  %v497_v38 = vpack.c.bf16 %v467_v31, %v466_v30 }
  0x2a   : > { %v488_v36 = vld [vmem:[#allocation2 + $0x101] sm:$0xff]  ;;  %v489_v37 = vld [vmem:[#allocation2 + $0x109] sm:$0xff]  ;;  %v507_v39 = vpack.c.bf16 %v487_v33, %v486_v32  ;;  %v498_v40 = vpack.c.bf16 %v469_v35, %v468_v34  ;;  %v404_v58 = vld [vmem:[#allocation2 + $0x18] sm:$0xff] }
  0x2b   : > { %4832 = vmatmul.mubr.msk.bf16.gmra.mxu0 %vm358_vm1, %v495_v26  ;;  %v508_v41 = vpack.c.bf16 %v489_v37, %v488_v36  ;;  %v470_v42 = vld [vmem:[#allocation2 + $0x71] sm:$0xff]  ;;  %v471_v43 = vld [vmem:[#allocation2 + $0x79] sm:$0xff]  ;;  %v406_v60 = vld [vmem:[#allocation2 + $0x28] sm:$0xff] }
  0x2c   : > { %4852 = vmatmul.mubr.msk.bf16.gmra.mxu1 %vm358_vm1, %v505_v27  ;;  %4835 = vmatprep.mubr.msk.bf16.mxu0 %vm358_vm1, %v496_v28  ;;  %v490_v44 = vld [vmem:[#allocation2 + $0x111] sm:$0xff]  ;;  %v491_v46 = vld [vmem:[#allocation2 + $0x119] sm:$0xff]  ;;  %v499_v51 = vpack.c.bf16 %v471_v43, %v470_v42  ;;  %v981_v61 = vld [vmem:[#allocation2 + $0x2] sm:$0xff] }
  0x2d   : > { %4855 = vmatprep.mubr.msk.bf16.mxu1 %vm358_vm1, %v506_v29  ;;  %v472_v47 = vld [vmem:[#allocation2 + $0x81] sm:$0xff]  ;;  %v473_v48 = vld [vmem:[#allocation2 + $0x89] sm:$0xff]  ;;  %v509_v52 = vpack.c.bf16 %v491_v46, %v490_v44  ;;  %v408_v45 = vld [vmem:[#allocation2 + $0x38] sm:$0xff] }
  0x2e   : > { %v401_v49 = vld [vmem:[#allocation2] sm:$0xff]  ;;  %v500_v53 = vpack.c.bf16 %v473_v48, %v472_v47  ;;  %v474_v55 = vld [vmem:[#allocation2 + $0x91] sm:$0xff]  ;;  %v410_v12 = vld [vmem:[#allocation2 + $0x48] sm:$0xff] }
  0x2f   : > { %v437_v54 = vpack.c.bf16 %v402_v50, %v401_v49  ;;  %v475_v56 = vld [vmem:[#allocation2 + $0x99] sm:$0xff]  ;;  %v403_v57 = vld [vmem:[#allocation2 + $0x10] sm:$0xff]  ;;  %v5445_v7 = vld [vmem:[%s7694_s2 + $0xa] sm:$0x3] }
  0x30   : > { %v405_v59 = vld [vmem:[#allocation2 + $0x20] sm:$0xff]  ;;  %v982_v62 = vld [vmem:[#allocation2 + $0xa] sm:$0xff]  ;;  %v501_v63 = vpack.c.bf16 %v475_v56, %v474_v55  ;;  %v438_v0 = vpack.c.bf16 %v404_v58, %v403_v57  ;;  %v983_v9 = vld [vmem:[#allocation2 + $0x12] sm:$0xff] }
  0x31   : > { %v439_v4 = vpack.c.bf16 %v406_v60, %v405_v59  ;;  %v1017_v6 = vpack.c.bf16 %v982_v62, %v981_v61  ;;  %v407_v8 = vld [vmem:[#allocation2 + $0x30] sm:$0xff]  ;;  %v984_v10 = vld [vmem:[#allocation2 + $0x1a] sm:$0xff]  ;;  %v985_v13 = vld [vmem:[#allocation2 + $0x22] sm:$0xff] }
  0x32   : > { %v409_v11 = vld [vmem:[#allocation2 + $0x40] sm:$0xff]  ;;  %v986_v14 = vld [vmem:[#allocation2 + $0x2a] sm:$0xff]  ;;  %v440_v15 = vpack.c.bf16 %v408_v45, %v407_v8  ;;  %v5453_v16 = vpack.c.bf16 %v984_v10, %v983_v9  ;;  %v412_v21 = vld [vmem:[#allocation2 + $0x58] sm:$0xff] }
  0x33   : > { %4836 = vmatmul.mubr.msk.bf16.gmra.mxu0 %vm358_vm1, %v497_v38  ;;  %v441_v17 = vpack.c.bf16 %v410_v12, %v409_v11  ;;  %v5457_v2 = vpack.c.bf16 %v986_v14, %v985_v13  ;;  %v5462_v19 = vld [vmem:[%s7694_s2 + $0xc] sm:$0x3]  ;;  %v411_v20 = vld [vmem:[#allocation2 + $0x50] sm:$0xff]  ;;  %v988_v23 = vld [vmem:[#allocation2 + $0x3a] sm:$0xff] }
  0x34   : > { %4856 = vmatmul.mubr.msk.bf16.gmra.mxu1 %vm358_vm1, %v507_v39  ;;  %4839 = vmatprep.mubr.msk.bf16.mxu0 %vm358_vm1, %v498_v40  ;;  %v987_v22 = vld [vmem:[#allocation2 + $0x32] sm:$0xff]  ;;  %v413_v3 = vld [vmem:[#allocation2 + $0x60] sm:$0xff]  ;;  %v414_v25 = vld [vmem:[#allocation2 + $0x68] sm:$0xff]  ;;  %v442_v30 = vpack.c.bf16 %v412_v21, %v411_v20 }
  0x35   : > { %4859 = vmatprep.mubr.msk.bf16.mxu1 %vm358_vm1, %v508_v41  ;;  %v4653_v24 = vld [vmem:[%s5341_s9 + $0x98] sm:$0xff]   ;;  %v989_v26 = vld [vmem:[#allocation2 + $0x42] sm:$0xff]  ;;  %v5473_v31 = vpack.c.bf16 %v988_v23, %v987_v22  ;;  %v443_v32 = vpack.c.bf16 %v414_v25, %v413_v3  ;;  %v416_v35 = vld [vmem:[#allocation2 + $0x78] sm:$0xff] }
  0x36   : > { %v990_v27 = vld [vmem:[#allocation2 + $0x4a] sm:$0xff]  ;;  %v4633_v28 = vunpack.c.l.bf16 %v4653_v24  ;;  %v4634_v29 = vunpack.c.h.bf16 %v4653_v24  ;;  %v991_v36 = vld [vmem:[#allocation2 + $0x52] sm:$0xff]  ;;  %v992_v37 = vld [vmem:[#allocation2 + $0x5a] sm:$0xff] }
  0x37   : > { %v5477_v33 = vpack.c.bf16 %v990_v27, %v989_v26  ;;  %v415_v34 = vld [vmem:[#allocation2 + $0x70] sm:$0xff]  ;;  %v417_v38 = vld [vmem:[#allocation2 + $0x80] sm:$0xff]  ;;  %v418_v39 = vld [vmem:[#allocation2 + $0x88] sm:$0xff]  ;;  %v5485_v43 = vpack.c.bf16 %v992_v37, %v991_v36 }
  0x38   : > { %397 = vst.msk [vmem:[#allocation2 + $0x130] sm:$0xff] %vm358_vm1, %v4633_v28  ;;  %398 = vst.msk [vmem:[#allocation2 + $0x138] sm:$0xff] %vm358_vm1, %v4634_v29  ;;  %v993_v40 = vld [vmem:[#allocation2 + $0x62] sm:$0xff]  ;;  %v994_v41 = vld [vmem:[#allocation2 + $0x6a] sm:$0xff]  ;;  %v444_v42 = vpack.c.bf16 %v416_v35, %v415_v34  ;;  %v445_v44 = vpack.c.bf16 %v418_v39, %v417_v38 }
  0x39   : > { %v5487_v46 = vpack.c.bf16 %v994_v41, %v993_v40  ;;  %v419_v47 = vld [vmem:[#allocation2 + $0x90] sm:$0xff]  ;;  %v420_v48 = vld [vmem:[#allocation2 + $0x98] sm:$0xff]  ;;  %v1001_v1 = vld [vmem:[#allocation2 + $0xa2] sm:$0xff] }
  0x3a   : > { %v995_v49 = vld [vmem:[#allocation2 + $0x72] sm:$0xff]  ;;  %v996_v50 = vld [vmem:[#allocation2 + $0x7a] sm:$0xff]  ;;  %v446_v55 = vpack.c.bf16 %v420_v48, %v419_v47  ;;  %v430_v14 = vld [vmem:[#allocation2 + $0xe8] sm:$0xff] }
  0x3b   : > { %4840 = vmatmul.mubr.msk.bf16.gmra.mxu0 %vm358_vm1, %v499_v51  ;;  %v421_v51 = vld [vmem:[#allocation2 + $0xa0] sm:$0xff]  ;;  %v5495_v56 = vpack.c.bf16 %v996_v50, %v995_v49  ;;  %v423_v59 = vld [vmem:[#allocation2 + $0xb0] sm:$0xff]  ;;  %v424_v60 = vld [vmem:[#allocation2 + $0xb8] sm:$0xff] }
  0x3c   : > { %4860 = vmatmul.mubr.msk.bf16.gmra.mxu1 %vm358_vm1, %v509_v52  ;;  %4843 = vmatprep.mubr.msk.bf16.mxu0 %vm358_vm1, %v500_v53  ;;  %v422_v52 = vld [vmem:[#allocation2 + $0xa8] sm:$0xff]  ;;  %v999_v61 = vld [vmem:[#allocation2 + $0x92] sm:$0xff]  ;;  %v1000_v62 = vld [vmem:[#allocation2 + $0x9a] sm:$0xff] }
  0x3d   : > { %4865 = vmatprep.mubr.msk.bf16.mxu1 %vm358_vm1, %v437_v54  ;;  %v997_v53 = vld [vmem:[#allocation2 + $0x82] sm:$0xff]  ;;  %v998_v54 = vld [vmem:[#allocation2 + $0x8a] sm:$0xff]  ;;  %v447_v57 = vpack.c.bf16 %v422_v52, %v421_v51  ;;  %v428_v10 = vld [vmem:[#allocation2 + $0xd8] sm:$0xff] }
  0x3e   : > { %v5497_v58 = vpack.c.bf16 %v998_v54, %v997_v53  ;;  %v427_v9 = vld [vmem:[#allocation2 + $0xd0] sm:$0xff]  ;;  %v1004_v12 = vld [vmem:[#allocation2 + $0xba] sm:$0xff]  ;;  %v434_v27 = vld [vmem:[#allocation2 + $0x108] sm:$0xff]  ;;  %v2070_v53 = vsel %vm566_vm0, %v5445_v7, 0 }
  0x3f   : > { %v1003_v11 = vld [vmem:[#allocation2 + $0xb2] sm:$0xff]  ;;  %v429_v13 = vld [vmem:[#allocation2 + $0xe0] sm:$0xff]  ;;  %v1010_v29 = vld [vmem:[#allocation2 + $0xea] sm:$0xff] }
  0x40   : > { %v5515_v20 = vpack.c.bf16 %v1004_v12, %v1003_v11  ;;  %v451_v21 = vpack.c.bf16 %v430_v14, %v429_v13  ;;  %v431_v23 = vld [vmem:[#allocation2 + $0xf0] sm:$0xff]  ;;  %v432_v3 = vld [vmem:[#allocation2 + $0xf8] sm:$0xff]  ;;  %v433_v26 = vld [vmem:[#allocation2 + $0x100] sm:$0xff] }
  0x41   : > { %v1007_v24 = vld [vmem:[#allocation2 + $0xd2] sm:$0xff]  ;;  %v1008_v25 = vld [vmem:[#allocation2 + $0xda] sm:$0xff]  ;;  %v1009_v28 = vld [vmem:[#allocation2 + $0xe2] sm:$0xff]  ;;  %v453_v34 = vpack.c.bf16 %v434_v27, %v433_v26 }
  0x42   : > { %v5527_v35 = vpack.c.bf16 %v1010_v29, %v1009_v28  ;;  %v435_v36 = vld [vmem:[#allocation2 + $0x110] sm:$0xff]  ;;  %v436_v37 = vld [vmem:[#allocation2 + $0x118] sm:$0xff]  ;;  %v1013_v40 = vld [vmem:[#allocation2 + $0x102] sm:$0xff] }
  0x43   : > { %4844 = vmatmul.mubr.msk.bf16.gmra.mxu0 %vm358_vm1, %v501_v63  ;;  %v425_v63 = vld [vmem:[#allocation2 + $0xc0] sm:$0xff]  ;;  %v1011_v38 = vld [vmem:[#allocation2 + $0xf2] sm:$0xff]  ;;  %v1014_v41 = vld [vmem:[#allocation2 + $0x10a] sm:$0xff] }
  0x44   : > { %4866 = vmatmul.mubr.msk.bf16.vlgmr.msra.gmra.mxu1 %vm358_vm1, %v438_v0  ;;  %4903 = vmatprep.mubr.msk.bf16.mxu0 %vm358_vm1, %v1017_v6  ;;  %v426_v0 = vld [vmem:[#allocation2 + $0xc8] sm:$0xff]  ;;  %v5505_v6 = vpack.c.bf16 %v1000_v62, %v999_v61  ;;  %v1012_v39 = vld [vmem:[#allocation2 + $0xfa] sm:$0xff]  ;;  %v5537_v47 = vpack.c.bf16 %v1014_v41, %v1013_v40  ;;  %v1015_v48 = vld [vmem:[#allocation2 + $0x112] sm:$0xff] }
  0x45   : > { %4940 = vmatpush3.bf16.msra.mxu1 %v1418_v5  ;;  %4869 = vmatprep.mubr.msk.bf16.mxu1 %vm358_vm1, %v439_v4  ;;  %v1002_v4 = vld [vmem:[#allocation2 + $0xaa] sm:$0xff]  ;;  %v448_v5 = vpack.c.bf16 %v424_v60, %v423_v59  ;;  %v449_v8 = vpack.c.bf16 %v426_v0, %v425_v63  ;;  %v1016_v49 = vld [vmem:[#allocation2 + $0x11a] sm:$0xff] }
  0x46   : > { %5175 = vmatprep.subr.msk.bf16.mxu1 %vm566_vm0, %v5445_v7  ;;  %v5507_v45 = vpack.c.bf16 %v1002_v4, %v1001_v1  ;;  %v1633_v50 = vld [vmem:[#allocation2 + $0x13] sm:$0xff]  ;;  %v1634_v51 = vld [vmem:[#allocation2 + $0x1b] sm:$0xff]  ;;  %v5546_v52 = vpack.c.bf16 %v1016_v49, %v1015_v48  ;;  %v1639_v0 = vld [vmem:[#allocation2 + $0x43] sm:$0xff] }
  0x47   : > { %v1669_v54 = vpack.c.bf16 %v1634_v51, %v1633_v50  ;;  %v1637_v7 = vld [vmem:[#allocation2 + $0x33] sm:$0xff]  ;;  %v1638_v59 = vld [vmem:[#allocation2 + $0x3b] sm:$0xff]  ;;  %v1640_v1 = vld [vmem:[#allocation2 + $0x4b] sm:$0xff] }
  0x48   : > { %v316_v60 = vld [vmem:[%s5341_s9 + $0xa0] sm:$0x7]  ;;  %v1671_v63 = vpack.c.bf16 %v1638_v59, %v1637_v7  ;;  %v1642_v4 = vld [vmem:[#allocation2 + $0x5b] sm:$0xff]  ;;  %v1660_v28 = vld [vmem:[#allocation2 + $0xeb] sm:$0xff]  ;;  %s269_s9 = scalar_lea.vmem %s7697_s5, %s4380_s30 }
  0x49   : > { %v357_v62 = vunpack.c.l.bf16 %v316_v60  ;;  %v1649_v13 = vld [vmem:[#allocation2 + $0x93] sm:$0xff]  ;;  %v1650_v14 = vld [vmem:[#allocation2 + $0x9b] sm:$0xff]  ;;  %v1668_v51 = vld [vmem:[#allocation2 + $0x12b] sm:$0xff] }
  0x4a   : > { %v1661_v29 = vld [vmem:[#allocation2 + $0xf3] sm:$0xff]  ;;  %v1666_v40 = vld [vmem:[#allocation2 + $0x11b] sm:$0xff] }
  0x4b   : > { %4904 = vmatmul.mubr.msk.bf16.vlgmr.msra.gmra.mxu0 %vm358_vm1, %v5453_v16  ;;  %400 = vst.msk [vmem:[#allocation2 + $0x140] sm:$0x3f] %vm399_vm2, %v357_v62  ;;  %v1959_v41 = vld [vmem:[#allocation2 + $0x14] sm:$0xff]  ;;  %v1966_v62 = vld [vmem:[#allocation2 + $0x4c] sm:$0xff] }
  0x4c   : > { %4870 = vmatmul.mubr.msk.bf16.gmra.mxu1 %vm358_vm1, %v440_v15  ;;  %4978 = vmatpush3.bf16.msra.mxu0 %v1744_v18  ;;  %v1005_v15 = vld [vmem:[#allocation2 + $0xc2] sm:$0xff]  ;;  %v450_v18 = vpack.c.bf16 %v428_v10, %v427_v9  ;;  %v1645_v9 = vld [vmem:[#allocation2 + $0x73] sm:$0xff] }
  0x4d   : > { %4873 = vmatprep.mubr.msk.bf16.mxu1 %vm358_vm1, %v441_v17  ;;  %4907 = vmatprep.mubr.msk.bf16.mxu0 %vm358_vm1, %v5457_v2  ;;  %v1006_v17 = vld [vmem:[#allocation2 + $0xca] sm:$0xff]  ;;  %v1646_v10 = vld [vmem:[#allocation2 + $0x7b] sm:$0xff] }
  0x4e   : > { %5176 = vmatprep.subr.msk.bf16.mxu0 %vm566_vm0, %v5462_v19  ;;  %v5517_v22 = vpack.c.bf16 %v1006_v17, %v1005_v15  ;;  %v1675_v12 = vpack.c.bf16 %v1646_v10, %v1645_v9  ;;  %v1677_v17 = vpack.c.bf16 %v1650_v14, %v1649_v13  ;;  %v1976_v13 = vld [vmem:[#allocation2 + $0x9c] sm:$0xff] }
  0x53   : > { %4908 = vmatmul.mubr.msk.bf16.gmra.mxu0 %vm358_vm1, %v5473_v31 }
  0x54   : > { %4874 = vmatmul.mubr.msk.bf16.gmra.mxu1 %vm358_vm1, %v442_v30  ;;  %4911 = vmatprep.mubr.msk.bf16.mxu0 %vm358_vm1, %v5477_v33  ;;  %v452_v30 = vpack.c.bf16 %v432_v3, %v431_v23 }
  0x55   : > { %4877 = vmatprep.mubr.msk.bf16.mxu1 %vm358_vm1, %v443_v32  ;;  %v5525_v32 = vpack.c.bf16 %v1008_v25, %v1007_v24  ;;  %v1657_v24 = vld [vmem:[#allocation2 + $0xd3] sm:$0xff]  ;;  %v1658_v25 = vld [vmem:[#allocation2 + $0xdb] sm:$0xff] }
  0x56   : > { %v1681_v27 = vpack.c.bf16 %v1658_v25, %v1657_v24  ;;  %v1979_v25 = vld [vmem:[#allocation2 + $0xb4] sm:$0xff] }
  0x5b   : > { %4912 = vmatmul.mubr.msk.bf16.gmra.mxu0 %vm358_vm1, %v5485_v43 }
  0x5c   : > { %4878 = vmatmul.mubr.msk.bf16.gmra.mxu1 %vm358_vm1, %v444_v42  ;;  %4915 = vmatprep.mubr.msk.bf16.mxu0 %vm358_vm1, %v5487_v46  ;;  %v454_v42 = vpack.c.bf16 %v436_v37, %v435_v36  ;;  %v1341_v36 = vld [vmem:[#allocation2 + $0x122] sm:$0xff]  ;;  %v1342_v37 = vld [vmem:[#allocation2 + $0x12a] sm:$0xff] }
  0x5d   : > { %4881 = vmatprep.mubr.msk.bf16.mxu1 %vm358_vm1, %v445_v44  ;;  %v5535_v44 = vpack.c.bf16 %v1012_v39, %v1011_v38  ;;  %v1664_v38 = vld [vmem:[#allocation2 + $0x10b] sm:$0xff]  ;;  %v1665_v39 = vld [vmem:[#allocation2 + $0x113] sm:$0xff] }
  0x5e   : > { %v1685_v49 = vpack.c.bf16 %v1666_v40, %v1665_v39  ;;  %v1983_v40 = vld [vmem:[#allocation2 + $0xd4] sm:$0xff] }
  0x63   : > { %4916 = vmatmul.mubr.msk.bf16.gmra.mxu0 %vm358_vm1, %v5495_v56 }
  0x64   : > { %4882 = vmatmul.mubr.msk.bf16.gmra.mxu1 %vm358_vm1, %v446_v55  ;;  %4919 = vmatprep.mubr.msk.bf16.mxu0 %vm358_vm1, %v5497_v58  ;;  %v5553_v55 = vld [vmem:[%s7694_s2 + $0xe] sm:$0x3] }
  0x65   : > { %4885 = vmatprep.mubr.msk.bf16.mxu1 %vm358_vm1, %v447_v57  ;;  %v1636_v57 = vld [vmem:[#allocation2 + $0x2b] sm:$0xff]  ;;  %v2722_v60 = vsel %vm566_vm0, %v5553_v55, 0 }
  0x6b   : > { %4920 = vmatmul.mubr.msk.bf16.gmra.mxu0 %vm358_vm1, %v5505_v6 }
  0x6c   : > { %4886 = vmatmul.mubr.msk.bf16.gmra.mxu1 %vm358_vm1, %v448_v5  ;;  %4923 = vmatprep.mubr.msk.bf16.mxu0 %vm358_vm1, %v5507_v45  ;;  %v1672_v5 = vpack.c.bf16 %v1640_v1, %v1639_v0 }
  0x6d   : > { %4889 = vmatprep.mubr.msk.bf16.mxu1 %vm358_vm1, %v449_v8 }
  0x73   : > { %4924 = vmatmul.mubr.msk.bf16.gmra.mxu0 %vm358_vm1, %v5515_v20 }
  0x74   : > { %4890 = vmatmul.mubr.msk.bf16.gmra.mxu1 %vm358_vm1, %v450_v18  ;;  %4927 = vmatprep.mubr.msk.bf16.mxu0 %vm358_vm1, %v5517_v22  ;;  %v1653_v18 = vld [vmem:[#allocation2 + $0xb3] sm:$0xff] }
  0x75   : > { %4893 = vmatprep.mubr.msk.bf16.mxu1 %vm358_vm1, %v451_v21  ;;  %v1654_v21 = vld [vmem:[#allocation2 + $0xbb] sm:$0xff] }
  0x76   : > { %v1679_v3 = vpack.c.bf16 %v1654_v21, %v1653_v18 }
  0x7b   : > { %4928 = vmatmul.mubr.msk.bf16.gmra.mxu0 %vm358_vm1, %v5525_v32 }
  0x7c   : > { %4894 = vmatmul.mubr.msk.bf16.gmra.mxu1 %vm358_vm1, %v452_v30  ;;  %4931 = vmatprep.mubr.msk.bf16.mxu0 %vm358_vm1, %v5527_v35  ;;  %v1662_v30 = vld [vmem:[#allocation2 + $0xfb] sm:$0xff] }
  0x7d   : > { %4897 = vmatprep.mubr.msk.bf16.mxu1 %vm358_vm1, %v453_v34  ;;  %v1683_v34 = vpack.c.bf16 %v1662_v30, %v1661_v29 }
  0x83   : > { %4932 = vmatmul.mubr.msk.bf16.gmra.mxu0 %vm358_vm1, %v5535_v44 }
  0x84   : > { %4898 = vmatmul.mubr.msk.bf16.gmra.mxu1 %vm358_vm1, %v454_v42  ;;  %4935 = vmatprep.mubr.msk.bf16.mxu0 %vm358_vm1, %v5537_v47  ;;  %v1960_v42 = vld [vmem:[#allocation2 + $0x1c] sm:$0xff] }
  0x85   : > { %4941 = vmatprep.mubr.msk.bf16.mxu1 %vm358_vm1, %v5453_v16  ;;  %v1635_v16 = vld [vmem:[#allocation2 + $0x23] sm:$0xff]  ;;  %v1995_v50 = vpack.c.bf16 %v1960_v42, %v1959_v41 }
  0x86   : > { %v1670_v61 = vpack.c.bf16 %v1636_v57, %v1635_v16  ;;  %v1964_v16 = vld [vmem:[#allocation2 + $0x3c] sm:$0xff] }
  0x87   : > { %v1984_v41 = vld [vmem:[#allocation2 + $0xdc] sm:$0xff] }
  0x8b   : > { %4936 = vmatmul.mubr.msk.bf16.gmra.mxu0 %vm358_vm1, %v5546_v52 }
  0x8c   : > { %4942 = vmatmul.mubr.msk.bf16.vlgmr.msra.gmra.mxu1 %vm358_vm1, %v5457_v2  ;;  %4979 = vmatprep.mubr.msk.bf16.mxu0 %vm358_vm1, %v1669_v54  ;;  %v2396_v2 = vsel %vm566_vm0, %v5462_v19, 0  ;;  %v1641_v19 = vld [vmem:[#allocation2 + $0x53] sm:$0xff] }
  0x8d   : > { %5016 = vmatpush3.bf16.msra.mxu1 %v2070_v53  ;;  %4945 = vmatprep.mubr.msk.bf16.mxu1 %vm358_vm1, %v5473_v31  ;;  %v5570_v31 = vld [vmem:[%s7694_s2 + $0x10] sm:$0x3]  ;;  %v1673_v8 = vpack.c.bf16 %v1642_v4, %v1641_v19  ;;  %v1962_v53 = vld [vmem:[#allocation2 + $0x2c] sm:$0xff]  ;;  %v1963_v54 = vld [vmem:[#allocation2 + $0x34] sm:$0xff] }
  0x8e   : > { %5177 = vmatprep.subr.msk.bf16.mxu1 %vm566_vm0, %v5553_v55  ;;  %v1997_v59 = vpack.c.bf16 %v1964_v16, %v1963_v54  ;;  %v3048_v19 = vsel %vm566_vm0, %v5570_v31, 0  ;;  %v1969_v55 = vld [vmem:[#allocation2 + $0x64] sm:$0xff]  ;;  %v1970_v4 = vld [vmem:[#allocation2 + $0x6c] sm:$0xff] }
  0x8f   : > { %v1986_v54 = vld [vmem:[#allocation2 + $0xec] sm:$0xff] }
  0x93   : > { %4980 = vmatmul.mubr.msk.bf16.vlgmr.msra.gmra.mxu0 %vm358_vm1, %v1670_v61  ;;  %v1965_v61 = vld [vmem:[#allocation2 + $0x44] sm:$0xff] }
  0x94   : > { %4946 = vmatmul.mubr.msk.bf16.gmra.mxu1 %vm358_vm1, %v5477_v33  ;;  %5054 = vmatpush3.bf16.msra.mxu0 %v2396_v2  ;;  %v1643_v33 = vld [vmem:[#allocation2 + $0x63] sm:$0xff]  ;;  %v1967_v2 = vld [vmem:[#allocation2 + $0x54] sm:$0xff]  ;;  %v1998_v0 = vpack.c.bf16 %v1966_v62, %v1965_v61 }
  0x95   : > { %4949 = vmatprep.mubr.msk.bf16.mxu1 %vm358_vm1, %v5485_v43  ;;  %4983 = vmatprep.mubr.msk.bf16.mxu0 %vm358_vm1, %v1671_v63  ;;  %v1644_v43 = vld [vmem:[#allocation2 + $0x6b] sm:$0xff]  ;;  %v1968_v63 = vld [vmem:[#allocation2 + $0x5c] sm:$0xff] }
  0x96   : > { %5178 = vmatprep.subr.msk.bf16.mxu0 %vm566_vm0, %v5570_v31  ;;  %v1674_v11 = vpack.c.bf16 %v1644_v43, %v1643_v33  ;;  %v1999_v1 = vpack.c.bf16 %v1968_v63, %v1967_v2  ;;  %v2000_v33 = vpack.c.bf16 %v1970_v4, %v1969_v55  ;;  %v1973_v31 = vld [vmem:[#allocation2 + $0x84] sm:$0xff] }
  0x97   : > { %v1989_v4 = vld [vmem:[#allocation2 + $0x104] sm:$0xff] }
  0x9b   : > { %4984 = vmatmul.mubr.msk.bf16.gmra.mxu0 %vm358_vm1, %v1672_v5  ;;  %v1971_v5 = vld [vmem:[#allocation2 + $0x74] sm:$0xff] }
  0x9c   : > { %4950 = vmatmul.mubr.msk.bf16.gmra.mxu1 %vm358_vm1, %v5487_v46  ;;  %4987 = vmatprep.mubr.msk.bf16.mxu0 %vm358_vm1, %v1673_v8  ;;  %v1647_v46 = vld [vmem:[#allocation2 + $0x83] sm:$0xff] }
  0x9d   : > { %4953 = vmatprep.mubr.msk.bf16.mxu1 %vm358_vm1, %v5495_v56  ;;  %v1648_v56 = vld [vmem:[#allocation2 + $0x8b] sm:$0xff]  ;;  %v1972_v8 = vld [vmem:[#allocation2 + $0x7c] sm:$0xff] }
  0x9e   : > { %v1676_v15 = vpack.c.bf16 %v1648_v56, %v1647_v46  ;;  %v2001_v43 = vpack.c.bf16 %v1972_v8, %v1971_v5  ;;  %v1975_v56 = vld [vmem:[#allocation2 + $0x94] sm:$0xff]  ;;  %v1990_v5 = vld [vmem:[#allocation2 + $0x10c] sm:$0xff] }
  0xa3   : > { %4988 = vmatmul.mubr.msk.bf16.gmra.mxu0 %vm358_vm1, %v1674_v11  ;;  %v1974_v11 = vld [vmem:[#allocation2 + $0x8c] sm:$0xff] }
  0xa4   : > { %4954 = vmatmul.mubr.msk.bf16.gmra.mxu1 %vm358_vm1, %v5497_v58  ;;  %4991 = vmatprep.mubr.msk.bf16.mxu0 %vm358_vm1, %v1675_v12  ;;  %v1651_v58 = vld [vmem:[#allocation2 + $0xa3] sm:$0xff] }
  0xa5   : > { %4957 = vmatprep.mubr.msk.bf16.mxu1 %vm358_vm1, %v5505_v6  ;;  %v1652_v6 = vld [vmem:[#allocation2 + $0xab] sm:$0xff] }
  0xa6   : > { %v1678_v23 = vpack.c.bf16 %v1652_v6, %v1651_v58  ;;  %v2003_v58 = vpack.c.bf16 %v1976_v13, %v1975_v56 }
  0xab   : > { %4992 = vmatmul.mubr.msk.bf16.gmra.mxu0 %vm358_vm1, %v1676_v15 }
  0xac   : > { %4958 = vmatmul.mubr.msk.bf16.gmra.mxu1 %vm358_vm1, %v5507_v45  ;;  %4995 = vmatprep.mubr.msk.bf16.mxu0 %vm358_vm1, %v1677_v17  ;;  %v1655_v45 = vld [vmem:[#allocation2 + $0xc3] sm:$0xff]  ;;  %v2002_v17 = vpack.c.bf16 %v1974_v11, %v1973_v31 }
  0xad   : > { %4961 = vmatprep.mubr.msk.bf16.mxu1 %vm358_vm1, %v5515_v20  ;;  %v1656_v20 = vld [vmem:[#allocation2 + $0xcb] sm:$0xff]  ;;  %v1992_v31 = vld [vmem:[#allocation2 + $0x11c] sm:$0xff] }
  0xae   : > { %v1680_v26 = vpack.c.bf16 %v1656_v20, %v1655_v45  ;;  %v1978_v45 = vld [vmem:[#allocation2 + $0xac] sm:$0xff] }
  0xb3   : > { %4996 = vmatmul.mubr.msk.bf16.gmra.mxu0 %vm358_vm1, %v1678_v23 }
  0xb4   : > { %4962 = vmatmul.mubr.msk.bf16.gmra.mxu1 %vm358_vm1, %v5517_v22  ;;  %4999 = vmatprep.mubr.msk.bf16.mxu0 %vm358_vm1, %v1679_v3  ;;  %v1659_v22 = vld [vmem:[#allocation2 + $0xe3] sm:$0xff] }
  0xb5   : > { %4965 = vmatprep.mubr.msk.bf16.mxu1 %vm358_vm1, %v5525_v32  ;;  %v1682_v32 = vpack.c.bf16 %v1660_v28, %v1659_v22  ;;  %v1977_v3 = vld [vmem:[#allocation2 + $0xa4] sm:$0xff] }
  0xb6   : > { %v2004_v28 = vpack.c.bf16 %v1978_v45, %v1977_v3 }
  0xbb   : > { %5000 = vmatmul.mubr.msk.bf16.gmra.mxu0 %vm358_vm1, %v1680_v26  ;;  %v1980_v26 = vld [vmem:[#allocation2 + $0xbc] sm:$0xff] }
  0xbc   : > { %4966 = vmatmul.mubr.msk.bf16.gmra.mxu1 %vm358_vm1, %v5527_v35  ;;  %5003 = vmatprep.mubr.msk.bf16.mxu0 %vm358_vm1, %v1681_v27  ;;  %v1663_v35 = vld [vmem:[#allocation2 + $0x103] sm:$0xff]  ;;  %v2005_v29 = vpack.c.bf16 %v1980_v26, %v1979_v25 }
  0xbd   : > { %4969 = vmatprep.mubr.msk.bf16.mxu1 %vm358_vm1, %v5535_v44  ;;  %v1360_v44 = vpack.c.bf16 %v1342_v37, %v1341_v36  ;;  %v1684_v48 = vpack.c.bf16 %v1664_v38, %v1663_v35  ;;  %v1981_v35 = vld [vmem:[#allocation2 + $0xc4] sm:$0xff]  ;;  %v1982_v37 = vld [vmem:[#allocation2 + $0xcc] sm:$0xff] }
  0xc3   : > { %5004 = vmatmul.mubr.msk.bf16.gmra.mxu0 %vm358_vm1, %v1682_v32 }
  0xc4   : > { %4970 = vmatmul.mubr.msk.bf16.gmra.mxu1 %vm358_vm1, %v5537_v47  ;;  %5007 = vmatprep.mubr.msk.bf16.mxu0 %vm358_vm1, %v1683_v34  ;;  %v1667_v47 = vld [vmem:[#allocation2 + $0x123] sm:$0xff] }
  0xc5   : > { %4973 = vmatprep.mubr.msk.bf16.mxu1 %vm358_vm1, %v5546_v52  ;;  %v1961_v52 = vld [vmem:[#allocation2 + $0x24] sm:$0xff]  ;;  %v1686_v57 = vpack.c.bf16 %v1668_v51, %v1667_v47 }
  0xc6   : > { %v1996_v7 = vpack.c.bf16 %v1962_v53, %v1961_v52  ;;  %v1985_v53 = vld [vmem:[#allocation2 + $0xe4] sm:$0xff] }
  0xc7   : > { %v2008_v62 = vpack.c.bf16 %v1986_v54, %v1985_v53 }
  0xcb   : > { %5008 = vmatmul.mubr.msk.bf16.gmra.mxu0 %vm358_vm1, %v1684_v48  ;;  %v2006_v48 = vpack.c.bf16 %v1982_v37, %v1981_v35  ;;  %v1994_v35 = vld [vmem:[#allocation2 + $0x12c] sm:$0xff] }
  0xcc   : > { %4974 = vmatmul.mubr.msk.bf16.gmra.mxu1 %vm358_vm1, %v1360_v44  ;;  %5011 = vmatprep.mubr.msk.bf16.mxu0 %vm358_vm1, %v1685_v49  ;;  %v2007_v49 = vpack.c.bf16 %v1984_v41, %v1983_v40  ;;  %v2611_v41 = vld [vmem:[#allocation2 + $0x25] sm:$0xff] }
  0xcd   : > { %5017 = vmatprep.mubr.msk.bf16.mxu1 %vm358_vm1, %v1995_v50 }
  0xd3   : > { %5012 = vmatmul.mubr.msk.bf16.gmra.mxu0 %vm358_vm1, %v1686_v57 }
  0xd4   : > { %5018 = vmatmul.mubr.msk.bf16.vlgmr.msra.gmra.mxu1 %vm358_vm1, %v1996_v7  ;;  %5055 = vmatprep.mubr.msk.bf16.mxu0 %vm358_vm1, %v1996_v7  ;;  %v1987_v7 = vld [vmem:[#allocation2 + $0xf4] sm:$0xff] }
  0xd5   : > { %5092 = vmatpush3.bf16.msra.mxu1 %v2722_v60  ;;  %5021 = vmatprep.mubr.msk.bf16.mxu1 %vm358_vm1, %v1997_v59 }
  0xdb   : > { %5056 = vmatmul.mubr.msk.bf16.vlgmr.msra.gmra.mxu0 %vm358_vm1, %v1997_v59  ;;  %v1988_v59 = vld [vmem:[#allocation2 + $0xfc] sm:$0xff] }
  0xdc   : > { %5022 = vmatmul.mubr.msk.bf16.gmra.mxu1 %vm358_vm1, %v1998_v0  ;;  %5130 = vmatpush3.bf16.msra.mxu0 %v3048_v19  ;;  %v2009_v2 = vpack.c.bf16 %v1988_v59, %v1987_v7 }
  0xdd   : > { %5025 = vmatprep.mubr.msk.bf16.mxu1 %vm358_vm1, %v1999_v1  ;;  %5059 = vmatprep.mubr.msk.bf16.mxu0 %vm358_vm1, %v1998_v0 }
  0xe3   : > { %v5632_v9 = vpop.f32.mrf.mxu0  ;;  %5060 = vmatmul.mubr.msk.bf16.gmra.mxu0 %vm358_vm1, %v1999_v1 }
  0xe4   : > { %v5634_v10 = vpop.f32.mrf.mxu1  ;;  %5026 = vmatmul.mubr.msk.bf16.gmra.mxu1 %vm358_vm1, %v2000_v33  ;;  %5063 = vmatprep.mubr.msk.bf16.mxu0 %vm358_vm1, %v2000_v33 }
  0xe5   : > { %5029 = vmatprep.mubr.msk.bf16.mxu1 %vm358_vm1, %v2001_v43  ;;  %v5640_v12 = vpop.f32.mrf.mxu0 }
  0xe6   : > { %v5642_v46 = vpop.f32.mrf.mxu1 }
  0xe7   : > { %v5644_v14 = vpop.f32.mrf.mxu0 }
  0xe8   : > { %v5646_v15 = vpop.f32.mrf.mxu1 }
  0xe9   : > { %v5648_v6 = vpop.f32.mrf.mxu0 }
  0xea   : > { %v5650_v18 = vpop.f32.mrf.mxu1 }
  0xeb   : > { %v5652_v21 = vpop.f32.mrf.mxu0  ;;  %5064 = vmatmul.mubr.msk.bf16.gmra.mxu0 %vm358_vm1, %v2001_v43  ;;  %v1991_v43 = vld [vmem:[#allocation2 + $0x114] sm:$0xff] }
  0xec   : > { %v5654_v23 = vpop.f32.mrf.mxu1  ;;  %5030 = vmatmul.mubr.msk.bf16.gmra.mxu1 %vm358_vm1, %v2002_v17  ;;  %5067 = vmatprep.mubr.msk.bf16.mxu0 %vm358_vm1, %v2002_v17  ;;  %v2010_v17 = vpack.c.bf16 %v1990_v5, %v1989_v4 }
  0xed   : > { %5033 = vmatprep.mubr.msk.bf16.mxu1 %vm358_vm1, %v2003_v58  ;;  %v5660_v20 = vpop.f32.mrf.mxu0 }
  0xee   : > { %v5662_v24 = vpop.f32.mrf.mxu1 }
  0xef   : > { %v5664_v27 = vpop.f32.mrf.mxu0 }
  0xf0   : > { %v5666_v22 = vpop.f32.mrf.mxu1 }
  0xf1   : > { %v5668_v30 = vpop.f32.mrf.mxu0 }
  0xf2   : > { %v5670_v32 = vpop.f32.mrf.mxu1 }
  0xf3   : > { %v5672_v34 = vpop.f32.mrf.mxu0  ;;  %5068 = vmatmul.mubr.msk.bf16.gmra.mxu0 %vm358_vm1, %v2003_v58 }
  0xf4   : > { %v5674_v36 = vpop.f32.mrf.mxu1  ;;  %5034 = vmatmul.mubr.msk.bf16.gmra.mxu1 %vm358_vm1, %v2004_v28  ;;  %5071 = vmatprep.mubr.msk.bf16.mxu0 %vm358_vm1, %v2004_v28 }
  0xf5   : > { %5037 = vmatprep.mubr.msk.bf16.mxu1 %vm358_vm1, %v2005_v29  ;;  %v5680_v38 = vpop.f32.mrf.mxu0 }
  0xf6   : > { %v5682_v39 = vpop.f32.mrf.mxu1 }
  0xf7   : > { %v5684_v42 = vpop.f32.mrf.mxu0 }
  0xf8   : > { %v5686_v44 = vpop.f32.mrf.mxu1 }
  0xf9   : > { %v5688_v50 = vpop.f32.mrf.mxu0 }
  0xfa   : > { %v5690_v47 = vpop.f32.mrf.mxu1 }
  0xfb   : > { %v5692_v51 = vpop.f32.mrf.mxu0  ;;  %5072 = vmatmul.mubr.msk.bf16.gmra.mxu0 %vm358_vm1, %v2005_v29 }
  0xfc   : > { %v5694_v52 = vpop.f32.mrf.mxu1  ;;  %5038 = vmatmul.mubr.msk.bf16.gmra.mxu1 %vm358_vm1, %v2006_v48  ;;  %5075 = vmatprep.mubr.msk.bf16.mxu0 %vm358_vm1, %v2006_v48 }
  0xfd   : > { %5041 = vmatprep.mubr.msk.bf16.mxu1 %vm358_vm1, %v2007_v49  ;;  %v5700_v16 = vpop.f32.mrf.mxu0 }
  0xfe   : > { %v5702_v57 = vpop.f32.mrf.mxu1 }
  0xff   : > { %v5704_v60 = vpop.f32.mrf.mxu0 }
 0x100   : > { %v5706_v61 = vpop.f32.mrf.mxu1 }
 0x101   : > { %v5708_v63 = vpop.f32.mrf.mxu0 }
 0x102   : > { %v5710_v0 = vpop.f32.mrf.mxu1 }
 0x103   : > { %v5712_v1 = vpop.f32.mrf.mxu0  ;;  %5076 = vmatmul.mubr.msk.bf16.gmra.mxu0 %vm358_vm1, %v2007_v49 }
 0x104   : > { %v4867_v19 = vpop.f32.mrf.mxu1  ;;  %5042 = vmatmul.mubr.msk.bf16.gmra.mxu1 %vm358_vm1, %v2008_v62  ;;  %5079 = vmatprep.mubr.msk.bf16.mxu0 %vm358_vm1, %v2008_v62 }
 0x105   : > { %v847_v55 = vadd.f32 %v4867_v19, %v5632_v9  ;;  %5045 = vmatprep.mubr.msk.bf16.mxu1 %vm358_vm1, %v2009_v2  ;;  %v5719_v8 = vpop.f32.mrf.mxu0  ;;  %v2011_v9 = vpack.c.bf16 %v1992_v31, %v1991_v43  ;;  %v2320_v43 = vld [vmem:[#allocation2 + $0x13c] sm:$0xff] }
 0x106   : > { %v838_v33 = vpop.f32.mrf.mxu1 }
 0x107   : > { %v839_v11 = vadd.f32 %v838_v33, %v5640_v12  ;;  %v5722_v56 = vpop.f32.mrf.mxu0 }
 0x108   : > { %v4868_v13 = vpop.f32.mrf.mxu1 }
 0x109   : > { %v850_v58 = vadd.f32 %v4868_v13, %v5644_v14  ;;  %v5725_v3 = vpop.f32.mrf.mxu0  ;;  %v1993_v14 = vld [vmem:[#allocation2 + $0x124] sm:$0xff] }
 0x10a   : > { %v841_v45 = vpop.f32.mrf.mxu1  ;;  %v2012_v7 = vpack.c.bf16 %v1994_v35, %v1993_v14  ;;  %v2615_v13 = vld [vmem:[#allocation2 + $0x45] sm:$0xff] }
 0x10b   : > { %v842_v25 = vadd.f32 %v841_v45, %v5648_v6  ;;  %v4905_v28 = vpop.f32.mrf.mxu0  ;;  %5080 = vmatmul.mubr.msk.bf16.gmra.mxu0 %vm358_vm1, %v2009_v2  ;;  %v2612_v6 = vld [vmem:[#allocation2 + $0x2d] sm:$0xff] }
 0x10c   : > { %v4871_v26 = vpop.f32.mrf.mxu1  ;;  %5046 = vmatmul.mubr.msk.bf16.gmra.mxu1 %vm358_vm1, %v2010_v17  ;;  %v5731_v29 = vadd.f32 %v4905_v28, %v847_v55  ;;  %5083 = vmatprep.mubr.msk.bf16.mxu0 %vm358_vm1, %v2010_v17  ;;  %v2647_v62 = vpack.c.bf16 %v2612_v6, %v2611_v41  ;;  %v2616_v45 = vld [vmem:[#allocation2 + $0x4d] sm:$0xff] }
 0x10d   : > { %v863_v12 = vadd.f32 %v4871_v26, %v5652_v21  ;;  %5049 = vmatprep.mubr.msk.bf16.mxu1 %vm358_vm1, %v2011_v9  ;;  %v1128_v40 = vpop.f32.mrf.mxu0  ;;  %v2938_v26 = vld [vmem:[#allocation2 + $0x2e] sm:$0xff]  ;;  %v2649_v41 = vpack.c.bf16 %v2616_v45, %v2615_v13 }
 0x10e   : > { %v854_v37 = vpop.f32.mrf.mxu1  ;;  %v5736_v49 = vadd.f32 %v1128_v40, %v839_v11  ;;  %v2613_v11 = vld [vmem:[#allocation2 + $0x35] sm:$0xff] }
 0x10f   : > { %v855_v48 = vadd.f32 %v854_v37, %v5660_v20  ;;  %v4906_v54 = vpop.f32.mrf.mxu0  ;;  %v2319_v20 = vld [vmem:[#allocation2 + $0x134] sm:$0xff] }
 0x110   : > { %v4872_v53 = vpop.f32.mrf.mxu1  ;;  %v5739_v59 = vadd.f32 %v4906_v54, %v850_v58 }
 0x111   : > { %v866_v21 = vadd.f32 %v4872_v53, %v5664_v27  ;;  %v1131_v19 = vpop.f32.mrf.mxu0 }
 0x112   : > { %v857_v2 = vpop.f32.mrf.mxu1  ;;  %v5742_v4 = vadd.f32 %v1131_v19, %v842_v25  ;;  %v2937_v25 = vld [vmem:[#allocation2 + $0x26] sm:$0xff]  ;;  %v2618_v19 = vld [vmem:[#allocation2 + $0x5d] sm:$0xff] }
 0x113   : > { %v858_v55 = vadd.f32 %v857_v2, %v5668_v30  ;;  %v4909_v33 = vpop.f32.mrf.mxu0  ;;  %5084 = vmatmul.mubr.msk.bf16.gmra.mxu0 %vm358_vm1, %v2011_v9  ;;  %v2614_v30 = vld [vmem:[#allocation2 + $0x3d] sm:$0xff]  ;;  %v2973_v6 = vpack.c.bf16 %v2938_v26, %v2937_v25 }
 0x114   : > { %v4875_v5 = vpop.f32.mrf.mxu1  ;;  %5050 = vmatmul.mubr.msk.bf16.gmra.mxu1 %vm358_vm1, %v2012_v7  ;;  %v5747_v27 = vadd.f32 %v4909_v33, %v863_v12  ;;  %5087 = vmatprep.mubr.msk.bf16.mxu0 %vm358_vm1, %v2012_v7  ;;  %v2338_v12 = vpack.c.bf16 %v2320_v43, %v2319_v20  ;;  %v2648_v35 = vpack.c.bf16 %v2614_v30, %v2613_v11  ;;  %v2620_v43 = vld [vmem:[#allocation2 + $0x6d] sm:$0xff] }
 0x115   : > { %v879_v31 = vadd.f32 %v4875_v5, %v5672_v34  ;;  %5093 = vmatprep.mubr.msk.bf16.mxu1 %vm358_vm1, %v2647_v62  ;;  %v1144_v58 = vpop.f32.mrf.mxu0  ;;  %v2939_v5 = vld [vmem:[#allocation2 + $0x36] sm:$0xff]  ;;  %v2941_v11 = vld [vmem:[#allocation2 + $0x46] sm:$0xff]  ;;  %v2942_v30 = vld [vmem:[#allocation2 + $0x4e] sm:$0xff] }
 0x116   : > { %v870_v17 = vpop.f32.mrf.mxu1  ;;  %v5752_v28 = vadd.f32 %v1144_v58, %v855_v48  ;;  %v2617_v48 = vld [vmem:[#allocation2 + $0x55] sm:$0xff] }
 0x117   : > { %v871_v9 = vadd.f32 %v870_v17, %v5680_v38  ;;  %v4910_v34 = vpop.f32.mrf.mxu0 }
 0x118   : > { %v4876_v14 = vpop.f32.mrf.mxu1  ;;  %v5755_v40 = vadd.f32 %v4910_v34, %v866_v21  ;;  %v2975_v34 = vpack.c.bf16 %v2942_v30, %v2941_v11 }
 0x119   : > { %v882_v37 = vadd.f32 %v4876_v14, %v5684_v42  ;;  %v1147_v54 = vpop.f32.mrf.mxu0 }
 0x11a   : > { %v873_v53 = vpop.f32.mrf.mxu1  ;;  %v5758_v62 = vadd.f32 %v1147_v54, %v858_v55  ;;  %v2619_v55 = vld [vmem:[#allocation2 + $0x65] sm:$0xff]  ;;  %v2622_v54 = vld [vmem:[#allocation2 + $0x7d] sm:$0xff] }
 0x11b   : > { %v874_v7 = vadd.f32 %v873_v53, %v5688_v50  ;;  %v4913_v38 = vpop.f32.mrf.mxu0  ;;  %5088 = vmatmul.mubr.msk.bf16.gmra.mxu0 %vm358_vm1, %v2338_v12  ;;  %v2940_v50 = vld [vmem:[#allocation2 + $0x3e] sm:$0xff]  ;;  %v2651_v14 = vpack.c.bf16 %v2620_v43, %v2619_v55 }
 0x11c   : > { %v4879_v2 = vpop.f32.mrf.mxu1  ;;  %5094 = vmatmul.mubr.msk.bf16.vlgmr.msra.gmra.mxu1 %vm358_vm1, %v2648_v35  ;;  %v5763_v21 = vadd.f32 %v4913_v38, %v879_v31  ;;  %5131 = vmatprep.mubr.msk.bf16.mxu0 %vm358_vm1, %v2973_v6  ;;  %v2650_v31 = vpack.c.bf16 %v2618_v19, %v2617_v48  ;;  %v2974_v45 = vpack.c.bf16 %v2940_v50, %v2939_v5  ;;  %v2624_v19 = vld [vmem:[#allocation2 + $0x8d] sm:$0xff] }
 0x11d   : > { %v895_v42 = vadd.f32 %v4879_v2, %v5692_v51  ;;  %5097 = vmatprep.mubr.msk.bf16.mxu1 %vm358_vm1, %v2649_v41  ;;  %v1160_v20 = vpop.f32.mrf.mxu0  ;;  %v2943_v2 = vld [vmem:[#allocation2 + $0x56] sm:$0xff]  ;;  %v2945_v5 = vld [vmem:[#allocation2 + $0x66] sm:$0xff]  ;;  %v2946_v50 = vld [vmem:[#allocation2 + $0x6e] sm:$0xff] }
 0x11e   : > { %v886_v33 = vpop.f32.mrf.mxu1  ;;  %v5768_v17 = vadd.f32 %v1160_v20, %v871_v9  ;;  %v2621_v9 = vld [vmem:[#allocation2 + $0x75] sm:$0xff] }
 0x11f   : > { %v887_v13 = vadd.f32 %v886_v33, %v5700_v16  ;;  %v4914_v51 = vpop.f32.mrf.mxu0 }
 0x120   : > { %v4880_v58 = vpop.f32.mrf.mxu1  ;;  %v5771_v26 = vadd.f32 %v4914_v51, %v882_v37  ;;  %v2977_v51 = vpack.c.bf16 %v2946_v50, %v2945_v5 }
 0x121   : > { %v898_v25 = vadd.f32 %v4880_v58, %v5704_v60  ;;  %v1163_v35 = vpop.f32.mrf.mxu0 }
 0x122   : > { %v889_v12 = vpop.f32.mrf.mxu1  ;;  %v5774_v6 = vadd.f32 %v1163_v35, %v874_v7  ;;  %v2623_v7 = vld [vmem:[#allocation2 + $0x85] sm:$0xff]  ;;  %v2626_v35 = vld [vmem:[#allocation2 + $0x9d] sm:$0xff] }
 0x123   : > { %v890_v41 = vadd.f32 %v889_v12, %v5708_v63  ;;  %v4917_v16 = vpop.f32.mrf.mxu0  ;;  %5132 = vmatmul.mubr.msk.bf16.vlgmr.msra.gmra.mxu0 %vm358_vm1, %v2974_v45  ;;  %v2944_v63 = vld [vmem:[#allocation2 + $0x5e] sm:$0xff]  ;;  %v2653_v58 = vpack.c.bf16 %v2624_v19, %v2623_v7 }
 0x124   : > { %v4883_v53 = vpop.f32.mrf.mxu1  ;;  %5098 = vmatmul.mubr.msk.bf16.gmra.mxu1 %vm358_vm1, %v2650_v31  ;;  %v5779_v37 = vadd.f32 %v4917_v16, %v895_v42  ;;  %5135 = vmatprep.mubr.msk.bf16.mxu0 %vm358_vm1, %v2975_v34  ;;  %v2652_v42 = vpack.c.bf16 %v2622_v54, %v2621_v9  ;;  %v2976_v43 = vpack.c.bf16 %v2944_v63, %v2943_v2  ;;  %v2627_v16 = vld [vmem:[#allocation2 + $0xa5] sm:$0xff]  ;;  %v2628_v9 = vld [vmem:[#allocation2 + $0xad] sm:$0xff] }
 0x125   : > { %v911_v60 = vadd.f32 %v4883_v53, %v5712_v1  ;;  %5101 = vmatprep.mubr.msk.bf16.mxu1 %vm358_vm1, %v2651_v14  ;;  %v1176_v48 = vpop.f32.mrf.mxu0  ;;  %v2949_v54 = vld [vmem:[#allocation2 + $0x86] sm:$0xff]  ;;  %v2950_v2 = vld [vmem:[#allocation2 + $0x8e] sm:$0xff]  ;;  %v2655_v5 = vpack.c.bf16 %v2628_v9, %v2627_v16 }
 0x126   : > { %v902_v38 = vpop.f32.mrf.mxu1  ;;  %v5784_v33 = vadd.f32 %v1176_v48, %v887_v13  ;;  %v2625_v13 = vld [vmem:[#allocation2 + $0x95] sm:$0xff]  ;;  %v2979_v50 = vpack.c.bf16 %v2950_v2, %v2949_v54 }
 0x127   : > { %v903_v55 = vadd.f32 %v902_v38, %v5719_v8  ;;  %v4918_v1 = vpop.f32.mrf.mxu0  ;;  %v2654_v48 = vpack.c.bf16 %v2626_v35, %v2625_v13  ;;  %v2632_v35 = vld [vmem:[#allocation2 + $0xcd] sm:$0xff] }
 0x128   : > { %v4884_v20 = vpop.f32.mrf.mxu1  ;;  %v5787_v30 = vadd.f32 %v4918_v1, %v898_v25  ;;  %v2948_v25 = vld [vmem:[#allocation2 + $0x7e] sm:$0xff] }
 0x129   : > { %v914_v11 = vadd.f32 %v4884_v20, %v5722_v56  ;;  %v1179_v45 = vpop.f32.mrf.mxu0  ;;  %v2947_v56 = vld [vmem:[#allocation2 + $0x76] sm:$0xff] }
 0x12a   : > { %v905_v31 = vpop.f32.mrf.mxu1  ;;  %v5790_v34 = vadd.f32 %v1179_v45, %v890_v41  ;;  %v2978_v19 = vpack.c.bf16 %v2948_v25, %v2947_v56  ;;  %v2953_v56 = vld [vmem:[#allocation2 + $0xa6] sm:$0xff]  ;;  %v2954_v25 = vld [vmem:[#allocation2 + $0xae] sm:$0xff] }
 0x12b   : > { %v906_v14 = vadd.f32 %v905_v31, %v5725_v3  ;;  %v4921_v8 = vpop.f32.mrf.mxu0  ;;  %5136 = vmatmul.mubr.msk.bf16.gmra.mxu0 %vm358_vm1, %v2976_v43  ;;  %v2630_v31 = vld [vmem:[#allocation2 + $0xbd] sm:$0xff] }
 0x12c   : > { %v4887_v12 = vpop.f32.mrf.mxu1  ;;  %5102 = vmatmul.mubr.msk.bf16.gmra.mxu1 %vm358_vm1, %v2652_v42  ;;  %v5794_v53 = vadd.f32 %v4921_v8, %v911_v60  ;;  %5139 = vmatprep.mubr.msk.bf16.mxu0 %vm358_vm1, %v2977_v51  ;;  %v2951_v8 = vld [vmem:[#allocation2 + $0x96] sm:$0xff] }
 0x12d   : > { %5105 = vmatprep.mubr.msk.bf16.mxu1 %vm358_vm1, %v2653_v58  ;;  %v1192_v41 = vpop.f32.mrf.mxu0  ;;  %v927_v42 = vadd.f32 %v4887_v12, %v5634_v10  ;;  %v2952_v10 = vld [vmem:[#allocation2 + $0x9e] sm:$0xff] }
 0x12e   : > { %v918_v3 = vpop.f32.mrf.mxu1  ;;  %v5798_v63 = vadd.f32 %v1192_v41, %v903_v55  ;;  %v2629_v55 = vld [vmem:[#allocation2 + $0xb5] sm:$0xff]  ;;  %v2980_v54 = vpack.c.bf16 %v2952_v10, %v2951_v8  ;;  %v2636_v10 = vld [vmem:[#allocation2 + $0xed] sm:$0xff] }
 0x12f   : > { %v4922_v38 = vpop.f32.mrf.mxu0  ;;  %v919_v45 = vadd.f32 %v918_v3, %v5642_v46  ;;  %v2656_v3 = vpack.c.bf16 %v2630_v31, %v2629_v55  ;;  %v2634_v55 = vld [vmem:[#allocation2 + $0xdd] sm:$0xff] }
 0x130   : > { %v4888_v7 = vpop.f32.mrf.mxu1  ;;  %v5800_v60 = vadd.f32 %v4922_v38, %v914_v11  ;;  %v2955_v31 = vld [vmem:[#allocation2 + $0xb6] sm:$0xff] }
 0x131   : > { %v1195_v1 = vpop.f32.mrf.mxu0  ;;  %v930_v16 = vadd.f32 %v4888_v7, %v5646_v15  ;;  %v2633_v7 = vld [vmem:[#allocation2 + $0xd5] sm:$0xff] }
 0x132   : > { %v921_v20 = vpop.f32.mrf.mxu1  ;;  %v5803_v43 = vadd.f32 %v1195_v1, %v906_v14  ;;  %v2631_v14 = vld [vmem:[#allocation2 + $0xc5] sm:$0xff] }
 0x133   : > { %v4925_v51 = vpop.f32.mrf.mxu0  ;;  %5140 = vmatmul.mubr.msk.bf16.gmra.mxu0 %vm358_vm1, %v2978_v19  ;;  %v922_v2 = vadd.f32 %v921_v20, %v5650_v18  ;;  %v2981_v19 = vpack.c.bf16 %v2954_v25, %v2953_v56 }
 0x134   : > { %v4891_v58 = vpop.f32.mrf.mxu1  ;;  %5106 = vmatmul.mubr.msk.bf16.gmra.mxu1 %vm358_vm1, %v2654_v48  ;;  %v5808_v11 = vadd.f32 %v4925_v51, %v927_v42  ;;  %5143 = vmatprep.mubr.msk.bf16.mxu0 %vm358_vm1, %v2979_v50  ;;  %v2657_v48 = vpack.c.bf16 %v2632_v35, %v2631_v14  ;;  %v2957_v14 = vld [vmem:[#allocation2 + $0xc6] sm:$0xff] }
 0x135   : > { %5109 = vmatprep.mubr.msk.bf16.mxu1 %vm358_vm1, %v2655_v5  ;;  %v1208_v13 = vpop.f32.mrf.mxu0  ;;  %v943_v1 = vadd.f32 %v4891_v58, %v5654_v23  ;;  %v2956_v23 = vld [vmem:[#allocation2 + $0xbe] sm:$0xff] }
 0x136   : > { %v934_v12 = vpop.f32.mrf.mxu1  ;;  %v5813_v41 = vadd.f32 %v1208_v13, %v919_v45  ;;  %v2635_v58 = vld [vmem:[#allocation2 + $0xe5] sm:$0xff]  ;;  %v2958_v13 = vld [vmem:[#allocation2 + $0xce] sm:$0xff] }
 0x137   : > { %v4926_v46 = vpop.f32.mrf.mxu0  ;;  %v935_v18 = vadd.f32 %v934_v12, %v5662_v24  ;;  %v2658_v12 = vpack.c.bf16 %v2634_v55, %v2633_v7  ;;  %v2638_v7 = vld [vmem:[#allocation2 + $0xfd] sm:$0xff] }
 0x138   : > { %v4892_v9 = vpop.f32.mrf.mxu1  ;;  %v5816_v38 = vadd.f32 %v4926_v46, %v930_v16  ;;  %v2982_v16 = vpack.c.bf16 %v2956_v23, %v2955_v31  ;;  %v2959_v55 = vld [vmem:[#allocation2 + $0xd6] sm:$0xff]  ;;  %v2640_v23 = vld [vmem:[#allocation2 + $0x10d] sm:$0xff] }
 0x139   : > { %v1211_v50 = vpop.f32.mrf.mxu0  ;;  %v946_v35 = vadd.f32 %v4892_v9, %v5666_v22  ;;  %v2637_v9 = vld [vmem:[#allocation2 + $0xf5] sm:$0xff] }
 0x13a   : > { %v937_v5 = vpop.f32.mrf.mxu1  ;;  %v5819_v42 = vadd.f32 %v1211_v50, %v922_v2  ;;  %v2983_v2 = vpack.c.bf16 %v2958_v13, %v2957_v14 }
 0x13b   : > { %v4929_v15 = vpop.f32.mrf.mxu0  ;;  %5144 = vmatmul.mubr.msk.bf16.gmra.mxu0 %vm358_vm1, %v2980_v54  ;;  %v938_v46 = vadd.f32 %v937_v5, %v5670_v32  ;;  %v2659_v54 = vpack.c.bf16 %v2636_v10, %v2635_v58  ;;  %v2961_v58 = vld [vmem:[#allocation2 + $0xe6] sm:$0xff] }
 0x13c   : > { %v4895_v51 = vpop.f32.mrf.mxu1  ;;  %5110 = vmatmul.mubr.msk.bf16.gmra.mxu1 %vm358_vm1, %v2656_v3  ;;  %v5824_v20 = vadd.f32 %v4929_v15, %v943_v1  ;;  %5147 = vmatprep.mubr.msk.bf16.mxu0 %vm358_vm1, %v2981_v19 }
 0x13d   : > { %5113 = vmatprep.mubr.msk.bf16.mxu1 %vm358_vm1, %v2657_v48  ;;  %v1224_v8 = vpop.f32.mrf.mxu0  ;;  %v959_v50 = vadd.f32 %v4895_v51, %v5674_v36  ;;  %v2960_v36 = vld [vmem:[#allocation2 + $0xde] sm:$0xff] }
 0x13e   : > { %v950_v45 = vpop.f32.mrf.mxu1  ;;  %v5829_v56 = vadd.f32 %v1224_v8, %v935_v18  ;;  %v2639_v51 = vld [vmem:[#allocation2 + $0x105] sm:$0xff]  ;;  %v2962_v8 = vld [vmem:[#allocation2 + $0xee] sm:$0xff] }
 0x13f   : > { %v4930_v24 = vpop.f32.mrf.mxu0  ;;  %v951_v32 = vadd.f32 %v950_v45, %v5682_v39  ;;  %v2660_v45 = vpack.c.bf16 %v2638_v7, %v2637_v9  ;;  %v2642_v9 = vld [vmem:[#allocation2 + $0x11d] sm:$0xff] }
 0x140   : > { %v4896_v25 = vpop.f32.mrf.mxu1  ;;  %v5832_v3 = vadd.f32 %v4930_v24, %v946_v35  ;;  %v2984_v35 = vpack.c.bf16 %v2960_v36, %v2959_v55  ;;  %v2963_v7 = vld [vmem:[#allocation2 + $0xf6] sm:$0xff]  ;;  %v2644_v55 = vld [vmem:[#allocation2 + $0x12d] sm:$0xff] }
 0x141   : > { %v1227_v19 = vpop.f32.mrf.mxu0  ;;  %v962_v10 = vadd.f32 %v4896_v25, %v5686_v44  ;;  %v2641_v25 = vld [vmem:[#allocation2 + $0x115] sm:$0xff] }
 0x142   : > { %v953_v48 = vpop.f32.mrf.mxu1  ;;  %v5835_v1 = vadd.f32 %v1227_v19, %v938_v46  ;;  %v2985_v46 = vpack.c.bf16 %v2962_v8, %v2961_v58 }
 0x143   : > { %v4933_v22 = vpop.f32.mrf.mxu0  ;;  %5148 = vmatmul.mubr.msk.bf16.gmra.mxu0 %vm358_vm1, %v2982_v16  ;;  %v954_v24 = vadd.f32 %v953_v48, %v5690_v47  ;;  %v2661_v16 = vpack.c.bf16 %v2640_v23, %v2639_v51  ;;  %v2966_v23 = vld [vmem:[#allocation2 + $0x10e] sm:$0xff] }
 0x144   : > { %v4899_v15 = vpop.f32.mrf.mxu1  ;;  %5114 = vmatmul.mubr.msk.bf16.gmra.mxu1 %vm358_vm1, %v2658_v12  ;;  %v5840_v5 = vadd.f32 %v4933_v22, %v959_v50  ;;  %5151 = vmatprep.mubr.msk.bf16.mxu0 %vm358_vm1, %v2983_v2 }
 0x145   : > { %5117 = vmatprep.mubr.msk.bf16.mxu1 %vm358_vm1, %v2659_v54  ;;  %v1240_v31 = vpop.f32.mrf.mxu0  ;;  %v975_v19 = vadd.f32 %v4899_v15, %v5694_v52  ;;  %v2964_v52 = vld [vmem:[#allocation2 + $0xfe] sm:$0xff] }
 0x146   : > { %v966_v18 = vpop.f32.mrf.mxu1  ;;  %v5845_v14 = vadd.f32 %v1240_v31, %v951_v32  ;;  %v2643_v15 = vld [vmem:[#allocation2 + $0x125] sm:$0xff] }
 0x147   : > { %v4934_v39 = vpop.f32.mrf.mxu0  ;;  %v967_v47 = vadd.f32 %v966_v18, %v5702_v57  ;;  %v2965_v31 = vld [vmem:[#allocation2 + $0x106] sm:$0xff] }
 0x148   : > { %v4900_v13 = vpop.f32.mrf.mxu1  ;;  %v5848_v12 = vadd.f32 %v4934_v39, %v962_v10  ;;  %v2986_v39 = vpack.c.bf16 %v2964_v52, %v2963_v7  ;;  %v2970_v52 = vld [vmem:[#allocation2 + $0x12e] sm:$0xff] }
 0x149   : > { %v1243_v2 = vpop.f32.mrf.mxu0  ;;  %v978_v58 = vadd.f32 %v4900_v13, %v5706_v61 }
 0x14a   : > { %v969_v54 = vpop.f32.mrf.mxu1  ;;  %v5851_v50 = vadd.f32 %v1243_v2, %v954_v24 }
 0x14b   : > { %v4937_v22 = vpop.f32.mrf.mxu0  ;;  %5152 = vmatmul.mubr.msk.bf16.gmra.mxu0 %vm358_vm1, %v2984_v35  ;;  %v970_v35 = vadd.f32 %v969_v54, %v5710_v0 }
 0x14c   : > { %v4943_v44 = vpop.f32.mrf.mxu1  ;;  %5118 = vmatmul.mubr.msk.bf16.gmra.mxu1 %vm358_vm1, %v2660_v45  ;;  %v5856_v48 = vadd.f32 %v4937_v22, %v975_v19  ;;  %5155 = vmatprep.mubr.msk.bf16.mxu0 %vm358_vm1, %v2985_v46  ;;  %v2663_v45 = vpack.c.bf16 %v2644_v55, %v2643_v15  ;;  %v2987_v46 = vpack.c.bf16 %v2966_v23, %v2965_v31 }
 0x14d   : > { %v1599_v32 = vadd.f32 %v4943_v44, %v5731_v29  ;;  %5121 = vmatprep.mubr.msk.bf16.mxu1 %vm358_vm1, %v2661_v16  ;;  %v1256_v36 = vpop.f32.mrf.mxu0  ;;  %v2662_v29 = vpack.c.bf16 %v2642_v9, %v2641_v25  ;;  %v2645_v44 = vld [vmem:[#allocation2 + $0x135] sm:$0xff]  ;;  %v2968_v9 = vld [vmem:[#allocation2 + $0x11e] sm:$0xff] }
 0x14e   : > { %v1454_v51 = vpop.f32.mrf.mxu1  ;;  %v5862_v8 = vadd.f32 %v1256_v36, %v967_v47  ;;  %v2967_v25 = vld [vmem:[#allocation2 + $0x116] sm:$0xff]  ;;  %v2969_v47 = vld [vmem:[#allocation2 + $0x126] sm:$0xff] }
 0x14f   : > { %v1597_v57 = vadd.f32 %v1454_v51, %v5736_v49  ;;  %v4938_v18 = vpop.f32.mrf.mxu0 }
 0x150   : > { %v4944_v10 = vpop.f32.mrf.mxu1  ;;  %v5866_v24 = vadd.f32 %v4938_v18, %v978_v58  ;;  %v2989_v58 = vpack.c.bf16 %v2970_v52, %v2969_v47 }
 0x151   : > { %v1600_v16 = vadd.f32 %v4944_v10, %v5739_v59  ;;  %v1259_v2 = vpop.f32.mrf.mxu0  ;;  %v2646_v59 = vld [vmem:[#allocation2 + $0x13d] sm:$0xff] }
 0x152   : > { %v1457_v19 = vpop.f32.mrf.mxu1  ;;  %v5869_v22 = vadd.f32 %v1259_v2, %v970_v35 }
 0x153   : > { %v1598_v61 = vadd.f32 %v1457_v19, %v5742_v4  ;;  %v4981_v49 = vpop.f32.mrf.mxu0  ;;  %5156 = vmatmul.mubr.msk.bf16.gmra.mxu0 %vm358_vm1, %v2986_v39  ;;  %v3379_v19 = vlaneseq }
 0x154   : > { %v4947_v13 = vpop.f32.mrf.mxu1  ;;  %5122 = vmatmul.mubr.msk.bf16.gmra.mxu1 %vm358_vm1, %v2662_v29  ;;  %v5875_v54 = vadd.f32 %v4981_v49, %v1599_v32  ;;  %5159 = vmatprep.mubr.msk.bf16.mxu0 %vm358_vm1, %v2987_v46  ;;  %v2988_v32 = vpack.c.bf16 %v2968_v9, %v2967_v25 }
 0x155   : > { %v1603_v0 = vadd.f32 %v4947_v13, %v5747_v27  ;;  %5125 = vmatprep.mubr.msk.bf16.mxu1 %vm358_vm1, %v2663_v45  ;;  %v1780_v4 = vpop.f32.mrf.mxu0  ;;  %v2664_v27 = vpack.c.bf16 %v2646_v59, %v2645_v44  ;;  %v5900_v9 = vshrl.u32 %v3379_v19, 7 }
 0x156   : > { %v1470_v7 = vpop.f32.mrf.mxu1  ;;  %v5880_v55 = vadd.f32 %v1780_v4, %v1597_v57 }
 0x157   : > { %v1601_v15 = vadd.f32 %v1470_v7, %v5752_v28  ;;  %v4982_v51 = vpop.f32.mrf.mxu0 }
 0x158   : > { %v4948_v36 = vpop.f32.mrf.mxu1  ;;  %v5883_v23 = vadd.f32 %v4982_v51, %v1600_v16  ;;  %v2972_v16 = vld [vmem:[#allocation2 + $0x13e] sm:$0xff]  ;;  %v3382_v51 = vadd.s32 16, %v5900_v9 }
 0x159   : > { %v1604_v31 = vadd.f32 %v4948_v36, %v5755_v40  ;;  %v1783_v10 = vpop.f32.mrf.mxu0  ;;  %v2971_v40 = vld [vmem:[#allocation2 + $0x136] sm:$0xff] }
 0x15a   : > { %v1473_v18 = vpop.f32.mrf.mxu1  ;;  %v5886_v39 = vadd.f32 %v1783_v10, %v1598_v61  ;;  %v2990_v44 = vpack.c.bf16 %v2972_v16, %v2971_v40 }
 0x15b   : > { %v1602_v29 = vadd.f32 %v1473_v18, %v5758_v62  ;;  %v4985_v35 = vpop.f32.mrf.mxu0  ;;  %5160 = vmatmul.mubr.msk.bf16.gmra.mxu0 %vm358_vm1, %v2988_v32 }
 0x15c   : > { %v4951_v45 = vpop.f32.mrf.mxu1  ;;  %5126 = vmatmul.mubr.msk.bf16.gmra.mxu1 %vm358_vm1, %v2664_v27  ;;  %v5891_v57 = vadd.f32 %v4985_v35, %v1603_v0  ;;  %5163 = vmatprep.mubr.msk.bf16.mxu0 %vm358_vm1, %v2989_v58 }
 0x15d   : > { %v1607_v28 = vadd.f32 %v4951_v45, %v5763_v21  ;;  %v1796_v2 = vpop.f32.mrf.mxu0 }
 0x15e   : > { %v1486_v46 = vpop.f32.mrf.mxu1  ;;  %v5895_v61 = vadd.f32 %v1796_v2, %v1601_v15 }
 0x15f   : > { %v1605_v62 = vadd.f32 %v1486_v46, %v5768_v17  ;;  %v4986_v49 = vpop.f32.mrf.mxu0 }
 0x160   : > { %v4952_v13 = vpop.f32.mrf.mxu1  ;;  %v5898_v25 = vadd.f32 %v4986_v49, %v1604_v31 }
 0x161   : > { %v1608_v59 = vadd.f32 %v4952_v13, %v5771_v26  ;;  %v1799_v0 = vpop.f32.mrf.mxu0 }
 0x162   : > { %v1489_v21 = vpop.f32.mrf.mxu1  ;;  %v5903_v4 = vadd.f32 %v1799_v0, %v1602_v29 }
 0x163   : > { %v1606_v7 = vadd.f32 %v1489_v21, %v5774_v6  ;;  %v4989_v52 = vpop.f32.mrf.mxu0  ;;  %5164 = vmatmul.mubr.msk.bf16.gmra.mxu0 %vm358_vm1, %v2990_v44 }
 0x164   : > { %v4955_v47 = vpop.f32.mrf.mxu1  ;;  %v5907_v15 = vadd.f32 %v4989_v52, %v1607_v28 }
 0x165   : > { %v1611_v17 = vadd.f32 %v4955_v47, %v5779_v37  ;;  %v1812_v26 = vpop.f32.mrf.mxu0  ;;  %v5916_v45 = vmul.u32.u64.low 3817748708, %v3382_v51  ;;  %v5917_v37 = vmul.u32.u64.high 3817748708, %v3382_v51, %v5916_v45 }
 0x166   : > { %v1502_v36 = vpop.f32.mrf.mxu1  ;;  %v5911_v32 = vadd.f32 %v1812_v26, %v1605_v62 }
 0x167   : > { %v1609_v27 = vadd.f32 %v1502_v36, %v5784_v33  ;;  %v4990_v6 = vpop.f32.mrf.mxu0  ;;  %v5923_v33 = vadd.s32 24, %v5900_v9 }
 0x168   : > { %v4956_v31 = vpop.f32.mrf.mxu1  ;;  %v5914_v18 = vadd.f32 %v4990_v6, %v1608_v59  ;;  %v5950_v6 = vadd.s32 48, %v5900_v9 }
 0x169   : > { %v1612_v58 = vadd.f32 %v4956_v31, %v5787_v30  ;;  %v1815_v29 = vpop.f32.mrf.mxu0  ;;  %v5929_v30 = vmul.u32.u64.low 3817748708, %v5900_v9  ;;  %v5930_v19 = vmul.u32.u64.high 3817748708, %v5900_v9, %v5929_v30 }
 0x16a   : > { %v1505_v10 = vpop.f32.mrf.mxu1  ;;  %v5920_v28 = vadd.f32 %v1815_v29, %v1606_v7  ;;  %v5936_v21 = vmul.u32.u64.low 3817748708, %v5923_v33  ;;  %v5937_v0 = vmul.u32.u64.high 3817748708, %v5923_v33, %v5936_v21 }
 0x16b   : > { %v1610_v35 = vadd.f32 %v1505_v10, %v5790_v34  ;;  %v4993_v16 = vpop.f32.mrf.mxu0  ;;  %v3422_v10 = vshrl.u32 %v5930_v19, 4  ;;  %v5969_v19 = vadd.s32 32, %v5900_v9 }
 0x16c   : > { %v4959_v40 = vpop.f32.mrf.mxu1  ;;  %v5926_v2 = vadd.f32 %v4993_v16, %v1611_v17  ;;  %v3444_v17 = vshrl.u32 %v5917_v37, 4 }
 0x16d   : > { %v1615_v46 = vadd.f32 %v4959_v40, %v5794_v53  ;;  %v1828_v13 = vpop.f32.mrf.mxu0 }
 0x16e   : > { %v1518_v62 = vpop.f32.mrf.mxu1  ;;  %v5933_v34 = vadd.f32 %v1828_v13, %v1609_v27  ;;  %v3445_v37 = vmul.u32 18, %v3444_v17  ;;  %v3455_v13 = vshrl.u32 %v5937_v0, 4 }
 0x16f   : > { %v1613_v49 = vadd.f32 %v1518_v62, %v5798_v63  ;;  %v4994_v59 = vpop.f32.mrf.mxu0  ;;  %v5947_v63 = vadd.s32 8, %v5900_v9 }
 0x170   : > { %v4960_v44 = vpop.f32.mrf.mxu1  ;;  %v5940_v7 = vadd.f32 %v4994_v59, %v1612_v58 }
 0x171   : > { %v1616_v53 = vadd.f32 %v4960_v44, %v5800_v60  ;;  %v1831_v52 = vpop.f32.mrf.mxu0  ;;  %v5960_v40 = vmul.u32.u64.low 3817748708, %v5947_v63  ;;  %v5961_v16 = vmul.u32.u64.high 3817748708, %v5947_v63, %v5960_v40 }
 0x172   : > { %v1521_v47 = vpop.f32.mrf.mxu1  ;;  %v5944_v26 = vadd.f32 %v1831_v52, %v1610_v35 }
 0x173   : > { %v1614_v36 = vadd.f32 %v1521_v47, %v5803_v43  ;;  %v4997_v31 = vpop.f32.mrf.mxu0  ;;  %v5974_v47 = vsub.s32 %v3382_v51, %v3445_v37 }
 0x174   : > { %v4963_v27 = vpop.f32.mrf.mxu1  ;;  %v5953_v58 = vadd.f32 %v4997_v31, %v1615_v46  ;;  %v3456_v31 = vmul.u32 18, %v3455_v13 }
 0x175   : > { %v1619_v60 = vadd.f32 %v4963_v27, %v5808_v11  ;;  %v1844_v45 = vpop.f32.mrf.mxu0  ;;  %v5965_v11 = vmul.u32.u64.low 3817748708, %v5950_v6  ;;  %v5966_v46 = vmul.u32.u64.high 3817748708, %v5950_v6, %v5965_v11  ;;  %vm3814_vm3 = vcmp.ne.s32.totalorder %v5974_v47, 0 }
 0x176   : > { %v1534_v29 = vpop.f32.mrf.mxu1  ;;  %v5957_v35 = vadd.f32 %v1844_v45, %v1613_v49  ;;  %v3423_v49 = vmul.u32 18, %v3422_v10  ;;  %vm3850_vm4 = vcmp.lt.s32.totalorder %v5974_v47, 0  ;;  %v6004_v13 = vsub.s32 %v5923_v33, %v3456_v31 }
 0x177   : > { %v1617_v43 = vadd.f32 %v1534_v29, %v5813_v41  ;;  %v4998_v62 = vpop.f32.mrf.mxu0  ;;  %v5980_v29 = vmul.u32.u64.low 3817748708, %v5969_v19  ;;  %v5981_v45 = vmul.u32.u64.high 3817748708, %v5969_v19, %v5980_v29  ;;  %v3433_v11 = vshrl.u32 %v5961_v16, 4  ;;  %vm6045_vm9 = vmand %vm3850_vm4, %vm3814_vm3 }
 0x178   : > { %7794 = vst [vmem:[#allocation4_spill] sm:$0xff] %v5957_v35  ;;  %v4964_v30 = vpop.f32.mrf.mxu1  ;;  %v5972_v41 = vadd.f32 %v4998_v62, %v1616_v53  ;;  %v5987_v10 = vsub.s32 %v5900_v9, %v3423_v49  ;;  %v6001_v62 = vadd.s32 18, %v5974_v47  ;;  %7800 = vst [vmem:[#allocation10_spill] sm:$0xff] %v6004_v13  ;;  %v3488_v49 = vshrl.u32 %v5966_v46, 4 }
 0x179   : > { %v1620_v44 = vadd.f32 %v4964_v30, %v5816_v38  ;;  %v1847_v21 = vpop.f32.mrf.mxu0  ;;  %v6020_v16 = vadd.s32 80, %v5900_v9  ;;  %v6023_v46 = vadd.s32 64, %v5900_v9  ;;  %vm3815_vm7 = vcmp.ne.s32.totalorder %v6004_v13, 0 }
 0x17a   : > { %7795 = vst [vmem:[#allocation5_spill] sm:$0xff] %v5972_v41  ;;  %v1537_v59 = vpop.f32.mrf.mxu1  ;;  %v5977_v17 = vadd.f32 %v1847_v21, %v1614_v36  ;;  %7798 = vst [vmem:[#allocation8_spill] sm:$0xff] %v5987_v10  ;;  %vm3812_vm5 = vcmp.ne.s32.totalorder %v5987_v10, 0  ;;  %vm3848_vm6 = vcmp.lt.s32.totalorder %v5987_v10, 0  ;;  %vm3851_vm8 = vcmp.lt.s32.totalorder %v6004_v13, 0 }
 0x17b   : > { %v1618_v52 = vadd.f32 %v1537_v59, %v5819_v42  ;;  %v5001_v27 = vpop.f32.mrf.mxu0  ;;  %v5991_v42 = vadd.s32 56, %v5900_v9  ;;  %vm6066_vm10 = vmand %vm3848_vm6, %vm3812_vm5  ;;  %v6096_v35 = vstv %s6013_s22 }
 0x17c   : > { %7796 = vst [vmem:[#allocation6_spill] sm:$0xff] %v5977_v17  ;;  %v4967_v0 = vpop.f32.mrf.mxu1  ;;  %v5984_v53 = vadd.f32 %v5001_v27, %v1619_v60  ;;  %vm6078_vm11 = vmand %vm3851_vm8, %vm3815_vm7 }
 0x17d   : > { %v1623_v38 = vadd.f32 %v4967_v0, %v5824_v20  ;;  %v1860_v37 = vpop.f32.mrf.mxu0  ;;  %v5998_v20 = vadd.s32 40, %v5900_v9  ;;  %v6016_v0 = vmul.u32.u64.low 3817748708, %v5991_v42  ;;  %v6017_v33 = vmul.u32.u64.high 3817748708, %v5991_v42, %v6016_v0  ;;  %7817 = vst [vmem:[#allocation21_spill] sm:$0xff] %v6096_v35 }
 0x17e   : > { %7797 = vst [vmem:[#allocation7_spill] sm:$0xff] %v5984_v53  ;;  %v1550_v51 = vpop.f32.mrf.mxu1  ;;  %v5994_v40 = vadd.f32 %v1860_v37, %v1617_v43  ;;  %v3434_v37 = vmul.u32 18, %v3433_v11 }
 0x17f   : > { %v1621_v36 = vadd.f32 %v1550_v51, %v5829_v56  ;;  %v5002_v30 = vpop.f32.mrf.mxu0  ;;  %v6029_v27 = vmul.u32.u64.low 3817748708, %v5998_v20  ;;  %v6030_v31 = vmul.u32.u64.high 3817748708, %v5998_v20, %v6029_v27 }
 0x180   : > { %7799 = vst [vmem:[#allocation9_spill] sm:$0xff] %v5994_v40  ;;  %v4968_v60 = vpop.f32.mrf.mxu1  ;;  %v6009_v43 = vadd.f32 %v5002_v30, %v1620_v44  ;;  %v3466_v30 = vshrl.u32 %v5981_v45, 4  ;;  %v6050_v45 = vadd.s32 18, %v5987_v10 }
 0x181   : > { %v1624_v56 = vadd.f32 %v4968_v60, %v5832_v3  ;;  %v1863_v21 = vpop.f32.mrf.mxu0  ;;  %v3489_v60 = vmul.u32 18, %v3488_v49 }
 0x182   : > { %7801 = vst [vmem:[#allocation11_spill] sm:$0xff] %v6009_v43  ;;  %v1553_v59 = vpop.f32.mrf.mxu1  ;;  %v6026_v44 = vadd.f32 %v1863_v21, %v1618_v52  ;;  %7806 = vst [vmem:[#allocation14_spill] sm:$0xff] %v6050_v45 }
 0x183   : > { %v1622_v3 = vadd.f32 %v1553_v59, %v5835_v1  ;;  %v5005_v51 = vpop.f32.mrf.mxu0  ;;  %v6039_v1 = vadd.s32 88, %v5900_v9 }
 0x184   : > { %7802 = vst [vmem:[#allocation12_spill] sm:$0xff] %v6026_v44  ;;  %v4971_v29 = vpop.f32.mrf.mxu1  ;;  %v6035_v43 = vadd.f32 %v5005_v51, %v1623_v38  ;;  %v6056_v38 = vmul.u32.u64.low 3817748708, %v6020_v16  ;;  %v6057_v49 = vmul.u32.u64.high 3817748708, %v6020_v16, %v6056_v38 }
 0x185   : > { %v1627_v0 = vadd.f32 %v4971_v29, %v5840_v5  ;;  %v1876_v59 = vpop.f32.mrf.mxu0  ;;  %v6053_v5 = vadd.s32 18, %v6004_v13  ;;  %v7809_v29 = vmov 0 }
 0x186   : > { %7803 = vst [vmem:[#allocation13_spill] sm:$0xff] %v6035_v43  ;;  %v1566_v52 = vpop.f32.mrf.mxu1  ;;  %v6060_v27 = vadd.f32 %v1876_v59, %v1621_v36  ;;  %v7810_v29 = vsel %vm6066_vm10, 4294967295, %v7809_v29  ;;  %v6071_v51 = vmul.u32.u64.low 3817748708, %v6023_v46  ;;  %v6072_v43 = vmul.u32.u64.high 3817748708, %v6023_v46, %v6071_v51 }
 0x187   : > { %7807 = vst [vmem:[#allocation15_spill] sm:$0xff] %v6053_v5  ;;  %v1625_v21 = vadd.f32 %v1566_v52, %v5845_v14  ;;  %7811 = vst [vmem:[#allocation17_spill] sm:$0xff] %v7810_v29  ;;  %v5006_v40 = vpop.f32.mrf.mxu0  ;;  %v7812_v14 = vmov 0  ;;  %v6083_v36 = vsub.s32 %v5947_v63, %v3434_v37  ;;  %v6086_v52 = vsub.s32 %v5950_v6, %v3489_v60 }
 0x188   : > { %7808 = vst [vmem:[#allocation16_spill] sm:$0xff] %v6060_v27  ;;  %v4972_v44 = vpop.f32.mrf.mxu1  ;;  %v7813_v14 = vsel %vm6078_vm11, 4294967295, %v7812_v14  ;;  %v3467_v59 = vmul.u32 18, %v3466_v30  ;;  %v6089_v51 = vadd.f32 %v5006_v40, %v1624_v56  ;;  %v3499_v6 = vshrl.u32 %v6017_v33, 4 }
 0x189   : > { %7814 = vst [vmem:[#allocation18_spill] sm:$0xff] %v7813_v14  ;;  %7815 = vst [vmem:[#allocation19_spill] sm:$0xff] %v6083_v36  ;;  %v1628_v38 = vadd.f32 %v4972_v44, %v5848_v12  ;;  %v6092_v27 = vmul.u32.u64.low 3817748708, %v6039_v1  ;;  %v6093_v53 = vmul.u32.u64.high 3817748708, %v6039_v1, %v6092_v27  ;;  %v1879_v41 = vpop.f32.mrf.mxu0  ;;  %v3477_v37 = vshrl.u32 %v6030_v31, 4 }
 0x18a   : > { %7816 = vst [vmem:[#allocation20_spill] sm:$0xff] %v6086_v52  ;;  %v1569_v17 = vpop.f32.mrf.mxu1  ;;  %v6108_v56 = vadd.f32 %v1879_v41, %v1622_v3  ;;  %vm3813_vm12 = vcmp.ne.s32.totalorder %v6083_v36, 0  ;;  %vm3849_vm13 = vcmp.lt.s32.totalorder %v6083_v36, 0  ;;  %v6118_v27 = vadd.s32 18, %v6083_v36 }
 0x18b   : > { %v1626_v40 = vadd.f32 %v1569_v17, %v5851_v50  ;;  %v5009_v30 = vpop.f32.mrf.mxu0  ;;  %v6121_v50 = vsub.s32 %v5969_v19, %v3467_v59  ;;  %vm3818_vm14 = vcmp.ne.s32.totalorder %v6086_v52, 0  ;;  %vm3854_vm15 = vcmp.lt.s32.totalorder %v6086_v52, 0  ;;  %vm6154_vm2 = vmand %vm3849_vm13, %vm3813_vm12 }
 0x18c   : > { %v4975_v60 = vpop.f32.mrf.mxu1  ;;  %v6124_v17 = vadd.f32 %v5009_v30, %v1627_v0  ;;  %v6129_v31 = vadd.s32 18, %v6086_v52  ;;  %v3500_v44 = vmul.u32 18, %v3499_v6  ;;  %v3532_v12 = vshrl.u32 %v6057_v49, 4  ;;  %vm6166_vm3 = vmand %vm3854_vm15, %vm3818_vm14 }
 0x18d   : > { %7818 = vst [vmem:[#allocation22_spill] sm:$0xff] %v6121_v50  ;;  %v1631_v41 = vadd.f32 %v4975_v60, %v5856_v48  ;;  %v1892_v3 = vpop.f32.mrf.mxu0  ;;  %v6133_v63 = vadd.s32 72, %v5900_v9  ;;  %v3478_v0 = vmul.u32 18, %v3477_v37  ;;  %v3510_v59 = vshrl.u32 %v6072_v43, 4 }
 0x18e   : > { %v1582_v33 = vpop.f32.mrf.mxu1  ;;  %7819 = vst [vmem:[#allocation23_spill] sm:$0xff] %v6129_v31  ;;  %v6136_v48 = vadd.f32 %v1892_v3, %v1625_v21  ;;  %vm3816_vm0 = vcmp.ne.s32.totalorder %v6121_v50, 0  ;;  %vm3852_vm1 = vcmp.lt.s32.totalorder %v6121_v50, 0  ;;  %v6142_v6 = vadd.s32 112, %v5900_v9 }
 0x18f   : > { %v1629_v19 = vadd.f32 %v1582_v33, %v5862_v8  ;;  %v5010_v30 = vpop.f32.mrf.mxu0  ;;  %v6145_v49 = vadd.s32 96, %v5900_v9  ;;  %v6159_v21 = vadd.s32 18, %v6121_v50  ;;  %v3543_v37 = vshrl.u32 %v6093_v53, 4  ;;  %vm6184_vm4 = vmand %vm3852_vm1, %vm3816_vm0 }
 0x190   : > { %v4976_v60 = vpop.f32.mrf.mxu1  ;;  %v6148_v8 = vadd.f32 %v5010_v30, %v1628_v38  ;;  %v6171_v38 = vsub.s32 %v5991_v42, %v3500_v44  ;;  %v6174_v30 = vmul.u32.u64.low 3817748708, %v6133_v63  ;;  %v6175_v13 = vmul.u32.u64.high 3817748708, %v6133_v63, %v6174_v30 }
 0x191   : > { %v1632_v35 = vadd.f32 %v4976_v60, %v5866_v24  ;;  %7822 = vst [vmem:[#allocation24_spill] sm:$0xff] %v6159_v21  ;;  %v1895_v3 = vpop.f32.mrf.mxu0  ;;  %v7823_v24 = vmov 0  ;;  %v3533_v60 = vmul.u32 18, %v3532_v12  ;;  %v7827_v14 = vmov 0 }
 0x192   : > { %v1585_v33 = vpop.f32.mrf.mxu1  ;;  %v7824_v24 = vsel %vm6166_vm3, 4294967295, %v7823_v24  ;;  %7826 = vst [vmem:[#allocation26_spill] sm:$0xff] %v6171_v38  ;;  %v6178_v5 = vadd.f32 %v1895_v3, %v1626_v40  ;;  %v7828_v14 = vsel %vm6184_vm4, 4294967295, %v7827_v14  ;;  %v6189_v42 = vsub.s32 %v5998_v20, %v3478_v0 }
 0x193   : > { %7825 = vst [vmem:[#allocation25_spill] sm:$0xff] %v7824_v24  ;;  %v1630_v53 = vadd.f32 %v1585_v33, %v5869_v22  ;;  %7829 = vst [vmem:[#allocation27_spill] sm:$0xff] %v7828_v14  ;;  %v3511_v12 = vmul.u32 18, %v3510_v59  ;;  %v5013_v44 = vpop.f32.mrf.mxu0  ;;  %v6192_v30 = vmul.u32.u64.low 3817748708, %v6142_v6  ;;  %v6193_v45 = vmul.u32.u64.high 3817748708, %v6142_v6, %v6192_v30 }
 0x194   : > { %7830 = vst [vmem:[#allocation28_spill] sm:$0xff] %v6189_v42  ;;  %v5019_v10 = vpop.f32.mrf.mxu1  ;;  %v6196_v22 = vmul.u32.u64.low 3817748708, %v6145_v49  ;;  %v6197_v40 = vmul.u32.u64.high 3817748708, %v6145_v49, %v6196_v22  ;;  %v6199_v33 = vadd.f32 %v5013_v44, %v1631_v41  ;;  %v3544_v0 = vmul.u32 18, %v3543_v37 }
 0x195   : > { %v2251_v3 = vadd.f32 %v5019_v10, %v5875_v54  ;;  %v1908_v59 = vpop.f32.mrf.mxu0  ;;  %vm3819_vm5 = vcmp.ne.s32.totalorder %v6171_v38, 0  ;;  %v6216_v54 = vsub.s32 %v6020_v16, %v3533_v60  ;;  %vm3855_vm6 = vcmp.lt.s32.totalorder %v6171_v38, 0 }
 0x196   : > { %v2106_v29 = vpop.f32.mrf.mxu1  ;;  %v6218_v10 = vadd.f32 %v1908_v59, %v1629_v19  ;;  %v6223_v44 = vadd.s32 120, %v5900_v9  ;;  %v6226_v20 = vadd.s32 18, %v6171_v38  ;;  %vm3817_vm7 = vcmp.ne.s32.totalorder %v6189_v42, 0  ;;  %vm6259_vm14 = vmand %vm3855_vm6, %vm3819_vm5 }
 0x197   : > { %7831 = vst [vmem:[#allocation29_spill] sm:$0xff] %v6216_v54  ;;  %v2249_v37 = vadd.f32 %v2106_v29, %v5880_v55  ;;  %v5014_v22 = vpop.f32.mrf.mxu0  ;;  %vm3853_vm8 = vcmp.lt.s32.totalorder %v6189_v42, 0  ;;  %v6231_v16 = vsub.s32 %v6023_v46, %v3511_v12  ;;  %v6237_v29 = vadd.s32 18, %v6189_v42 }
 0x198   : > { %v5020_v30 = vpop.f32.mrf.mxu1  ;;  %7832 = vst [vmem:[#allocation30_spill] sm:$0xff] %v6226_v20  ;;  %v6233_v19 = vadd.f32 %v5014_v22, %v1632_v35  ;;  %v6240_v60 = vsub.s32 %v6039_v1, %v3544_v0  ;;  %vm3822_vm12 = vcmp.ne.s32.totalorder %v6216_v54, 0  ;;  %vm3858_vm13 = vcmp.lt.s32.totalorder %v6216_v54, 0  ;;  %vm6276_vm0 = vmand %vm3853_vm8, %vm3817_vm7 }
 0x199   : > { %7833 = vst [vmem:[#allocation31_spill] sm:$0xff] %v6231_v16  ;;  %v2252_v55 = vadd.f32 %v5020_v30, %v5883_v23  ;;  %7834 = vst [vmem:[#allocation32_spill] sm:$0xff] %v6237_v29  ;;  %v1911_v59 = vpop.f32.mrf.mxu0  ;;  %v3521_v50 = vshrl.u32 %v6175_v13, 4  ;;  %v6246_v46 = vadd.s32 104, %v5900_v9  ;;  %v7836_v22 = vmov 0 }
 0x19a   : > { %7835 = vst [vmem:[#allocation33_spill] sm:$0xff] %v6240_v60  ;;  %v2109_v41 = vpop.f32.mrf.mxu1  ;;  %v6248_v35 = vadd.f32 %v1911_v59, %v1630_v53  ;;  %v6252_v12 = vmul.u32.u64.low 3817748708, %v6223_v44  ;;  %v6253_v30 = vmul.u32.u64.high 3817748708, %v6223_v44, %v6252_v12  ;;  %v7837_v22 = vsel %vm6259_vm14, 4294967295, %v7836_v22  ;;  %vm6298_vm7 = vmand %vm3858_vm13, %vm3822_vm12 }
 0x19b   : > { %v2250_v23 = vadd.f32 %v2109_v41, %v5886_v39  ;;  %v5057_v0 = vpop.f32.mrf.mxu0  ;;  %7838 = vst [vmem:[#allocation34_spill] sm:$0xff] %v7837_v22  ;;  %v6264_v13 = vadd.s32 18, %v6216_v54  ;;  %vm3820_vm15 = vcmp.ne.s32.totalorder %v6231_v16, 0  ;;  %v3576_v39 = vshrl.u32 %v6193_v45, 4 }
 0x19c   : > { %v5023_v1 = vpop.f32.mrf.mxu1  ;;  %v3554_v53 = vshrl.u32 %v6197_v40, 4  ;;  %v6270_v59 = vadd.f32 %v5057_v0, %v2251_v3  ;;  %v7840_v12 = vmov 0  ;;  %vm3856_vm1 = vcmp.lt.s32.totalorder %v6231_v16, 0 }
 0x19d   : > { %7839 = vst [vmem:[#allocation35_spill] sm:$0xff] %v6264_v13  ;;  %v2255_v41 = vadd.f32 %v5023_v1, %v5891_v57  ;;  %v7841_v12 = vsel %vm6276_vm0, 4294967295, %v7840_v12  ;;  %vm3823_vm5 = vcmp.ne.s32.totalorder %v6240_v60, 0  ;;  %v2432_v45 = vpop.f32.mrf.mxu0  ;;  %vm3859_vm6 = vcmp.lt.s32.totalorder %v6240_v60, 0  ;;  %vm6313_vm8 = vmand %vm3856_vm1, %vm3820_vm15 }
 0x19e   : > { %7842 = vst [vmem:[#allocation36_spill] sm:$0xff] %v7841_v12  ;;  %v2122_v21 = vpop.f32.mrf.mxu1  ;;  %v3522_v40 = vmul.u32 18, %v3521_v50  ;;  %v6284_v57 = vmul.u32.u64.low 3817748708, %v6246_v46  ;;  %v6285_v3 = vmul.u32.u64.high 3817748708, %v6246_v46, %v6284_v57  ;;  %v6288_v0 = vadd.f32 %v2432_v45, %v2249_v37  ;;  %vm6327_vm12 = vmand %vm3859_vm6, %vm3823_vm5 }
 0x19f   : > { %v2253_v1 = vadd.f32 %v2122_v21, %v5895_v61  ;;  %v7843_v52 = vmov 0  ;;  %v6303_v50 = vadd.s32 18, %v6231_v16  ;;  %v5058_v61 = vpop.f32.mrf.mxu0  ;;  %v7847_v37 = vmov 0 }
 0x1a0   : > { %v7844_v52 = vsel %vm6298_vm7, 4294967295, %v7843_v52  ;;  %v5024_v57 = vpop.f32.mrf.mxu1  ;;  %v7848_v37 = vsel %vm6313_vm8, 4294967295, %v7847_v37  ;;  %v6318_v45 = vadd.s32 18, %v6240_v60  ;;  %v3577_v14 = vmul.u32 18, %v3576_v39 }
 0x1a1   : > { %7845 = vst [vmem:[#allocation37_spill] sm:$0xff] %v7844_v52  ;;  %7846 = vst [vmem:[#allocation38_spill] sm:$0xff] %v6303_v50  ;;  %v3555_v38 = vmul.u32 18, %v3554_v53  ;;  %v2256_v20 = vadd.f32 %v5024_v57, %v5898_v25  ;;  %v6321_v22 = vadd.f32 %v5058_v61, %v2252_v55  ;;  %v7851_v21 = vmov 0  ;;  %v2435_v53 = vpop.f32.mrf.mxu0 }
 0x1a2   : > { %7849 = vst [vmem:[#allocation39_spill] sm:$0xff] %v7848_v37  ;;  %7850 = vst [vmem:[#allocation40_spill] sm:$0xff] %v6318_v45  ;;  %v7852_v21 = vsel %vm6327_vm12, 4294967295, %v7851_v21  ;;  %v6332_v42 = vadd.s32 144, %v5900_v9  ;;  %v6335_v29 = vadd.s32 128, %v5900_v9  ;;  %v2125_v39 = vpop.f32.mrf.mxu1  ;;  %v6342_v55 = vsub.s32 %v6133_v63, %v3522_v40 }
 0x1a3   : > { %7853 = vst [vmem:[#allocation41_spill] sm:$0xff] %v7852_v21  ;;  %v6345_v57 = vadd.s32 152, %v5900_v9  ;;  %v6348_v61 = vadd.s32 136, %v5900_v9  ;;  %v2254_v12 = vadd.f32 %v2125_v39, %v5903_v4  ;;  %v6351_v31 = vadd.f32 %v2435_v53, %v2250_v23  ;;  %v5061_v63 = vpop.f32.mrf.mxu0 }
 0x1a4   : > { %7854 = vst [vmem:[#allocation42_spill] sm:$0xff] %v6342_v55  ;;  %v3587_v25 = vshrl.u32 %v6253_v30, 4  ;;  %v5027_v54 = vpop.f32.mrf.mxu1  ;;  %v6363_v13 = vsub.s32 %v6142_v6, %v3577_v14  ;;  %v6366_v4 = vsub.s32 %v6145_v49, %v3555_v38  ;;  %v6369_v23 = vadd.s32 176, %v5900_v9 }
 0x1a5   : > { %7855 = vst [vmem:[#allocation43_spill] sm:$0xff] %v6351_v31  ;;  %v2259_v39 = vadd.f32 %v5027_v54, %v5907_v15  ;;  %v6372_v53 = vadd.f32 %v5061_v63, %v2255_v41  ;;  %v6375_v30 = vmul.u32.u64.low 3817748708, %v6332_v42  ;;  %v6376_v24 = vmul.u32.u64.high 3817748708, %v6332_v42, %v6375_v30  ;;  %v2448_v21 = vpop.f32.mrf.mxu0 }
 0x1a6   : > { %7856 = vst [vmem:[#allocation44_spill] sm:$0xff] %v6363_v13  ;;  %7857 = vst [vmem:[#allocation45_spill] sm:$0xff] %v6366_v4  ;;  %v2138_v16 = vpop.f32.mrf.mxu1  ;;  %vm3821_vm13 = vcmp.ne.s32.totalorder %v6342_v55, 0  ;;  %vm3857_vm15 = vcmp.lt.s32.totalorder %v6342_v55, 0  ;;  %v3565_v14 = vshrl.u32 %v6285_v3, 4  ;;  %v6382_v6 = vadd.s32 160, %v5900_v9 }
 0x1a7   : > { %7858 = vst [vmem:[#allocation46_spill] sm:$0xff] %v6372_v53  ;;  %v2257_v49 = vadd.f32 %v2138_v16, %v5911_v32  ;;  %v6385_v15 = vadd.f32 %v2448_v21, %v2253_v1  ;;  %v6388_v38 = vadd.s32 18, %v6342_v55  ;;  %v3588_v54 = vmul.u32 18, %v3587_v25  ;;  %v5062_v63 = vpop.f32.mrf.mxu0  ;;  %vm6407_vm5 = vmand %vm3857_vm15, %vm3821_vm13 }
 0x1a8   : > { %v5028_v41 = vpop.f32.mrf.mxu1  ;;  %v6393_v30 = vmul.u32.u64.low 3817748708, %v6335_v29  ;;  %v6394_v3 = vmul.u32.u64.high 3817748708, %v6335_v29, %v6393_v30  ;;  %v6397_v60 = vadd.f32 %v5062_v63, %v2256_v20  ;;  %v6400_v32 = vadd.s32 18, %v6363_v13 }
 0x1a9   : > { %7859 = vst [vmem:[#allocation47_spill] sm:$0xff] %v6385_v15  ;;  %7860 = vst [vmem:[#allocation48_spill] sm:$0xff] %v6388_v38  ;;  %v2260_v40 = vadd.f32 %v5028_v41, %v5914_v18  ;;  %v2451_v1 = vpop.f32.mrf.mxu0  ;;  %v7863_v21 = vmov 0  ;;  %vm3860_vm1 = vcmp.lt.s32.totalorder %v6366_v4, 0  ;;  %v3566_v18 = vmul.u32 18, %v3565_v14 }
 0x1aa   : > { %7861 = vst [vmem:[#allocation49_spill] sm:$0xff] %v6397_v60  ;;  %7862 = vst [vmem:[#allocation50_spill] sm:$0xff] %v6400_v32  ;;  %v2141_v16 = vpop.f32.mrf.mxu1  ;;  %v7864_v21 = vsel %vm6407_vm5, 4294967295, %v7863_v21  ;;  %v6413_v20 = vmul.u32.u64.low 3817748708, %v6345_v57  ;;  %v6414_v25 = vmul.u32.u64.high 3817748708, %v6345_v57, %v6413_v20  ;;  %v6417_v63 = vadd.f32 %v2451_v1, %v2254_v12 }
 0x1ab   : > { %7865 = vst [vmem:[#allocation51_spill] sm:$0xff] %v7864_v21  ;;  %v2258_v41 = vadd.f32 %v2141_v16, %v5920_v28  ;;  %vm7867_vm6 = vcmp.ne.s32.totalorder %v6363_v13, 0  ;;  %vm7868_vm12 = vcmp.lt.s32.totalorder %v6363_v13, 0  ;;  %v7869_v30 = vmov 0  ;;  %v5065_v20 = vpop.f32.mrf.mxu0 }
 0x1ac   : > { %7866 = vst [vmem:[#allocation52_spill] sm:$0xff] %v6417_v63  ;;  %vm6423_vm8 = vmand %vm7868_vm12, %vm7867_vm6  ;;  %v6428_v45 = vsub.s32 %v6223_v44, %v3588_v54  ;;  %v6431_v14 = vadd.s32 184, %v5900_v9  ;;  %v5031_v50 = vpop.f32.mrf.mxu1  ;;  %v6434_v28 = vadd.s32 18, %v6366_v4  ;;  %v6441_v1 = vadd.s32 168, %v5900_v9 }
 0x1ad   : > { %v7870_v30 = vsel %vm6423_vm8, 4294967295, %v7869_v30  ;;  %v6437_v12 = vmul.u32.u64.low 3817748708, %v6348_v61  ;;  %v6438_v16 = vmul.u32.u64.high 3817748708, %v6348_v61, %v6437_v12  ;;  %v2263_v37 = vadd.f32 %v5031_v50, %v5926_v2  ;;  %v2464_v60 = vpop.f32.mrf.mxu0 }
 0x1ae   : > { %7871 = vst [vmem:[#allocation53_spill] sm:$0xff] %v7870_v30  ;;  %7872 = vst [vmem:[#allocation54_spill] sm:$0xff] %v6428_v45  ;;  %v6444_v52 = vadd.f32 %v5065_v20, %v2259_v39  ;;  %vm7875_vm12 = vcmp.ne.s32.totalorder %v6366_v4, 0  ;;  %v7876_v54 = vmov 0  ;;  %v3620_v12 = vshrl.u32 %v6376_v24, 4  ;;  %v2154_v63 = vpop.f32.mrf.mxu1 }
 0x1af   : > { %7873 = vst [vmem:[#allocation55_spill] sm:$0xff] %v6434_v28  ;;  %vm6454_vm13 = vmand %vm3860_vm1, %vm7875_vm12  ;;  %v6464_v50 = vsub.s32 %v6246_v46, %v3566_v18  ;;  %v6467_v39 = vadd.s32 208, %v5900_v9  ;;  %v6470_v20 = vadd.s32 192, %v5900_v9  ;;  %v2261_v44 = vadd.f32 %v2154_v63, %v5933_v34  ;;  %v5066_v30 = vpop.f32.mrf.mxu0 }
 0x1b0   : > { %7874 = vst [vmem:[#allocation56_spill] sm:$0xff] %v6444_v52  ;;  %v7877_v54 = vsel %vm6454_vm13, 4294967295, %v7876_v54  ;;  %v6473_v55 = vadd.f32 %v2464_v60, %v2257_v49  ;;  %vm3827_vm15 = vcmp.ne.s32.totalorder %v6428_v45, 0  ;;  %vm3863_vm1 = vcmp.lt.s32.totalorder %v6428_v45, 0  ;;  %v5032_v24 = vpop.f32.mrf.mxu1 }
 0x1b1   : > { %7878 = vst [vmem:[#allocation57_spill] sm:$0xff] %v7877_v54  ;;  %7879 = vst [vmem:[#allocation58_spill] sm:$0xff] %v6464_v50  ;;  %v3598_v18 = vshrl.u32 %v6394_v3, 4  ;;  %v6483_v2 = vadd.s32 216, %v5900_v9  ;;  %v6486_v34 = vadd.s32 200, %v5900_v9  ;;  %v2264_v60 = vadd.f32 %v5032_v24, %v5940_v7  ;;  %v2467_v38 = vpop.f32.mrf.mxu0 }
 0x1b2   : > { %7880 = vst [vmem:[#allocation59_spill] sm:$0xff] %v6473_v55  ;;  %v6489_v49 = vadd.f32 %v5066_v30, %v2260_v40  ;;  %v6492_v63 = vadd.s32 18, %v6428_v45  ;;  %v3621_v13 = vmul.u32 18, %v3620_v12  ;;  %v2157_v32 = vpop.f32.mrf.mxu1  ;;  %vm6496_vm6 = vmand %vm3863_vm1, %vm3827_vm15  ;;  %v7883_v3 = vmov 0 }
 0x1b3   : > { %v7884_v3 = vsel %vm6496_vm6, 4294967295, %v7883_v3  ;;  %vm3825_vm12 = vcmp.ne.s32.totalorder %v6464_v50, 0  ;;  %vm3861_vm13 = vcmp.lt.s32.totalorder %v6464_v50, 0  ;;  %v3631_v7 = vshrl.u32 %v6414_v25, 4  ;;  %v5069_v28 = vpop.f32.mrf.mxu0 }
 0x1b4   : > { %7881 = vst [vmem:[#allocation60_spill] sm:$0xff] %v6489_v49  ;;  %7882 = vst [vmem:[#allocation61_spill] sm:$0xff] %v6492_v63  ;;  %v6504_v40 = vadd.s32 240, %v5900_v9  ;;  %v2262_v30 = vadd.f32 %v2157_v32, %v5944_v26  ;;  %v6507_v12 = vadd.f32 %v2467_v38, %v2258_v41  ;;  %v5035_v4 = vpop.f32.mrf.mxu1  ;;  %v6514_v54 = vadd.s32 18, %v6464_v50 }
 0x1b5   : > { %7885 = vst [vmem:[#allocation62_spill] sm:$0xff] %v7884_v3  ;;  %v6510_v24 = vmul.u32.u64.low 3817748708, %v6369_v23  ;;  %v6511_v46 = vmul.u32.u64.high 3817748708, %v6369_v23, %v6510_v24  ;;  %v3599_v21 = vmul.u32 18, %v3598_v18  ;;  %v3609_v49 = vshrl.u32 %v6438_v16, 4  ;;  %vm6531_vm15 = vmand %vm3861_vm13, %vm3825_vm12 }
 0x1b6   : > { %7886 = vst [vmem:[#allocation63_spill] sm:$0xff] %v6507_v12  ;;  %7887 = vst [vmem:[#allocation64_spill] sm:$0xff] %v6514_v54  ;;  %v6518_v25 = vadd.s32 224, %v5900_v9  ;;  %v2267_v55 = vadd.f32 %v5035_v4, %v5953_v58  ;;  %v6521_v26 = vadd.f32 %v5069_v28, %v2263_v37  ;;  %v7889_v32 = vmov 0  ;;  %v2170_v16 = vpop.f32.mrf.mxu1  ;;  %v2480_v58 = vpop.f32.mrf.mxu0  ;;  %v7893_v24 = vld [vmem:[#allocation4_spill] sm:$0xff] }
 0x1b7   : > { %v7890_v32 = vsel %vm6531_vm15, 4294967295, %v7889_v32  ;;  %v6536_v41 = vsub.s32 %v6332_v42, %v3621_v13  ;;  %v3632_v37 = vmul.u32 18, %v3631_v7  ;;  %v6543_v18 = vadd.s32 248, %v5900_v9  ;;  %v7899_v7 = vld [vmem:[#allocation6_spill] sm:$0xff] }
 0x1b8   : > { %7888 = vst [vmem:[#allocation65_spill] sm:$0xff] %v6521_v26  ;;  %7891 = vst [vmem:[#allocation66_spill] sm:$0xff] %v7890_v32  ;;  %v6539_v4 = vmul.u32.u64.low 3817748708, %v6382_v6  ;;  %v6540_v28 = vmul.u32.u64.high 3817748708, %v6382_v6, %v6539_v4  ;;  %v2265_v38 = vadd.f32 %v2170_v16, %v7893_v24  ;;  %v6546_v45 = vadd.f32 %v2480_v58, %v2261_v44  ;;  %v5036_v42 = vpop.f32.mrf.mxu1  ;;  %v5070_v13 = vpop.f32.mrf.mxu0  ;;  %v7896_v44 = vld [vmem:[#allocation5_spill] sm:$0xff] }
 0x1b9   : > { %7892 = vst [vmem:[#allocation67_spill] sm:$0xff] %v6536_v41  ;;  %v6549_v63 = vmul.u32.u64.low 3817748708, %v6431_v14  ;;  %v6550_v3 = vmul.u32.u64.high 3817748708, %v6431_v14, %v6549_v63  ;;  %v6557_v4 = vsub.s32 %v6335_v29, %v3599_v21  ;;  %v3610_v26 = vmul.u32 18, %v3609_v49 }
 0x1ba   : > { %7894 = vst [vmem:[#allocation4_spill] sm:$0xff] %v6546_v45  ;;  %v6560_v12 = vadd.s32 232, %v5900_v9  ;;  %v2268_v16 = vadd.f32 %v5036_v42, %v7896_v44  ;;  %v6563_v58 = vadd.f32 %v5070_v13, %v2264_v60  ;;  %vm3830_vm13 = vcmp.ne.s32.totalorder %v6536_v41, 0  ;;  %v2173_v63 = vpop.f32.mrf.mxu1  ;;  %v2483_v24 = vpop.f32.mrf.mxu0 }
 0x1bb   : > { %7895 = vst [vmem:[#allocation68_spill] sm:$0xff] %v6557_v4  ;;  %vm3866_vm1 = vcmp.lt.s32.totalorder %v6536_v41, 0  ;;  %v6568_v32 = vadd.s32 18, %v6536_v41  ;;  %v6571_v29 = vsub.s32 %v6345_v57, %v3632_v37  ;;  %v2266_v42 = vadd.f32 %v2173_v63, %v7899_v7 }
 0x1bc   : > { %7897 = vst [vmem:[#allocation5_spill] sm:$0xff] %v6563_v58  ;;  %v6574_v21 = vmul.u32.u64.low 3817748708, %v6441_v1  ;;  %v6575_v49 = vmul.u32.u64.high 3817748708, %v6441_v1, %v6574_v21  ;;  %v6578_v60 = vadd.f32 %v2483_v24, %v2262_v30  ;;  %v3664_v13 = vshrl.u32 %v6511_v46, 4  ;;  %v5039_v50 = vpop.f32.mrf.mxu1  ;;  %v5073_v54 = vpop.f32.mrf.mxu0  ;;  %vm6599_vm15 = vmand %vm3866_vm1, %vm3830_vm13 }
 0x1bd   : > { %7898 = vst [vmem:[#allocation69_spill] sm:$0xff] %v6568_v32  ;;  %v6582_v44 = vadd.s32 272, %v5900_v9  ;;  %v6586_v57 = vsub.s32 %v6348_v61, %v3610_v26  ;;  %v6589_v37 = vmul.u32.u64.low 3817748708, %v6467_v39  ;;  %v6590_v58 = vmul.u32.u64.high 3817748708, %v6467_v39, %v6589_v37  ;;  %v7902_v21 = vld [vmem:[#allocation7_spill] sm:$0xff] }
 0x1be   : > { %7900 = vst [vmem:[#allocation6_spill] sm:$0xff] %v6578_v60  ;;  %v2271_v7 = vadd.f32 %v5039_v50, %v7902_v21  ;;  %v6593_v30 = vadd.f32 %v5073_v54, %v2267_v55  ;;  %v7904_v46 = vmov 0  ;;  %v2186_v26 = vpop.f32.mrf.mxu1  ;;  %v2496_v24 = vpop.f32.mrf.mxu0  ;;  %vm3864_vm12 = vcmp.lt.s32.totalorder %v6557_v4, 0  ;;  %v7907_v54 = vld [vmem:[#allocation9_spill] sm:$0xff] }
 0x1bf   : > { %7901 = vst [vmem:[#allocation70_spill] sm:$0xff] %v6586_v57  ;;  %v7905_v46 = vsel %vm6599_vm15, 4294967295, %v7904_v46  ;;  %v6604_v63 = vmul.u32.u64.low 3817748708, %v6470_v20  ;;  %v6605_v61 = vmul.u32.u64.high 3817748708, %v6470_v20, %v6604_v63  ;;  %v3642_v55 = vshrl.u32 %v6540_v28, 4 }
 0x1c0   : > { %7903 = vst [vmem:[#allocation7_spill] sm:$0xff] %v6593_v30  ;;  %7906 = vst [vmem:[#allocation71_spill] sm:$0xff] %v7905_v46  ;;  %v2269_v50 = vadd.f32 %v2186_v26, %v7907_v54  ;;  %v6612_v37 = vadd.f32 %v2496_v24, %v2265_v38  ;;  %v3665_v21 = vmul.u32 18, %v3664_v13  ;;  %v3675_v30 = vshrl.u32 %v6550_v3, 4  ;;  %v5040_v60 = vpop.f32.mrf.mxu1  ;;  %v5074_v45 = vpop.f32.mrf.mxu0  ;;  %v7909_v26 = vld [vmem:[#allocation11_spill] sm:$0xff]  ;;  %v7920_v46 = vld [vmem:[#allocation12_spill] sm:$0xff] }
 0x1c1   : > { %v6622_v28 = vadd.s32 256, %v5900_v9  ;;  %v2272_v38 = vadd.f32 %v5040_v60, %v7909_v26  ;;  %v6625_v24 = vadd.f32 %v5074_v45, %v2268_v16  ;;  %vm7911_vm8 = vcmp.ne.s32.totalorder %v6557_v4, 0 }
 0x1c2   : > { %7908 = vst [vmem:[#allocation9_spill] sm:$0xff] %v6612_v37  ;;  %vm6631_vm6 = vmand %vm3864_vm12, %vm7911_vm8  ;;  %v7912_v3 = vmov 0  ;;  %v6636_v13 = vadd.s32 18, %v6557_v4  ;;  %v6639_v54 = vadd.s32 280, %v5900_v9  ;;  %v2189_v63 = vpop.f32.mrf.mxu1  ;;  %v2499_v41 = vpop.f32.mrf.mxu0  ;;  %vm7914_vm1 = vcmp.ne.s32.totalorder %v6571_v29, 0 }
 0x1c3   : > { %7910 = vst [vmem:[#allocation11_spill] sm:$0xff] %v6625_v24  ;;  %v7913_v3 = vsel %vm6631_vm6, 4294967295, %v7912_v3  ;;  %vm7915_vm13 = vcmp.lt.s32.totalorder %v6571_v29, 0  ;;  %v7916_v45 = vmov 0  ;;  %v6650_v16 = vadd.s32 18, %v6571_v29 }
 0x1c4   : > { %vm6645_vm15 = vmand %vm7915_vm13, %vm7914_vm1  ;;  %v6653_v60 = vadd.s32 18, %v6586_v57  ;;  %v3643_v26 = vmul.u32 18, %v3642_v55  ;;  %v3653_v32 = vshrl.u32 %v6575_v49, 4  ;;  %v2270_v24 = vadd.f32 %v2189_v63, %v7920_v46  ;;  %v5043_v31 = vpop.f32.mrf.mxu1  ;;  %v5077_v55 = vpop.f32.mrf.mxu0  ;;  %v7927_v63 = vld [vmem:[#allocation13_spill] sm:$0xff] }
 0x1c5   : > { %v7917_v45 = vsel %vm6645_vm15, 4294967295, %v7916_v45  ;;  %v6657_v37 = vadd.f32 %v2499_v41, %v2266_v42  ;;  %vm7922_vm8 = vcmp.ne.s32.totalorder %v6586_v57, 0  ;;  %vm7923_vm12 = vcmp.lt.s32.totalorder %v6586_v57, 0 }
 0x1c6   : > { %7918 = vst [vmem:[#allocation72_spill] sm:$0xff] %v7917_v45  ;;  %7919 = vst [vmem:[#allocation73_spill] sm:$0xff] %v6653_v60  ;;  %v7924_v52 = vmov 0  ;;  %v6668_v15 = vsub.s32 %v6369_v23, %v3665_v21  ;;  %v3676_v53 = vmul.u32 18, %v3675_v30  ;;  %v3708_v49 = vshrl.u32 %v6590_v58, 4  ;;  %v2202_v21 = vpop.f32.mrf.mxu1  ;;  %v2512_v58 = vpop.f32.mrf.mxu0 }
 0x1c7   : > { %7921 = vst [vmem:[#allocation12_spill] sm:$0xff] %v6657_v37  ;;  %vm6663_vm13 = vmand %vm7923_vm12, %vm7922_vm8  ;;  %v3686_v46 = vshrl.u32 %v6605_v61, 4  ;;  %v6673_v41 = vmul.u32.u64.low 3817748708, %v6483_v2  ;;  %v6674_v42 = vmul.u32.u64.high 3817748708, %v6483_v2, %v6673_v41  ;;  %v2275_v37 = vadd.f32 %v5043_v31, %v7927_v63 }
 0x1c8   : > { %v7925_v52 = vsel %vm6663_vm13, 4294967295, %v7924_v52  ;;  %7926 = vst [vmem:[#allocation74_spill] sm:$0xff] %v6668_v15  ;;  %v6677_v36 = vadd.f32 %v5077_v55, %v2271_v7  ;;  %v6684_v30 = vadd.s32 264, %v5900_v9  ;;  %v6695_v7 = vsub.s32 %v6382_v6, %v3643_v26  ;;  %v7930_v41 = vld [vmem:[#allocation16_spill] sm:$0xff]  ;;  %v5044_v4 = vpop.f32.mrf.mxu1  ;;  %v5078_v45 = vpop.f32.mrf.mxu0 }
 0x1c9   : > { %v3654_v55 = vmul.u32 18, %v3653_v32  ;;  %v2273_v63 = vadd.f32 %v2202_v21, %v7930_v41  ;;  %v6698_v9 = vadd.f32 %v2512_v58, %v2269_v50  ;;  %v6706_v61 = vsub.s32 %v6431_v14, %v3676_v53 }
 0x1ca   : > { %7928 = vst [vmem:[#allocation13_spill] sm:$0xff] %v6677_v36  ;;  %7929 = vst [vmem:[#allocation75_spill] sm:$0xff] %v6684_v30  ;;  %v6701_v23 = vmul.u32.u64.low 3817748708, %v6486_v34  ;;  %v6702_v36 = vmul.u32.u64.high 3817748708, %v6486_v34, %v6701_v23  ;;  %v3709_v31 = vmul.u32 18, %v3708_v49  ;;  %v2276_v6 = vadd.f32 %v5044_v4, %v6089_v51  ;;  %v2205_v21 = vpop.f32.mrf.mxu1  ;;  %v2515_v58 = vpop.f32.mrf.mxu0 }
 0x1cb   : > { %v3687_v57 = vmul.u32 18, %v3686_v46  ;;  %v6709_v32 = vadd.f32 %v5078_v45, %v2272_v38  ;;  %v6712_v50 = vmul.u32.u64.low 3817748708, %v6504_v40  ;;  %v6713_v26 = vmul.u32.u64.high 3817748708, %v6504_v40, %v6712_v50 }
 0x1cc   : > { %v6717_v23 = vadd.s32 18, %v6668_v15  ;;  %v6721_v53 = vsub.s32 %v6441_v1, %v3654_v55  ;;  %v2274_v51 = vadd.f32 %v2205_v21, %v6108_v56  ;;  %v6724_v14 = vadd.f32 %v2515_v58, %v2270_v24  ;;  %v5047_v38 = vpop.f32.mrf.mxu1  ;;  %v5081_v45 = vpop.f32.mrf.mxu0 }
 0x1cd   : > { %7931 = vst [vmem:[#allocation16_spill] sm:$0xff] %v6709_v32  ;;  %v6728_v4 = vadd.s32 18, %v6695_v7  ;;  %v6733_v49 = vsub.s32 %v6467_v39, %v3709_v31  ;;  %v3719_v1 = vshrl.u32 %v6674_v42, 4  ;;  %v2279_v56 = vadd.f32 %v5047_v38, %v6124_v17 }
 0x1ce   : > { %7932 = vst [vmem:[#allocation76_spill] sm:$0xff] %v6717_v23  ;;  %7933 = vst [vmem:[#allocation77_spill] sm:$0xff] %v6724_v14  ;;  %v6737_v24 = vadd.f32 %v5081_v45, %v2275_v37  ;;  %v6740_v46 = vadd.s32 18, %v6706_v61  ;;  %v6743_v55 = vsub.s32 %v6470_v20, %v3687_v57  ;;  %v2218_v41 = vpop.f32.mrf.mxu1  ;;  %v2528_v50 = vpop.f32.mrf.mxu0  ;;  %vm7936_vm1 = vcmp.ne.s32.totalorder %v6668_v15, 0 }
 0x1cf   : > { %v6748_v39 = vmul.u32.u64.low 3817748708, %v6518_v25  ;;  %v6749_v31 = vmul.u32.u64.high 3817748708, %v6518_v25, %v6748_v39  ;;  %v2277_v17 = vadd.f32 %v2218_v41, %v6136_v48  ;;  %v6752_v37 = vadd.f32 %v2528_v50, %v2273_v63 }
 0x1d0   : > { %7934 = vst [vmem:[#allocation78_spill] sm:$0xff] %v6737_v24  ;;  %vm7937_vm12 = vcmp.lt.s32.totalorder %v6668_v15, 0  ;;  %v7938_v20 = vmov 0  ;;  %v6763_v57 = vadd.s32 18, %v6721_v53  ;;  %v3697_v42 = vshrl.u32 %v6702_v36, 4  ;;  %v5048_v21 = vpop.f32.mrf.mxu1  ;;  %v5082_v58 = vpop.f32.mrf.mxu0 }
 0x1d1   : > { %7935 = vst [vmem:[#allocation79_spill] sm:$0xff] %v6752_v37  ;;  %vm6758_vm15 = vmand %vm7937_vm12, %vm7936_vm1  ;;  %vm7941_vm13 = vcmp.ne.s32.totalorder %v6695_v7, 0  ;;  %vm7942_vm8 = vcmp.lt.s32.totalorder %v6695_v7, 0  ;;  %v7943_v48 = vmov 0  ;;  %v3720_v63 = vmul.u32 18, %v3719_v1 }
 0x1d2   : > { %v7939_v20 = vsel %vm6758_vm15, 4294967295, %v7938_v20  ;;  %vm6770_vm6 = vmand %vm7942_vm8, %vm7941_vm13  ;;  %v3752_v38 = vshrl.u32 %v6713_v26, 4  ;;  %v2280_v45 = vadd.f32 %v5048_v21, %v6148_v8  ;;  %v6778_v36 = vadd.f32 %v5082_v58, %v2276_v6  ;;  %v2221_v50 = vpop.f32.mrf.mxu1  ;;  %v2531_v1 = vpop.f32.mrf.mxu0 }
 0x1d3   : > { %7940 = vst [vmem:[#allocation80_spill] sm:$0xff] %v7939_v20  ;;  %v7944_v48 = vsel %vm6770_vm6, 4294967295, %v7943_v48  ;;  %vm7946_vm5 = vcmp.ne.s32.totalorder %v6706_v61, 0  ;;  %vm7947_vm7 = vcmp.lt.s32.totalorder %v6706_v61, 0  ;;  %v7948_v41 = vmov 0 }
 0x1d4   : > { %7945 = vst [vmem:[#allocation81_spill] sm:$0xff] %v6778_v36  ;;  %vm6784_vm0 = vmand %vm7947_vm7, %vm7946_vm5  ;;  %vm3836_vm13 = vcmp.ne.s32.totalorder %v6743_v55, 0  ;;  %vm3872_vm8 = vcmp.lt.s32.totalorder %v6743_v55, 0  ;;  %vm7950_vm12 = vcmp.ne.s32.totalorder %v6721_v53, 0  ;;  %vm7951_vm1 = vcmp.lt.s32.totalorder %v6721_v53, 0  ;;  %v5051_v14 = vpop.f32.mrf.mxu1  ;;  %v5085_v32 = vpop.f32.mrf.mxu0 }
 0x1d5   : > { %v7949_v41 = vsel %vm6784_vm0, 4294967295, %v7948_v41  ;;  %vm6794_vm14 = vmand %vm7951_vm1, %vm7950_vm12  ;;  %v7952_v8 = vmov 0  ;;  %v6799_v6 = vadd.s32 18, %v6733_v49  ;;  %v3730_v26 = vshrl.u32 %v6749_v31, 4 }
 0x1d6   : > { %v7953_v8 = vsel %vm6794_vm14, 4294967295, %v7952_v8  ;;  %v6803_v39 = vmul.u32.u64.low 3817748708, %v6543_v18  ;;  %v6804_v21 = vmul.u32.u64.high 3817748708, %v6543_v18, %v6803_v39  ;;  %v2278_v58 = vadd.f32 %v2221_v50, %v6178_v5  ;;  %vm6828_vm12 = vmand %vm3872_vm8, %vm3836_vm13  ;;  %v2234_v15 = vpop.f32.mrf.mxu1  ;;  %v2544_v23 = vpop.f32.mrf.mxu0 }
 0x1d7   : > { %v6807_v36 = vadd.f32 %v2531_v1, %v2274_v51  ;;  %vm7955_vm7 = vcmp.ne.s32.totalorder %v6733_v49, 0  ;;  %vm7956_vm5 = vcmp.lt.s32.totalorder %v6733_v49, 0  ;;  %v7957_v37 = vmov 0 }
 0x1d8   : > { %vm6813_vm1 = vmand %vm7956_vm5, %vm7955_vm7  ;;  %v6818_v24 = vadd.s32 18, %v6743_v55  ;;  %v3698_v31 = vmul.u32 18, %v3697_v42  ;;  %v7959_v51 = vmov 0  ;;  %v6833_v50 = vsub.s32 %v6483_v2, %v3720_v63 }
 0x1d9   : > { %7954 = vst [vmem:[#allocation82_spill] sm:$0xff] %v6807_v36  ;;  %v7958_v37 = vsel %vm6813_vm1, 4294967295, %v7957_v37  ;;  %v7960_v51 = vsel %vm6828_vm12, 4294967295, %v7959_v51  ;;  %v3753_v1 = vmul.u32 18, %v3752_v38  ;;  %v3731_v42 = vmul.u32 18, %v3730_v26  ;;  %v5052_v38 = vpop.f32.mrf.mxu1  ;;  %v5086_v26 = vpop.f32.mrf.mxu0 }
 0x1da   : > { %v2283_v39 = vadd.f32 %v5051_v14, %v6199_v33  ;;  %v6836_v36 = vadd.f32 %v5085_v32, %v2279_v56  ;;  %v6839_v20 = vmul.u32.u64.low 3817748708, %v6560_v12  ;;  %v6840_v5 = vmul.u32.u64.high 3817748708, %v6560_v12, %v6839_v20 }
 0x1db   : > { %v3763_v32 = vshrl.u32 %v6804_v21, 4  ;;  %v2281_v14 = vadd.f32 %v2234_v15, %v6218_v10  ;;  %v6856_v56 = vadd.f32 %v2544_v23, %v2277_v17  ;;  %v6868_v21 = vsub.s32 %v6486_v34, %v3698_v31  ;;  %v2237_v33 = vpop.f32.mrf.mxu1  ;;  %v2547_v2 = vpop.f32.mrf.mxu0 }
 0x1dc   : > { %v6871_v10 = vsub.s32 %v6504_v40, %v3753_v1  ;;  %v2284_v23 = vadd.f32 %v5052_v38, %v6233_v19  ;;  %v6874_v17 = vadd.f32 %v5086_v26, %v2280_v45  ;;  %v6877_v20 = vsub.s32 %v6518_v25, %v3731_v42 }
 0x1dd   : > { %7961 = vst [vmem:[#allocation83_spill] sm:$0xff] %v6856_v56  ;;  %7962 = vst [vmem:[#allocation84_spill] sm:$0xff] %v6868_v21  ;;  %v3764_v15 = vmul.u32 18, %v3763_v32  ;;  %v3741_v63 = vshrl.u32 %v6840_v5, 4  ;;  %v6882_v34 = vadd.s32 18, %v6833_v50  ;;  %v2282_v19 = vadd.f32 %v2237_v33, %v6248_v35  ;;  %v5089_v5 = vpop.f32.mrf.mxu0  ;;  %v5095_v42 = vpop.f32.mrf.mxu1 }
 0x1de   : > { %7963 = vst [vmem:[#allocation85_spill] sm:$0xff] %v6874_v17  ;;  %7964 = vst [vmem:[#allocation86_spill] sm:$0xff] %v6877_v20  ;;  %v6885_v40 = vmul.u32.u64.low 3817748708, %v6582_v44  ;;  %v6886_v31 = vmul.u32.u64.high 3817748708, %v6582_v44, %v6885_v40  ;;  %v6889_v45 = vadd.f32 %v2547_v2, %v2278_v58  ;;  %v6897_v32 = vadd.s32 18, %v6868_v21 }
 0x1df   : > { %v6892_v25 = vsub.s32 %v6543_v18, %v3764_v15  ;;  %v3742_v1 = vmul.u32 18, %v3741_v63  ;;  %v6900_v38 = vadd.f32 %v5089_v5, %v2283_v39  ;;  %v2560_v18 = vpop.f32.mrf.mxu0  ;;  %v2758_v58 = vpop.f32.mrf.mxu1  ;;  %vm7970_vm7 = vcmp.ne.s32.totalorder %v6833_v50, 0 }
 0x1e0   : > { %7965 = vst [vmem:[#allocation87_spill] sm:$0xff] %v6889_v45  ;;  %7967 = vst [vmem:[#allocation89_spill] sm:$0xff] %v6897_v32  ;;  %vm7971_vm5 = vcmp.lt.s32.totalorder %v6833_v50, 0  ;;  %v3796_v39 = vshrl.u32 %v6886_v31, 4  ;;  %v6918_v33 = vmul.u32.u64.low 3817748708, %v6622_v28  ;;  %v6919_v63 = vmul.u32.u64.high 3817748708, %v6622_v28, %v6918_v33 }
 0x1e1   : > { %7966 = vst [vmem:[#allocation88_spill] sm:$0xff] %v6892_v25  ;;  %7968 = vst [vmem:[#allocation90_spill] sm:$0xff] %v6900_v38  ;;  %v6905_v35 = vsub.s32 %v6560_v12, %v3742_v1  ;;  %v6921_v12 = vadd.f32 %v2560_v18, %v2281_v14  ;;  %vm7975_vm12 = vcmp.ne.s32.totalorder %v6868_v21, 0  ;;  %vm7976_vm13 = vcmp.lt.s32.totalorder %v6868_v21, 0  ;;  %v5090_v40 = vpop.f32.mrf.mxu0  ;;  %v5096_v31 = vpop.f32.mrf.mxu1 }
 0x1e2   : > { %vm6911_vm1 = vmand %vm7971_vm5, %vm7970_vm7  ;;  %v7977_v26 = vmov 0  ;;  %v6932_v15 = vadd.s32 18, %v6871_v10  ;;  %vm3843_vm7 = vcmp.ne.s32.totalorder %v6892_v25, 0  ;;  %vm7980_vm8 = vcmp.ne.s32.totalorder %v6871_v10, 0 }
 0x1e3   : > { %7969 = vst [vmem:[#allocation91_spill] sm:$0xff] %v6905_v35  ;;  %7974 = vst [vmem:[#allocation92_spill] sm:$0xff] %v6921_v12  ;;  %vm7981_vm0 = vcmp.lt.s32.totalorder %v6871_v10, 0  ;;  %v7982_v14 = vmov 0  ;;  %v6945_v1 = vadd.s32 18, %v6877_v20  ;;  %v6948_v5 = vadd.s32 18, %v6892_v25 }
 0x1e4   : > { %vm6927_vm14 = vmand %vm7976_vm13, %vm7975_vm12  ;;  %v3797_v18 = vmul.u32 18, %v3796_v39  ;;  %v6951_v33 = vadd.f32 %v5090_v40, %v2284_v23  ;;  %v7987_v60 = vsel %vm6045_vm9, %v6001_v62, %v5974_v47  ;;  %vm7990_vm13 = vcmp.ne.s32.totalorder %v6877_v20, 0  ;;  %v2563_v47 = vpop.f32.mrf.mxu0  ;;  %v2761_v62 = vpop.f32.mrf.mxu1  ;;  %v7996_v39 = vld [vmem:[#allocation14_spill] sm:$0xff]  ;;  %v7997_v40 = vld [vmem:[#allocation8_spill] sm:$0xff] }
 0x1e5   : > { %v7978_v26 = vsel %vm6927_vm14, 4294967295, %v7977_v26  ;;  %vm6940_vm6 = vmand %vm7981_vm0, %vm7980_vm8  ;;  %7984 = vst [vmem:[#allocation94_spill] sm:$0xff] %v6945_v1  ;;  %vm6958_vm0 = vcmp.lt.s32.totalorder %v7987_v60, 16  ;;  %vm7991_vm8 = vcmp.lt.s32.totalorder %v6877_v20, 0  ;;  %v7992_v38 = vmov 0  ;;  %v8042_v1 = vld [vmem:[#allocation49_spill] sm:$0xff] }
 0x1e6   : > { %7979 = vst [vmem:[#allocation93_spill] sm:$0xff] %v7978_v26  ;;  %v7983_v14 = vsel %vm6940_vm6, 4294967295, %v7982_v14  ;;  %7985 = vst [vmem:[#allocation95_spill] sm:$0xff] %v6948_v5  ;;  %vm3877_vm12 = vcmp.lt.s32.totalorder %v6905_v35, 0  ;;  %v6972_v11 = vmul.u32.u64.low 3817748708, %v6639_v54  ;;  %v6973_v23 = vmul.u32.u64.high 3817748708, %v6639_v54, %v6972_v11  ;;  %v5099_v32 = vpop.f32.mrf.mxu1  ;;  %v5133_v26 = vpop.f32.mrf.mxu0 }
 0x1e7   : > { %7986 = vst [vmem:[#allocation96_spill] sm:$0xff] %v6951_v33  ;;  %vm6966_vm5 = vmand %vm7991_vm8, %vm7990_vm13  ;;  %v7998_v33 = vsel %vm6066_vm10, %v7996_v39, %v7997_v40  ;;  %vm8001_vm13 = vcmp.lt.s32.totalorder %v6892_v25, 0  ;;  %v8002_v60 = vmov 0  ;;  %v3774_v39 = vshrl.u32 %v6919_v63, 4  ;;  %v8022_v25 = vld [vmem:[#allocation19_spill] sm:$0xff]  ;;  %v8052_v12 = vld [vmem:[#allocation30_spill] sm:$0xff] }
 0x1e8   : > { %v7993_v38 = vsel %vm6966_vm5, 4294967295, %v7992_v38  ;;  %vm6980_vm9 = vcmp.lt.s32.totalorder %v7998_v33, 16  ;;  %vm6996_vm8 = vmand %vm8001_vm13, %vm3843_vm7  ;;  %v7001_v33 = vsub.s32 %v6582_v44, %v3797_v18  ;;  %v2903_v40 = vadd.f32 %v5095_v42, %v6270_v59  ;;  %v8009_v44 = vld [vmem:[#allocation15_spill] sm:$0xff]  ;;  %v8010_v18 = vld [vmem:[#allocation10_spill] sm:$0xff]  ;;  %v2774_v11 = vpop.f32.mrf.mxu1 }
 0x1e9   : > { %7994 = vst [vmem:[#allocation97_spill] sm:$0xff] %v7993_v38  ;;  %v8003_v60 = vsel %vm6996_vm8, 4294967295, %v8002_v60  ;;  %v7005_v17 = vadd.f32 %v2563_v47, %v2282_v19  ;;  %v7012_v21 = vadd.s32 18, %v6905_v35  ;;  %v8011_v63 = vsel %vm6078_vm11, %v8009_v44, %v8010_v18  ;;  %v7047_v19 = vld [vmem:[%s7695_s3] ss:$0 sm:$0xff] }
 0x1ea   : > { %8004 = vst [vmem:[#allocation17_spill] sm:$0xff] %v8003_v60  ;;  %8005 = vst [vmem:[#allocation14_spill] sm:$0xff] %v7001_v33  ;;  %vm7020_vm10 = vcmp.lt.s32.totalorder %v8011_v63, 16  ;;  %vm8014_vm7 = vcmp.ne.s32.totalorder %v6905_v35, 0  ;;  %v8015_v42 = vmov 0  ;;  %vm3846_vm6 = vcmp.ne.s32.totalorder %v7001_v33, 0 }
 0x1eb   : > { %8006 = vst [vmem:[#allocation8_spill] sm:$0xff] %v7005_v17  ;;  %8007 = vst [vmem:[#allocation98_spill] sm:$0xff] %v7012_v21  ;;  %vm3882_vm11 = vcmp.lt.s32.totalorder %v7001_v33, 0  ;;  %v3775_v56 = vmul.u32 18, %v3774_v39  ;;  %v2901_v47 = vadd.f32 %v2758_v58, %v6288_v0  ;;  %v3229_v44 = vadd.f32 %v5133_v26, %v2903_v40  ;;  %v3084_v17 = vpop.f32.mrf.mxu0  ;;  %v8086_v21 = vld [vmem:[#allocation33_spill] sm:$0xff] }
 0x1ec   : > { %vm7032_vm13 = vmand %vm3877_vm12, %vm8014_vm7  ;;  %v3807_v63 = vshrl.u32 %v6973_v23, 4  ;;  %v7050_v20 = vadd.s32 18, %v7001_v33  ;;  %v7056_v58 = vmul.u32.u64.low 3817748708, %v6684_v30  ;;  %v7057_v26 = vmul.u32.u64.high 3817748708, %v6684_v30, %v7056_v58  ;;  %v8021_v23 = vld [vmem:[#allocation21_spill] sm:$0xff]  ;;  %v8033_v30 = vld [vmem:[#allocation20_spill] sm:$0xff] }
 0x1ed   : > { %v8016_v42 = vsel %vm7032_vm13, 4294967295, %v8015_v42  ;;  %v7053_v0 = vsub.s32 %v6622_v28, %v3775_v56  ;;  %v2904_v39 = vadd.f32 %v5096_v31, %v6321_v22  ;;  %v3266_v40 = vmul.f32 %v8021_v23, %v3229_v44  ;;  %vm7078_vm7 = vmand %vm3882_vm11, %vm3846_vm6  ;;  %v5134_v43 = vpop.f32.mrf.mxu0  ;;  %v8030_v31 = vld [vmem:[#allocation43_spill] sm:$0xff] }
 0x1ee   : > { %8017 = vst [vmem:[#allocation18_spill] sm:$0xff] %v8016_v42  ;;  %8018 = vst [vmem:[#allocation15_spill] sm:$0xff] %v7050_v20  ;;  %v3227_v18 = vadd.f32 %v3084_v17, %v2901_v47  ;;  %v8023_v5 = vsel %vm6154_vm2, %v6118_v27, %v8022_v25  ;;  %v8026_v22 = vmov 0  ;;  %v5100_v27 = vpop.f32.mrf.mxu1  ;;  %v3808_v25 = vmul.u32 18, %v3807_v63  ;;  %v8032_v28 = vld [vmem:[#allocation23_spill] sm:$0xff]  ;;  %v8040_v63 = vld [vmem:[#allocation46_spill] sm:$0xff] }
 0x1ef   : > { %8019 = vst [vmem:[#allocation10_spill] sm:$0xff] %v7053_v0  ;;  %8020 = vst [vmem:[#allocation99_spill] sm:$0xff] %v7057_v26  ;;  %vm7066_vm12 = vcmp.lt.s32.totalorder %v8023_v5, 16  ;;  %v8027_v22 = vsel %vm7078_vm7, 4294967295, %v8026_v22  ;;  %vm3844_vm2 = vcmp.ne.s32.totalorder %v7053_v0, 0  ;;  %vm3880_vm8 = vcmp.lt.s32.totalorder %v7053_v0, 0 }
 0x1f0   : > { %8028 = vst [vmem:[#allocation21_spill] sm:$0xff] %v8027_v22  ;;  %v7090_v17 = vadd.s32 18, %v7053_v0  ;;  %v2902_v5 = vadd.f32 %v2761_v62, %v8030_v31  ;;  %v3309_v56 = vadd.f32 %v7047_v19, %v3266_v40  ;;  %v3264_v47 = vmul.f32 %v8021_v23, %v3227_v18  ;;  %vm7104_vm11 = vmand %vm3880_vm8, %vm3844_vm2  ;;  %v8041_v31 = vld [vmem:[#allocation47_spill] sm:$0xff]  ;;  %v8050_v0 = vld [vmem:[#allocation34_spill] sm:$0xff] }
 0x1f1   : > { %v3230_v44 = vadd.f32 %v5134_v43, %v2904_v39  ;;  %v8034_v35 = vsel %vm6166_vm3, %v8032_v28, %v8033_v30  ;;  %v8037_v42 = vmov 0  ;;  %v2907_v62 = vadd.f32 %v5099_v32, %v8040_v63  ;;  %v2777_v39 = vpop.f32.mrf.mxu1  ;;  %v3087_v43 = vpop.f32.mrf.mxu0  ;;  %v8044_v30 = vld [vmem:[#allocation24_spill] sm:$0xff]  ;;  %v8065_v33 = vld [vmem:[#allocation59_spill] sm:$0xff] }
 0x1f2   : > { %8029 = vst [vmem:[#allocation19_spill] sm:$0xff] %v7090_v17  ;;  %vm7100_vm6 = vcmp.lt.s32.totalorder %v8034_v35, 16  ;;  %v8038_v42 = vsel %vm7104_vm11, 4294967295, %v8037_v42  ;;  %v2905_v40 = vadd.f32 %v2774_v11, %v8041_v31  ;;  %v2908_v18 = vadd.f32 %v5100_v27, %v8042_v1  ;;  %v8045_v35 = vld [vmem:[#allocation22_spill] sm:$0xff]  ;;  %3345 = vst [vmem:[%s7085_s29 + $0x10] sm:$0xff] %v3309_v56  ;;  %v8049_v27 = vld [vmem:[#allocation52_spill] sm:$0xff] }
 0x1f3   : > { %8039 = vst [vmem:[#allocation43_spill] sm:$0xff] %v8038_v42  ;;  %v8046_v28 = vsel %vm6184_vm4, %v8044_v30, %v8045_v35  ;;  %v3307_v1 = vadd.f32 %v7047_v19, %v3264_v47  ;;  %v3267_v11 = vmul.f32 %v8021_v23, %v3230_v44  ;;  %v7132_v63 = vsub.s32 %v6639_v54, %v3808_v25  ;;  %v5103_v35 = vpop.f32.mrf.mxu1  ;;  %v5137_v47 = vpop.f32.mrf.mxu0 }
 0x1f4   : > { %vm7116_vm3 = vcmp.lt.s32.totalorder %v8046_v28, 16  ;;  %v4102_v31 = vsel %vm6958_vm0, %v3309_v56, -inf  ;;  %v4179_v58 = vsel %vm6958_vm0, %v3309_v56, inf  ;;  %v3228_v30 = vadd.f32 %v3087_v43, %v2902_v5  ;;  %v8053_v5 = vld [vmem:[#allocation26_spill] sm:$0xff] }
 0x1f5   : > { %3343 = vst [vmem:[%s7085_s29] sm:$0xff] %v3307_v1  ;;  %v4100_v28 = vsel %vm6980_vm9, %v3307_v1, -inf  ;;  %v4177_v54 = vsel %vm6980_vm9, %v3307_v1, inf  ;;  %v3310_v25 = vadd.f32 %v7047_v19, %v3267_v11  ;;  %v2906_v32 = vadd.f32 %v2777_v39, %v8049_v27  ;;  %v2790_v45 = vpop.f32.mrf.mxu1  ;;  %v3100_v1 = vpop.f32.mrf.mxu0  ;;  %v8057_v11 = vld [vmem:[#allocation56_spill] sm:$0xff] }
 0x1f6   : > { %vm8051_vm4 = vnez %v8050_v0  ;;  %v4138_v44 = vmax.f32 %v4102_v31, %v4100_v28  ;;  %v4215_v26 = vmin.f32 %v4179_v58, %v4177_v54  ;;  %v3265_v17 = vmul.f32 %v8021_v23, %v3228_v30  ;;  %v8060_v31 = vld [vmem:[#allocation32_spill] sm:$0xff] }
 0x1f7   : > { %v8054_v56 = vsel %vm8051_vm4, %v8052_v12, %v8053_v5  ;;  %v3233_v42 = vadd.f32 %v5137_v47, %v2907_v62  ;;  %3346 = vst [vmem:[%s7085_s29 + $0x18] sm:$0xff] %v3310_v25  ;;  %v4103_v39 = vsel %vm7020_vm10, %v3310_v25, -inf  ;;  %v4180_v0 = vsel %vm7020_vm10, %v3310_v25, inf  ;;  %v8058_v5 = vld [vmem:[#allocation36_spill] sm:$0xff]  ;;  %v5138_v25 = vpop.f32.mrf.mxu0 }
 0x1f8   : > { %vm7151_vm0 = vcmp.lt.s32.totalorder %v8054_v56, 16  ;;  %v2911_v27 = vadd.f32 %v5103_v35, %v8057_v11  ;;  %v3231_v12 = vadd.f32 %v3100_v1, %v2905_v40  ;;  %vm8059_vm9 = vnez %v8058_v5  ;;  %v8061_v58 = vld [vmem:[#allocation28_spill] sm:$0xff]  ;;  %v5104_v56 = vpop.f32.mrf.mxu1 }
 0x1f9   : > { %v8062_v28 = vsel %vm8059_vm9, %v8060_v31, %v8061_v58  ;;  %v4136_v30 = vmax.f32 %v4103_v39, %v4138_v44  ;;  %v4213_v47 = vmin.f32 %v4180_v0, %v4215_v26  ;;  %v3308_v54 = vadd.f32 %v7047_v19, %v3265_v17  ;;  %v8066_v1 = vld [vmem:[#allocation60_spill] sm:$0xff]  ;;  %v8067_v31 = vld [vmem:[#allocation37_spill] sm:$0xff]  ;;  %v8069_v58 = vld [vmem:[#allocation35_spill] sm:$0xff] }
 0x1fa   : > { %vm7167_vm8 = vcmp.lt.s32.totalorder %v8062_v28, 16  ;;  %v3270_v59 = vmul.f32 %v8021_v23, %v3233_v42  ;;  %v2909_v35 = vadd.f32 %v2790_v45, %v8065_v33  ;;  %v3268_v40 = vmul.f32 %v8021_v23, %v3231_v12  ;;  %v8070_v28 = vld [vmem:[#allocation29_spill] sm:$0xff]  ;;  %v2793_v45 = vpop.f32.mrf.mxu1  ;;  %v8074_v39 = vld [vmem:[#allocation39_spill] sm:$0xff]  ;;  %v8076_v0 = vld [vmem:[#allocation38_spill] sm:$0xff] }
 0x1fb   : > { %v2912_v11 = vadd.f32 %v5104_v56, %v8066_v1  ;;  %v3234_v5 = vadd.f32 %v5138_v25, %v2908_v18  ;;  %vm8068_vm10 = vnez %v8067_v31  ;;  %3344 = vst [vmem:[%s7085_s29 + $0x8] sm:$0xff] %v3308_v54  ;;  %v4101_v42 = vsel %vm7066_vm12, %v3308_v54, -inf  ;;  %v3103_v18 = vpop.f32.mrf.mxu0  ;;  %v8077_v12 = vld [vmem:[#allocation31_spill] sm:$0xff]  ;;  %v8118_v26 = vld [vmem:[#allocation54_spill] sm:$0xff] }
 0x1fc   : > { %v8071_v44 = vsel %vm8068_vm10, %v8069_v58, %v8070_v28  ;;  %v4178_v33 = vsel %vm7066_vm12, %v3308_v54, inf  ;;  %v3313_v17 = vadd.f32 %v7047_v19, %v3270_v59  ;;  %vm8075_vm4 = vnez %v8074_v39 }
 0x1fd   : > { %vm7181_vm2 = vcmp.lt.s32.totalorder %v8071_v44, 16  ;;  %v8078_v56 = vsel %vm8075_vm4, %v8076_v0, %v8077_v12  ;;  %v7201_v1 = vadd.s32 18, %v7132_v63  ;;  %v4139_v31 = vmax.f32 %v4101_v42, %v4136_v30  ;;  %v8082_v44 = vld [vmem:[#allocation63_spill] sm:$0xff]  ;;  %v5107_v12 = vpop.f32.mrf.mxu1 }
 0x1fe   : > { %vm7196_vm9 = vcmp.lt.s32.totalorder %v8078_v56, 16  ;;  %v4216_v60 = vmin.f32 %v4178_v33, %v4213_v47  ;;  %v3311_v54 = vadd.f32 %v7047_v19, %v3268_v40  ;;  %v3271_v59 = vmul.f32 %v8021_v23, %v3234_v5  ;;  %3349 = vst [vmem:[%s7085_s29 + $0x30] sm:$0xff] %v3313_v17  ;;  %v5141_v56 = vpop.f32.mrf.mxu0  ;;  %v8083_v40 = vld [vmem:[#allocation41_spill] sm:$0xff]  ;;  %v8085_v5 = vld [vmem:[#allocation40_spill] sm:$0xff] }
 0x1ff   : > { %8081 = vst [vmem:[#allocation25_spill] sm:$0xff] %v7201_v1  ;;  %v4106_v58 = vsel %vm7100_vm6, %v3313_v17, -inf  ;;  %v4183_v28 = vsel %vm7100_vm6, %v3313_v17, inf  ;;  %v2910_v39 = vadd.f32 %v2793_v45, %v8082_v44  ;;  %v3232_v0 = vadd.f32 %v3103_v18, %v2906_v32  ;;  %v8090_v45 = vld [vmem:[#allocation65_spill] sm:$0xff] }
 0x200   : > { %v4137_v20 = vmax.f32 %v4106_v58, %v4139_v31  ;;  %v4214_v1 = vmin.f32 %v4183_v28, %v4216_v60  ;;  %3347 = vst [vmem:[%s7085_s29 + $0x20] sm:$0xff] %v3311_v54  ;;  %v4104_v30 = vsel %vm7116_vm3, %v3311_v54, -inf  ;;  %v4181_v47 = vsel %vm7116_vm3, %v3311_v54, inf  ;;  %v2806_v60 = vpop.f32.mrf.mxu1  ;;  %v3116_v58 = vpop.f32.mrf.mxu0  ;;  %v8091_v28 = vld [vmem:[#allocation4_spill] sm:$0xff] }
 0x201   : > { %vm8084_vm12 = vnez %v8083_v40  ;;  %v3314_v32 = vadd.f32 %v7047_v19, %v3271_v59  ;;  %v3269_v17 = vmul.f32 %v8021_v23, %v3232_v0  ;;  %v2915_v18 = vadd.f32 %v5107_v12, %v8090_v45 }
 0x202   : > { %v8087_v42 = vsel %vm8084_vm12, %v8085_v5, %v8086_v21  ;;  %v3237_v31 = vadd.f32 %v5141_v56, %v2911_v27  ;;  %v4142_v38 = vmax.f32 %v4104_v30, %v4137_v20  ;;  %v4219_v54 = vmin.f32 %v4181_v47, %v4214_v1  ;;  %v8092_v5 = vld [vmem:[#allocation51_spill] sm:$0xff]  ;;  %v8094_v21 = vld [vmem:[#allocation48_spill] sm:$0xff]  ;;  %v5108_v0 = vpop.f32.mrf.mxu1  ;;  %v5142_v12 = vpop.f32.mrf.mxu0  ;;  %v8099_v47 = vld [vmem:[#allocation5_spill] sm:$0xff] }
 0x203   : > { %vm7221_vm6 = vcmp.lt.s32.totalorder %v8087_v42, 16  ;;  %v2913_v44 = vadd.f32 %v2806_v60, %v8091_v28  ;;  %v3235_v40 = vadd.f32 %v3116_v58, %v2909_v35  ;;  %vm8093_vm3 = vnez %v8092_v5  ;;  %v8095_v42 = vld [vmem:[#allocation42_spill] sm:$0xff]  ;;  %3350 = vst [vmem:[%s7085_s29 + $0x38] sm:$0xff] %v3314_v32  ;;  %v8100_v60 = vld [vmem:[#allocation53_spill] sm:$0xff]  ;;  %v8103_v28 = vld [vmem:[#allocation44_spill] sm:$0xff] }
 0x204   : > { %v8096_v22 = vsel %vm8093_vm3, %v8094_v21, %v8095_v42  ;;  %v4107_v27 = vsel %vm7151_vm0, %v3314_v32, -inf  ;;  %v4184_v20 = vsel %vm7151_vm0, %v3314_v32, inf  ;;  %v3312_v1 = vadd.f32 %v7047_v19, %v3269_v17  ;;  %v8102_v58 = vld [vmem:[#allocation50_spill] sm:$0xff]  ;;  %v8107_v21 = vld [vmem:[#allocation57_spill] sm:$0xff]  ;;  %v8109_v42 = vld [vmem:[#allocation55_spill] sm:$0xff] }
 0x205   : > { %vm7234_vm10 = vcmp.lt.s32.totalorder %v8096_v22, 16  ;;  %v3274_v35 = vmul.f32 %v8021_v23, %v3237_v31  ;;  %v4140_v56 = vmax.f32 %v4107_v27, %v4142_v38  ;;  %v4217_v30 = vmin.f32 %v4184_v20, %v4219_v54  ;;  %v2809_v54 = vpop.f32.mrf.mxu1  ;;  %v8110_v27 = vld [vmem:[#allocation45_spill] sm:$0xff] }
 0x206   : > { %v3272_v22 = vmul.f32 %v8021_v23, %v3235_v40  ;;  %v2916_v45 = vadd.f32 %v5108_v0, %v8099_v47  ;;  %vm8101_vm4 = vnez %v8100_v60  ;;  %3348 = vst [vmem:[%s7085_s29 + $0x28] sm:$0xff] %v3312_v1  ;;  %v4105_v32 = vsel %vm7167_vm8, %v3312_v1, -inf  ;;  %v3119_v40 = vpop.f32.mrf.mxu0 }
 0x207   : > { %v8104_v5 = vsel %vm8101_vm4, %v8102_v58, %v8103_v28  ;;  %v4182_v17 = vsel %vm7167_vm8, %v3312_v1, inf  ;;  %v3317_v31 = vadd.f32 %v7047_v19, %v3274_v35  ;;  %v3238_v38 = vadd.f32 %v5142_v12, %v2912_v11  ;;  %v8114_v1 = vld [vmem:[#allocation6_spill] sm:$0xff] }
 0x208   : > { %vm7252_vm12 = vcmp.lt.s32.totalorder %v8104_v5, 16  ;;  %vm8108_vm0 = vnez %v8107_v21  ;;  %v4143_v47 = vmax.f32 %v4105_v32, %v4140_v56  ;;  %v4220_v60 = vmin.f32 %v4182_v17, %v4217_v30  ;;  %v5111_v5 = vpop.f32.mrf.mxu1  ;;  %v5145_v21 = vpop.f32.mrf.mxu0  ;;  %v8117_v32 = vld [vmem:[#allocation61_spill] sm:$0xff] }
 0x209   : > { %v8111_v20 = vsel %vm8108_vm0, %v8109_v42, %v8110_v27  ;;  %v3315_v62 = vadd.f32 %v7047_v19, %v3272_v22  ;;  %v2914_v58 = vadd.f32 %v2809_v54, %v8114_v1  ;;  %3353 = vst [vmem:[%s7085_s29 + $0x50] sm:$0xff] %v3317_v31  ;;  %v4110_v11 = vsel %vm7181_vm2, %v3317_v31, -inf  ;;  %v8115_v22 = vld [vmem:[#allocation62_spill] sm:$0xff]  ;;  %v8122_v54 = vld [vmem:[#allocation7_spill] sm:$0xff]  ;;  %v8123_v1 = vld [vmem:[#allocation9_spill] sm:$0xff] }
 0x20a   : > { %vm7267_vm3 = vcmp.lt.s32.totalorder %v8111_v20, 16  ;;  %v4187_v35 = vsel %vm7181_vm2, %v3317_v31, inf  ;;  %v3275_v12 = vmul.f32 %v8021_v23, %v3238_v38  ;;  %v3236_v28 = vadd.f32 %v3119_v40, %v2910_v39 }
 0x20b   : > { %v4141_v42 = vmax.f32 %v4110_v11, %v4143_v47  ;;  %v4218_v27 = vmin.f32 %v4187_v35, %v4220_v60  ;;  %3351 = vst [vmem:[%s7085_s29 + $0x40] sm:$0xff] %v3315_v62  ;;  %v4108_v56 = vsel %vm7196_vm9, %v3315_v62, -inf  ;;  %v4185_v30 = vsel %vm7196_vm9, %v3315_v62, inf  ;;  %v2822_v47 = vpop.f32.mrf.mxu1  ;;  %v3132_v60 = vpop.f32.mrf.mxu0 }
 0x20c   : > { %vm8116_vm8 = vnez %v8115_v22  ;;  %v3318_v39 = vadd.f32 %v7047_v19, %v3275_v12  ;;  %v3273_v38 = vmul.f32 %v8021_v23, %v3236_v28  ;;  %v2919_v40 = vadd.f32 %v5111_v5, %v8122_v54  ;;  %v8124_v22 = vld [vmem:[#allocation66_spill] sm:$0xff]  ;;  %v8131_v54 = vld [vmem:[#allocation11_spill] sm:$0xff] }
 0x20d   : > { %v8119_v17 = vsel %vm8116_vm8, %v8117_v32, %v8118_v26  ;;  %v3241_v20 = vadd.f32 %v5145_v21, %v2915_v18  ;;  %v4146_v25 = vmax.f32 %v4108_v56, %v4141_v42  ;;  %v4223_v62 = vmin.f32 %v4185_v30, %v4218_v27  ;;  %v8126_v32 = vld [vmem:[#allocation64_spill] sm:$0xff]  ;;  %v8127_v26 = vld [vmem:[#allocation58_spill] sm:$0xff]  ;;  %v5112_v21 = vpop.f32.mrf.mxu1  ;;  %v5146_v42 = vpop.f32.mrf.mxu0 }
 0x20e   : > { %vm7289_vm2 = vcmp.lt.s32.totalorder %v8119_v17, 16  ;;  %v2917_v11 = vadd.f32 %v2822_v47, %v8123_v1  ;;  %v3239_v35 = vadd.f32 %v3132_v60, %v2913_v44  ;;  %vm8125_vm9 = vnez %v8124_v22  ;;  %3354 = vst [vmem:[%s7085_s29 + $0x58] sm:$0xff] %v3318_v39  ;;  %v8132_v60 = vld [vmem:[#allocation71_spill] sm:$0xff]  ;;  %v8134_v1 = vld [vmem:[#allocation69_spill] sm:$0xff] }
 0x20f   : > { %v8128_v17 = vsel %vm8125_vm9, %v8126_v32, %v8127_v26  ;;  %v4111_v18 = vsel %vm7221_vm6, %v3318_v39, -inf  ;;  %v4188_v28 = vsel %vm7221_vm6, %v3318_v39, inf  ;;  %v3316_v5 = vadd.f32 %v7047_v19, %v3273_v38  ;;  %v8135_v22 = vld [vmem:[#allocation67_spill] sm:$0xff]  ;;  %v8140_v26 = vld [vmem:[#allocation68_spill] sm:$0xff] }
 0x210   : > { %vm7302_vm4 = vcmp.lt.s32.totalorder %v8128_v17, 16  ;;  %v3278_v44 = vmul.f32 %v8021_v23, %v3241_v20  ;;  %v4144_v27 = vmax.f32 %v4111_v18, %v4146_v25  ;;  %v4221_v56 = vmin.f32 %v4188_v28, %v4223_v62  ;;  %v2825_v62 = vpop.f32.mrf.mxu1 }
 0x211   : > { %v3276_v30 = vmul.f32 %v8021_v23, %v3239_v35  ;;  %v2920_v47 = vadd.f32 %v5112_v21, %v8131_v54  ;;  %vm8133_vm0 = vnez %v8132_v60  ;;  %3352 = vst [vmem:[%s7085_s29 + $0x48] sm:$0xff] %v3316_v5  ;;  %v4109_v39 = vsel %vm7234_vm10, %v3316_v5, -inf  ;;  %v3135_v35 = vpop.f32.mrf.mxu0 }
 0x212   : > { %v8136_v32 = vsel %vm8133_vm0, %v8134_v1, %v8135_v22  ;;  %v4186_v38 = vsel %vm7234_vm10, %v3316_v5, inf  ;;  %v3321_v20 = vadd.f32 %v7047_v19, %v3278_v44  ;;  %v3242_v25 = vadd.f32 %v5146_v42, %v2916_v45  ;;  %v8144_v5 = vld [vmem:[#allocation12_spill] sm:$0xff]  ;;  %v5115_v42 = vpop.f32.mrf.mxu1 }
 0x213   : > { %vm7320_vm8 = vcmp.lt.s32.totalorder %v8136_v32, 16  ;;  %vm8139_vm6 = vnez %v7913_v3  ;;  %v4147_v28 = vmax.f32 %v4109_v39, %v4144_v27  ;;  %v4224_v21 = vmin.f32 %v4186_v38, %v4221_v56  ;;  %v5149_v60 = vpop.f32.mrf.mxu0  ;;  %v8150_v38 = vld [vmem:[#allocation13_spill] sm:$0xff]  ;;  %v8214_v32 = vld [vmem:[#allocation88_spill] sm:$0xff] }
 0x214   : > { %v8141_v17 = vsel %vm8139_vm6, %v6636_v13, %v8140_v26  ;;  %v3319_v59 = vadd.f32 %v7047_v19, %v3276_v30  ;;  %v2918_v54 = vadd.f32 %v2825_v62, %v8144_v5  ;;  %3357 = vst [vmem:[%s7085_s29 + $0x70] sm:$0xff] %v3321_v20  ;;  %v4114_v45 = vsel %vm7252_vm12, %v3321_v20, -inf  ;;  %v8145_v30 = vld [vmem:[#allocation72_spill] sm:$0xff]  ;;  %v2838_v62 = vpop.f32.mrf.mxu1 }
 0x215   : > { %vm7335_vm9 = vcmp.lt.s32.totalorder %v8141_v17, 16  ;;  %v4191_v3 = vsel %vm7252_vm12, %v3321_v20, inf  ;;  %v3279_v44 = vmul.f32 %v8021_v23, %v3242_v25  ;;  %v3240_v13 = vadd.f32 %v3135_v35, %v2914_v58  ;;  %v3148_v35 = vpop.f32.mrf.mxu0 }
 0x216   : > { %v4145_v1 = vmax.f32 %v4114_v45, %v4147_v28  ;;  %v4222_v22 = vmin.f32 %v4191_v3, %v4224_v21  ;;  %3355 = vst [vmem:[%s7085_s29 + $0x60] sm:$0xff] %v3319_v59  ;;  %v4112_v27 = vsel %vm7267_vm3, %v3319_v59, -inf  ;;  %v4189_v56 = vsel %vm7267_vm3, %v3319_v59, inf }
 0x217   : > { %vm8146_vm10 = vnez %v8145_v30  ;;  %v3322_v58 = vadd.f32 %v7047_v19, %v3279_v44  ;;  %v3277_v39 = vmul.f32 %v8021_v23, %v3240_v13  ;;  %v2923_v20 = vadd.f32 %v5115_v42, %v8150_v38  ;;  %v8157_v42 = vld [vmem:[#allocation16_spill] sm:$0xff] }
 0x218   : > { %v8147_v43 = vsel %vm8146_vm10, %v6650_v16, %v6571_v29  ;;  %v3245_v25 = vadd.f32 %v5149_v60, %v2919_v40  ;;  %v4150_v0 = vmax.f32 %v4112_v27, %v4145_v1  ;;  %v4227_v26 = vmin.f32 %v4189_v56, %v4222_v22  ;;  %v8152_v29 = vld [vmem:[#allocation73_spill] sm:$0xff]  ;;  %v8153_v16 = vld [vmem:[#allocation70_spill] sm:$0xff]  ;;  %v8159_v22 = vld [vmem:[#allocation76_spill] sm:$0xff] }
 0x219   : > { %vm7357_vm12 = vcmp.lt.s32.totalorder %v8147_v43, 16  ;;  %v2921_v17 = vadd.f32 %v2838_v62, %v6698_v9  ;;  %v3243_v28 = vadd.f32 %v3148_v35, %v2917_v11  ;;  %vm8151_vm3 = vnez %v7925_v52  ;;  %3358 = vst [vmem:[%s7085_s29 + $0x78] sm:$0xff] %v3322_v58  ;;  %v5116_v11 = vpop.f32.mrf.mxu1  ;;  %v5150_v52 = vpop.f32.mrf.mxu0  ;;  %v8160_v27 = vld [vmem:[#allocation74_spill] sm:$0xff] }
 0x21a   : > { %v8154_v21 = vsel %vm8151_vm3, %v8152_v29, %v8153_v16  ;;  %v4115_v40 = vsel %vm7289_vm2, %v3322_v58, -inf  ;;  %v4192_v5 = vsel %vm7289_vm2, %v3322_v58, inf  ;;  %v3320_v45 = vadd.f32 %v7047_v19, %v3277_v39 }
 0x21b   : > { %vm7370_vm0 = vcmp.lt.s32.totalorder %v8154_v21, 16  ;;  %v3282_v9 = vmul.f32 %v8021_v23, %v3245_v25  ;;  %v4148_v3 = vmax.f32 %v4115_v40, %v4150_v0  ;;  %v4225_v44 = vmin.f32 %v4192_v5, %v4227_v26  ;;  %v2841_v38 = vpop.f32.mrf.mxu1  ;;  %v3151_v25 = vpop.f32.mrf.mxu0 }
 0x21c   : > { %v3280_v13 = vmul.f32 %v8021_v23, %v3243_v28  ;;  %v2924_v60 = vadd.f32 %v5116_v11, %v8157_v42  ;;  %v8161_v56 = vsel %vm6758_vm15, %v8159_v22, %v8160_v27  ;;  %3356 = vst [vmem:[%s7085_s29 + $0x68] sm:$0xff] %v3320_v45  ;;  %v4113_v30 = vsel %vm7302_vm4, %v3320_v45, -inf  ;;  %v8168_v28 = vld [vmem:[#allocation77_spill] sm:$0xff]  ;;  %v8174_v27 = vld [vmem:[#allocation79_spill] sm:$0xff] }
 0x21d   : > { %vm7388_vm6 = vcmp.lt.s32.totalorder %v8161_v56, 16  ;;  %v4190_v43 = vsel %vm7302_vm4, %v3320_v45, inf  ;;  %v3325_v58 = vadd.f32 %v7047_v19, %v3282_v9  ;;  %v3246_v39 = vadd.f32 %v5150_v52, %v2920_v47  ;;  %v5153_v21 = vpop.f32.mrf.mxu0 }
 0x21e   : > { %vm8164_vm2 = vnez %v7944_v48  ;;  %v4151_v0 = vmax.f32 %v4113_v30, %v4148_v3  ;;  %v4228_v26 = vmin.f32 %v4190_v43, %v4225_v44  ;;  %v3323_v12 = vadd.f32 %v7047_v19, %v3280_v13  ;;  %v8173_v3 = vld [vmem:[#allocation78_spill] sm:$0xff] }
 0x21f   : > { %v8165_v62 = vsel %vm8164_vm2, %v6728_v4, %v6695_v7  ;;  %v2922_v29 = vadd.f32 %v2841_v38, %v8168_v28  ;;  %3361 = vst [vmem:[%s7085_s29 + $0x90] sm:$0xff] %v3325_v58  ;;  %v4118_v47 = vsel %vm7320_vm8, %v3325_v58, -inf  ;;  %v4195_v48 = vsel %vm7320_vm8, %v3325_v58, inf  ;;  %v5119_v4 = vpop.f32.mrf.mxu1  ;;  %v3164_v1 = vpop.f32.mrf.mxu0 }
 0x220   : > { %vm7403_vm15 = vcmp.lt.s32.totalorder %v8165_v62, 16  ;;  %v3283_v16 = vmul.f32 %v8021_v23, %v3246_v39  ;;  %v3244_v7 = vadd.f32 %v3151_v25, %v2918_v54  ;;  %v4149_v40 = vmax.f32 %v4118_v47, %v4151_v0  ;;  %3359 = vst [vmem:[%s7085_s29 + $0x80] sm:$0xff] %v3323_v12 }
 0x221   : > { %v4226_v5 = vmin.f32 %v4195_v48, %v4228_v26  ;;  %v4116_v45 = vsel %vm7335_vm9, %v3323_v12, -inf  ;;  %v4193_v9 = vsel %vm7335_vm9, %v3323_v12, inf  ;;  %vm8169_vm4 = vnez %v7949_v41  ;;  %v2854_v42 = vpop.f32.mrf.mxu1 }
 0x222   : > { %v8170_v33 = vsel %vm8169_vm4, %v6740_v46, %v6706_v61  ;;  %v3326_v54 = vadd.f32 %v7047_v19, %v3283_v16  ;;  %v3281_v52 = vmul.f32 %v8021_v23, %v3244_v7  ;;  %v2927_v44 = vadd.f32 %v5119_v4, %v8173_v3  ;;  %v8188_v7 = vld [vmem:[#allocation82_spill] sm:$0xff] }
 0x223   : > { %vm7425_vm8 = vcmp.lt.s32.totalorder %v8170_v33, 16  ;;  %v3249_v13 = vadd.f32 %v5153_v21, %v2923_v20  ;;  %v4154_v18 = vmax.f32 %v4116_v45, %v4149_v40  ;;  %v4231_v22 = vmin.f32 %v4193_v9, %v4226_v5  ;;  %v5120_v58 = vpop.f32.mrf.mxu1 }
 0x224   : > { %v2925_v41 = vadd.f32 %v2854_v42, %v8174_v27  ;;  %v3247_v56 = vadd.f32 %v3164_v1, %v2921_v17  ;;  %vm8175_vm9 = vnez %v7953_v8  ;;  %3362 = vst [vmem:[%s7085_s29 + $0x98] sm:$0xff] %v3326_v54  ;;  %v4119_v20 = vsel %vm7357_vm12, %v3326_v54, -inf  ;;  %v5154_v8 = vpop.f32.mrf.mxu0 }
 0x225   : > { %v8176_v61 = vsel %vm8175_vm9, %v6763_v57, %v6721_v53  ;;  %v4196_v30 = vsel %vm7357_vm12, %v3326_v54, inf  ;;  %v3324_v43 = vadd.f32 %v7047_v19, %v3281_v52  ;;  %v3286_v17 = vmul.f32 %v8021_v23, %v3249_v13  ;;  %v8179_v57 = vld [vmem:[#allocation81_spill] sm:$0xff]  ;;  %v2857_v47 = vpop.f32.mrf.mxu1 }
 0x226   : > { %vm7438_vm10 = vcmp.lt.s32.totalorder %v8176_v61, 16  ;;  %v4152_v39 = vmax.f32 %v4119_v20, %v4154_v18  ;;  %v4229_v38 = vmin.f32 %v4196_v30, %v4231_v22  ;;  %v3284_v53 = vmul.f32 %v8021_v23, %v3247_v56  ;;  %v8192_v22 = vld [vmem:[#allocation83_spill] sm:$0xff]  ;;  %v8219_v56 = vld [vmem:[#allocation92_spill] sm:$0xff] }
 0x227   : > { %v2928_v25 = vadd.f32 %v5120_v58, %v8179_v57  ;;  %vm8180_vm3 = vnez %v7958_v37  ;;  %3360 = vst [vmem:[%s7085_s29 + $0x88] sm:$0xff] %v3324_v43  ;;  %v4117_v0 = vsel %vm7370_vm0, %v3324_v43, -inf  ;;  %v4194_v26 = vsel %vm7370_vm0, %v3324_v43, inf  ;;  %v3167_v37 = vpop.f32.mrf.mxu0 }
 0x228   : > { %v8181_v62 = vsel %vm8180_vm3, %v6799_v6, %v6733_v49  ;;  %v3329_v12 = vadd.f32 %v7047_v19, %v3286_v17  ;;  %v3250_v28 = vadd.f32 %v5154_v8, %v2924_v60  ;;  %vm8184_vm12 = vnez %v7960_v51 }
 0x229   : > { %vm7456_vm2 = vcmp.lt.s32.totalorder %v8181_v62, 16  ;;  %v8185_v49 = vsel %vm8184_vm12, %v6818_v24, %v6743_v55  ;;  %v4155_v48 = vmax.f32 %v4117_v0, %v4152_v39  ;;  %v4232_v16 = vmin.f32 %v4194_v26, %v4229_v38  ;;  %v5123_v55 = vpop.f32.mrf.mxu1  ;;  %v5157_v40 = vpop.f32.mrf.mxu0  ;;  %v8199_v38 = vld [vmem:[#allocation85_spill] sm:$0xff] }
 0x22a   : > { %vm7471_vm4 = vcmp.lt.s32.totalorder %v8185_v49, 16  ;;  %v3327_v59 = vadd.f32 %v7047_v19, %v3284_v53  ;;  %v2926_v4 = vadd.f32 %v2857_v47, %v8188_v7  ;;  %3365 = vst [vmem:[%s7085_s29 + $0xb0] sm:$0xff] %v3329_v12  ;;  %v4122_v60 = vsel %vm7388_vm6, %v3329_v12, -inf }
 0x22b   : > { %v4199_v51 = vsel %vm7388_vm6, %v3329_v12, inf  ;;  %v3287_v21 = vmul.f32 %v8021_v23, %v3250_v28  ;;  %v3248_v24 = vadd.f32 %v3167_v37, %v2922_v29  ;;  %v4153_v5 = vmax.f32 %v4122_v60, %v4155_v48  ;;  %v2870_v42 = vpop.f32.mrf.mxu1  ;;  %v3180_v1 = vpop.f32.mrf.mxu0 }
 0x22c   : > { %v4230_v45 = vmin.f32 %v4199_v51, %v4232_v16  ;;  %3363 = vst [vmem:[%s7085_s29 + $0xa0] sm:$0xff] %v3327_v59  ;;  %v4120_v9 = vsel %vm7403_vm15, %v3327_v59, -inf  ;;  %v4197_v33 = vsel %vm7403_vm15, %v3327_v59, inf  ;;  %v8189_v31 = vsel %vm6911_vm1, %v6882_v34, %v6833_v50  ;;  %v8194_v50 = vld [vmem:[#allocation89_spill] sm:$0xff]  ;;  %v8195_v34 = vld [vmem:[#allocation84_spill] sm:$0xff]  ;;  %v8210_v59 = vld [vmem:[#allocation87_spill] sm:$0xff] }
 0x22d   : > { %vm7493_vm0 = vcmp.lt.s32.totalorder %v8189_v31, 16  ;;  %v3330_v29 = vadd.f32 %v7047_v19, %v3287_v21  ;;  %v3285_v52 = vmul.f32 %v8021_v23, %v3248_v24  ;;  %v2931_v3 = vadd.f32 %v5123_v55, %v6836_v36  ;;  %v5124_v43 = vpop.f32.mrf.mxu1  ;;  %v5158_v17 = vpop.f32.mrf.mxu0  ;;  %v8213_v31 = vld [vmem:[#allocation95_spill] sm:$0xff] }
 0x22e   : > { %v3253_v13 = vadd.f32 %v5157_v40, %v2927_v44  ;;  %v4158_v35 = vmax.f32 %v4120_v9, %v4153_v5  ;;  %v4235_v18 = vmin.f32 %v4197_v33, %v4230_v45  ;;  %v2929_v2 = vadd.f32 %v2870_v42, %v8192_v22  ;;  %v8211_v33 = vld [vmem:[#allocation17_spill] sm:$0xff]  ;;  %v8218_v42 = vld [vmem:[#allocation90_spill] sm:$0xff] }
 0x22f   : > { %v3251_v27 = vadd.f32 %v3180_v1, %v2925_v41  ;;  %v8196_v61 = vsel %vm6927_vm14, %v8194_v50, %v8195_v34  ;;  %3366 = vst [vmem:[%s7085_s29 + $0xb8] sm:$0xff] %v3330_v29  ;;  %v4123_v36 = vsel %vm7425_vm8, %v3330_v29, -inf  ;;  %v4200_v44 = vsel %vm7425_vm8, %v3330_v29, inf  ;;  %v2873_v28 = vpop.f32.mrf.mxu1 }
 0x230   : > { %vm7506_vm1 = vcmp.lt.s32.totalorder %v8196_v61, 16  ;;  %v3328_v30 = vadd.f32 %v7047_v19, %v3285_v52  ;;  %v3290_v41 = vmul.f32 %v8021_v23, %v3253_v13  ;;  %vm3847_vm14 = vcmp.ne.s32.totalorder %v7132_v63, 0 }
 0x231   : > { %vm3883_vm6 = vcmp.lt.s32.totalorder %v7132_v63, 0  ;;  %v4156_v58 = vmax.f32 %v4123_v36, %v4158_v35  ;;  %v4233_v8 = vmin.f32 %v4200_v44, %v4235_v18  ;;  %v3288_v39 = vmul.f32 %v8021_v23, %v3251_v27  ;;  %v5127_v24 = vpop.f32.mrf.mxu1  ;;  %v8221_v36 = vld [vmem:[#allocation98_spill] sm:$0xff]  ;;  %v8222_v44 = vld [vmem:[#allocation91_spill] sm:$0xff] }
 0x232   : > { %v2932_v53 = vadd.f32 %v5124_v43, %v8199_v38  ;;  %vm8200_vm15 = vnez %v7983_v14  ;;  %3364 = vst [vmem:[%s7085_s29 + $0xa8] sm:$0xff] %v3328_v30  ;;  %v4121_v62 = vsel %vm7438_vm10, %v3328_v30, -inf  ;;  %v4198_v0 = vsel %vm7438_vm10, %v3328_v30, inf  ;;  %v3183_v14 = vpop.f32.mrf.mxu0 }
 0x233   : > { %v8201_v11 = vsel %vm8200_vm15, %v6932_v15, %v6871_v10  ;;  %v3333_v26 = vadd.f32 %v7047_v19, %v3290_v41  ;;  %v3254_v12 = vadd.f32 %v5158_v17, %v2928_v25  ;;  %v8205_v10 = vld [vmem:[#allocation94_spill] sm:$0xff]  ;;  %v4159_v48 = vmax.f32 %v4121_v62, %v4156_v58  ;;  %v2886_v18 = vpop.f32.mrf.mxu1  ;;  %v8226_v62 = vld [vmem:[#allocation96_spill] sm:$0xff] }
 0x234   : > { %vm7526_vm8 = vcmp.lt.s32.totalorder %v8201_v11, 16  ;;  %v8206_v15 = vld [vmem:[#allocation86_spill] sm:$0xff]  ;;  %v4236_v16 = vmin.f32 %v4198_v0, %v4233_v8  ;;  %v3331_v46 = vadd.f32 %v7047_v19, %v3288_v39  ;;  %v2930_v7 = vadd.f32 %v2873_v28, %v8210_v59  ;;  %v5161_v55 = vpop.f32.mrf.mxu0  ;;  %v8234_v59 = vld [vmem:[#allocation19_spill] sm:$0xff] }
 0x235   : > { %v8207_v37 = vsel %vm6966_vm5, %v8205_v10, %v8206_v15  ;;  %3369 = vst [vmem:[%s7085_s29 + $0xd0] sm:$0xff] %v3333_v26  ;;  %v4126_v25 = vsel %vm7456_vm2, %v3333_v26, -inf  ;;  %v4203_v60 = vsel %vm7456_vm2, %v3333_v26, inf  ;;  %v3291_v51 = vmul.f32 %v8021_v23, %v3254_v12  ;;  %v5128_v58 = vpop.f32.mrf.mxu1  ;;  %v8228_v12 = vld [vmem:[#allocation15_spill] sm:$0xff]  ;;  %v8229_v28 = vld [vmem:[#allocation14_spill] sm:$0xff]  ;;  %vm7619_vm2 = vmand %vm3883_vm6, %vm3847_vm14 }
 0x236   : > { %vm7541_vm9 = vcmp.lt.s32.totalorder %v8207_v37, 16  ;;  %v3252_v21 = vadd.f32 %v3183_v14, %v2926_v4  ;;  %v4157_v40 = vmax.f32 %v4126_v25, %v4159_v48  ;;  %v4234_v5 = vmin.f32 %v4203_v60, %v4236_v16  ;;  %3367 = vst [vmem:[%s7085_s29 + $0xc0] sm:$0xff] %v3331_v46  ;;  %v3196_v22 = vpop.f32.mrf.mxu0  ;;  %v8235_v25 = vld [vmem:[#allocation10_spill] sm:$0xff] }
 0x237   : > { %v4124_v45 = vsel %vm7471_vm4, %v3331_v46, -inf  ;;  %v4201_v9 = vsel %vm7471_vm4, %v3331_v46, inf  ;;  %vm8212_vm5 = vnez %v8211_v33  ;;  %v3334_v4 = vadd.f32 %v7047_v19, %v3291_v51  ;;  %v2889_v48 = vpop.f32.mrf.mxu1 }
 0x238   : > { %v8215_v29 = vsel %vm8212_vm5, %v8213_v31, %v8214_v32  ;;  %v3289_v13 = vmul.f32 %v8021_v23, %v3252_v21  ;;  %v2935_v1 = vadd.f32 %v5127_v24, %v8218_v42  ;;  %v3257_v35 = vadd.f32 %v5161_v55, %v2931_v3  ;;  %v5162_v8 = vpop.f32.mrf.mxu0  ;;  %v8239_v55 = vld [vmem:[#allocation8_spill] sm:$0xff] }
 0x239   : > { %vm7563_vm10 = vcmp.lt.s32.totalorder %v8215_v29, 16  ;;  %v4162_v6 = vmax.f32 %v4124_v45, %v4157_v40  ;;  %v4239_v27 = vmin.f32 %v4201_v9, %v4234_v5  ;;  %v2933_v50 = vadd.f32 %v2886_v18, %v8219_v56  ;;  %3370 = vst [vmem:[%s7085_s29 + $0xd8] sm:$0xff] %v3334_v4 }
 0x23a   : > { %v3255_v34 = vadd.f32 %v3196_v22, %v2929_v2  ;;  %v8223_v30 = vsel %vm7032_vm13, %v8221_v36, %v8222_v44  ;;  %v4127_v3 = vsel %vm7493_vm0, %v3334_v4, -inf  ;;  %v4204_v43 = vsel %vm7493_vm0, %v3334_v4, inf  ;;  %v3199_v16 = vpop.f32.mrf.mxu0  ;;  %v8242_v22 = vld [vmem:[#allocation25_spill] sm:$0xff] }
 0x23b   : > { %vm7576_vm3 = vcmp.lt.s32.totalorder %v8223_v30, 16  ;;  %v3332_v17 = vadd.f32 %v7047_v19, %v3289_v13  ;;  %v3294_v2 = vmul.f32 %v8021_v23, %v3257_v35  ;;  %v4160_v39 = vmax.f32 %v4127_v3, %v4162_v6 }
 0x23c   : > { %v4237_v38 = vmin.f32 %v4204_v43, %v4239_v27  ;;  %v3292_v11 = vmul.f32 %v8021_v23, %v3255_v34  ;;  %v2936_v0 = vadd.f32 %v5128_v58, %v8226_v62  ;;  %v8230_v14 = vsel %vm7078_vm7, %v8228_v12, %v8229_v28  ;;  %v5165_v31 = vpop.f32.mrf.mxu0  ;;  %v8245_v58 = vld [vmem:[#allocation99_spill] sm:$0xff] }
 0x23d   : > { %vm7594_vm13 = vcmp.lt.s32.totalorder %v8230_v14, 16  ;;  %3368 = vst [vmem:[%s7085_s29 + $0xc8] sm:$0xff] %v3332_v17  ;;  %v4125_v47 = vsel %vm7506_vm1, %v3332_v17, -inf  ;;  %v4202_v10 = vsel %vm7506_vm1, %v3332_v17, inf  ;;  %v3337_v15 = vadd.f32 %v7047_v19, %v3294_v2  ;;  %v8247_v28 = vld [vmem:[#allocation75_spill] sm:$0xff] }
 0x23e   : > { %v3258_v37 = vadd.f32 %v5162_v8, %v2932_v53  ;;  %v8236_v60 = vsel %vm7104_vm11, %v8234_v59, %v8235_v25  ;;  %v4163_v21 = vmax.f32 %v4125_v47, %v4160_v39  ;;  %v4240_v24 = vmin.f32 %v4202_v10, %v4237_v38  ;;  %v3212_v18 = vpop.f32.mrf.mxu0 }
 0x23f   : > { %vm7609_vm7 = vcmp.lt.s32.totalorder %v8236_v60, 16  ;;  %v3335_v20 = vadd.f32 %v7047_v19, %v3292_v11  ;;  %v2934_v40 = vadd.f32 %v2889_v48, %v8239_v55  ;;  %3373 = vst [vmem:[%s7085_s29 + $0xf0] sm:$0xff] %v3337_v15  ;;  %v4130_v5 = vsel %vm7526_vm8, %v3337_v15, -inf }
 0x240   : > { %v4207_v45 = vsel %vm7526_vm8, %v3337_v15, inf  ;;  %v3295_v9 = vmul.f32 %v8021_v23, %v3258_v37  ;;  %v3256_v33 = vadd.f32 %v3199_v16, %v2930_v7  ;;  %v4161_v32 = vmax.f32 %v4130_v5, %v4163_v21 }
 0x241   : > { %v4238_v29 = vmin.f32 %v4207_v45, %v4240_v24  ;;  %3371 = vst [vmem:[%s7085_s29 + $0xe0] sm:$0xff] %v3335_v20  ;;  %v4128_v4 = vsel %vm7541_vm9, %v3335_v20, -inf  ;;  %v4205_v13 = vsel %vm7541_vm9, %v3335_v20, inf  ;;  %v3261_v57 = vadd.f32 %v5165_v31, %v2935_v1 }
 0x242   : > { %v3338_v42 = vadd.f32 %v7047_v19, %v3295_v9  ;;  %v3293_v35 = vmul.f32 %v8021_v23, %v3256_v33  ;;  %v3991_v7 = vsel %vm7619_vm2, %v8242_v22, %v7132_v63  ;;  %v4166_v6 = vmax.f32 %v4128_v4, %v4161_v32  ;;  %v5166_v63 = vpop.f32.mrf.mxu0 }
 0x243   : > { %v4243_v27 = vmin.f32 %v4205_v13, %v4238_v29  ;;  %v3259_v56 = vadd.f32 %v3212_v18, %v2933_v50  ;;  %vm7640_vm11 = vcmp.lt.s32.totalorder %v3991_v7, 16  ;;  %v3298_v36 = vmul.f32 %v8021_v23, %v3261_v57 }
 0x244   : > { %3374 = vst [vmem:[%s7085_s29 + $0xf8] sm:$0xff] %v3338_v42  ;;  %v4131_v49 = vsel %vm7563_vm10, %v3338_v42, -inf  ;;  %v4208_v1 = vsel %vm7563_vm10, %v3338_v42, inf  ;;  %v3336_v61 = vadd.f32 %v7047_v19, %v3293_v35  ;;  %v3262_v3 = vadd.f32 %v5166_v63, %v2936_v0  ;;  %v3215_v2 = vpop.f32.mrf.mxu0 }
 0x245   : > { %v4164_v44 = vmax.f32 %v4131_v49, %v4166_v6  ;;  %v4241_v30 = vmin.f32 %v4208_v1, %v4243_v27  ;;  %v3296_v50 = vmul.f32 %v8021_v23, %v3259_v56  ;;  %v3341_v17 = vadd.f32 %v7047_v19, %v3298_v36 }
 0x246   : > { %3372 = vst [vmem:[%s7085_s29 + $0xe8] sm:$0xff] %v3336_v61  ;;  %v4129_v43 = vsel %vm7576_vm3, %v3336_v61, -inf  ;;  %v4206_v52 = vsel %vm7576_vm3, %v3336_v61, inf  ;;  %v8246_v8 = vshrl.u32 %v8245_v58, 4  ;;  %v3299_v0 = vmul.f32 %v8021_v23, %v3262_v3 }
 0x247   : > { %v4167_v38 = vmax.f32 %v4129_v43, %v4164_v44  ;;  %v4244_v11 = vmin.f32 %v4206_v52, %v4241_v30  ;;  %v3339_v62 = vadd.f32 %v7047_v19, %v3296_v50  ;;  %3377 = vst [vmem:[%s7085_s29 + $0x110] sm:$0xff] %v3341_v17  ;;  %v4134_v26 = vsel %vm7594_vm13, %v3341_v17, -inf }
 0x248   : > { %v3786_v39 = vmul.u32 18, %v8246_v8  ;;  %v4211_v41 = vsel %vm7594_vm13, %v3341_v17, inf  ;;  %v3260_v12 = vadd.f32 %v3215_v2, %v2934_v40  ;;  %v3342_v48 = vadd.f32 %v7047_v19, %v3299_v0 }
 0x249   : > { %v4169_v47 = vmax.f32 %v4134_v26, %v4167_v38  ;;  %v4246_v10 = vmin.f32 %v4211_v41, %v4244_v11  ;;  %3375 = vst [vmem:[%s7085_s29 + $0x100] sm:$0xff] %v3339_v62  ;;  %v4132_v15 = vsel %vm7609_vm7, %v3339_v62, -inf  ;;  %v4209_v37 = vsel %vm7609_vm7, %v3339_v62, inf }
 0x24a   : > { %v3787_v14 = vsub.s32 %v8247_v28, %v3786_v39  ;;  %v3297_v16 = vmul.f32 %v8021_v23, %v3260_v12  ;;  %3378 = vst [vmem:[%s7085_s29 + $0x118] sm:$0xff] %v3342_v48  ;;  %v4135_v25 = vsel %vm7640_vm11, %v3342_v48, -inf  ;;  %v4212_v60 = vsel %vm7640_vm11, %v3342_v48, inf }
 0x24b   : > { %v4165_v54 = vmax.f32 %v4132_v15, %v4169_v47  ;;  %v4242_v46 = vmin.f32 %v4209_v37, %v4246_v10 }
 0x24c   : > { %vm3845_vm12 = vcmp.ne.s32.totalorder %v3787_v14, 0  ;;  %vm3881_vm4 = vcmp.lt.s32.totalorder %v3787_v14, 0  ;;  %v3953_v59 = vadd.s32 18, %v3787_v14  ;;  %v3340_v51 = vadd.f32 %v7047_v19, %v3297_v16 }
 0x24d   : > { %vm3917_vm0 = vmand %vm3881_vm4, %vm3845_vm12  ;;  %v4168_v21 = vmax.f32 %v4135_v25, %v4165_v54  ;;  %v4245_v24 = vmin.f32 %v4212_v60, %v4242_v46 }
 0x24e   : > { %v3989_v20 = vsel %vm3917_vm0, %v3953_v59, %v3787_v14  ;;  %3376 = vst [vmem:[%s7085_s29 + $0x108] sm:$0xff] %v3340_v51 }
 0x24f   : > { %vm4025_vm1 = vcmp.lt.s32.totalorder %v3989_v20, 16 }
 0x250   : > { %v4133_v23 = vsel %vm4025_vm1, %v3340_v51, -inf  ;;  %v4210_v55 = vsel %vm4025_vm1, %v3340_v51, inf }
 0x251   : > { %v4170_v40 = vmax.f32 %v4168_v21, %v4133_v23  ;;  %v4247_v53 = vmin.f32 %v4245_v24, %v4210_v55 }
 0x253   : > { %v4171_v5 = vrot.slane %v4170_v40, 4  ;;  %v4248_v45 = vrot.slane %v4247_v53, 4 }
 0x255   : > { %v4172_v9 = vmax.f32 %v4170_v40, %v4171_v5  ;;  %v4249_v33 = vmin.f32 %v4247_v53, %v4248_v45 }
 0x257   : > { %v4173_v31 = vrot.slane %v4172_v9, 2  ;;  %v4250_v32 = vrot.slane %v4249_v33, 2 }
 0x259   : > { %v4174_v29 = vmax.f32 %v4172_v9, %v4173_v31  ;;  %v4251_v4 = vmin.f32 %v4249_v33, %v4250_v32 }
 0x25b   : > { %v4175_v19 = vrot.slane %v4174_v29, 1  ;;  %v4252_v13 = vrot.slane %v4251_v4, 1 }
 0x25d   : > { %v4176_v42 = vmax.f32 %v4174_v29, %v4175_v19  ;;  %v4253_v35 = vmin.f32 %v4251_v4, %v4252_v13 }
 0x25f   : > { %4254 = vst [vmem:[%s269_s9] sm:$0xff] %v4176_v42  ;;  %4255 = vst [vmem:[%s273_s12] sm:$0xff] %v4253_v35 }
 0x260 PF: > { %s18_s23 = sadd.s32 1, %s5267_s23  }
 0x261   : > { %p15_p4 = scmp.ge.s32.totalorder %s18_s23, 4  }
 0x263   :  { %17 = sbr.rel (!%p15_p4) target bundleno = 2 (0x2), region = 98 }

// kernel: qconv2d_forward.3
= control target key start
LH: loop header
LB: loop body
LE: loop exit
PB: predicated region body
PF: predicated region fallthrough
CT: control target
= control target key end

     0   :  { %7 = vsyncpa [#allocation3], 0  ;;  %s919_s9 = smov 0   ;;  %s1498_s0 = inlined_call_operand.vmem [shape: f32[3], index: 0, kind: input, shape index: {}]   ;;  %s1499_s1 = inlined_call_operand.vmem [shape: f32[2,288,128], index: 1, kind: input, shape index: {}, may-alias: {1,2}]   ;;  %s1500_s2 = inlined_call_operand.vmem [shape: f32[2,288,128], index: 2, kind: output, shape index: {}, may-alias: {1,2}]  }
   0x1 LB: > { %s555_s10 = sadd.s32 4294967295, %s901_s9   ;;  %p557_p0 = scmp.ge.s32.totalorder %s901_s9, 1  ;;  %s901_s9 = sphi %s919_s9, %s13_s9  }
   0x2   : > { %p91_p1 = scmp.lt.s32.totalorder %s901_s9, 3  ;;  %s104_s13 = sshll.u32 %s1498_s0, 4  ;;  %s105_s13 = int_to_ptr.vmem [resolvable:$true] %s104_s13 }
   0x3   : > { %p865_p3 = scmp.eq.s32.totalorder %s555_s10, 0  ;;  %s876_s15 = scalar_lea.vmem %s105_s13, 16 }
   0x4   : > { %p930_p2 = pnand %p557_p0, %p91_p1  ;;  %p877_p6 = scmp.ne.s32.totalorder %s105_s13, %s876_s15 }
   0x5   : > { %p884_p10 = scmp.lt.s32.totalorder %s105_s13, %s105_s13  ;;  %p885_p11 = scmp.lt.s32.totalorder %s876_s15, %s876_s15 }
   0x6   : > { %p861_p4 = pneg %p930_p2 }
   0x7   : > { %p886_p12 = por %p885_p11, %p884_p10 }
   0x8   : > { %p862_p5 = pnand %p865_p3, %p861_p4 }
   0xa   : > { %p878_p7 = pneg %p862_p5 }
   0xc   : > { %p879_p8 = pnand %p878_p7, %p877_p6 }
   0xe   : > { %p880_p9 = pneg %p879_p8 }
  0x10   : > { %p887_p13 = pnand %p886_p12, %p880_p9 }
  0x12   : > { %890 = shalt.err (!%p887_p13)
}
  0x13   : > { %s903_s16 = smov [#allocation2]   ;;  %125 = sbr.rel (%p930_p2) target bundleno = 172 (0xac), region = 28 }
  0x14   : > { %864 = dma.vmem_to_smem (!%p862_p5), %s105_s13, 16, %s903_s16, [#allocation3]  }
  0x18   : > { %896 = dma.done.wait (%p865_p3), [#allocation3], 16  }
  0x19   : > { %898 = vsyncadd (%p865_p3), [#allocation3], 4294967280 }
  0x1a   : > { %131 = sfence }
  0x1b   : > { %p148_p0 = scmp.lt.s32.totalorder %s555_s10, 1  ;;  %s158_s17 = sld [smem:[#allocation2]] }
  0x1c   : > { %s564_s18 = sld [smem:[#allocation2 + $0x1]] }
  0x1d   : > { %s1571_s10 = smov (!%p148_p0, %s555_s10), 1  ;;  %s565_s19 = sld [smem:[#allocation2 + $0x2]] }
  0x1e   : > { %s568_s20 = smul.u32 288, %s1571_s10 }
  0x20   : > { %s949_s23 = scalar_lea.vmem %s1499_s1, %s568_s20  ;;  %s1050_s26 = scalar_lea.vmem %s1500_s2, %s568_s20 }
  0x21   : > { %v161_v0 = vld [vmem:[%s949_s23] sm:$0xff]  ;;  %v162_v1 = vld [vmem:[%s949_s23 + $0x8] sm:$0xff]  ;;  %v163_v2 = vld [vmem:[%s949_s23 + $0x10] sm:$0xff]  ;;  %v960_v8 = vstv %s158_s17 }
  0x22   : > { %v954_v3 = vstv %s564_s18  ;;  %v164_v4 = vld [vmem:[%s949_s23 + $0x18] sm:$0xff]  ;;  %v165_v5 = vld [vmem:[%s949_s23 + $0x20] sm:$0xff]  ;;  %v166_v6 = vld [vmem:[%s949_s23 + $0x28] sm:$0xff] }
  0x23   : > { %v198_v7 = vmul.f32 %v954_v3, %v161_v0  ;;  %v199_v9 = vmul.f32 %v954_v3, %v162_v1  ;;  %v200_v10 = vmul.f32 %v954_v3, %v163_v2  ;;  %v167_v11 = vld [vmem:[%s949_s23 + $0x30] sm:$0xff]  ;;  %v168_v12 = vld [vmem:[%s949_s23 + $0x38] sm:$0xff]  ;;  %v966_v13 = vstv %s565_s19  ;;  %v169_v21 = vld [vmem:[%s949_s23 + $0x40] sm:$0xff] }
  0x24   : > { %v201_v14 = vmul.f32 %v954_v3, %v164_v4  ;;  %v202_v15 = vmul.f32 %v954_v3, %v165_v5  ;;  %v203_v16 = vmul.f32 %v954_v3, %v166_v6  ;;  %v204_v20 = vmul.f32 %v954_v3, %v167_v11  ;;  %v170_v26 = vld [vmem:[%s949_s23 + $0x48] sm:$0xff]  ;;  %v1121_v55 = vld [vmem:[%s949_s23 + $0x100] sm:$0xff]  ;;  %v1134_v61 = vld [vmem:[%s949_s23 + $0x118] sm:$0xff] }
  0x25   : > { %v235_v17 = vadd.f32 %v966_v13, %v198_v7  ;;  %v236_v18 = vadd.f32 %v966_v13, %v199_v9  ;;  %v237_v19 = vadd.f32 %v966_v13, %v200_v10  ;;  %v205_v25 = vmul.f32 %v954_v3, %v168_v12 }
  0x26   : > { %v238_v22 = vadd.f32 %v966_v13, %v201_v14  ;;  %v239_v23 = vadd.f32 %v966_v13, %v202_v15  ;;  %v240_v24 = vadd.f32 %v966_v13, %v203_v16  ;;  %v982_v30 = vadd.f32 %v966_v13, %v204_v20 }
  0x27   : > { %v271_v27 = vmax.f32 %v235_v17, 0.0  ;;  %v272_v28 = vmax.f32 %v236_v18, 0.0  ;;  %v273_v29 = vmax.f32 %v237_v19, 0.0  ;;  %v985_v34 = vadd.f32 %v966_v13, %v205_v25  ;;  %v171_v18 = vld [vmem:[%s949_s23 + $0x50] sm:$0xff]  ;;  %v1059_v25 = vld [vmem:[%s949_s23 + $0x68] sm:$0xff] }
  0x28   : > { %v274_v31 = vmax.f32 %v238_v22, 0.0  ;;  %v275_v32 = vmax.f32 %v239_v23, 0.0  ;;  %v276_v33 = vmax.f32 %v240_v24, 0.0  ;;  %v990_v38 = vmul.f32 %v954_v3, %v169_v21  ;;  %v1053_v23 = vld [vmem:[%s949_s23 + $0x58] sm:$0xff]  ;;  %v1056_v24 = vld [vmem:[%s949_s23 + $0x60] sm:$0xff] }
  0x29   : > { %v307_v35 = vmin.f32 %v271_v27, 255.0  ;;  %v308_v36 = vmin.f32 %v272_v28, 255.0  ;;  %v987_v37 = vmin.f32 %v273_v29, 255.0  ;;  %v999_v42 = vmul.f32 %v954_v3, %v170_v26  ;;  %v1062_v26 = vld [vmem:[%s949_s23 + $0x70] sm:$0xff]  ;;  %v1065_v27 = vld [vmem:[%s949_s23 + $0x78] sm:$0xff]  ;;  %v1068_v28 = vld [vmem:[%s949_s23 + $0x80] sm:$0xff] }
  0x2a   : > { %v992_v39 = vmin.f32 %v274_v31, 255.0  ;;  %v994_v40 = vmin.f32 %v275_v32, 255.0  ;;  %v996_v41 = vmin.f32 %v276_v33, 255.0  ;;  %v1071_v29 = vld [vmem:[%s949_s23 + $0x88] sm:$0xff]  ;;  %v1074_v31 = vld [vmem:[%s949_s23 + $0x90] sm:$0xff]  ;;  %v1077_v32 = vld [vmem:[%s949_s23 + $0x98] sm:$0xff] }
  0x2b   : > { %v569_v43 = vand.u32 2147483647, %v307_v35  ;;  %v571_v44 = vcvt.f32.s32 %v307_v35  ;;  %v574_v45 = vand.u32 2147483648, %v307_v35  ;;  %v579_v46 = vcvt.f32.s32 %v308_v36  ;;  %v1080_v33 = vld [vmem:[%s949_s23 + $0xa0] sm:$0xff] }
  0x2c   : > { %v577_v47 = vand.u32 2147483647, %v308_v36  ;;  %v582_v48 = vand.u32 2147483648, %v308_v36  ;;  %v587_v49 = vcvt.f32.s32 %v987_v37  ;;  %v595_v50 = vcvt.f32.s32 %v992_v39 }
  0x2d   : > { %vm1003_vm0 = vcmp.lt.f32.partialorder %v569_v43, 8388608.0  ;;  %v572_v52 = vcvt.s32.f32 %v571_v44  ;;  %v580_v53 = vcvt.s32.f32 %v579_v46  ;;  %v585_v54 = vand.u32 2147483647, %v987_v37  ;;  %v1092_v43 = vld [vmem:[%s949_s23 + $0xc0] sm:$0xff]  ;;  %v1095_v44 = vld [vmem:[%s949_s23 + $0xc8] sm:$0xff]  ;;  %v1101_v46 = vld [vmem:[%s949_s23 + $0xd8] sm:$0xff] }
  0x2e   : > { %vm1008_vm1 = vcmp.lt.f32.partialorder %v577_v47, 8388608.0  ;;  %v588_v56 = vcvt.s32.f32 %v587_v49  ;;  %v590_v57 = vand.u32 2147483648, %v987_v37  ;;  %v593_v58 = vand.u32 2147483647, %v992_v39  ;;  %v1104_v47 = vld [vmem:[%s949_s23 + $0xe0] sm:$0xff] }
  0x2f   : > { %v573_v59 = vand.u32 2147483647, %v572_v52  ;;  %v581_v60 = vand.u32 2147483647, %v580_v53  ;;  %vm1014_vm2 = vcmp.lt.f32.partialorder %v585_v54, 8388608.0  ;;  %v596_v62 = vcvt.s32.f32 %v595_v50  ;;  %v1115_v53 = vld [vmem:[%s949_s23 + $0xf0] sm:$0xff] }
  0x30   : > { %v589_v63 = vand.u32 2147483647, %v588_v56  ;;  %vm1018_vm3 = vcmp.lt.f32.partialorder %v593_v58, 8388608.0  ;;  %v598_v1 = vand.u32 2147483648, %v992_v39  ;;  %v601_v2 = vand.u32 2147483647, %v994_v40 }
  0x31   : > { %v575_v4 = vor.u32 %v574_v45, %v573_v59  ;;  %v583_v5 = vor.u32 %v582_v48, %v581_v60  ;;  %v597_v6 = vand.u32 2147483647, %v596_v62  ;;  %v603_v7 = vcvt.f32.s32 %v994_v40  ;;  %v1098_v45 = vld [vmem:[%s949_s23 + $0xd0] sm:$0xff]  ;;  %v1107_v48 = vld [vmem:[%s949_s23 + $0xe8] sm:$0xff]  ;;  %v1118_v54 = vld [vmem:[%s949_s23 + $0xf8] sm:$0xff] }
  0x32   : > { %v591_v9 = vor.u32 %v590_v57, %v589_v63  ;;  %vm1025_vm4 = vcmp.lt.f32.partialorder %v601_v2, 8388608.0  ;;  %v606_v11 = vand.u32 2147483648, %v994_v40  ;;  %v609_v12 = vand.u32 2147483647, %v996_v41  ;;  %v1128_v59 = vld [vmem:[%s949_s23 + $0x108] sm:$0xff]  ;;  %v1131_v60 = vld [vmem:[%s949_s23 + $0x110] sm:$0xff] }
  0x33   : > { %v576_v14 = vsel %vm1003_vm0, %v575_v4, %v307_v35  ;;  %v584_v15 = vsel %vm1008_vm1, %v583_v5, %v308_v36  ;;  %v599_v16 = vor.u32 %v598_v1, %v597_v6  ;;  %v604_v17 = vcvt.s32.f32 %v603_v7  ;;  %v1083_v35 = vld [vmem:[%s949_s23 + $0xa8] sm:$0xff]  ;;  %v1086_v36 = vld [vmem:[%s949_s23 + $0xb0] sm:$0xff] }
  0x34   : > { %v379_v19 = vsub.f32 %v576_v14, %v966_v13  ;;  %v380_v20 = vsub.f32 %v584_v15, %v966_v13  ;;  %v592_v21 = vsel %vm1014_vm2, %v591_v9, %v987_v37  ;;  %vm1041_vm5 = vcmp.lt.f32.partialorder %v609_v12, 8388608.0  ;;  %v1089_v37 = vld [vmem:[%s949_s23 + $0xb8] sm:$0xff] }
  0x35   : > { %v381_v49 = vsub.f32 %v592_v21, %v966_v13  ;;  %v600_v50 = vsel %vm1018_vm3, %v599_v16, %v992_v39  ;;  %v605_v51 = vand.u32 2147483647, %v604_v17  ;;  %v611_v52 = vcvt.f32.s32 %v996_v41 }
  0x36   : > { %v416_v56 = vmul.f32 %v960_v8, %v379_v19  ;;  %v417_v57 = vmul.f32 %v960_v8, %v380_v20  ;;  %v382_v58 = vsub.f32 %v600_v50, %v966_v13  ;;  %v614_v39 = vand.u32 2147483648, %v996_v41 }
  0x37   : > { %v418_v62 = vmul.f32 %v960_v8, %v381_v49  ;;  %v607_v63 = vor.u32 %v606_v11, %v605_v51  ;;  %v612_v0 = vcvt.s32.f32 %v611_v52  ;;  %v277_v1 = vmax.f32 %v982_v30, 0.0 }
  0x38   : > { %452 = vst [vmem:[%s1050_s26] sm:$0xff] %v416_v56  ;;  %453 = vst [vmem:[%s1050_s26 + $0x8] sm:$0xff] %v417_v57  ;;  %v419_v2 = vmul.f32 %v960_v8, %v382_v58  ;;  %v278_v4 = vmax.f32 %v985_v34, 0.0  ;;  %v243_v5 = vadd.f32 %v966_v13, %v990_v38  ;;  %v244_v6 = vadd.f32 %v966_v13, %v999_v42 }
  0x39   : > { %454 = vst [vmem:[%s1050_s26 + $0x10] sm:$0xff] %v418_v62  ;;  %v608_v7 = vsel %vm1025_vm4, %v607_v63, %v994_v40  ;;  %v613_v9 = vand.u32 2147483647, %v612_v0  ;;  %v313_v11 = vmin.f32 %v277_v1, 255.0  ;;  %v208_v30 = vmul.f32 %v954_v3, %v171_v18 }
  0x3a   : > { %455 = vst [vmem:[%s1050_s26 + $0x18] sm:$0xff] %v419_v2  ;;  %v383_v12 = vsub.f32 %v608_v7, %v966_v13  ;;  %v314_v34 = vmin.f32 %v278_v4, 255.0  ;;  %v279_v14 = vmax.f32 %v243_v5, 0.0  ;;  %v280_v15 = vmax.f32 %v244_v6, 0.0 }
  0x3b   : > { %v615_v38 = vor.u32 %v614_v39, %v613_v9  ;;  %v617_v16 = vand.u32 2147483647, %v313_v11  ;;  %v619_v17 = vcvt.f32.s32 %v313_v11  ;;  %v622_v42 = vand.u32 2147483648, %v313_v11 }
  0x3c   : > { %v420_v19 = vmul.f32 %v960_v8, %v383_v12  ;;  %v625_v20 = vand.u32 2147483647, %v314_v34  ;;  %v627_v10 = vcvt.f32.s32 %v314_v34  ;;  %v630_v40 = vand.u32 2147483648, %v314_v34 }
  0x3d   : > { %v616_v18 = vsel %vm1041_vm5, %v615_v38, %v996_v41  ;;  %vm1157_vm6 = vcmp.lt.f32.partialorder %v617_v16, 8388608.0  ;;  %v620_v49 = vcvt.s32.f32 %v619_v17  ;;  %v315_v50 = vmin.f32 %v279_v14, 255.0 }
  0x3e   : > { %456 = vst [vmem:[%s1050_s26 + $0x20] sm:$0xff] %v420_v19  ;;  %v384_v51 = vsub.f32 %v616_v18, %v966_v13  ;;  %vm1163_vm7 = vcmp.lt.f32.partialorder %v625_v20, 8388608.0  ;;  %v628_v56 = vcvt.s32.f32 %v627_v10  ;;  %v316_v57 = vmin.f32 %v280_v15, 255.0 }
  0x3f   : > { %v621_v58 = vand.u32 2147483647, %v620_v49  ;;  %v633_v39 = vand.u32 2147483647, %v315_v50  ;;  %v635_v22 = vcvt.f32.s32 %v315_v50  ;;  %v638_v41 = vand.u32 2147483648, %v315_v50 }
  0x40   : > { %v421_v62 = vmul.f32 %v960_v8, %v384_v51  ;;  %v629_v63 = vand.u32 2147483647, %v628_v56  ;;  %v641_v0 = vand.u32 2147483647, %v316_v57  ;;  %v643_v1 = vcvt.f32.s32 %v316_v57 }
  0x41   : > { %v623_v2 = vor.u32 %v622_v42, %v621_v58  ;;  %vm1168_vm8 = vcmp.lt.f32.partialorder %v633_v39, 8388608.0  ;;  %v636_v5 = vcvt.s32.f32 %v635_v22  ;;  %v646_v6 = vand.u32 2147483648, %v316_v57 }
  0x42   : > { %457 = vst [vmem:[%s1050_s26 + $0x28] sm:$0xff] %v421_v62  ;;  %v631_v7 = vor.u32 %v630_v40, %v629_v63  ;;  %vm1173_vm9 = vcmp.lt.f32.partialorder %v641_v0, 8388608.0  ;;  %v644_v12 = vcvt.s32.f32 %v643_v1  ;;  %v245_v14 = vadd.f32 %v966_v13, %v208_v30 }
  0x43   : > { %v624_v15 = vsel %vm1157_vm6, %v623_v2, %v313_v11  ;;  %v637_v38 = vand.u32 2147483647, %v636_v5  ;;  %v209_v16 = vmul.f32 %v954_v3, %v1053_v23  ;;  %v210_v17 = vmul.f32 %v954_v3, %v1056_v24 }
  0x44   : > { %v385_v42 = vsub.f32 %v624_v15, %v966_v13  ;;  %v632_v19 = vsel %vm1163_vm7, %v631_v7, %v314_v34  ;;  %v645_v20 = vand.u32 2147483647, %v644_v12  ;;  %v281_v10 = vmax.f32 %v245_v14, 0.0 }
  0x45   : > { %v386_v30 = vsub.f32 %v632_v19, %v966_v13  ;;  %v639_v40 = vor.u32 %v638_v41, %v637_v38  ;;  %v246_v11 = vadd.f32 %v966_v13, %v209_v16  ;;  %v247_v18 = vadd.f32 %v966_v13, %v210_v17 }
  0x46   : > { %v422_v23 = vmul.f32 %v960_v8, %v385_v42  ;;  %v647_v21 = vor.u32 %v646_v6, %v645_v20  ;;  %v317_v24 = vmin.f32 %v281_v10, 255.0  ;;  %v211_v49 = vmul.f32 %v954_v3, %v1059_v25 }
  0x47   : > { %v423_v51 = vmul.f32 %v960_v8, %v386_v30  ;;  %v640_v34 = vsel %vm1168_vm8, %v639_v40, %v315_v50  ;;  %v282_v52 = vmax.f32 %v246_v11, 0.0  ;;  %v283_v56 = vmax.f32 %v247_v18, 0.0 }
  0x48   : > { %458 = vst [vmem:[%s1050_s26 + $0x30] sm:$0xff] %v422_v23  ;;  %v387_v58 = vsub.f32 %v640_v34, %v966_v13  ;;  %v648_v39 = vsel %vm1173_vm9, %v647_v21, %v316_v57  ;;  %v649_v22 = vand.u32 2147483647, %v317_v24  ;;  %v651_v41 = vcvt.f32.s32 %v317_v24 }
  0x49   : > { %459 = vst [vmem:[%s1050_s26 + $0x38] sm:$0xff] %v423_v51  ;;  %v388_v62 = vsub.f32 %v648_v39, %v966_v13  ;;  %v654_v25 = vand.u32 2147483648, %v317_v24  ;;  %v318_v63 = vmin.f32 %v282_v52, 255.0  ;;  %v319_v0 = vmin.f32 %v283_v56, 255.0 }
  0x4a   : > { %v424_v50 = vmul.f32 %v960_v8, %v387_v58  ;;  %vm1203_vm10 = vcmp.lt.f32.partialorder %v649_v22, 8388608.0  ;;  %v652_v2 = vcvt.s32.f32 %v651_v41  ;;  %v248_v4 = vadd.f32 %v966_v13, %v211_v49 }
  0x4b   : > { %v425_v57 = vmul.f32 %v960_v8, %v388_v62  ;;  %v657_v5 = vand.u32 2147483647, %v318_v63  ;;  %v659_v6 = vcvt.f32.s32 %v318_v63  ;;  %v662_v7 = vand.u32 2147483648, %v318_v63 }
  0x4c   : > { %460 = vst [vmem:[%s1050_s26 + $0x40] sm:$0xff] %v424_v50  ;;  %v653_v9 = vand.u32 2147483647, %v652_v2  ;;  %v665_v12 = vand.u32 2147483647, %v319_v0  ;;  %v667_v14 = vcvt.f32.s32 %v319_v0  ;;  %v670_v15 = vand.u32 2147483648, %v319_v0 }
  0x4d   : > { %461 = vst [vmem:[%s1050_s26 + $0x48] sm:$0xff] %v425_v57  ;;  %vm1211_vm11 = vcmp.lt.f32.partialorder %v657_v5, 8388608.0  ;;  %v660_v16 = vcvt.s32.f32 %v659_v6  ;;  %v284_v17 = vmax.f32 %v248_v4, 0.0  ;;  %v212_v42 = vmul.f32 %v954_v3, %v1062_v26 }
  0x4e   : > { %v655_v19 = vor.u32 %v654_v25, %v653_v9  ;;  %vm1217_vm12 = vcmp.lt.f32.partialorder %v665_v12, 8388608.0  ;;  %v668_v10 = vcvt.s32.f32 %v667_v14  ;;  %v213_v30 = vmul.f32 %v954_v3, %v1065_v27 }
  0x4f   : > { %v661_v40 = vand.u32 2147483647, %v660_v16  ;;  %v320_v11 = vmin.f32 %v284_v17, 255.0  ;;  %v249_v18 = vadd.f32 %v966_v13, %v212_v42  ;;  %v214_v23 = vmul.f32 %v954_v3, %v1068_v28 }
  0x50   : > { %v656_v21 = vsel %vm1203_vm10, %v655_v19, %v317_v24  ;;  %v669_v26 = vand.u32 2147483647, %v668_v10  ;;  %v250_v49 = vadd.f32 %v966_v13, %v213_v30  ;;  %v215_v51 = vmul.f32 %v954_v3, %v1071_v29 }
  0x51   : > { %v389_v34 = vsub.f32 %v656_v21, %v966_v13  ;;  %v663_v27 = vor.u32 %v662_v7, %v661_v40  ;;  %v673_v52 = vand.u32 2147483647, %v320_v11  ;;  %v675_v56 = vcvt.f32.s32 %v320_v11 }
  0x52   : > { %v671_v58 = vor.u32 %v670_v15, %v669_v26  ;;  %v678_v39 = vand.u32 2147483648, %v320_v11  ;;  %v285_v22 = vmax.f32 %v249_v18, 0.0  ;;  %v286_v41 = vmax.f32 %v250_v49, 0.0 }
  0x53   : > { %v426_v28 = vmul.f32 %v960_v8, %v389_v34  ;;  %v664_v24 = vsel %vm1211_vm11, %v663_v27, %v318_v63  ;;  %vm1235_vm13 = vcmp.lt.f32.partialorder %v673_v52, 8388608.0  ;;  %v676_v29 = vcvt.s32.f32 %v675_v56 }
  0x54   : > { %v390_v25 = vsub.f32 %v664_v24, %v966_v13  ;;  %v672_v50 = vsel %vm1217_vm12, %v671_v58, %v319_v0  ;;  %v321_v1 = vmin.f32 %v285_v22, 255.0  ;;  %v322_v2 = vmin.f32 %v286_v41, 255.0 }
  0x55   : > { %462 = vst [vmem:[%s1050_s26 + $0x50] sm:$0xff] %v426_v28  ;;  %v391_v4 = vsub.f32 %v672_v50, %v966_v13  ;;  %v677_v57 = vand.u32 2147483647, %v676_v29  ;;  %v251_v63 = vadd.f32 %v966_v13, %v214_v23  ;;  %v252_v5 = vadd.f32 %v966_v13, %v215_v51 }
  0x56   : > { %v427_v6 = vmul.f32 %v960_v8, %v390_v25  ;;  %v681_v7 = vand.u32 2147483647, %v321_v1  ;;  %v683_v9 = vcvt.f32.s32 %v321_v1  ;;  %v686_v12 = vand.u32 2147483648, %v321_v1 }
  0x57   : > { %v428_v14 = vmul.f32 %v960_v8, %v391_v4  ;;  %v679_v0 = vor.u32 %v678_v39, %v677_v57  ;;  %v689_v15 = vand.u32 2147483647, %v322_v2  ;;  %v691_v38 = vcvt.f32.s32 %v322_v2 }
  0x58   : > { %463 = vst [vmem:[%s1050_s26 + $0x58] sm:$0xff] %v427_v6  ;;  %vm1249_vm14 = vcmp.lt.f32.partialorder %v681_v7, 8388608.0  ;;  %v684_v17 = vcvt.s32.f32 %v683_v9  ;;  %v694_v42 = vand.u32 2147483648, %v322_v2  ;;  %v287_v19 = vmax.f32 %v251_v63, 0.0 }
  0x59   : > { %464 = vst [vmem:[%s1050_s26 + $0x60] sm:$0xff] %v428_v14  ;;  %v680_v20 = vsel %vm1235_vm13, %v679_v0, %v320_v11  ;;  %vm1256_vm15 = vcmp.lt.f32.partialorder %v689_v15, 8388608.0  ;;  %v692_v30 = vcvt.s32.f32 %v691_v38  ;;  %v288_v40 = vmax.f32 %v252_v5, 0.0 }
  0x5a   : > { %v392_v18 = vsub.f32 %v680_v20, %v966_v13  ;;  %v685_v23 = vand.u32 2147483647, %v684_v17  ;;  %v323_v21 = vmin.f32 %v287_v19, 255.0  ;;  %v216_v26 = vmul.f32 %v954_v3, %v1074_v31 }
  0x5b   : > { %v693_v49 = vand.u32 2147483647, %v692_v30  ;;  %v324_v51 = vmin.f32 %v288_v40, 255.0  ;;  %v217_v34 = vmul.f32 %v954_v3, %v1077_v32  ;;  %v218_v11 = vmul.f32 %v954_v3, %v1080_v33 }
  0x5c   : > { %v429_v27 = vmul.f32 %v960_v8, %v392_v18  ;;  %v687_v52 = vor.u32 %v686_v12, %v685_v23  ;;  %v697_v56 = vand.u32 2147483647, %v323_v21  ;;  %v699_v58 = vcvt.f32.s32 %v323_v21 }
  0x5d   : > { %v695_v39 = vor.u32 %v694_v42, %v693_v49  ;;  %v702_v22 = vand.u32 2147483648, %v323_v21  ;;  %v705_v41 = vand.u32 2147483647, %v324_v51  ;;  %v707_v28 = vcvt.f32.s32 %v324_v51 }
  0x5e   : > { %465 = vst [vmem:[%s1050_s26 + $0x68] sm:$0xff] %v429_v27  ;;  %v688_v31 = vsel %vm1249_vm14, %v687_v52, %v321_v1  ;;  %vm1271_vm0 = vcmp.lt.f32.partialorder %v697_v56, 8388608.0  ;;  %v700_v32 = vcvt.s32.f32 %v699_v58  ;;  %v710_v62 = vand.u32 2147483648, %v324_v51 }
  0x5f   : > { %v393_v33 = vsub.f32 %v688_v31, %v966_v13  ;;  %v696_v29 = vsel %vm1256_vm15, %v695_v39, %v322_v2  ;;  %vm1278_vm1 = vcmp.lt.f32.partialorder %v705_v41, 8388608.0  ;;  %v708_v50 = vcvt.s32.f32 %v707_v28 }
  0x60   : > { %v394_v4 = vsub.f32 %v696_v29, %v966_v13  ;;  %v701_v1 = vand.u32 2147483647, %v700_v32  ;;  %v253_v57 = vadd.f32 %v966_v13, %v216_v26  ;;  %v254_v63 = vadd.f32 %v966_v13, %v217_v34 }
  0x61   : > { %v430_v5 = vmul.f32 %v960_v8, %v393_v33  ;;  %v709_v6 = vand.u32 2147483647, %v708_v50  ;;  %v255_v7 = vadd.f32 %v966_v13, %v218_v11  ;;  %v219_v2 = vmul.f32 %v954_v3, %v1083_v35 }
  0x62   : > { %v431_v9 = vmul.f32 %v960_v8, %v394_v4  ;;  %v703_v12 = vor.u32 %v702_v22, %v701_v1  ;;  %v289_v14 = vmax.f32 %v253_v57, 0.0  ;;  %v290_v0 = vmax.f32 %v254_v63, 0.0 }
  0x63   : > { %466 = vst [vmem:[%s1050_s26 + $0x70] sm:$0xff] %v430_v5  ;;  %v711_v15 = vor.u32 %v710_v62, %v709_v6  ;;  %v291_v38 = vmax.f32 %v255_v7, 0.0  ;;  %v256_v16 = vadd.f32 %v966_v13, %v219_v2  ;;  %v220_v17 = vmul.f32 %v954_v3, %v1086_v36 }
  0x64   : > { %467 = vst [vmem:[%s1050_s26 + $0x78] sm:$0xff] %v431_v9  ;;  %v704_v42 = vsel %vm1271_vm0, %v703_v12, %v323_v21  ;;  %v325_v19 = vmin.f32 %v289_v14, 255.0  ;;  %v326_v20 = vmin.f32 %v290_v0, 255.0  ;;  %v221_v35 = vmul.f32 %v954_v3, %v1089_v37 }
  0x65   : > { %v395_v10 = vsub.f32 %v704_v42, %v966_v13  ;;  %v712_v30 = vsel %vm1278_vm1, %v711_v15, %v324_v51  ;;  %v327_v40 = vmin.f32 %v291_v38, 255.0  ;;  %v292_v18 = vmax.f32 %v256_v16, 0.0 }
  0x66   : > { %v396_v23 = vsub.f32 %v712_v30, %v966_v13  ;;  %v713_v36 = vand.u32 2147483647, %v325_v19  ;;  %v715_v26 = vcvt.f32.s32 %v325_v19  ;;  %v718_v49 = vand.u32 2147483648, %v325_v19 }
  0x67   : > { %v432_v21 = vmul.f32 %v960_v8, %v395_v10  ;;  %v721_v34 = vand.u32 2147483647, %v326_v20  ;;  %v723_v11 = vcvt.f32.s32 %v326_v20  ;;  %v726_v27 = vand.u32 2147483648, %v326_v20 }
  0x68   : > { %v433_v37 = vmul.f32 %v960_v8, %v396_v23  ;;  %vm1305_vm2 = vcmp.lt.f32.partialorder %v713_v36, 8388608.0  ;;  %v716_v51 = vcvt.s32.f32 %v715_v26  ;;  %v729_v56 = vand.u32 2147483647, %v327_v40 }
  0x69   : > { %468 = vst [vmem:[%s1050_s26 + $0x80] sm:$0xff] %v432_v21  ;;  %vm1310_vm3 = vcmp.lt.f32.partialorder %v721_v34, 8388608.0  ;;  %v724_v39 = vcvt.s32.f32 %v723_v11  ;;  %v731_v22 = vcvt.f32.s32 %v327_v40  ;;  %v734_v41 = vand.u32 2147483648, %v327_v40 }
  0x6a   : > { %469 = vst [vmem:[%s1050_s26 + $0x88] sm:$0xff] %v433_v37  ;;  %v717_v28 = vand.u32 2147483647, %v716_v51  ;;  %vm1315_vm4 = vcmp.lt.f32.partialorder %v729_v56, 8388608.0  ;;  %v328_v24 = vmin.f32 %v292_v18, 255.0  ;;  %v257_v32 = vadd.f32 %v966_v13, %v220_v17 }
  0x6b   : > { %v725_v62 = vand.u32 2147483647, %v724_v39  ;;  %v732_v33 = vcvt.s32.f32 %v731_v22  ;;  %v258_v29 = vadd.f32 %v966_v13, %v221_v35  ;;  %v222_v25 = vmul.f32 %v954_v3, %v1092_v43 }
  0x6c   : > { %v719_v50 = vor.u32 %v718_v49, %v717_v28  ;;  %v737_v4 = vand.u32 2147483647, %v328_v24  ;;  %v739_v1 = vcvt.f32.s32 %v328_v24  ;;  %v742_v57 = vand.u32 2147483648, %v328_v24 }
  0x6d   : > { %v727_v63 = vor.u32 %v726_v27, %v725_v62  ;;  %v733_v5 = vand.u32 2147483647, %v732_v33  ;;  %v293_v6 = vmax.f32 %v257_v32, 0.0  ;;  %v294_v7 = vmax.f32 %v258_v29, 0.0 }
  0x6e   : > { %v720_v2 = vsel %vm1305_vm2, %v719_v50, %v325_v19  ;;  %vm1325_vm5 = vcmp.lt.f32.partialorder %v737_v4, 8388608.0  ;;  %v740_v12 = vcvt.s32.f32 %v739_v1  ;;  %v259_v14 = vadd.f32 %v966_v13, %v222_v25 }
  0x6f   : > { %v397_v43 = vsub.f32 %v720_v2, %v966_v13  ;;  %v728_v0 = vsel %vm1310_vm3, %v727_v63, %v326_v20  ;;  %v735_v15 = vor.u32 %v734_v41, %v733_v5  ;;  %v329_v38 = vmin.f32 %v293_v6, 255.0 }
  0x70   : > { %v398_v16 = vsub.f32 %v728_v0, %v966_v13  ;;  %v741_v17 = vand.u32 2147483647, %v740_v12  ;;  %v330_v42 = vmin.f32 %v294_v7, 255.0  ;;  %v295_v19 = vmax.f32 %v259_v14, 0.0 }
  0x71   : > { %v434_v35 = vmul.f32 %v960_v8, %v397_v43  ;;  %v736_v10 = vsel %vm1315_vm4, %v735_v15, %v327_v40  ;;  %v745_v30 = vand.u32 2147483647, %v329_v38  ;;  %v747_v18 = vcvt.f32.s32 %v329_v38 }
  0x72   : > { %v435_v23 = vmul.f32 %v960_v8, %v398_v16  ;;  %v399_v36 = vsub.f32 %v736_v10, %v966_v13  ;;  %v743_v20 = vor.u32 %v742_v57, %v741_v17  ;;  %v750_v26 = vand.u32 2147483648, %v329_v38 }
  0x73   : > { %470 = vst [vmem:[%s1050_s26 + $0x90] sm:$0xff] %v434_v35  ;;  %vm1340_vm6 = vcmp.lt.f32.partialorder %v745_v30, 8388608.0  ;;  %v748_v21 = vcvt.s32.f32 %v747_v18  ;;  %v753_v34 = vand.u32 2147483647, %v330_v42  ;;  %v755_v11 = vcvt.f32.s32 %v330_v42 }
  0x74   : > { %471 = vst [vmem:[%s1050_s26 + $0x98] sm:$0xff] %v435_v23  ;;  %v436_v40 = vmul.f32 %v960_v8, %v399_v36  ;;  %v744_v27 = vsel %vm1325_vm5, %v743_v20, %v328_v24  ;;  %v758_v37 = vand.u32 2147483648, %v330_v42  ;;  %v331_v52 = vmin.f32 %v295_v19, 255.0 }
  0x75   : > { %v400_v51 = vsub.f32 %v744_v27, %v966_v13  ;;  %v749_v56 = vand.u32 2147483647, %v748_v21  ;;  %vm1349_vm7 = vcmp.lt.f32.partialorder %v753_v34, 8388608.0  ;;  %v756_v39 = vcvt.s32.f32 %v755_v11 }
  0x76   : > { %472 = vst [vmem:[%s1050_s26 + $0xa0] sm:$0xff] %v436_v40  ;;  %v761_v22 = vand.u32 2147483647, %v331_v52  ;;  %v763_v41 = vcvt.f32.s32 %v331_v52  ;;  %v766_v28 = vand.u32 2147483648, %v331_v52  ;;  %v223_v31 = vmul.f32 %v954_v3, %v1095_v44 }
  0x77   : > { %v437_v24 = vmul.f32 %v960_v8, %v400_v51  ;;  %v751_v32 = vor.u32 %v750_v26, %v749_v56  ;;  %v757_v62 = vand.u32 2147483647, %v756_v39  ;;  %v224_v33 = vmul.f32 %v954_v3, %v1098_v45 }
  0x78   : > { %vm1359_vm8 = vcmp.lt.f32.partialorder %v761_v22, 8388608.0  ;;  %v764_v25 = vcvt.s32.f32 %v763_v41  ;;  %v260_v50 = vadd.f32 %v966_v13, %v223_v31  ;;  %v225_v4 = vmul.f32 %v954_v3, %v1101_v46 }
  0x79   : > { %473 = vst [vmem:[%s1050_s26 + $0xa8] sm:$0xff] %v437_v24  ;;  %v752_v44 = vsel %vm1340_vm6, %v751_v32, %v329_v38  ;;  %v759_v1 = vor.u32 %v758_v37, %v757_v62  ;;  %v261_v57 = vadd.f32 %v966_v13, %v224_v33  ;;  %v226_v45 = vmul.f32 %v954_v3, %v1104_v47 }
  0x7a   : > { %v401_v63 = vsub.f32 %v752_v44, %v966_v13  ;;  %v765_v5 = vand.u32 2147483647, %v764_v25  ;;  %v296_v6 = vmax.f32 %v260_v50, 0.0  ;;  %v262_v7 = vadd.f32 %v966_v13, %v225_v4 }
  0x7b   : > { %v760_v46 = vsel %vm1349_vm7, %v759_v1, %v330_v42  ;;  %v297_v2 = vmax.f32 %v261_v57, 0.0  ;;  %v263_v9 = vadd.f32 %v966_v13, %v226_v45  ;;  %v227_v12 = vmul.f32 %v954_v3, %v1107_v48 }
  0x7c   : > { %v438_v14 = vmul.f32 %v960_v8, %v401_v63  ;;  %v402_v47 = vsub.f32 %v760_v46, %v966_v13  ;;  %v767_v43 = vor.u32 %v766_v28, %v765_v5  ;;  %v332_v0 = vmin.f32 %v296_v6, 255.0 }
  0x7d   : > { %v333_v15 = vmin.f32 %v297_v2, 255.0  ;;  %v298_v38 = vmax.f32 %v262_v7, 0.0  ;;  %v299_v16 = vmax.f32 %v263_v9, 0.0  ;;  %v264_v18 = vadd.f32 %v966_v13, %v227_v12 }
  0x7e   : > { %474 = vst [vmem:[%s1050_s26 + $0xb0] sm:$0xff] %v438_v14  ;;  %v439_v17 = vmul.f32 %v960_v8, %v402_v47  ;;  %v768_v42 = vsel %vm1359_vm8, %v767_v43, %v331_v52  ;;  %v769_v19 = vand.u32 2147483647, %v332_v0  ;;  %v771_v35 = vcvt.f32.s32 %v332_v0 }
  0x7f   : > { %v403_v48 = vsub.f32 %v768_v42, %v966_v13  ;;  %v777_v10 = vand.u32 2147483647, %v333_v15  ;;  %v779_v30 = vcvt.f32.s32 %v333_v15  ;;  %v774_v20 = vand.u32 2147483648, %v332_v0 }
  0x80   : > { %475 = vst [vmem:[%s1050_s26 + $0xb8] sm:$0xff] %v439_v17  ;;  %vm1388_vm9 = vcmp.lt.f32.partialorder %v769_v19, 8388608.0  ;;  %v772_v36 = vcvt.s32.f32 %v771_v35  ;;  %v334_v26 = vmin.f32 %v298_v38, 255.0  ;;  %v782_v34 = vand.u32 2147483648, %v333_v15 }
  0x81   : > { %v440_v49 = vmul.f32 %v960_v8, %v403_v48  ;;  %v780_v21 = vcvt.s32.f32 %v779_v30  ;;  %v335_v11 = vmin.f32 %v299_v16, 255.0  ;;  %vm1393_vm10 = vcmp.lt.f32.partialorder %v777_v10, 8388608.0 }
  0x82   : > { %v773_v40 = vand.u32 2147483647, %v772_v36  ;;  %v785_v37 = vand.u32 2147483647, %v334_v26  ;;  %v787_v52 = vcvt.f32.s32 %v334_v26  ;;  %v790_v56 = vand.u32 2147483648, %v334_v26 }
  0x83   : > { %476 = vst [vmem:[%s1050_s26 + $0xc0] sm:$0xff] %v440_v49  ;;  %v781_v51 = vand.u32 2147483647, %v780_v21  ;;  %v793_v58 = vand.u32 2147483647, %v335_v11  ;;  %v795_v39 = vcvt.f32.s32 %v335_v11  ;;  %v798_v28 = vand.u32 2147483648, %v335_v11 }
  0x84   : > { %v775_v22 = vor.u32 %v774_v20, %v773_v40  ;;  %v788_v41 = vcvt.s32.f32 %v787_v52  ;;  %v300_v31 = vmax.f32 %v264_v18, 0.0  ;;  %vm1398_vm11 = vcmp.lt.f32.partialorder %v785_v37, 8388608.0 }
  0x85   : > { %v783_v24 = vor.u32 %v782_v34, %v781_v51  ;;  %v796_v62 = vcvt.s32.f32 %v795_v39  ;;  %v228_v33 = vmul.f32 %v954_v3, %v1115_v53  ;;  %v229_v4 = vmul.f32 %v954_v3, %v1118_v54 }
  0x86   : > { %v776_v29 = vsel %vm1388_vm9, %v775_v22, %v332_v0  ;;  %v789_v25 = vand.u32 2147483647, %v788_v41  ;;  %v336_v50 = vmin.f32 %v300_v31, 255.0  ;;  %vm1413_vm12 = vcmp.lt.f32.partialorder %v793_v58, 8388608.0 }
  0x87   : > { %v404_v44 = vsub.f32 %v776_v29, %v966_v13  ;;  %v784_v1 = vsel %vm1393_vm10, %v783_v24, %v333_v15  ;;  %v797_v57 = vand.u32 2147483647, %v796_v62  ;;  %v265_v45 = vadd.f32 %v966_v13, %v228_v33 }
  0x88   : > { %v405_v63 = vsub.f32 %v784_v1, %v966_v13  ;;  %v791_v53 = vor.u32 %v790_v56, %v789_v25  ;;  %v803_v6 = vcvt.f32.s32 %v336_v50  ;;  %v801_v46 = vand.u32 2147483647, %v336_v50 }
  0x89   : > { %v441_v54 = vmul.f32 %v960_v8, %v404_v44  ;;  %v799_v7 = vor.u32 %v798_v28, %v797_v57  ;;  %v301_v2 = vmax.f32 %v265_v45, 0.0  ;;  %v806_v47 = vand.u32 2147483648, %v336_v50 }
  0x8a   : > { %v442_v9 = vmul.f32 %v960_v8, %v405_v63  ;;  %v792_v12 = vsel %vm1398_vm11, %v791_v53, %v334_v26  ;;  %v804_v14 = vcvt.s32.f32 %v803_v6  ;;  %v266_v38 = vadd.f32 %v966_v13, %v229_v4 }
  0x8b   : > { %477 = vst [vmem:[%s1050_s26 + $0xc8] sm:$0xff] %v441_v54  ;;  %v406_v43 = vsub.f32 %v792_v12, %v966_v13  ;;  %v800_v0 = vsel %vm1413_vm12, %v799_v7, %v335_v11  ;;  %v337_v15 = vmin.f32 %v301_v2, 255.0  ;;  %v230_v42 = vmul.f32 %v954_v3, %v1121_v55 }
  0x8c   : > { %478 = vst [vmem:[%s1050_s26 + $0xd0] sm:$0xff] %v442_v9  ;;  %v407_v16 = vsub.f32 %v800_v0, %v966_v13  ;;  %v805_v17 = vand.u32 2147483647, %v804_v14  ;;  %v231_v19 = vmul.f32 %v954_v3, %v1128_v59  ;;  %vm1433_vm13 = vcmp.lt.f32.partialorder %v801_v46, 8388608.0 }
  0x8d   : > { %v443_v35 = vmul.f32 %v960_v8, %v406_v43  ;;  %v809_v10 = vand.u32 2147483647, %v337_v15  ;;  %v811_v30 = vcvt.f32.s32 %v337_v15  ;;  %v302_v36 = vmax.f32 %v266_v38, 0.0 }
  0x8e   : > { %v444_v18 = vmul.f32 %v960_v8, %v407_v16  ;;  %v807_v23 = vor.u32 %v806_v47, %v805_v17  ;;  %v267_v20 = vadd.f32 %v966_v13, %v230_v42  ;;  %v814_v55 = vand.u32 2147483648, %v337_v15 }
  0x8f   : > { %479 = vst [vmem:[%s1050_s26 + $0xd8] sm:$0xff] %v443_v35  ;;  %v812_v26 = vcvt.s32.f32 %v811_v30  ;;  %v268_v49 = vadd.f32 %v966_v13, %v231_v19  ;;  %v232_v59 = vmul.f32 %v954_v3, %v1131_v60  ;;  %v338_v34 = vmin.f32 %v302_v36, 255.0 }
  0x90   : > { %480 = vst [vmem:[%s1050_s26 + $0xe0] sm:$0xff] %v444_v18  ;;  %v808_v21 = vsel %vm1433_vm13, %v807_v23, %v336_v50  ;;  %v303_v11 = vmax.f32 %v267_v20, 0.0  ;;  %vm1448_vm14 = vcmp.lt.f32.partialorder %v809_v10, 8388608.0  ;;  %v233_v62 = vmul.f32 %v954_v3, %v1134_v61 }
  0x91   : > { %v408_v40 = vsub.f32 %v808_v21, %v966_v13  ;;  %v813_v27 = vand.u32 2147483647, %v812_v26  ;;  %v304_v37 = vmax.f32 %v268_v49, 0.0  ;;  %v269_v52 = vadd.f32 %v966_v13, %v232_v59 }
  0x92   : > { %v817_v56 = vand.u32 2147483647, %v338_v34  ;;  %v819_v58 = vcvt.f32.s32 %v338_v34  ;;  %v339_v60 = vmin.f32 %v303_v11, 255.0  ;;  %v822_v24 = vand.u32 2147483648, %v338_v34 }
  0x93   : > { %v445_v39 = vmul.f32 %v960_v8, %v408_v40  ;;  %v815_v22 = vor.u32 %v814_v55, %v813_v27  ;;  %v340_v41 = vmin.f32 %v304_v37, 255.0  ;;  %v305_v28 = vmax.f32 %v269_v52, 0.0 }
  0x94   : > { %v820_v31 = vcvt.s32.f32 %v819_v58  ;;  %v827_v32 = vcvt.f32.s32 %v339_v60  ;;  %v825_v29 = vand.u32 2147483647, %v339_v60  ;;  %v830_v57 = vand.u32 2147483648, %v339_v60 }
  0x95   : > { %481 = vst [vmem:[%s1050_s26 + $0xe8] sm:$0xff] %v445_v39  ;;  %v816_v33 = vsel %vm1448_vm14, %v815_v22, %v337_v15  ;;  %v833_v25 = vand.u32 2147483647, %v340_v41  ;;  %v835_v50 = vcvt.f32.s32 %v340_v41  ;;  %vm1459_vm15 = vcmp.lt.f32.partialorder %v817_v56, 8388608.0 }
  0x96   : > { %v409_v4 = vsub.f32 %v816_v33, %v966_v13  ;;  %v821_v44 = vand.u32 2147483647, %v820_v31  ;;  %v828_v1 = vcvt.s32.f32 %v827_v32  ;;  %v838_v53 = vand.u32 2147483648, %v340_v41 }
  0x97   : > { %v836_v63 = vcvt.s32.f32 %v835_v50  ;;  %v341_v3 = vmin.f32 %v305_v28, 255.0  ;;  %v270_v54 = vadd.f32 %v966_v13, %v233_v62  ;;  %vm1465_vm0 = vcmp.lt.f32.partialorder %v825_v29, 8388608.0 }
  0x98   : > { %v446_v61 = vmul.f32 %v960_v8, %v409_v4  ;;  %v823_v5 = vor.u32 %v822_v24, %v821_v44  ;;  %v829_v6 = vand.u32 2147483647, %v828_v1  ;;  %vm1469_vm1 = vcmp.lt.f32.partialorder %v833_v25, 8388608.0 }
  0x99   : > { %v837_v2 = vand.u32 2147483647, %v836_v63  ;;  %v843_v9 = vcvt.f32.s32 %v341_v3  ;;  %v841_v47 = vand.u32 2147483647, %v341_v3  ;;  %v306_v43 = vmax.f32 %v270_v54, 0.0 }
  0x9a   : > { %482 = vst [vmem:[%s1050_s26 + $0xf0] sm:$0xff] %v446_v61  ;;  %v824_v12 = vsel %vm1459_vm15, %v823_v5, %v338_v34  ;;  %v831_v14 = vor.u32 %v830_v57, %v829_v6  ;;  %v846_v16 = vand.u32 2147483648, %v341_v3 }
  0x9b   : > { %v410_v0 = vsub.f32 %v824_v12, %v966_v13  ;;  %v839_v15 = vor.u32 %v838_v53, %v837_v2  ;;  %v844_v38 = vcvt.s32.f32 %v843_v9  ;;  %v342_v42 = vmin.f32 %v306_v43, 255.0 }
  0x9c   : > { %v832_v17 = vsel %vm1465_vm0, %v831_v14, %v339_v60  ;;  %vm842_vm2 = vcmp.lt.f32.partialorder %v841_v47, 8388608.0 }
  0x9d   : > { %v447_v19 = vmul.f32 %v960_v8, %v410_v0  ;;  %v411_v35 = vsub.f32 %v832_v17, %v966_v13  ;;  %v840_v48 = vsel %vm1469_vm1, %v839_v15, %v340_v41  ;;  %v845_v10 = vand.u32 2147483647, %v844_v38 }
  0x9e   : > { %v412_v30 = vsub.f32 %v840_v48, %v966_v13  ;;  %v851_v18 = vcvt.f32.s32 %v342_v42  ;;  %v849_v20 = vand.u32 2147483647, %v342_v42  ;;  %v854_v49 = vand.u32 2147483648, %v342_v42 }
  0x9f   : > { %483 = vst [vmem:[%s1050_s26 + $0xf8] sm:$0xff] %v447_v19  ;;  %v448_v23 = vmul.f32 %v960_v8, %v411_v35  ;;  %v847_v36 = vor.u32 %v846_v16, %v845_v10 }
  0xa0   : > { %v449_v26 = vmul.f32 %v960_v8, %v412_v30  ;;  %v852_v55 = vcvt.s32.f32 %v851_v18  ;;  %vm850_vm3 = vcmp.lt.f32.partialorder %v849_v20, 8388608.0 }
  0xa1   : > { %484 = vst [vmem:[%s1050_s26 + $0x100] sm:$0xff] %v448_v23  ;;  %v848_v59 = vsel %vm842_vm2, %v847_v36, %v341_v3 }
  0xa2   : > { %485 = vst [vmem:[%s1050_s26 + $0x108] sm:$0xff] %v449_v26  ;;  %v413_v21 = vsub.f32 %v848_v59, %v966_v13  ;;  %v853_v34 = vand.u32 2147483647, %v852_v55 }
  0xa4   : > { %v450_v11 = vmul.f32 %v960_v8, %v413_v21  ;;  %v855_v40 = vor.u32 %v854_v49, %v853_v34 }
  0xa6   : > { %486 = vst [vmem:[%s1050_s26 + $0x110] sm:$0xff] %v450_v11  ;;  %v856_v27 = vsel %vm850_vm3, %v855_v40, %v342_v42 }
  0xa7   : > { %v414_v37 = vsub.f32 %v856_v27, %v966_v13 }
  0xa9   : > { %v451_v52 = vmul.f32 %v960_v8, %v414_v37 }
  0xab   : > { %487 = vst [vmem:[%s1050_s26 + $0x118] sm:$0xff] %v451_v52 }
  0xac PF: > { %s13_s9 = sadd.s32 1, %s901_s9  }
  0xad   : > { %p10_p1 = scmp.ge.s32.totalorder %s13_s9, 4  }
  0xaf   :  { %12 = sbr.rel (!%p10_p1) target bundleno = 1 (0x1), region = 63 }
  0xb4   :  { %509 = vsyncpa [#allocation3], 1 }
  0xb5   :  { %511 = vsyncpa [#allocation3 + $0x1], 1 }

// kernel: qconv2d_forward.2
= control target key start
LH: loop header
LB: loop body
LE: loop exit
PB: predicated region body
PF: predicated region fallthrough
CT: control target
= control target key end

     0   :  { %s5307_s23 = smov 0   ;;  %s7692_s0 = inlined_call_operand.<no memory space> [shape: f32[1], index: 0, kind: input, shape index: {}]   ;;  %s7693_s1 = inlined_call_operand.vmem [shape: bf16[2,326,4], index: 1, kind: input, shape index: {}]   ;;  %s7694_s2 = inlined_call_operand.vmem [shape: bf16[9,4,128], index: 2, kind: input, shape index: {}]   ;;  %s7695_s3 = inlined_call_operand.vmem [shape: f32[1,128], index: 3, kind: input, shape index: {}]   ;;  %s7696_s4 = inlined_call_operand.vmem [shape: f32[2,288,128], index: 4, kind: output, shape index: {0}]   ;;  %s7697_s5 = inlined_call_operand.vmem [shape: f32[2,8,128], index: 5, kind: output, shape index: {1}]   ;;  %s7698_s6 = inlined_call_operand.vmem [shape: f32[2,8,128], index: 6, kind: output, shape index: {2}]  }
   0x1   :  { %12 = sst [smem:[#allocation3]] %s7692_s0 }
   0x2 LB: > { %s4373_s24 = sadd.s32 4294967295, %s5267_s23   ;;  %p4377_p0 = scmp.ge.s32.totalorder %s5267_s23, 1  ;;  %s5267_s23 = sphi %s5307_s23, %s18_s23  }
   0x3   : > { %p218_p1 = scmp.lt.s32.totalorder %s5267_s23, 3 }
   0x5   : > { %p219_p2 = pnand %p4377_p0, %p218_p1 }
   0x7   : > { %222 = sbr.rel (%p219_p2) target bundleno = 608 (0x260), region = 36 }
   0xc   : > { %v4382_v0 = vld [vmem:[%s7694_s2 + $0x2] sm:$0x3]  ;;  %vm566_vm0 = vcmask 1041408   ;;  %p256_p3 = scmp.lt.s32.totalorder %s4373_s24, 1  ;;  %v5324_v2 = vld [vmem:[%s7694_s2 + $0x4] sm:$0x3] }
   0xd   : > { %5169 = vmatprep.subr.msk.bf16.mxu0 %vm566_vm0, %v4382_v0  ;;  %5170 = vmatprep.subr.msk.bf16.mxu1 %vm566_vm0, %v4382_v0  ;;  %v568_v1 = vsel %vm566_vm0, %v4382_v0, 0  ;;  %v5329_v3 = vld [vmem:[%s7694_s2] sm:$0x3]  ;;  %vm358_vm1 = vcmask 31744   ;;  %vm399_vm2 = vcmask 29696   ;;  %s6013_s22 = sld [smem:[#allocation3]] }
   0xe   : > { %4826 = vmatpush3.bf16.msra.mxu0 %v568_v1  ;;  %5168 = vmatpush3.bf16.msra.mxu1 %v568_v1  ;;  %s8249_s24 = smov (!%p256_p3, %s4373_s24), 1 }
   0xf   : > { %5172 = vmatprep.subr.msk.bf16.mxu0 %vm566_vm0, %v5324_v2  ;;  %5171 = vmatprep.subr.msk.bf16.mxu1 %vm566_vm0, %v5329_v3  ;;  %s5179_s30 = smul.u32 164, %s8249_s24 }
  0x10   : > { %s5180_s25 = smul.u32 288, %s8249_s24 }
  0x11   : > { %s5341_s9 = scalar_lea.vmem %s7693_s1, %s5179_s30  ;;  %s4380_s30 = sshll.u32 %s8249_s24, 3 }
  0x12   : > { %v4556_v4 = vld [vmem:[%s5341_s9] sm:$0xff]   ;;  %v4635_v5 = vld [vmem:[%s5341_s9 + $0x8] sm:$0xff]   ;;  %v4644_v6 = vld [vmem:[%s5341_s9 + $0x50] sm:$0xff]   ;;  %s7085_s29 = scalar_lea.vmem %s7696_s4, %s5180_s25  ;;  %s273_s12 = scalar_lea.vmem %s7698_s6, %s4380_s30 }
  0x13   : > { %v4557_v7 = vunpack.c.l.bf16 %v4556_v4  ;;  %v4558_v8 = vunpack.c.h.bf16 %v4556_v4  ;;  %v4561_v9 = vunpack.c.l.bf16 %v4635_v5  ;;  %v4562_v10 = vunpack.c.h.bf16 %v4635_v5  ;;  %v4645_v11 = vld [vmem:[%s5341_s9 + $0x58] sm:$0xff]   ;;  %v4636_v12 = vld [vmem:[%s5341_s9 + $0x10] sm:$0xff]   ;;  %v4646_v13 = vld [vmem:[%s5341_s9 + $0x60] sm:$0xff]  }
  0x14   : > { %v4597_v14 = vunpack.c.l.bf16 %v4644_v6  ;;  %v4598_v15 = vunpack.c.h.bf16 %v4644_v6  ;;  %v4601_v16 = vunpack.c.l.bf16 %v4645_v11  ;;  %v4602_v17 = vunpack.c.h.bf16 %v4645_v11  ;;  %v4637_v18 = vld [vmem:[%s5341_s9 + $0x18] sm:$0xff]   ;;  %v4647_v19 = vld [vmem:[%s5341_s9 + $0x68] sm:$0xff]   ;;  %v4638_v20 = vld [vmem:[%s5341_s9 + $0x20] sm:$0xff]  }
  0x15   : > { %359 = vst.msk [vmem:[#allocation2] sm:$0xff] %vm358_vm1, %v4557_v7  ;;  %360 = vst.msk [vmem:[#allocation2 + $0x8] sm:$0xff] %vm358_vm1, %v4558_v8  ;;  %v4565_v21 = vunpack.c.l.bf16 %v4636_v12  ;;  %v4605_v22 = vunpack.c.l.bf16 %v4646_v13  ;;  %v4566_v23 = vunpack.c.h.bf16 %v4636_v12  ;;  %v4569_v24 = vunpack.c.l.bf16 %v4637_v18  ;;  %v4648_v25 = vld [vmem:[%s5341_s9 + $0x70] sm:$0xff]   ;;  %v4639_v26 = vld [vmem:[%s5341_s9 + $0x28] sm:$0xff]  }
  0x16   : > { %361 = vst.msk [vmem:[#allocation2 + $0x10] sm:$0xff] %vm358_vm1, %v4561_v9  ;;  %362 = vst.msk [vmem:[#allocation2 + $0x18] sm:$0xff] %vm358_vm1, %v4562_v10  ;;  %v4649_v27 = vld [vmem:[%s5341_s9 + $0x78] sm:$0xff]   ;;  %v4606_v28 = vunpack.c.h.bf16 %v4646_v13  ;;  %v4609_v29 = vunpack.c.l.bf16 %v4647_v19  ;;  %v4570_v30 = vunpack.c.h.bf16 %v4637_v18  ;;  %v4573_v31 = vunpack.c.l.bf16 %v4638_v20  ;;  %v4640_v32 = vld [vmem:[%s5341_s9 + $0x30] sm:$0xff]  }
  0x17   : > { %379 = vst.msk [vmem:[#allocation2 + $0xa0] sm:$0xff] %vm358_vm1, %v4597_v14  ;;  %380 = vst.msk [vmem:[#allocation2 + $0xa8] sm:$0xff] %vm358_vm1, %v4598_v15  ;;  %v4650_v33 = vld [vmem:[%s5341_s9 + $0x80] sm:$0xff]   ;;  %v4641_v34 = vld [vmem:[%s5341_s9 + $0x38] sm:$0xff]   ;;  %v4610_v35 = vunpack.c.h.bf16 %v4647_v19  ;;  %v4613_v36 = vunpack.c.l.bf16 %v4648_v25  ;;  %v4574_v37 = vunpack.c.h.bf16 %v4638_v20  ;;  %v4577_v38 = vunpack.c.l.bf16 %v4639_v26 }
  0x18   : > { %381 = vst.msk [vmem:[#allocation2 + $0xb0] sm:$0xff] %vm358_vm1, %v4601_v16  ;;  %382 = vst.msk [vmem:[#allocation2 + $0xb8] sm:$0xff] %vm358_vm1, %v4602_v17  ;;  %v4651_v39 = vld [vmem:[%s5341_s9 + $0x88] sm:$0xff]   ;;  %v4642_v40 = vld [vmem:[%s5341_s9 + $0x40] sm:$0xff]   ;;  %v4614_v41 = vunpack.c.h.bf16 %v4648_v25  ;;  %v4617_v42 = vunpack.c.l.bf16 %v4649_v27  ;;  %v4578_v43 = vunpack.c.h.bf16 %v4639_v26  ;;  %v4581_v44 = vunpack.c.l.bf16 %v4640_v32 }
  0x19   : > { %363 = vst.msk [vmem:[#allocation2 + $0x20] sm:$0xff] %vm358_vm1, %v4565_v21  ;;  %383 = vst.msk [vmem:[#allocation2 + $0xc0] sm:$0xff] %vm358_vm1, %v4605_v22  ;;  %v5377_v45 = vld [vmem:[%s5341_s9 + $0x90] sm:$0xff]   ;;  %v4643_v46 = vld [vmem:[%s5341_s9 + $0x48] sm:$0xff]   ;;  %v4618_v47 = vunpack.c.h.bf16 %v4649_v27  ;;  %v4621_v48 = vunpack.c.l.bf16 %v4650_v33  ;;  %v4582_v49 = vunpack.c.h.bf16 %v4640_v32  ;;  %v4585_v50 = vunpack.c.l.bf16 %v4641_v34 }
  0x1a   : > { %364 = vst.msk [vmem:[#allocation2 + $0x28] sm:$0xff] %vm358_vm1, %v4566_v23  ;;  %365 = vst.msk [vmem:[#allocation2 + $0x30] sm:$0xff] %vm358_vm1, %v4569_v24  ;;  %v4622_v51 = vunpack.c.h.bf16 %v4650_v33  ;;  %v4625_v52 = vunpack.c.l.bf16 %v4651_v39  ;;  %v4586_v53 = vunpack.c.h.bf16 %v4641_v34  ;;  %v4589_v54 = vunpack.c.l.bf16 %v4642_v40  ;;  %v5411_v18 = vld [vmem:[%s7694_s2 + $0x6] sm:$0x3] }
  0x1b   : > { %384 = vst.msk [vmem:[#allocation2 + $0xc8] sm:$0xff] %vm358_vm1, %v4606_v28  ;;  %385 = vst.msk [vmem:[#allocation2 + $0xd0] sm:$0xff] %vm358_vm1, %v4609_v29  ;;  %v4626_v55 = vunpack.c.h.bf16 %v4651_v39  ;;  %v4629_v56 = vunpack.c.l.bf16 %v5377_v45  ;;  %v4590_v57 = vunpack.c.h.bf16 %v4642_v40  ;;  %v4593_v58 = vunpack.c.l.bf16 %v4643_v46 }
  0x1c   : > { %366 = vst.msk [vmem:[#allocation2 + $0x38] sm:$0xff] %vm358_vm1, %v4570_v30  ;;  %367 = vst.msk [vmem:[#allocation2 + $0x40] sm:$0xff] %vm358_vm1, %v4573_v31  ;;  %v456_v59 = vld [vmem:[#allocation2 + $0x1] sm:$0xff]  ;;  %v4594_v62 = vunpack.c.h.bf16 %v4643_v46  ;;  %v1092_v11 = vsel %vm566_vm0, %v5324_v2, 0  ;;  %v802_v12 = vsel %vm566_vm0, %v5329_v3, 0 }
  0x1d   : > { %386 = vst.msk [vmem:[#allocation2 + $0xd8] sm:$0xff] %vm358_vm1, %v4610_v35  ;;  %387 = vst.msk [vmem:[#allocation2 + $0xe0] sm:$0xff] %vm358_vm1, %v4613_v36  ;;  %v457_v60 = vld [vmem:[#allocation2 + $0x9] sm:$0xff]  ;;  %v458_v61 = vld [vmem:[#allocation2 + $0x11] sm:$0xff] }
  0x1e   : > { %368 = vst.msk [vmem:[#allocation2 + $0x48] sm:$0xff] %vm358_vm1, %v4574_v37  ;;  %369 = vst.msk [vmem:[#allocation2 + $0x50] sm:$0xff] %vm358_vm1, %v4577_v38  ;;  %v492_v63 = vpack.c.bf16 %v457_v60, %v456_v59  ;;  %v476_v0 = vld [vmem:[#allocation2 + $0xa1] sm:$0xff] }
  0x1f   : > { %388 = vst.msk [vmem:[#allocation2 + $0xe8] sm:$0xff] %vm358_vm1, %v4614_v41  ;;  %389 = vst.msk [vmem:[#allocation2 + $0xf0] sm:$0xff] %vm358_vm1, %v4617_v42  ;;  %v477_v1 = vld [vmem:[#allocation2 + $0xa9] sm:$0xff]  ;;  %v478_v4 = vld [vmem:[#allocation2 + $0xb1] sm:$0xff] }
  0x20   : > { %370 = vst.msk [vmem:[#allocation2 + $0x58] sm:$0xff] %vm358_vm1, %v4578_v43  ;;  %371 = vst.msk [vmem:[#allocation2 + $0x60] sm:$0xff] %vm358_vm1, %v4581_v44  ;;  %v502_v5 = vpack.c.bf16 %v477_v1, %v476_v0  ;;  %v459_v6 = vld [vmem:[#allocation2 + $0x19] sm:$0xff]  ;;  %4827 = vmatprep.mubr.msk.bf16.mxu0 %vm358_vm1, %v492_v63  ;;  %v4630_v1 = vunpack.c.h.bf16 %v5377_v45 }
  0x21   : > { %390 = vst.msk [vmem:[#allocation2 + $0xf8] sm:$0xff] %vm358_vm1, %v4618_v47  ;;  %391 = vst.msk [vmem:[#allocation2 + $0x100] sm:$0xff] %vm358_vm1, %v4621_v48  ;;  %v479_v7 = vld [vmem:[#allocation2 + $0xb9] sm:$0xff]  ;;  %v460_v8 = vld [vmem:[#allocation2 + $0x21] sm:$0xff]  ;;  %v493_v9 = vpack.c.bf16 %v459_v6, %v458_v61 }
  0x22   : > { %372 = vst.msk [vmem:[#allocation2 + $0x68] sm:$0xff] %vm358_vm1, %v4582_v49  ;;  %373 = vst.msk [vmem:[#allocation2 + $0x70] sm:$0xff] %vm358_vm1, %v4585_v50  ;;  %v503_v10 = vpack.c.bf16 %v479_v7, %v478_v4  ;;  %v461_v13 = vld [vmem:[#allocation2 + $0x29] sm:$0xff]  ;;  %v480_v14 = vld [vmem:[#allocation2 + $0xc1] sm:$0xff]  ;;  %4847 = vmatprep.mubr.msk.bf16.mxu1 %vm358_vm1, %v502_v5  ;;  %v1418_v5 = vsel %vm566_vm0, %v5411_v18, 0 }
  0x23   : > { %392 = vst.msk [vmem:[#allocation2 + $0x108] sm:$0xff] %vm358_vm1, %v4622_v51  ;;  %393 = vst.msk [vmem:[#allocation2 + $0x110] sm:$0xff] %vm358_vm1, %v4625_v52  ;;  %v481_v15 = vld [vmem:[#allocation2 + $0xc9] sm:$0xff]  ;;  %v494_v16 = vpack.c.bf16 %v461_v13, %v460_v8  ;;  %4828 = vmatmul.mubr.msk.bf16.vlgmr.msra.gmra.mxu0 %vm358_vm1, %v493_v9  ;;  %v462_v2 = vld [vmem:[#allocation2 + $0x31] sm:$0xff] }
  0x24   : > { %374 = vst.msk [vmem:[#allocation2 + $0x78] sm:$0xff] %vm358_vm1, %v4586_v53  ;;  %375 = vst.msk [vmem:[#allocation2 + $0x80] sm:$0xff] %vm358_vm1, %v4589_v54  ;;  %v504_v17 = vpack.c.bf16 %v481_v15, %v480_v14  ;;  %4848 = vmatmul.mubr.msk.bf16.vlgmr.msra.gmra.mxu1 %vm358_vm1, %v503_v10  ;;  %v463_v19 = vld [vmem:[#allocation2 + $0x39] sm:$0xff]  ;;  %4902 = vmatpush3.bf16.msra.mxu0 %v1092_v11  ;;  %v482_v20 = vld [vmem:[#allocation2 + $0xd1] sm:$0xff] }
  0x25   : > { %394 = vst.msk [vmem:[#allocation2 + $0x118] sm:$0xff] %vm358_vm1, %v4626_v55  ;;  %395 = vst.msk [vmem:[#allocation2 + $0x120] sm:$0xff] %vm358_vm1, %v4629_v56  ;;  %v5418_v3 = vld [vmem:[%s7694_s2 + $0x8] sm:$0x3]  ;;  %4864 = vmatpush3.bf16.msra.mxu1 %v802_v12  ;;  %4831 = vmatprep.mubr.msk.bf16.mxu0 %vm358_vm1, %v494_v16  ;;  %v465_v23 = vld [vmem:[#allocation2 + $0x49] sm:$0xff]  ;;  %v495_v26 = vpack.c.bf16 %v463_v19, %v462_v2 }
  0x26   : > { %376 = vst.msk [vmem:[#allocation2 + $0x88] sm:$0xff] %vm358_vm1, %v4590_v57  ;;  %377 = vst.msk [vmem:[#allocation2 + $0x90] sm:$0xff] %vm358_vm1, %v4593_v58  ;;  %v483_v21 = vld [vmem:[#allocation2 + $0xd9] sm:$0xff]  ;;  %v464_v22 = vld [vmem:[#allocation2 + $0x41] sm:$0xff]  ;;  %4851 = vmatprep.mubr.msk.bf16.mxu1 %vm358_vm1, %v504_v17  ;;  %5173 = vmatprep.subr.msk.bf16.mxu1 %vm566_vm0, %v5411_v18  ;;  %v1744_v18 = vsel %vm566_vm0, %v5418_v3, 0 }
  0x27   : > { %378 = vst.msk [vmem:[#allocation2 + $0x98] sm:$0xff] %vm358_vm1, %v4594_v62  ;;  %v484_v24 = vld [vmem:[#allocation2 + $0xe1] sm:$0xff]  ;;  %v485_v25 = vld [vmem:[#allocation2 + $0xe9] sm:$0xff]  ;;  %5174 = vmatprep.subr.msk.bf16.mxu0 %vm566_vm0, %v5418_v3  ;;  %v505_v27 = vpack.c.bf16 %v483_v21, %v482_v20  ;;  %v496_v28 = vpack.c.bf16 %v465_v23, %v464_v22  ;;  %v466_v30 = vld [vmem:[#allocation2 + $0x51] sm:$0xff] }
  0x28   : > { %v506_v29 = vpack.c.bf16 %v485_v25, %v484_v24  ;;  %v467_v31 = vld [vmem:[#allocation2 + $0x59] sm:$0xff]  ;;  %v486_v32 = vld [vmem:[#allocation2 + $0xf1] sm:$0xff]  ;;  %v402_v50 = vld [vmem:[#allocation2 + $0x8] sm:$0xff]  ;;  %396 = vst.msk [vmem:[#allocation2 + $0x128] sm:$0xff] %vm358_vm1, %v4630_v1 }
  0x29   : > { %v487_v33 = vld [vmem:[#allocation2 + $0xf9] sm:$0xff]  ;;  %v468_v34 = vld [vmem:[#allocation2 + $0x61] sm:$0xff]  ;;  %v469_v35 = vld [vmem:[#allocation2 + $0x69] sm:$0xff]  ;;  %v497_v38 = vpack.c.bf16 %v467_v31, %v466_v30 }
  0x2a   : > { %v488_v36 = vld [vmem:[#allocation2 + $0x101] sm:$0xff]  ;;  %v489_v37 = vld [vmem:[#allocation2 + $0x109] sm:$0xff]  ;;  %v507_v39 = vpack.c.bf16 %v487_v33, %v486_v32  ;;  %v498_v40 = vpack.c.bf16 %v469_v35, %v468_v34  ;;  %v404_v58 = vld [vmem:[#allocation2 + $0x18] sm:$0xff] }
  0x2b   : > { %4832 = vmatmul.mubr.msk.bf16.gmra.mxu0 %vm358_vm1, %v495_v26  ;;  %v508_v41 = vpack.c.bf16 %v489_v37, %v488_v36  ;;  %v470_v42 = vld [vmem:[#allocation2 + $0x71] sm:$0xff]  ;;  %v471_v43 = vld [vmem:[#allocation2 + $0x79] sm:$0xff]  ;;  %v406_v60 = vld [vmem:[#allocation2 + $0x28] sm:$0xff] }
  0x2c   : > { %4852 = vmatmul.mubr.msk.bf16.gmra.mxu1 %vm358_vm1, %v505_v27  ;;  %4835 = vmatprep.mubr.msk.bf16.mxu0 %vm358_vm1, %v496_v28  ;;  %v490_v44 = vld [vmem:[#allocation2 + $0x111] sm:$0xff]  ;;  %v491_v46 = vld [vmem:[#allocation2 + $0x119] sm:$0xff]  ;;  %v499_v51 = vpack.c.bf16 %v471_v43, %v470_v42  ;;  %v981_v61 = vld [vmem:[#allocation2 + $0x2] sm:$0xff] }
  0x2d   : > { %4855 = vmatprep.mubr.msk.bf16.mxu1 %vm358_vm1, %v506_v29  ;;  %v472_v47 = vld [vmem:[#allocation2 + $0x81] sm:$0xff]  ;;  %v473_v48 = vld [vmem:[#allocation2 + $0x89] sm:$0xff]  ;;  %v509_v52 = vpack.c.bf16 %v491_v46, %v490_v44  ;;  %v408_v45 = vld [vmem:[#allocation2 + $0x38] sm:$0xff] }
  0x2e   : > { %v401_v49 = vld [vmem:[#allocation2] sm:$0xff]  ;;  %v500_v53 = vpack.c.bf16 %v473_v48, %v472_v47  ;;  %v474_v55 = vld [vmem:[#allocation2 + $0x91] sm:$0xff]  ;;  %v410_v12 = vld [vmem:[#allocation2 + $0x48] sm:$0xff] }
  0x2f   : > { %v437_v54 = vpack.c.bf16 %v402_v50, %v401_v49  ;;  %v475_v56 = vld [vmem:[#allocation2 + $0x99] sm:$0xff]  ;;  %v403_v57 = vld [vmem:[#allocation2 + $0x10] sm:$0xff]  ;;  %v5445_v7 = vld [vmem:[%s7694_s2 + $0xa] sm:$0x3] }
  0x30   : > { %v405_v59 = vld [vmem:[#allocation2 + $0x20] sm:$0xff]  ;;  %v982_v62 = vld [vmem:[#allocation2 + $0xa] sm:$0xff]  ;;  %v501_v63 = vpack.c.bf16 %v475_v56, %v474_v55  ;;  %v438_v0 = vpack.c.bf16 %v404_v58, %v403_v57  ;;  %v983_v9 = vld [vmem:[#allocation2 + $0x12] sm:$0xff] }
  0x31   : > { %v439_v4 = vpack.c.bf16 %v406_v60, %v405_v59  ;;  %v1017_v6 = vpack.c.bf16 %v982_v62, %v981_v61  ;;  %v407_v8 = vld [vmem:[#allocation2 + $0x30] sm:$0xff]  ;;  %v984_v10 = vld [vmem:[#allocation2 + $0x1a] sm:$0xff]  ;;  %v985_v13 = vld [vmem:[#allocation2 + $0x22] sm:$0xff] }
  0x32   : > { %v409_v11 = vld [vmem:[#allocation2 + $0x40] sm:$0xff]  ;;  %v986_v14 = vld [vmem:[#allocation2 + $0x2a] sm:$0xff]  ;;  %v440_v15 = vpack.c.bf16 %v408_v45, %v407_v8  ;;  %v5453_v16 = vpack.c.bf16 %v984_v10, %v983_v9  ;;  %v412_v21 = vld [vmem:[#allocation2 + $0x58] sm:$0xff] }
  0x33   : > { %4836 = vmatmul.mubr.msk.bf16.gmra.mxu0 %vm358_vm1, %v497_v38  ;;  %v441_v17 = vpack.c.bf16 %v410_v12, %v409_v11  ;;  %v5457_v2 = vpack.c.bf16 %v986_v14, %v985_v13  ;;  %v5462_v19 = vld [vmem:[%s7694_s2 + $0xc] sm:$0x3]  ;;  %v411_v20 = vld [vmem:[#allocation2 + $0x50] sm:$0xff]  ;;  %v988_v23 = vld [vmem:[#allocation2 + $0x3a] sm:$0xff] }
  0x34   : > { %4856 = vmatmul.mubr.msk.bf16.gmra.mxu1 %vm358_vm1, %v507_v39  ;;  %4839 = vmatprep.mubr.msk.bf16.mxu0 %vm358_vm1, %v498_v40  ;;  %v987_v22 = vld [vmem:[#allocation2 + $0x32] sm:$0xff]  ;;  %v413_v3 = vld [vmem:[#allocation2 + $0x60] sm:$0xff]  ;;  %v414_v25 = vld [vmem:[#allocation2 + $0x68] sm:$0xff]  ;;  %v442_v30 = vpack.c.bf16 %v412_v21, %v411_v20 }
  0x35   : > { %4859 = vmatprep.mubr.msk.bf16.mxu1 %vm358_vm1, %v508_v41  ;;  %v4653_v24 = vld [vmem:[%s5341_s9 + $0x98] sm:$0xff]   ;;  %v989_v26 = vld [vmem:[#allocation2 + $0x42] sm:$0xff]  ;;  %v5473_v31 = vpack.c.bf16 %v988_v23, %v987_v22  ;;  %v443_v32 = vpack.c.bf16 %v414_v25, %v413_v3  ;;  %v416_v35 = vld [vmem:[#allocation2 + $0x78] sm:$0xff] }
  0x36   : > { %v990_v27 = vld [vmem:[#allocation2 + $0x4a] sm:$0xff]  ;;  %v4633_v28 = vunpack.c.l.bf16 %v4653_v24  ;;  %v4634_v29 = vunpack.c.h.bf16 %v4653_v24  ;;  %v991_v36 = vld [vmem:[#allocation2 + $0x52] sm:$0xff]  ;;  %v992_v37 = vld [vmem:[#allocation2 + $0x5a] sm:$0xff] }
  0x37   : > { %v5477_v33 = vpack.c.bf16 %v990_v27, %v989_v26  ;;  %v415_v34 = vld [vmem:[#allocation2 + $0x70] sm:$0xff]  ;;  %v417_v38 = vld [vmem:[#allocation2 + $0x80] sm:$0xff]  ;;  %v418_v39 = vld [vmem:[#allocation2 + $0x88] sm:$0xff]  ;;  %v5485_v43 = vpack.c.bf16 %v992_v37, %v991_v36 }
  0x38   : > { %397 = vst.msk [vmem:[#allocation2 + $0x130] sm:$0xff] %vm358_vm1, %v4633_v28  ;;  %398 = vst.msk [vmem:[#allocation2 + $0x138] sm:$0xff] %vm358_vm1, %v4634_v29  ;;  %v993_v40 = vld [vmem:[#allocation2 + $0x62] sm:$0xff]  ;;  %v994_v41 = vld [vmem:[#allocation2 + $0x6a] sm:$0xff]  ;;  %v444_v42 = vpack.c.bf16 %v416_v35, %v415_v34  ;;  %v445_v44 = vpack.c.bf16 %v418_v39, %v417_v38 }
  0x39   : > { %v5487_v46 = vpack.c.bf16 %v994_v41, %v993_v40  ;;  %v419_v47 = vld [vmem:[#allocation2 + $0x90] sm:$0xff]  ;;  %v420_v48 = vld [vmem:[#allocation2 + $0x98] sm:$0xff]  ;;  %v1001_v1 = vld [vmem:[#allocation2 + $0xa2] sm:$0xff] }
  0x3a   : > { %v995_v49 = vld [vmem:[#allocation2 + $0x72] sm:$0xff]  ;;  %v996_v50 = vld [vmem:[#allocation2 + $0x7a] sm:$0xff]  ;;  %v446_v55 = vpack.c.bf16 %v420_v48, %v419_v47  ;;  %v430_v14 = vld [vmem:[#allocation2 + $0xe8] sm:$0xff] }
  0x3b   : > { %4840 = vmatmul.mubr.msk.bf16.gmra.mxu0 %vm358_vm1, %v499_v51  ;;  %v421_v51 = vld [vmem:[#allocation2 + $0xa0] sm:$0xff]  ;;  %v5495_v56 = vpack.c.bf16 %v996_v50, %v995_v49  ;;  %v423_v59 = vld [vmem:[#allocation2 + $0xb0] sm:$0xff]  ;;  %v424_v60 = vld [vmem:[#allocation2 + $0xb8] sm:$0xff] }
  0x3c   : > { %4860 = vmatmul.mubr.msk.bf16.gmra.mxu1 %vm358_vm1, %v509_v52  ;;  %4843 = vmatprep.mubr.msk.bf16.mxu0 %vm358_vm1, %v500_v53  ;;  %v422_v52 = vld [vmem:[#allocation2 + $0xa8] sm:$0xff]  ;;  %v999_v61 = vld [vmem:[#allocation2 + $0x92] sm:$0xff]  ;;  %v1000_v62 = vld [vmem:[#allocation2 + $0x9a] sm:$0xff] }
  0x3d   : > { %4865 = vmatprep.mubr.msk.bf16.mxu1 %vm358_vm1, %v437_v54  ;;  %v997_v53 = vld [vmem:[#allocation2 + $0x82] sm:$0xff]  ;;  %v998_v54 = vld [vmem:[#allocation2 + $0x8a] sm:$0xff]  ;;  %v447_v57 = vpack.c.bf16 %v422_v52, %v421_v51  ;;  %v428_v10 = vld [vmem:[#allocation2 + $0xd8] sm:$0xff] }
  0x3e   : > { %v5497_v58 = vpack.c.bf16 %v998_v54, %v997_v53  ;;  %v427_v9 = vld [vmem:[#allocation2 + $0xd0] sm:$0xff]  ;;  %v1004_v12 = vld [vmem:[#allocation2 + $0xba] sm:$0xff]  ;;  %v434_v27 = vld [vmem:[#allocation2 + $0x108] sm:$0xff]  ;;  %v2070_v53 = vsel %vm566_vm0, %v5445_v7, 0 }
  0x3f   : > { %v1003_v11 = vld [vmem:[#allocation2 + $0xb2] sm:$0xff]  ;;  %v429_v13 = vld [vmem:[#allocation2 + $0xe0] sm:$0xff]  ;;  %v1010_v29 = vld [vmem:[#allocation2 + $0xea] sm:$0xff] }
  0x40   : > { %v5515_v20 = vpack.c.bf16 %v1004_v12, %v1003_v11  ;;  %v451_v21 = vpack.c.bf16 %v430_v14, %v429_v13  ;;  %v431_v23 = vld [vmem:[#allocation2 + $0xf0] sm:$0xff]  ;;  %v432_v3 = vld [vmem:[#allocation2 + $0xf8] sm:$0xff]  ;;  %v433_v26 = vld [vmem:[#allocation2 + $0x100] sm:$0xff] }
  0x41   : > { %v1007_v24 = vld [vmem:[#allocation2 + $0xd2] sm:$0xff]  ;;  %v1008_v25 = vld [vmem:[#allocation2 + $0xda] sm:$0xff]  ;;  %v1009_v28 = vld [vmem:[#allocation2 + $0xe2] sm:$0xff]  ;;  %v453_v34 = vpack.c.bf16 %v434_v27, %v433_v26 }
  0x42   : > { %v5527_v35 = vpack.c.bf16 %v1010_v29, %v1009_v28  ;;  %v435_v36 = vld [vmem:[#allocation2 + $0x110] sm:$0xff]  ;;  %v436_v37 = vld [vmem:[#allocation2 + $0x118] sm:$0xff]  ;;  %v1013_v40 = vld [vmem:[#allocation2 + $0x102] sm:$0xff] }
  0x43   : > { %4844 = vmatmul.mubr.msk.bf16.gmra.mxu0 %vm358_vm1, %v501_v63  ;;  %v425_v63 = vld [vmem:[#allocation2 + $0xc0] sm:$0xff]  ;;  %v1011_v38 = vld [vmem:[#allocation2 + $0xf2] sm:$0xff]  ;;  %v1014_v41 = vld [vmem:[#allocation2 + $0x10a] sm:$0xff] }
  0x44   : > { %4866 = vmatmul.mubr.msk.bf16.vlgmr.msra.gmra.mxu1 %vm358_vm1, %v438_v0  ;;  %4903 = vmatprep.mubr.msk.bf16.mxu0 %vm358_vm1, %v1017_v6  ;;  %v426_v0 = vld [vmem:[#allocation2 + $0xc8] sm:$0xff]  ;;  %v5505_v6 = vpack.c.bf16 %v1000_v62, %v999_v61  ;;  %v1012_v39 = vld [vmem:[#allocation2 + $0xfa] sm:$0xff]  ;;  %v5537_v47 = vpack.c.bf16 %v1014_v41, %v1013_v40  ;;  %v1015_v48 = vld [vmem:[#allocation2 + $0x112] sm:$0xff] }
  0x45   : > { %4940 = vmatpush3.bf16.msra.mxu1 %v1418_v5  ;;  %4869 = vmatprep.mubr.msk.bf16.mxu1 %vm358_vm1, %v439_v4  ;;  %v1002_v4 = vld [vmem:[#allocation2 + $0xaa] sm:$0xff]  ;;  %v448_v5 = vpack.c.bf16 %v424_v60, %v423_v59  ;;  %v449_v8 = vpack.c.bf16 %v426_v0, %v425_v63  ;;  %v1016_v49 = vld [vmem:[#allocation2 + $0x11a] sm:$0xff] }
  0x46   : > { %5175 = vmatprep.subr.msk.bf16.mxu1 %vm566_vm0, %v5445_v7  ;;  %v5507_v45 = vpack.c.bf16 %v1002_v4, %v1001_v1  ;;  %v1633_v50 = vld [vmem:[#allocation2 + $0x13] sm:$0xff]  ;;  %v1634_v51 = vld [vmem:[#allocation2 + $0x1b] sm:$0xff]  ;;  %v5546_v52 = vpack.c.bf16 %v1016_v49, %v1015_v48  ;;  %v1639_v0 = vld [vmem:[#allocation2 + $0x43] sm:$0xff] }
  0x47   : > { %v1669_v54 = vpack.c.bf16 %v1634_v51, %v1633_v50  ;;  %v1637_v7 = vld [vmem:[#allocation2 + $0x33] sm:$0xff]  ;;  %v1638_v59 = vld [vmem:[#allocation2 + $0x3b] sm:$0xff]  ;;  %v1640_v1 = vld [vmem:[#allocation2 + $0x4b] sm:$0xff] }
  0x48   : > { %v316_v60 = vld [vmem:[%s5341_s9 + $0xa0] sm:$0x7]  ;;  %v1671_v63 = vpack.c.bf16 %v1638_v59, %v1637_v7  ;;  %v1642_v4 = vld [vmem:[#allocation2 + $0x5b] sm:$0xff]  ;;  %v1660_v28 = vld [vmem:[#allocation2 + $0xeb] sm:$0xff]  ;;  %s269_s9 = scalar_lea.vmem %s7697_s5, %s4380_s30 }
  0x49   : > { %v357_v62 = vunpack.c.l.bf16 %v316_v60  ;;  %v1649_v13 = vld [vmem:[#allocation2 + $0x93] sm:$0xff]  ;;  %v1650_v14 = vld [vmem:[#allocation2 + $0x9b] sm:$0xff]  ;;  %v1668_v51 = vld [vmem:[#allocation2 + $0x12b] sm:$0xff] }
  0x4a   : > { %v1661_v29 = vld [vmem:[#allocation2 + $0xf3] sm:$0xff]  ;;  %v1666_v40 = vld [vmem:[#allocation2 + $0x11b] sm:$0xff] }
  0x4b   : > { %4904 = vmatmul.mubr.msk.bf16.vlgmr.msra.gmra.mxu0 %vm358_vm1, %v5453_v16  ;;  %400 = vst.msk [vmem:[#allocation2 + $0x140] sm:$0x3f] %vm399_vm2, %v357_v62  ;;  %v1959_v41 = vld [vmem:[#allocation2 + $0x14] sm:$0xff]  ;;  %v1966_v62 = vld [vmem:[#allocation2 + $0x4c] sm:$0xff] }
  0x4c   : > { %4870 = vmatmul.mubr.msk.bf16.gmra.mxu1 %vm358_vm1, %v440_v15  ;;  %4978 = vmatpush3.bf16.msra.mxu0 %v1744_v18  ;;  %v1005_v15 = vld [vmem:[#allocation2 + $0xc2] sm:$0xff]  ;;  %v450_v18 = vpack.c.bf16 %v428_v10, %v427_v9  ;;  %v1645_v9 = vld [vmem:[#allocation2 + $0x73] sm:$0xff] }
  0x4d   : > { %4873 = vmatprep.mubr.msk.bf16.mxu1 %vm358_vm1, %v441_v17  ;;  %4907 = vmatprep.mubr.msk.bf16.mxu0 %vm358_vm1, %v5457_v2  ;;  %v1006_v17 = vld [vmem:[#allocation2 + $0xca] sm:$0xff]  ;;  %v1646_v10 = vld [vmem:[#allocation2 + $0x7b] sm:$0xff] }
  0x4e   : > { %5176 = vmatprep.subr.msk.bf16.mxu0 %vm566_vm0, %v5462_v19  ;;  %v5517_v22 = vpack.c.bf16 %v1006_v17, %v1005_v15  ;;  %v1675_v12 = vpack.c.bf16 %v1646_v10, %v1645_v9  ;;  %v1677_v17 = vpack.c.bf16 %v1650_v14, %v1649_v13  ;;  %v1976_v13 = vld [vmem:[#allocation2 + $0x9c] sm:$0xff] }
  0x53   : > { %4908 = vmatmul.mubr.msk.bf16.gmra.mxu0 %vm358_vm1, %v5473_v31 }
  0x54   : > { %4874 = vmatmul.mubr.msk.bf16.gmra.mxu1 %vm358_vm1, %v442_v30  ;;  %4911 = vmatprep.mubr.msk.bf16.mxu0 %vm358_vm1, %v5477_v33  ;;  %v452_v30 = vpack.c.bf16 %v432_v3, %v431_v23 }
  0x55   : > { %4877 = vmatprep.mubr.msk.bf16.mxu1 %vm358_vm1, %v443_v32  ;;  %v5525_v32 = vpack.c.bf16 %v1008_v25, %v1007_v24  ;;  %v1657_v24 = vld [vmem:[#allocation2 + $0xd3] sm:$0xff]  ;;  %v1658_v25 = vld [vmem:[#allocation2 + $0xdb] sm:$0xff] }
  0x56   : > { %v1681_v27 = vpack.c.bf16 %v1658_v25, %v1657_v24  ;;  %v1979_v25 = vld [vmem:[#allocation2 + $0xb4] sm:$0xff] }
  0x5b   : > { %4912 = vmatmul.mubr.msk.bf16.gmra.mxu0 %vm358_vm1, %v5485_v43 }
  0x5c   : > { %4878 = vmatmul.mubr.msk.bf16.gmra.mxu1 %vm358_vm1, %v444_v42  ;;  %4915 = vmatprep.mubr.msk.bf16.mxu0 %vm358_vm1, %v5487_v46  ;;  %v454_v42 = vpack.c.bf16 %v436_v37, %v435_v36  ;;  %v1341_v36 = vld [vmem:[#allocation2 + $0x122] sm:$0xff]  ;;  %v1342_v37 = vld [vmem:[#allocation2 + $0x12a] sm:$0xff] }
  0x5d   : > { %4881 = vmatprep.mubr.msk.bf16.mxu1 %vm358_vm1, %v445_v44  ;;  %v5535_v44 = vpack.c.bf16 %v1012_v39, %v1011_v38  ;;  %v1664_v38 = vld [vmem:[#allocation2 + $0x10b] sm:$0xff]  ;;  %v1665_v39 = vld [vmem:[#allocation2 + $0x113] sm:$0xff] }
  0x5e   : > { %v1685_v49 = vpack.c.bf16 %v1666_v40, %v1665_v39  ;;  %v1983_v40 = vld [vmem:[#allocation2 + $0xd4] sm:$0xff] }
  0x63   : > { %4916 = vmatmul.mubr.msk.bf16.gmra.mxu0 %vm358_vm1, %v5495_v56 }
  0x64   : > { %4882 = vmatmul.mubr.msk.bf16.gmra.mxu1 %vm358_vm1, %v446_v55  ;;  %4919 = vmatprep.mubr.msk.bf16.mxu0 %vm358_vm1, %v5497_v58  ;;  %v5553_v55 = vld [vmem:[%s7694_s2 + $0xe] sm:$0x3] }
  0x65   : > { %4885 = vmatprep.mubr.msk.bf16.mxu1 %vm358_vm1, %v447_v57  ;;  %v1636_v57 = vld [vmem:[#allocation2 + $0x2b] sm:$0xff]  ;;  %v2722_v60 = vsel %vm566_vm0, %v5553_v55, 0 }
  0x6b   : > { %4920 = vmatmul.mubr.msk.bf16.gmra.mxu0 %vm358_vm1, %v5505_v6 }
  0x6c   : > { %4886 = vmatmul.mubr.msk.bf16.gmra.mxu1 %vm358_vm1, %v448_v5  ;;  %4923 = vmatprep.mubr.msk.bf16.mxu0 %vm358_vm1, %v5507_v45  ;;  %v1672_v5 = vpack.c.bf16 %v1640_v1, %v1639_v0 }
  0x6d   : > { %4889 = vmatprep.mubr.msk.bf16.mxu1 %vm358_vm1, %v449_v8 }
  0x73   : > { %4924 = vmatmul.mubr.msk.bf16.gmra.mxu0 %vm358_vm1, %v5515_v20 }
  0x74   : > { %4890 = vmatmul.mubr.msk.bf16.gmra.mxu1 %vm358_vm1, %v450_v18  ;;  %4927 = vmatprep.mubr.msk.bf16.mxu0 %vm358_vm1, %v5517_v22  ;;  %v1653_v18 = vld [vmem:[#allocation2 + $0xb3] sm:$0xff] }
  0x75   : > { %4893 = vmatprep.mubr.msk.bf16.mxu1 %vm358_vm1, %v451_v21  ;;  %v1654_v21 = vld [vmem:[#allocation2 + $0xbb] sm:$0xff] }
  0x76   : > { %v1679_v3 = vpack.c.bf16 %v1654_v21, %v1653_v18 }
  0x7b   : > { %4928 = vmatmul.mubr.msk.bf16.gmra.mxu0 %vm358_vm1, %v5525_v32 }
  0x7c   : > { %4894 = vmatmul.mubr.msk.bf16.gmra.mxu1 %vm358_vm1, %v452_v30  ;;  %4931 = vmatprep.mubr.msk.bf16.mxu0 %vm358_vm1, %v5527_v35  ;;  %v1662_v30 = vld [vmem:[#allocation2 + $0xfb] sm:$0xff] }
  0x7d   : > { %4897 = vmatprep.mubr.msk.bf16.mxu1 %vm358_vm1, %v453_v34  ;;  %v1683_v34 = vpack.c.bf16 %v1662_v30, %v1661_v29 }
  0x83   : > { %4932 = vmatmul.mubr.msk.bf16.gmra.mxu0 %vm358_vm1, %v5535_v44 }
  0x84   : > { %4898 = vmatmul.mubr.msk.bf16.gmra.mxu1 %vm358_vm1, %v454_v42  ;;  %4935 = vmatprep.mubr.msk.bf16.mxu0 %vm358_vm1, %v5537_v47  ;;  %v1960_v42 = vld [vmem:[#allocation2 + $0x1c] sm:$0xff] }
  0x85   : > { %4941 = vmatprep.mubr.msk.bf16.mxu1 %vm358_vm1, %v5453_v16  ;;  %v1635_v16 = vld [vmem:[#allocation2 + $0x23] sm:$0xff]  ;;  %v1995_v50 = vpack.c.bf16 %v1960_v42, %v1959_v41 }
  0x86   : > { %v1670_v61 = vpack.c.bf16 %v1636_v57, %v1635_v16  ;;  %v1964_v16 = vld [vmem:[#allocation2 + $0x3c] sm:$0xff] }
  0x87   : > { %v1984_v41 = vld [vmem:[#allocation2 + $0xdc] sm:$0xff] }
  0x8b   : > { %4936 = vmatmul.mubr.msk.bf16.gmra.mxu0 %vm358_vm1, %v5546_v52 }
  0x8c   : > { %4942 = vmatmul.mubr.msk.bf16.vlgmr.msra.gmra.mxu1 %vm358_vm1, %v5457_v2  ;;  %4979 = vmatprep.mubr.msk.bf16.mxu0 %vm358_vm1, %v1669_v54  ;;  %v2396_v2 = vsel %vm566_vm0, %v5462_v19, 0  ;;  %v1641_v19 = vld [vmem:[#allocation2 + $0x53] sm:$0xff] }
  0x8d   : > { %5016 = vmatpush3.bf16.msra.mxu1 %v2070_v53  ;;  %4945 = vmatprep.mubr.msk.bf16.mxu1 %vm358_vm1, %v5473_v31  ;;  %v5570_v31 = vld [vmem:[%s7694_s2 + $0x10] sm:$0x3]  ;;  %v1673_v8 = vpack.c.bf16 %v1642_v4, %v1641_v19  ;;  %v1962_v53 = vld [vmem:[#allocation2 + $0x2c] sm:$0xff]  ;;  %v1963_v54 = vld [vmem:[#allocation2 + $0x34] sm:$0xff] }
  0x8e   : > { %5177 = vmatprep.subr.msk.bf16.mxu1 %vm566_vm0, %v5553_v55  ;;  %v1997_v59 = vpack.c.bf16 %v1964_v16, %v1963_v54  ;;  %v3048_v19 = vsel %vm566_vm0, %v5570_v31, 0  ;;  %v1969_v55 = vld [vmem:[#allocation2 + $0x64] sm:$0xff]  ;;  %v1970_v4 = vld [vmem:[#allocation2 + $0x6c] sm:$0xff] }
  0x8f   : > { %v1986_v54 = vld [vmem:[#allocation2 + $0xec] sm:$0xff] }
  0x93   : > { %4980 = vmatmul.mubr.msk.bf16.vlgmr.msra.gmra.mxu0 %vm358_vm1, %v1670_v61  ;;  %v1965_v61 = vld [vmem:[#allocation2 + $0x44] sm:$0xff] }
  0x94   : > { %4946 = vmatmul.mubr.msk.bf16.gmra.mxu1 %vm358_vm1, %v5477_v33  ;;  %5054 = vmatpush3.bf16.msra.mxu0 %v2396_v2  ;;  %v1643_v33 = vld [vmem:[#allocation2 + $0x63] sm:$0xff]  ;;  %v1967_v2 = vld [vmem:[#allocation2 + $0x54] sm:$0xff]  ;;  %v1998_v0 = vpack.c.bf16 %v1966_v62, %v1965_v61 }
  0x95   : > { %4949 = vmatprep.mubr.msk.bf16.mxu1 %vm358_vm1, %v5485_v43  ;;  %4983 = vmatprep.mubr.msk.bf16.mxu0 %vm358_vm1, %v1671_v63  ;;  %v1644_v43 = vld [vmem:[#allocation2 + $0x6b] sm:$0xff]  ;;  %v1968_v63 = vld [vmem:[#allocation2 + $0x5c] sm:$0xff] }
  0x96   : > { %5178 = vmatprep.subr.msk.bf16.mxu0 %vm566_vm0, %v5570_v31  ;;  %v1674_v11 = vpack.c.bf16 %v1644_v43, %v1643_v33  ;;  %v1999_v1 = vpack.c.bf16 %v1968_v63, %v1967_v2  ;;  %v2000_v33 = vpack.c.bf16 %v1970_v4, %v1969_v55  ;;  %v1973_v31 = vld [vmem:[#allocation2 + $0x84] sm:$0xff] }
  0x97   : > { %v1989_v4 = vld [vmem:[#allocation2 + $0x104] sm:$0xff] }
  0x9b   : > { %4984 = vmatmul.mubr.msk.bf16.gmra.mxu0 %vm358_vm1, %v1672_v5  ;;  %v1971_v5 = vld [vmem:[#allocation2 + $0x74] sm:$0xff] }
  0x9c   : > { %4950 = vmatmul.mubr.msk.bf16.gmra.mxu1 %vm358_vm1, %v5487_v46  ;;  %4987 = vmatprep.mubr.msk.bf16.mxu0 %vm358_vm1, %v1673_v8  ;;  %v1647_v46 = vld [vmem:[#allocation2 + $0x83] sm:$0xff] }
  0x9d   : > { %4953 = vmatprep.mubr.msk.bf16.mxu1 %vm358_vm1, %v5495_v56  ;;  %v1648_v56 = vld [vmem:[#allocation2 + $0x8b] sm:$0xff]  ;;  %v1972_v8 = vld [vmem:[#allocation2 + $0x7c] sm:$0xff] }
  0x9e   : > { %v1676_v15 = vpack.c.bf16 %v1648_v56, %v1647_v46  ;;  %v2001_v43 = vpack.c.bf16 %v1972_v8, %v1971_v5  ;;  %v1975_v56 = vld [vmem:[#allocation2 + $0x94] sm:$0xff]  ;;  %v1990_v5 = vld [vmem:[#allocation2 + $0x10c] sm:$0xff] }
  0xa3   : > { %4988 = vmatmul.mubr.msk.bf16.gmra.mxu0 %vm358_vm1, %v1674_v11  ;;  %v1974_v11 = vld [vmem:[#allocation2 + $0x8c] sm:$0xff] }
  0xa4   : > { %4954 = vmatmul.mubr.msk.bf16.gmra.mxu1 %vm358_vm1, %v5497_v58  ;;  %4991 = vmatprep.mubr.msk.bf16.mxu0 %vm358_vm1, %v1675_v12  ;;  %v1651_v58 = vld [vmem:[#allocation2 + $0xa3] sm:$0xff] }
  0xa5   : > { %4957 = vmatprep.mubr.msk.bf16.mxu1 %vm358_vm1, %v5505_v6  ;;  %v1652_v6 = vld [vmem:[#allocation2 + $0xab] sm:$0xff] }
  0xa6   : > { %v1678_v23 = vpack.c.bf16 %v1652_v6, %v1651_v58  ;;  %v2003_v58 = vpack.c.bf16 %v1976_v13, %v1975_v56 }
  0xab   : > { %4992 = vmatmul.mubr.msk.bf16.gmra.mxu0 %vm358_vm1, %v1676_v15 }
  0xac   : > { %4958 = vmatmul.mubr.msk.bf16.gmra.mxu1 %vm358_vm1, %v5507_v45  ;;  %4995 = vmatprep.mubr.msk.bf16.mxu0 %vm358_vm1, %v1677_v17  ;;  %v1655_v45 = vld [vmem:[#allocation2 + $0xc3] sm:$0xff]  ;;  %v2002_v17 = vpack.c.bf16 %v1974_v11, %v1973_v31 }
  0xad   : > { %4961 = vmatprep.mubr.msk.bf16.mxu1 %vm358_vm1, %v5515_v20  ;;  %v1656_v20 = vld [vmem:[#allocation2 + $0xcb] sm:$0xff]  ;;  %v1992_v31 = vld [vmem:[#allocation2 + $0x11c] sm:$0xff] }
  0xae   : > { %v1680_v26 = vpack.c.bf16 %v1656_v20, %v1655_v45  ;;  %v1978_v45 = vld [vmem:[#allocation2 + $0xac] sm:$0xff] }
  0xb3   : > { %4996 = vmatmul.mubr.msk.bf16.gmra.mxu0 %vm358_vm1, %v1678_v23 }
  0xb4   : > { %4962 = vmatmul.mubr.msk.bf16.gmra.mxu1 %vm358_vm1, %v5517_v22  ;;  %4999 = vmatprep.mubr.msk.bf16.mxu0 %vm358_vm1, %v1679_v3  ;;  %v1659_v22 = vld [vmem:[#allocation2 + $0xe3] sm:$0xff] }
  0xb5   : > { %4965 = vmatprep.mubr.msk.bf16.mxu1 %vm358_vm1, %v5525_v32  ;;  %v1682_v32 = vpack.c.bf16 %v1660_v28, %v1659_v22  ;;  %v1977_v3 = vld [vmem:[#allocation2 + $0xa4] sm:$0xff] }
  0xb6   : > { %v2004_v28 = vpack.c.bf16 %v1978_v45, %v1977_v3 }
  0xbb   : > { %5000 = vmatmul.mubr.msk.bf16.gmra.mxu0 %vm358_vm1, %v1680_v26  ;;  %v1980_v26 = vld [vmem:[#allocation2 + $0xbc] sm:$0xff] }
  0xbc   : > { %4966 = vmatmul.mubr.msk.bf16.gmra.mxu1 %vm358_vm1, %v5527_v35  ;;  %5003 = vmatprep.mubr.msk.bf16.mxu0 %vm358_vm1, %v1681_v27  ;;  %v1663_v35 = vld [vmem:[#allocation2 + $0x103] sm:$0xff]  ;;  %v2005_v29 = vpack.c.bf16 %v1980_v26, %v1979_v25 }
  0xbd   : > { %4969 = vmatprep.mubr.msk.bf16.mxu1 %vm358_vm1, %v5535_v44  ;;  %v1360_v44 = vpack.c.bf16 %v1342_v37, %v1341_v36  ;;  %v1684_v48 = vpack.c.bf16 %v1664_v38, %v1663_v35  ;;  %v1981_v35 = vld [vmem:[#allocation2 + $0xc4] sm:$0xff]  ;;  %v1982_v37 = vld [vmem:[#allocation2 + $0xcc] sm:$0xff] }
  0xc3   : > { %5004 = vmatmul.mubr.msk.bf16.gmra.mxu0 %vm358_vm1, %v1682_v32 }
  0xc4   : > { %4970 = vmatmul.mubr.msk.bf16.gmra.mxu1 %vm358_vm1, %v5537_v47  ;;  %5007 = vmatprep.mubr.msk.bf16.mxu0 %vm358_vm1, %v1683_v34  ;;  %v1667_v47 = vld [vmem:[#allocation2 + $0x123] sm:$0xff] }
  0xc5   : > { %4973 = vmatprep.mubr.msk.bf16.mxu1 %vm358_vm1, %v5546_v52  ;;  %v1961_v52 = vld [vmem:[#allocation2 + $0x24] sm:$0xff]  ;;  %v1686_v57 = vpack.c.bf16 %v1668_v51, %v1667_v47 }
  0xc6   : > { %v1996_v7 = vpack.c.bf16 %v1962_v53, %v1961_v52  ;;  %v1985_v53 = vld [vmem:[#allocation2 + $0xe4] sm:$0xff] }
  0xc7   : > { %v2008_v62 = vpack.c.bf16 %v1986_v54, %v1985_v53 }
  0xcb   : > { %5008 = vmatmul.mubr.msk.bf16.gmra.mxu0 %vm358_vm1, %v1684_v48  ;;  %v2006_v48 = vpack.c.bf16 %v1982_v37, %v1981_v35  ;;  %v1994_v35 = vld [vmem:[#allocation2 + $0x12c] sm:$0xff] }
  0xcc   : > { %4974 = vmatmul.mubr.msk.bf16.gmra.mxu1 %vm358_vm1, %v1360_v44  ;;  %5011 = vmatprep.mubr.msk.bf16.mxu0 %vm358_vm1, %v1685_v49  ;;  %v2007_v49 = vpack.c.bf16 %v1984_v41, %v1983_v40  ;;  %v2611_v41 = vld [vmem:[#allocation2 + $0x25] sm:$0xff] }
  0xcd   : > { %5017 = vmatprep.mubr.msk.bf16.mxu1 %vm358_vm1, %v1995_v50 }
  0xd3   : > { %5012 = vmatmul.mubr.msk.bf16.gmra.mxu0 %vm358_vm1, %v1686_v57 }
  0xd4   : > { %5018 = vmatmul.mubr.msk.bf16.vlgmr.msra.gmra.mxu1 %vm358_vm1, %v1996_v7  ;;  %5055 = vmatprep.mubr.msk.bf16.mxu0 %vm358_vm1, %v1996_v7  ;;  %v1987_v7 = vld [vmem:[#allocation2 + $0xf4] sm:$0xff] }
  0xd5   : > { %5092 = vmatpush3.bf16.msra.mxu1 %v2722_v60  ;;  %5021 = vmatprep.mubr.msk.bf16.mxu1 %vm358_vm1, %v1997_v59 }
  0xdb   : > { %5056 = vmatmul.mubr.msk.bf16.vlgmr.msra.gmra.mxu0 %vm358_vm1, %v1997_v59  ;;  %v1988_v59 = vld [vmem:[#allocation2 + $0xfc] sm:$0xff] }
  0xdc   : > { %5022 = vmatmul.mubr.msk.bf16.gmra.mxu1 %vm358_vm1, %v1998_v0  ;;  %5130 = vmatpush3.bf16.msra.mxu0 %v3048_v19  ;;  %v2009_v2 = vpack.c.bf16 %v1988_v59, %v1987_v7 }
  0xdd   : > { %5025 = vmatprep.mubr.msk.bf16.mxu1 %vm358_vm1, %v1999_v1  ;;  %5059 = vmatprep.mubr.msk.bf16.mxu0 %vm358_vm1, %v1998_v0 }
  0xe3   : > { %v5632_v9 = vpop.f32.mrf.mxu0  ;;  %5060 = vmatmul.mubr.msk.bf16.gmra.mxu0 %vm358_vm1, %v1999_v1 }
  0xe4   : > { %v5634_v10 = vpop.f32.mrf.mxu1  ;;  %5026 = vmatmul.mubr.msk.bf16.gmra.mxu1 %vm358_vm1, %v2000_v33  ;;  %5063 = vmatprep.mubr.msk.bf16.mxu0 %vm358_vm1, %v2000_v33 }
  0xe5   : > { %5029 = vmatprep.mubr.msk.bf16.mxu1 %vm358_vm1, %v2001_v43  ;;  %v5640_v12 = vpop.f32.mrf.mxu0 }
  0xe6   : > { %v5642_v46 = vpop.f32.mrf.mxu1 }
  0xe7   : > { %v5644_v14 = vpop.f32.mrf.mxu0 }
  0xe8   : > { %v5646_v15 = vpop.f32.mrf.mxu1 }
  0xe9   : > { %v5648_v6 = vpop.f32.mrf.mxu0 }
  0xea   : > { %v5650_v18 = vpop.f32.mrf.mxu1 }
  0xeb   : > { %v5652_v21 = vpop.f32.mrf.mxu0  ;;  %5064 = vmatmul.mubr.msk.bf16.gmra.mxu0 %vm358_vm1, %v2001_v43  ;;  %v1991_v43 = vld [vmem:[#allocation2 + $0x114] sm:$0xff] }
  0xec   : > { %v5654_v23 = vpop.f32.mrf.mxu1  ;;  %5030 = vmatmul.mubr.msk.bf16.gmra.mxu1 %vm358_vm1, %v2002_v17  ;;  %5067 = vmatprep.mubr.msk.bf16.mxu0 %vm358_vm1, %v2002_v17  ;;  %v2010_v17 = vpack.c.bf16 %v1990_v5, %v1989_v4 }
  0xed   : > { %5033 = vmatprep.mubr.msk.bf16.mxu1 %vm358_vm1, %v2003_v58  ;;  %v5660_v20 = vpop.f32.mrf.mxu0 }
  0xee   : > { %v5662_v24 = vpop.f32.mrf.mxu1 }
  0xef   : > { %v5664_v27 = vpop.f32.mrf.mxu0 }
  0xf0   : > { %v5666_v22 = vpop.f32.mrf.mxu1 }
  0xf1   : > { %v5668_v30 = vpop.f32.mrf.mxu0 }
  0xf2   : > { %v5670_v32 = vpop.f32.mrf.mxu1 }
  0xf3   : > { %v5672_v34 = vpop.f32.mrf.mxu0  ;;  %5068 = vmatmul.mubr.msk.bf16.gmra.mxu0 %vm358_vm1, %v2003_v58 }
  0xf4   : > { %v5674_v36 = vpop.f32.mrf.mxu1  ;;  %5034 = vmatmul.mubr.msk.bf16.gmra.mxu1 %vm358_vm1, %v2004_v28  ;;  %5071 = vmatprep.mubr.msk.bf16.mxu0 %vm358_vm1, %v2004_v28 }
  0xf5   : > { %5037 = vmatprep.mubr.msk.bf16.mxu1 %vm358_vm1, %v2005_v29  ;;  %v5680_v38 = vpop.f32.mrf.mxu0 }
  0xf6   : > { %v5682_v39 = vpop.f32.mrf.mxu1 }
  0xf7   : > { %v5684_v42 = vpop.f32.mrf.mxu0 }
  0xf8   : > { %v5686_v44 = vpop.f32.mrf.mxu1 }
  0xf9   : > { %v5688_v50 = vpop.f32.mrf.mxu0 }
  0xfa   : > { %v5690_v47 = vpop.f32.mrf.mxu1 }
  0xfb   : > { %v5692_v51 = vpop.f32.mrf.mxu0  ;;  %5072 = vmatmul.mubr.msk.bf16.gmra.mxu0 %vm358_vm1, %v2005_v29 }
  0xfc   : > { %v5694_v52 = vpop.f32.mrf.mxu1  ;;  %5038 = vmatmul.mubr.msk.bf16.gmra.mxu1 %vm358_vm1, %v2006_v48  ;;  %5075 = vmatprep.mubr.msk.bf16.mxu0 %vm358_vm1, %v2006_v48 }
  0xfd   : > { %5041 = vmatprep.mubr.msk.bf16.mxu1 %vm358_vm1, %v2007_v49  ;;  %v5700_v16 = vpop.f32.mrf.mxu0 }
  0xfe   : > { %v5702_v57 = vpop.f32.mrf.mxu1 }
  0xff   : > { %v5704_v60 = vpop.f32.mrf.mxu0 }
 0x100   : > { %v5706_v61 = vpop.f32.mrf.mxu1 }
 0x101   : > { %v5708_v63 = vpop.f32.mrf.mxu0 }
 0x102   : > { %v5710_v0 = vpop.f32.mrf.mxu1 }
 0x103   : > { %v5712_v1 = vpop.f32.mrf.mxu0  ;;  %5076 = vmatmul.mubr.msk.bf16.gmra.mxu0 %vm358_vm1, %v2007_v49 }
 0x104   : > { %v4867_v19 = vpop.f32.mrf.mxu1  ;;  %5042 = vmatmul.mubr.msk.bf16.gmra.mxu1 %vm358_vm1, %v2008_v62  ;;  %5079 = vmatprep.mubr.msk.bf16.mxu0 %vm358_vm1, %v2008_v62 }
 0x105   : > { %v847_v55 = vadd.f32 %v4867_v19, %v5632_v9  ;;  %5045 = vmatprep.mubr.msk.bf16.mxu1 %vm358_vm1, %v2009_v2  ;;  %v5719_v8 = vpop.f32.mrf.mxu0  ;;  %v2011_v9 = vpack.c.bf16 %v1992_v31, %v1991_v43  ;;  %v2320_v43 = vld [vmem:[#allocation2 + $0x13c] sm:$0xff] }
 0x106   : > { %v838_v33 = vpop.f32.mrf.mxu1 }
 0x107   : > { %v839_v11 = vadd.f32 %v838_v33, %v5640_v12  ;;  %v5722_v56 = vpop.f32.mrf.mxu0 }
 0x108   : > { %v4868_v13 = vpop.f32.mrf.mxu1 }
 0x109   : > { %v850_v58 = vadd.f32 %v4868_v13, %v5644_v14  ;;  %v5725_v3 = vpop.f32.mrf.mxu0  ;;  %v1993_v14 = vld [vmem:[#allocation2 + $0x124] sm:$0xff] }
 0x10a   : > { %v841_v45 = vpop.f32.mrf.mxu1  ;;  %v2012_v7 = vpack.c.bf16 %v1994_v35, %v1993_v14  ;;  %v2615_v13 = vld [vmem:[#allocation2 + $0x45] sm:$0xff] }
 0x10b   : > { %v842_v25 = vadd.f32 %v841_v45, %v5648_v6  ;;  %v4905_v28 = vpop.f32.mrf.mxu0  ;;  %5080 = vmatmul.mubr.msk.bf16.gmra.mxu0 %vm358_vm1, %v2009_v2  ;;  %v2612_v6 = vld [vmem:[#allocation2 + $0x2d] sm:$0xff] }
 0x10c   : > { %v4871_v26 = vpop.f32.mrf.mxu1  ;;  %5046 = vmatmul.mubr.msk.bf16.gmra.mxu1 %vm358_vm1, %v2010_v17  ;;  %v5731_v29 = vadd.f32 %v4905_v28, %v847_v55  ;;  %5083 = vmatprep.mubr.msk.bf16.mxu0 %vm358_vm1, %v2010_v17  ;;  %v2647_v62 = vpack.c.bf16 %v2612_v6, %v2611_v41  ;;  %v2616_v45 = vld [vmem:[#allocation2 + $0x4d] sm:$0xff] }
 0x10d   : > { %v863_v12 = vadd.f32 %v4871_v26, %v5652_v21  ;;  %5049 = vmatprep.mubr.msk.bf16.mxu1 %vm358_vm1, %v2011_v9  ;;  %v1128_v40 = vpop.f32.mrf.mxu0  ;;  %v2938_v26 = vld [vmem:[#allocation2 + $0x2e] sm:$0xff]  ;;  %v2649_v41 = vpack.c.bf16 %v2616_v45, %v2615_v13 }
 0x10e   : > { %v854_v37 = vpop.f32.mrf.mxu1  ;;  %v5736_v49 = vadd.f32 %v1128_v40, %v839_v11  ;;  %v2613_v11 = vld [vmem:[#allocation2 + $0x35] sm:$0xff] }
 0x10f   : > { %v855_v48 = vadd.f32 %v854_v37, %v5660_v20  ;;  %v4906_v54 = vpop.f32.mrf.mxu0  ;;  %v2319_v20 = vld [vmem:[#allocation2 + $0x134] sm:$0xff] }
 0x110   : > { %v4872_v53 = vpop.f32.mrf.mxu1  ;;  %v5739_v59 = vadd.f32 %v4906_v54, %v850_v58 }
 0x111   : > { %v866_v21 = vadd.f32 %v4872_v53, %v5664_v27  ;;  %v1131_v19 = vpop.f32.mrf.mxu0 }
 0x112   : > { %v857_v2 = vpop.f32.mrf.mxu1  ;;  %v5742_v4 = vadd.f32 %v1131_v19, %v842_v25  ;;  %v2937_v25 = vld [vmem:[#allocation2 + $0x26] sm:$0xff]  ;;  %v2618_v19 = vld [vmem:[#allocation2 + $0x5d] sm:$0xff] }
 0x113   : > { %v858_v55 = vadd.f32 %v857_v2, %v5668_v30  ;;  %v4909_v33 = vpop.f32.mrf.mxu0  ;;  %5084 = vmatmul.mubr.msk.bf16.gmra.mxu0 %vm358_vm1, %v2011_v9  ;;  %v2614_v30 = vld [vmem:[#allocation2 + $0x3d] sm:$0xff]  ;;  %v2973_v6 = vpack.c.bf16 %v2938_v26, %v2937_v25 }
 0x114   : > { %v4875_v5 = vpop.f32.mrf.mxu1  ;;  %5050 = vmatmul.mubr.msk.bf16.gmra.mxu1 %vm358_vm1, %v2012_v7  ;;  %v5747_v27 = vadd.f32 %v4909_v33, %v863_v12  ;;  %5087 = vmatprep.mubr.msk.bf16.mxu0 %vm358_vm1, %v2012_v7  ;;  %v2338_v12 = vpack.c.bf16 %v2320_v43, %v2319_v20  ;;  %v2648_v35 = vpack.c.bf16 %v2614_v30, %v2613_v11  ;;  %v2620_v43 = vld [vmem:[#allocation2 + $0x6d] sm:$0xff] }
 0x115   : > { %v879_v31 = vadd.f32 %v4875_v5, %v5672_v34  ;;  %5093 = vmatprep.mubr.msk.bf16.mxu1 %vm358_vm1, %v2647_v62  ;;  %v1144_v58 = vpop.f32.mrf.mxu0  ;;  %v2939_v5 = vld [vmem:[#allocation2 + $0x36] sm:$0xff]  ;;  %v2941_v11 = vld [vmem:[#allocation2 + $0x46] sm:$0xff]  ;;  %v2942_v30 = vld [vmem:[#allocation2 + $0x4e] sm:$0xff] }
 0x116   : > { %v870_v17 = vpop.f32.mrf.mxu1  ;;  %v5752_v28 = vadd.f32 %v1144_v58, %v855_v48  ;;  %v2617_v48 = vld [vmem:[#allocation2 + $0x55] sm:$0xff] }
 0x117   : > { %v871_v9 = vadd.f32 %v870_v17, %v5680_v38  ;;  %v4910_v34 = vpop.f32.mrf.mxu0 }
 0x118   : > { %v4876_v14 = vpop.f32.mrf.mxu1  ;;  %v5755_v40 = vadd.f32 %v4910_v34, %v866_v21  ;;  %v2975_v34 = vpack.c.bf16 %v2942_v30, %v2941_v11 }
 0x119   : > { %v882_v37 = vadd.f32 %v4876_v14, %v5684_v42  ;;  %v1147_v54 = vpop.f32.mrf.mxu0 }
 0x11a   : > { %v873_v53 = vpop.f32.mrf.mxu1  ;;  %v5758_v62 = vadd.f32 %v1147_v54, %v858_v55  ;;  %v2619_v55 = vld [vmem:[#allocation2 + $0x65] sm:$0xff]  ;;  %v2622_v54 = vld [vmem:[#allocation2 + $0x7d] sm:$0xff] }
 0x11b   : > { %v874_v7 = vadd.f32 %v873_v53, %v5688_v50  ;;  %v4913_v38 = vpop.f32.mrf.mxu0  ;;  %5088 = vmatmul.mubr.msk.bf16.gmra.mxu0 %vm358_vm1, %v2338_v12  ;;  %v2940_v50 = vld [vmem:[#allocation2 + $0x3e] sm:$0xff]  ;;  %v2651_v14 = vpack.c.bf16 %v2620_v43, %v2619_v55 }
 0x11c   : > { %v4879_v2 = vpop.f32.mrf.mxu1  ;;  %5094 = vmatmul.mubr.msk.bf16.vlgmr.msra.gmra.mxu1 %vm358_vm1, %v2648_v35  ;;  %v5763_v21 = vadd.f32 %v4913_v38, %v879_v31  ;;  %5131 = vmatprep.mubr.msk.bf16.mxu0 %vm358_vm1, %v2973_v6  ;;  %v2650_v31 = vpack.c.bf16 %v2618_v19, %v2617_v48  ;;  %v2974_v45 = vpack.c.bf16 %v2940_v50, %v2939_v5  ;;  %v2624_v19 = vld [vmem:[#allocation2 + $0x8d] sm:$0xff] }
 0x11d   : > { %v895_v42 = vadd.f32 %v4879_v2, %v5692_v51  ;;  %5097 = vmatprep.mubr.msk.bf16.mxu1 %vm358_vm1, %v2649_v41  ;;  %v1160_v20 = vpop.f32.mrf.mxu0  ;;  %v2943_v2 = vld [vmem:[#allocation2 + $0x56] sm:$0xff]  ;;  %v2945_v5 = vld [vmem:[#allocation2 + $0x66] sm:$0xff]  ;;  %v2946_v50 = vld [vmem:[#allocation2 + $0x6e] sm:$0xff] }
 0x11e   : > { %v886_v33 = vpop.f32.mrf.mxu1  ;;  %v5768_v17 = vadd.f32 %v1160_v20, %v871_v9  ;;  %v2621_v9 = vld [vmem:[#allocation2 + $0x75] sm:$0xff] }
 0x11f   : > { %v887_v13 = vadd.f32 %v886_v33, %v5700_v16  ;;  %v4914_v51 = vpop.f32.mrf.mxu0 }
 0x120   : > { %v4880_v58 = vpop.f32.mrf.mxu1  ;;  %v5771_v26 = vadd.f32 %v4914_v51, %v882_v37  ;;  %v2977_v51 = vpack.c.bf16 %v2946_v50, %v2945_v5 }
 0x121   : > { %v898_v25 = vadd.f32 %v4880_v58, %v5704_v60  ;;  %v1163_v35 = vpop.f32.mrf.mxu0 }
 0x122   : > { %v889_v12 = vpop.f32.mrf.mxu1  ;;  %v5774_v6 = vadd.f32 %v1163_v35, %v874_v7  ;;  %v2623_v7 = vld [vmem:[#allocation2 + $0x85] sm:$0xff]  ;;  %v2626_v35 = vld [vmem:[#allocation2 + $0x9d] sm:$0xff] }
 0x123   : > { %v890_v41 = vadd.f32 %v889_v12, %v5708_v63  ;;  %v4917_v16 = vpop.f32.mrf.mxu0  ;;  %5132 = vmatmul.mubr.msk.bf16.vlgmr.msra.gmra.mxu0 %vm358_vm1, %v2974_v45  ;;  %v2944_v63 = vld [vmem:[#allocation2 + $0x5e] sm:$0xff]  ;;  %v2653_v58 = vpack.c.bf16 %v2624_v19, %v2623_v7 }
 0x124   : > { %v4883_v53 = vpop.f32.mrf.mxu1  ;;  %5098 = vmatmul.mubr.msk.bf16.gmra.mxu1 %vm358_vm1, %v2650_v31  ;;  %v5779_v37 = vadd.f32 %v4917_v16, %v895_v42  ;;  %5135 = vmatprep.mubr.msk.bf16.mxu0 %vm358_vm1, %v2975_v34  ;;  %v2652_v42 = vpack.c.bf16 %v2622_v54, %v2621_v9  ;;  %v2976_v43 = vpack.c.bf16 %v2944_v63, %v2943_v2  ;;  %v2627_v16 = vld [vmem:[#allocation2 + $0xa5] sm:$0xff]  ;;  %v2628_v9 = vld [vmem:[#allocation2 + $0xad] sm:$0xff] }
 0x125   : > { %v911_v60 = vadd.f32 %v4883_v53, %v5712_v1  ;;  %5101 = vmatprep.mubr.msk.bf16.mxu1 %vm358_vm1, %v2651_v14  ;;  %v1176_v48 = vpop.f32.mrf.mxu0  ;;  %v2949_v54 = vld [vmem:[#allocation2 + $0x86] sm:$0xff]  ;;  %v2950_v2 = vld [vmem:[#allocation2 + $0x8e] sm:$0xff]  ;;  %v2655_v5 = vpack.c.bf16 %v2628_v9, %v2627_v16 }
 0x126   : > { %v902_v38 = vpop.f32.mrf.mxu1  ;;  %v5784_v33 = vadd.f32 %v1176_v48, %v887_v13  ;;  %v2625_v13 = vld [vmem:[#allocation2 + $0x95] sm:$0xff]  ;;  %v2979_v50 = vpack.c.bf16 %v2950_v2, %v2949_v54 }
 0x127   : > { %v903_v55 = vadd.f32 %v902_v38, %v5719_v8  ;;  %v4918_v1 = vpop.f32.mrf.mxu0  ;;  %v2654_v48 = vpack.c.bf16 %v2626_v35, %v2625_v13  ;;  %v2632_v35 = vld [vmem:[#allocation2 + $0xcd] sm:$0xff] }
 0x128   : > { %v4884_v20 = vpop.f32.mrf.mxu1  ;;  %v5787_v30 = vadd.f32 %v4918_v1, %v898_v25  ;;  %v2948_v25 = vld [vmem:[#allocation2 + $0x7e] sm:$0xff] }
 0x129   : > { %v914_v11 = vadd.f32 %v4884_v20, %v5722_v56  ;;  %v1179_v45 = vpop.f32.mrf.mxu0  ;;  %v2947_v56 = vld [vmem:[#allocation2 + $0x76] sm:$0xff] }
 0x12a   : > { %v905_v31 = vpop.f32.mrf.mxu1  ;;  %v5790_v34 = vadd.f32 %v1179_v45, %v890_v41  ;;  %v2978_v19 = vpack.c.bf16 %v2948_v25, %v2947_v56  ;;  %v2953_v56 = vld [vmem:[#allocation2 + $0xa6] sm:$0xff]  ;;  %v2954_v25 = vld [vmem:[#allocation2 + $0xae] sm:$0xff] }
 0x12b   : > { %v906_v14 = vadd.f32 %v905_v31, %v5725_v3  ;;  %v4921_v8 = vpop.f32.mrf.mxu0  ;;  %5136 = vmatmul.mubr.msk.bf16.gmra.mxu0 %vm358_vm1, %v2976_v43  ;;  %v2630_v31 = vld [vmem:[#allocation2 + $0xbd] sm:$0xff] }
 0x12c   : > { %v4887_v12 = vpop.f32.mrf.mxu1  ;;  %5102 = vmatmul.mubr.msk.bf16.gmra.mxu1 %vm358_vm1, %v2652_v42  ;;  %v5794_v53 = vadd.f32 %v4921_v8, %v911_v60  ;;  %5139 = vmatprep.mubr.msk.bf16.mxu0 %vm358_vm1, %v2977_v51  ;;  %v2951_v8 = vld [vmem:[#allocation2 + $0x96] sm:$0xff] }
 0x12d   : > { %5105 = vmatprep.mubr.msk.bf16.mxu1 %vm358_vm1, %v2653_v58  ;;  %v1192_v41 = vpop.f32.mrf.mxu0  ;;  %v927_v42 = vadd.f32 %v4887_v12, %v5634_v10  ;;  %v2952_v10 = vld [vmem:[#allocation2 + $0x9e] sm:$0xff] }
 0x12e   : > { %v918_v3 = vpop.f32.mrf.mxu1  ;;  %v5798_v63 = vadd.f32 %v1192_v41, %v903_v55  ;;  %v2629_v55 = vld [vmem:[#allocation2 + $0xb5] sm:$0xff]  ;;  %v2980_v54 = vpack.c.bf16 %v2952_v10, %v2951_v8  ;;  %v2636_v10 = vld [vmem:[#allocation2 + $0xed] sm:$0xff] }
 0x12f   : > { %v4922_v38 = vpop.f32.mrf.mxu0  ;;  %v919_v45 = vadd.f32 %v918_v3, %v5642_v46  ;;  %v2656_v3 = vpack.c.bf16 %v2630_v31, %v2629_v55  ;;  %v2634_v55 = vld [vmem:[#allocation2 + $0xdd] sm:$0xff] }
 0x130   : > { %v4888_v7 = vpop.f32.mrf.mxu1  ;;  %v5800_v60 = vadd.f32 %v4922_v38, %v914_v11  ;;  %v2955_v31 = vld [vmem:[#allocation2 + $0xb6] sm:$0xff] }
 0x131   : > { %v1195_v1 = vpop.f32.mrf.mxu0  ;;  %v930_v16 = vadd.f32 %v4888_v7, %v5646_v15  ;;  %v2633_v7 = vld [vmem:[#allocation2 + $0xd5] sm:$0xff] }
 0x132   : > { %v921_v20 = vpop.f32.mrf.mxu1  ;;  %v5803_v43 = vadd.f32 %v1195_v1, %v906_v14  ;;  %v2631_v14 = vld [vmem:[#allocation2 + $0xc5] sm:$0xff] }
 0x133   : > { %v4925_v51 = vpop.f32.mrf.mxu0  ;;  %5140 = vmatmul.mubr.msk.bf16.gmra.mxu0 %vm358_vm1, %v2978_v19  ;;  %v922_v2 = vadd.f32 %v921_v20, %v5650_v18  ;;  %v2981_v19 = vpack.c.bf16 %v2954_v25, %v2953_v56 }
 0x134   : > { %v4891_v58 = vpop.f32.mrf.mxu1  ;;  %5106 = vmatmul.mubr.msk.bf16.gmra.mxu1 %vm358_vm1, %v2654_v48  ;;  %v5808_v11 = vadd.f32 %v4925_v51, %v927_v42  ;;  %5143 = vmatprep.mubr.msk.bf16.mxu0 %vm358_vm1, %v2979_v50  ;;  %v2657_v48 = vpack.c.bf16 %v2632_v35, %v2631_v14  ;;  %v2957_v14 = vld [vmem:[#allocation2 + $0xc6] sm:$0xff] }
 0x135   : > { %5109 = vmatprep.mubr.msk.bf16.mxu1 %vm358_vm1, %v2655_v5  ;;  %v1208_v13 = vpop.f32.mrf.mxu0  ;;  %v943_v1 = vadd.f32 %v4891_v58, %v5654_v23  ;;  %v2956_v23 = vld [vmem:[#allocation2 + $0xbe] sm:$0xff] }
 0x136   : > { %v934_v12 = vpop.f32.mrf.mxu1  ;;  %v5813_v41 = vadd.f32 %v1208_v13, %v919_v45  ;;  %v2635_v58 = vld [vmem:[#allocation2 + $0xe5] sm:$0xff]  ;;  %v2958_v13 = vld [vmem:[#allocation2 + $0xce] sm:$0xff] }
 0x137   : > { %v4926_v46 = vpop.f32.mrf.mxu0  ;;  %v935_v18 = vadd.f32 %v934_v12, %v5662_v24  ;;  %v2658_v12 = vpack.c.bf16 %v2634_v55, %v2633_v7  ;;  %v2638_v7 = vld [vmem:[#allocation2 + $0xfd] sm:$0xff] }
 0x138   : > { %v4892_v9 = vpop.f32.mrf.mxu1  ;;  %v5816_v38 = vadd.f32 %v4926_v46, %v930_v16  ;;  %v2982_v16 = vpack.c.bf16 %v2956_v23, %v2955_v31  ;;  %v2959_v55 = vld [vmem:[#allocation2 + $0xd6] sm:$0xff]  ;;  %v2640_v23 = vld [vmem:[#allocation2 + $0x10d] sm:$0xff] }
 0x139   : > { %v1211_v50 = vpop.f32.mrf.mxu0  ;;  %v946_v35 = vadd.f32 %v4892_v9, %v5666_v22  ;;  %v2637_v9 = vld [vmem:[#allocation2 + $0xf5] sm:$0xff] }
 0x13a   : > { %v937_v5 = vpop.f32.mrf.mxu1  ;;  %v5819_v42 = vadd.f32 %v1211_v50, %v922_v2  ;;  %v2983_v2 = vpack.c.bf16 %v2958_v13, %v2957_v14 }
 0x13b   : > { %v4929_v15 = vpop.f32.mrf.mxu0  ;;  %5144 = vmatmul.mubr.msk.bf16.gmra.mxu0 %vm358_vm1, %v2980_v54  ;;  %v938_v46 = vadd.f32 %v937_v5, %v5670_v32  ;;  %v2659_v54 = vpack.c.bf16 %v2636_v10, %v2635_v58  ;;  %v2961_v58 = vld [vmem:[#allocation2 + $0xe6] sm:$0xff] }
 0x13c   : > { %v4895_v51 = vpop.f32.mrf.mxu1  ;;  %5110 = vmatmul.mubr.msk.bf16.gmra.mxu1 %vm358_vm1, %v2656_v3  ;;  %v5824_v20 = vadd.f32 %v4929_v15, %v943_v1  ;;  %5147 = vmatprep.mubr.msk.bf16.mxu0 %vm358_vm1, %v2981_v19 }
 0x13d   : > { %5113 = vmatprep.mubr.msk.bf16.mxu1 %vm358_vm1, %v2657_v48  ;;  %v1224_v8 = vpop.f32.mrf.mxu0  ;;  %v959_v50 = vadd.f32 %v4895_v51, %v5674_v36  ;;  %v2960_v36 = vld [vmem:[#allocation2 + $0xde] sm:$0xff] }
 0x13e   : > { %v950_v45 = vpop.f32.mrf.mxu1  ;;  %v5829_v56 = vadd.f32 %v1224_v8, %v935_v18  ;;  %v2639_v51 = vld [vmem:[#allocation2 + $0x105] sm:$0xff]  ;;  %v2962_v8 = vld [vmem:[#allocation2 + $0xee] sm:$0xff] }
 0x13f   : > { %v4930_v24 = vpop.f32.mrf.mxu0  ;;  %v951_v32 = vadd.f32 %v950_v45, %v5682_v39  ;;  %v2660_v45 = vpack.c.bf16 %v2638_v7, %v2637_v9  ;;  %v2642_v9 = vld [vmem:[#allocation2 + $0x11d] sm:$0xff] }
 0x140   : > { %v4896_v25 = vpop.f32.mrf.mxu1  ;;  %v5832_v3 = vadd.f32 %v4930_v24, %v946_v35  ;;  %v2984_v35 = vpack.c.bf16 %v2960_v36, %v2959_v55  ;;  %v2963_v7 = vld [vmem:[#allocation2 + $0xf6] sm:$0xff]  ;;  %v2644_v55 = vld [vmem:[#allocation2 + $0x12d] sm:$0xff] }
 0x141   : > { %v1227_v19 = vpop.f32.mrf.mxu0  ;;  %v962_v10 = vadd.f32 %v4896_v25, %v5686_v44  ;;  %v2641_v25 = vld [vmem:[#allocation2 + $0x115] sm:$0xff] }
 0x142   : > { %v953_v48 = vpop.f32.mrf.mxu1  ;;  %v5835_v1 = vadd.f32 %v1227_v19, %v938_v46  ;;  %v2985_v46 = vpack.c.bf16 %v2962_v8, %v2961_v58 }
 0x143   : > { %v4933_v22 = vpop.f32.mrf.mxu0  ;;  %5148 = vmatmul.mubr.msk.bf16.gmra.mxu0 %vm358_vm1, %v2982_v16  ;;  %v954_v24 = vadd.f32 %v953_v48, %v5690_v47  ;;  %v2661_v16 = vpack.c.bf16 %v2640_v23, %v2639_v51  ;;  %v2966_v23 = vld [vmem:[#allocation2 + $0x10e] sm:$0xff] }
 0x144   : > { %v4899_v15 = vpop.f32.mrf.mxu1  ;;  %5114 = vmatmul.mubr.msk.bf16.gmra.mxu1 %vm358_vm1, %v2658_v12  ;;  %v5840_v5 = vadd.f32 %v4933_v22, %v959_v50  ;;  %5151 = vmatprep.mubr.msk.bf16.mxu0 %vm358_vm1, %v2983_v2 }
 0x145   : > { %5117 = vmatprep.mubr.msk.bf16.mxu1 %vm358_vm1, %v2659_v54  ;;  %v1240_v31 = vpop.f32.mrf.mxu0  ;;  %v975_v19 = vadd.f32 %v4899_v15, %v5694_v52  ;;  %v2964_v52 = vld [vmem:[#allocation2 + $0xfe] sm:$0xff] }
 0x146   : > { %v966_v18 = vpop.f32.mrf.mxu1  ;;  %v5845_v14 = vadd.f32 %v1240_v31, %v951_v32  ;;  %v2643_v15 = vld [vmem:[#allocation2 + $0x125] sm:$0xff] }
 0x147   : > { %v4934_v39 = vpop.f32.mrf.mxu0  ;;  %v967_v47 = vadd.f32 %v966_v18, %v5702_v57  ;;  %v2965_v31 = vld [vmem:[#allocation2 + $0x106] sm:$0xff] }
 0x148   : > { %v4900_v13 = vpop.f32.mrf.mxu1  ;;  %v5848_v12 = vadd.f32 %v4934_v39, %v962_v10  ;;  %v2986_v39 = vpack.c.bf16 %v2964_v52, %v2963_v7  ;;  %v2970_v52 = vld [vmem:[#allocation2 + $0x12e] sm:$0xff] }
 0x149   : > { %v1243_v2 = vpop.f32.mrf.mxu0  ;;  %v978_v58 = vadd.f32 %v4900_v13, %v5706_v61 }
 0x14a   : > { %v969_v54 = vpop.f32.mrf.mxu1  ;;  %v5851_v50 = vadd.f32 %v1243_v2, %v954_v24 }
 0x14b   : > { %v4937_v22 = vpop.f32.mrf.mxu0  ;;  %5152 = vmatmul.mubr.msk.bf16.gmra.mxu0 %vm358_vm1, %v2984_v35  ;;  %v970_v35 = vadd.f32 %v969_v54, %v5710_v0 }
 0x14c   : > { %v4943_v44 = vpop.f32.mrf.mxu1  ;;  %5118 = vmatmul.mubr.msk.bf16.gmra.mxu1 %vm358_vm1, %v2660_v45  ;;  %v5856_v48 = vadd.f32 %v4937_v22, %v975_v19  ;;  %5155 = vmatprep.mubr.msk.bf16.mxu0 %vm358_vm1, %v2985_v46  ;;  %v2663_v45 = vpack.c.bf16 %v2644_v55, %v2643_v15  ;;  %v2987_v46 = vpack.c.bf16 %v2966_v23, %v2965_v31 }
 0x14d   : > { %v1599_v32 = vadd.f32 %v4943_v44, %v5731_v29  ;;  %5121 = vmatprep.mubr.msk.bf16.mxu1 %vm358_vm1, %v2661_v16  ;;  %v1256_v36 = vpop.f32.mrf.mxu0  ;;  %v2662_v29 = vpack.c.bf16 %v2642_v9, %v2641_v25  ;;  %v2645_v44 = vld [vmem:[#allocation2 + $0x135] sm:$0xff]  ;;  %v2968_v9 = vld [vmem:[#allocation2 + $0x11e] sm:$0xff] }
 0x14e   : > { %v1454_v51 = vpop.f32.mrf.mxu1  ;;  %v5862_v8 = vadd.f32 %v1256_v36, %v967_v47  ;;  %v2967_v25 = vld [vmem:[#allocation2 + $0x116] sm:$0xff]  ;;  %v2969_v47 = vld [vmem:[#allocation2 + $0x126] sm:$0xff] }
 0x14f   : > { %v1597_v57 = vadd.f32 %v1454_v51, %v5736_v49  ;;  %v4938_v18 = vpop.f32.mrf.mxu0 }
 0x150   : > { %v4944_v10 = vpop.f32.mrf.mxu1  ;;  %v5866_v24 = vadd.f32 %v4938_v18, %v978_v58  ;;  %v2989_v58 = vpack.c.bf16 %v2970_v52, %v2969_v47 }
 0x151   : > { %v1600_v16 = vadd.f32 %v4944_v10, %v5739_v59  ;;  %v1259_v2 = vpop.f32.mrf.mxu0  ;;  %v2646_v59 = vld [vmem:[#allocation2 + $0x13d] sm:$0xff] }
 0x152   : > { %v1457_v19 = vpop.f32.mrf.mxu1  ;;  %v5869_v22 = vadd.f32 %v1259_v2, %v970_v35 }
 0x153   : > { %v1598_v61 = vadd.f32 %v1457_v19, %v5742_v4  ;;  %v4981_v49 = vpop.f32.mrf.mxu0  ;;  %5156 = vmatmul.mubr.msk.bf16.gmra.mxu0 %vm358_vm1, %v2986_v39  ;;  %v3379_v19 = vlaneseq }
 0x154   : > { %v4947_v13 = vpop.f32.mrf.mxu1  ;;  %5122 = vmatmul.mubr.msk.bf16.gmra.mxu1 %vm358_vm1, %v2662_v29  ;;  %v5875_v54 = vadd.f32 %v4981_v49, %v1599_v32  ;;  %5159 = vmatprep.mubr.msk.bf16.mxu0 %vm358_vm1, %v2987_v46  ;;  %v2988_v32 = vpack.c.bf16 %v2968_v9, %v2967_v25 }
 0x155   : > { %v1603_v0 = vadd.f32 %v4947_v13, %v5747_v27  ;;  %5125 = vmatprep.mubr.msk.bf16.mxu1 %vm358_vm1, %v2663_v45  ;;  %v1780_v4 = vpop.f32.mrf.mxu0  ;;  %v2664_v27 = vpack.c.bf16 %v2646_v59, %v2645_v44  ;;  %v5900_v9 = vshrl.u32 %v3379_v19, 7 }
 0x156   : > { %v1470_v7 = vpop.f32.mrf.mxu1  ;;  %v5880_v55 = vadd.f32 %v1780_v4, %v1597_v57 }
 0x157   : > { %v1601_v15 = vadd.f32 %v1470_v7, %v5752_v28  ;;  %v4982_v51 = vpop.f32.mrf.mxu0 }
 0x158   : > { %v4948_v36 = vpop.f32.mrf.mxu1  ;;  %v5883_v23 = vadd.f32 %v4982_v51, %v1600_v16  ;;  %v2972_v16 = vld [vmem:[#allocation2 + $0x13e] sm:$0xff]  ;;  %v3382_v51 = vadd.s32 16, %v5900_v9 }
 0x159   : > { %v1604_v31 = vadd.f32 %v4948_v36, %v5755_v40  ;;  %v1783_v10 = vpop.f32.mrf.mxu0  ;;  %v2971_v40 = vld [vmem:[#allocation2 + $0x136] sm:$0xff] }
 0x15a   : > { %v1473_v18 = vpop.f32.mrf.mxu1  ;;  %v5886_v39 = vadd.f32 %v1783_v10, %v1598_v61  ;;  %v2990_v44 = vpack.c.bf16 %v2972_v16, %v2971_v40 }
 0x15b   : > { %v1602_v29 = vadd.f32 %v1473_v18, %v5758_v62  ;;  %v4985_v35 = vpop.f32.mrf.mxu0  ;;  %5160 = vmatmul.mubr.msk.bf16.gmra.mxu0 %vm358_vm1, %v2988_v32 }
 0x15c   : > { %v4951_v45 = vpop.f32.mrf.mxu1  ;;  %5126 = vmatmul.mubr.msk.bf16.gmra.mxu1 %vm358_vm1, %v2664_v27  ;;  %v5891_v57 = vadd.f32 %v4985_v35, %v1603_v0  ;;  %5163 = vmatprep.mubr.msk.bf16.mxu0 %vm358_vm1, %v2989_v58 }
 0x15d   : > { %v1607_v28 = vadd.f32 %v4951_v45, %v5763_v21  ;;  %v1796_v2 = vpop.f32.mrf.mxu0 }
 0x15e   : > { %v1486_v46 = vpop.f32.mrf.mxu1  ;;  %v5895_v61 = vadd.f32 %v1796_v2, %v1601_v15 }
 0x15f   : > { %v1605_v62 = vadd.f32 %v1486_v46, %v5768_v17  ;;  %v4986_v49 = vpop.f32.mrf.mxu0 }
 0x160   : > { %v4952_v13 = vpop.f32.mrf.mxu1  ;;  %v5898_v25 = vadd.f32 %v4986_v49, %v1604_v31 }
 0x161   : > { %v1608_v59 = vadd.f32 %v4952_v13, %v5771_v26  ;;  %v1799_v0 = vpop.f32.mrf.mxu0 }
 0x162   : > { %v1489_v21 = vpop.f32.mrf.mxu1  ;;  %v5903_v4 = vadd.f32 %v1799_v0, %v1602_v29 }
 0x163   : > { %v1606_v7 = vadd.f32 %v1489_v21, %v5774_v6  ;;  %v4989_v52 = vpop.f32.mrf.mxu0  ;;  %5164 = vmatmul.mubr.msk.bf16.gmra.mxu0 %vm358_vm1, %v2990_v44 }
 0x164   : > { %v4955_v47 = vpop.f32.mrf.mxu1  ;;  %v5907_v15 = vadd.f32 %v4989_v52, %v1607_v28 }
 0x165   : > { %v1611_v17 = vadd.f32 %v4955_v47, %v5779_v37  ;;  %v1812_v26 = vpop.f32.mrf.mxu0  ;;  %v5916_v45 = vmul.u32.u64.low 3817748708, %v3382_v51  ;;  %v5917_v37 = vmul.u32.u64.high 3817748708, %v3382_v51, %v5916_v45 }
 0x166   : > { %v1502_v36 = vpop.f32.mrf.mxu1  ;;  %v5911_v32 = vadd.f32 %v1812_v26, %v1605_v62 }
 0x167   : > { %v1609_v27 = vadd.f32 %v1502_v36, %v5784_v33  ;;  %v4990_v6 = vpop.f32.mrf.mxu0  ;;  %v5923_v33 = vadd.s32 24, %v5900_v9 }
 0x168   : > { %v4956_v31 = vpop.f32.mrf.mxu1  ;;  %v5914_v18 = vadd.f32 %v4990_v6, %v1608_v59  ;;  %v5950_v6 = vadd.s32 48, %v5900_v9 }
 0x169   : > { %v1612_v58 = vadd.f32 %v4956_v31, %v5787_v30  ;;  %v1815_v29 = vpop.f32.mrf.mxu0  ;;  %v5929_v30 = vmul.u32.u64.low 3817748708, %v5900_v9  ;;  %v5930_v19 = vmul.u32.u64.high 3817748708, %v5900_v9, %v5929_v30 }
 0x16a   : > { %v1505_v10 = vpop.f32.mrf.mxu1  ;;  %v5920_v28 = vadd.f32 %v1815_v29, %v1606_v7  ;;  %v5936_v21 = vmul.u32.u64.low 3817748708, %v5923_v33  ;;  %v5937_v0 = vmul.u32.u64.high 3817748708, %v5923_v33, %v5936_v21 }
 0x16b   : > { %v1610_v35 = vadd.f32 %v1505_v10, %v5790_v34  ;;  %v4993_v16 = vpop.f32.mrf.mxu0  ;;  %v3422_v10 = vshrl.u32 %v5930_v19, 4  ;;  %v5969_v19 = vadd.s32 32, %v5900_v9 }
 0x16c   : > { %v4959_v40 = vpop.f32.mrf.mxu1  ;;  %v5926_v2 = vadd.f32 %v4993_v16, %v1611_v17  ;;  %v3444_v17 = vshrl.u32 %v5917_v37, 4 }
 0x16d   : > { %v1615_v46 = vadd.f32 %v4959_v40, %v5794_v53  ;;  %v1828_v13 = vpop.f32.mrf.mxu0 }
 0x16e   : > { %v1518_v62 = vpop.f32.mrf.mxu1  ;;  %v5933_v34 = vadd.f32 %v1828_v13, %v1609_v27  ;;  %v3445_v37 = vmul.u32 18, %v3444_v17  ;;  %v3455_v13 = vshrl.u32 %v5937_v0, 4 }
 0x16f   : > { %v1613_v49 = vadd.f32 %v1518_v62, %v5798_v63  ;;  %v4994_v59 = vpop.f32.mrf.mxu0  ;;  %v5947_v63 = vadd.s32 8, %v5900_v9 }
 0x170   : > { %v4960_v44 = vpop.f32.mrf.mxu1  ;;  %v5940_v7 = vadd.f32 %v4994_v59, %v1612_v58 }
 0x171   : > { %v1616_v53 = vadd.f32 %v4960_v44, %v5800_v60  ;;  %v1831_v52 = vpop.f32.mrf.mxu0  ;;  %v5960_v40 = vmul.u32.u64.low 3817748708, %v5947_v63  ;;  %v5961_v16 = vmul.u32.u64.high 3817748708, %v5947_v63, %v5960_v40 }
 0x172   : > { %v1521_v47 = vpop.f32.mrf.mxu1  ;;  %v5944_v26 = vadd.f32 %v1831_v52, %v1610_v35 }
 0x173   : > { %v1614_v36 = vadd.f32 %v1521_v47, %v5803_v43  ;;  %v4997_v31 = vpop.f32.mrf.mxu0  ;;  %v5974_v47 = vsub.s32 %v3382_v51, %v3445_v37 }
 0x174   : > { %v4963_v27 = vpop.f32.mrf.mxu1  ;;  %v5953_v58 = vadd.f32 %v4997_v31, %v1615_v46  ;;  %v3456_v31 = vmul.u32 18, %v3455_v13 }
 0x175   : > { %v1619_v60 = vadd.f32 %v4963_v27, %v5808_v11  ;;  %v1844_v45 = vpop.f32.mrf.mxu0  ;;  %v5965_v11 = vmul.u32.u64.low 3817748708, %v5950_v6  ;;  %v5966_v46 = vmul.u32.u64.high 3817748708, %v5950_v6, %v5965_v11  ;;  %vm3814_vm3 = vcmp.ne.s32.totalorder %v5974_v47, 0 }
 0x176   : > { %v1534_v29 = vpop.f32.mrf.mxu1  ;;  %v5957_v35 = vadd.f32 %v1844_v45, %v1613_v49  ;;  %v3423_v49 = vmul.u32 18, %v3422_v10  ;;  %vm3850_vm4 = vcmp.lt.s32.totalorder %v5974_v47, 0  ;;  %v6004_v13 = vsub.s32 %v5923_v33, %v3456_v31 }
 0x177   : > { %v1617_v43 = vadd.f32 %v1534_v29, %v5813_v41  ;;  %v4998_v62 = vpop.f32.mrf.mxu0  ;;  %v5980_v29 = vmul.u32.u64.low 3817748708, %v5969_v19  ;;  %v5981_v45 = vmul.u32.u64.high 3817748708, %v5969_v19, %v5980_v29  ;;  %v3433_v11 = vshrl.u32 %v5961_v16, 4  ;;  %vm6045_vm9 = vmand %vm3850_vm4, %vm3814_vm3 }
 0x178   : > { %7794 = vst [vmem:[#allocation4_spill] sm:$0xff] %v5957_v35  ;;  %v4964_v30 = vpop.f32.mrf.mxu1  ;;  %v5972_v41 = vadd.f32 %v4998_v62, %v1616_v53  ;;  %v5987_v10 = vsub.s32 %v5900_v9, %v3423_v49  ;;  %v6001_v62 = vadd.s32 18, %v5974_v47  ;;  %7800 = vst [vmem:[#allocation10_spill] sm:$0xff] %v6004_v13  ;;  %v3488_v49 = vshrl.u32 %v5966_v46, 4 }
 0x179   : > { %v1620_v44 = vadd.f32 %v4964_v30, %v5816_v38  ;;  %v1847_v21 = vpop.f32.mrf.mxu0  ;;  %v6020_v16 = vadd.s32 80, %v5900_v9  ;;  %v6023_v46 = vadd.s32 64, %v5900_v9  ;;  %vm3815_vm7 = vcmp.ne.s32.totalorder %v6004_v13, 0 }
 0x17a   : > { %7795 = vst [vmem:[#allocation5_spill] sm:$0xff] %v5972_v41  ;;  %v1537_v59 = vpop.f32.mrf.mxu1  ;;  %v5977_v17 = vadd.f32 %v1847_v21, %v1614_v36  ;;  %7798 = vst [vmem:[#allocation8_spill] sm:$0xff] %v5987_v10  ;;  %vm3812_vm5 = vcmp.ne.s32.totalorder %v5987_v10, 0  ;;  %vm3848_vm6 = vcmp.lt.s32.totalorder %v5987_v10, 0  ;;  %vm3851_vm8 = vcmp.lt.s32.totalorder %v6004_v13, 0 }
 0x17b   : > { %v1618_v52 = vadd.f32 %v1537_v59, %v5819_v42  ;;  %v5001_v27 = vpop.f32.mrf.mxu0  ;;  %v5991_v42 = vadd.s32 56, %v5900_v9  ;;  %vm6066_vm10 = vmand %vm3848_vm6, %vm3812_vm5  ;;  %v6096_v35 = vstv %s6013_s22 }
 0x17c   : > { %7796 = vst [vmem:[#allocation6_spill] sm:$0xff] %v5977_v17  ;;  %v4967_v0 = vpop.f32.mrf.mxu1  ;;  %v5984_v53 = vadd.f32 %v5001_v27, %v1619_v60  ;;  %vm6078_vm11 = vmand %vm3851_vm8, %vm3815_vm7 }
 0x17d   : > { %v1623_v38 = vadd.f32 %v4967_v0, %v5824_v20  ;;  %v1860_v37 = vpop.f32.mrf.mxu0  ;;  %v5998_v20 = vadd.s32 40, %v5900_v9  ;;  %v6016_v0 = vmul.u32.u64.low 3817748708, %v5991_v42  ;;  %v6017_v33 = vmul.u32.u64.high 3817748708, %v5991_v42, %v6016_v0  ;;  %7817 = vst [vmem:[#allocation21_spill] sm:$0xff] %v6096_v35 }
 0x17e   : > { %7797 = vst [vmem:[#allocation7_spill] sm:$0xff] %v5984_v53  ;;  %v1550_v51 = vpop.f32.mrf.mxu1  ;;  %v5994_v40 = vadd.f32 %v1860_v37, %v1617_v43  ;;  %v3434_v37 = vmul.u32 18, %v3433_v11 }
 0x17f   : > { %v1621_v36 = vadd.f32 %v1550_v51, %v5829_v56  ;;  %v5002_v30 = vpop.f32.mrf.mxu0  ;;  %v6029_v27 = vmul.u32.u64.low 3817748708, %v5998_v20  ;;  %v6030_v31 = vmul.u32.u64.high 3817748708, %v5998_v20, %v6029_v27 }
 0x180   : > { %7799 = vst [vmem:[#allocation9_spill] sm:$0xff] %v5994_v40  ;;  %v4968_v60 = vpop.f32.mrf.mxu1  ;;  %v6009_v43 = vadd.f32 %v5002_v30, %v1620_v44  ;;  %v3466_v30 = vshrl.u32 %v5981_v45, 4  ;;  %v6050_v45 = vadd.s32 18, %v5987_v10 }
 0x181   : > { %v1624_v56 = vadd.f32 %v4968_v60, %v5832_v3  ;;  %v1863_v21 = vpop.f32.mrf.mxu0  ;;  %v3489_v60 = vmul.u32 18, %v3488_v49 }
 0x182   : > { %7801 = vst [vmem:[#allocation11_spill] sm:$0xff] %v6009_v43  ;;  %v1553_v59 = vpop.f32.mrf.mxu1  ;;  %v6026_v44 = vadd.f32 %v1863_v21, %v1618_v52  ;;  %7806 = vst [vmem:[#allocation14_spill] sm:$0xff] %v6050_v45 }
 0x183   : > { %v1622_v3 = vadd.f32 %v1553_v59, %v5835_v1  ;;  %v5005_v51 = vpop.f32.mrf.mxu0  ;;  %v6039_v1 = vadd.s32 88, %v5900_v9 }
 0x184   : > { %7802 = vst [vmem:[#allocation12_spill] sm:$0xff] %v6026_v44  ;;  %v4971_v29 = vpop.f32.mrf.mxu1  ;;  %v6035_v43 = vadd.f32 %v5005_v51, %v1623_v38  ;;  %v6056_v38 = vmul.u32.u64.low 3817748708, %v6020_v16  ;;  %v6057_v49 = vmul.u32.u64.high 3817748708, %v6020_v16, %v6056_v38 }
 0x185   : > { %v1627_v0 = vadd.f32 %v4971_v29, %v5840_v5  ;;  %v1876_v59 = vpop.f32.mrf.mxu0  ;;  %v6053_v5 = vadd.s32 18, %v6004_v13  ;;  %v7809_v29 = vmov 0 }
 0x186   : > { %7803 = vst [vmem:[#allocation13_spill] sm:$0xff] %v6035_v43  ;;  %v1566_v52 = vpop.f32.mrf.mxu1  ;;  %v6060_v27 = vadd.f32 %v1876_v59, %v1621_v36  ;;  %v7810_v29 = vsel %vm6066_vm10, 4294967295, %v7809_v29  ;;  %v6071_v51 = vmul.u32.u64.low 3817748708, %v6023_v46  ;;  %v6072_v43 = vmul.u32.u64.high 3817748708, %v6023_v46, %v6071_v51 }
 0x187   : > { %7807 = vst [vmem:[#allocation15_spill] sm:$0xff] %v6053_v5  ;;  %v1625_v21 = vadd.f32 %v1566_v52, %v5845_v14  ;;  %7811 = vst [vmem:[#allocation17_spill] sm:$0xff] %v7810_v29  ;;  %v5006_v40 = vpop.f32.mrf.mxu0  ;;  %v7812_v14 = vmov 0  ;;  %v6083_v36 = vsub.s32 %v5947_v63, %v3434_v37  ;;  %v6086_v52 = vsub.s32 %v5950_v6, %v3489_v60 }
 0x188   : > { %7808 = vst [vmem:[#allocation16_spill] sm:$0xff] %v6060_v27  ;;  %v4972_v44 = vpop.f32.mrf.mxu1  ;;  %v7813_v14 = vsel %vm6078_vm11, 4294967295, %v7812_v14  ;;  %v3467_v59 = vmul.u32 18, %v3466_v30  ;;  %v6089_v51 = vadd.f32 %v5006_v40, %v1624_v56  ;;  %v3499_v6 = vshrl.u32 %v6017_v33, 4 }
 0x189   : > { %7814 = vst [vmem:[#allocation18_spill] sm:$0xff] %v7813_v14  ;;  %7815 = vst [vmem:[#allocation19_spill] sm:$0xff] %v6083_v36  ;;  %v1628_v38 = vadd.f32 %v4972_v44, %v5848_v12  ;;  %v6092_v27 = vmul.u32.u64.low 3817748708, %v6039_v1  ;;  %v6093_v53 = vmul.u32.u64.high 3817748708, %v6039_v1, %v6092_v27  ;;  %v1879_v41 = vpop.f32.mrf.mxu0  ;;  %v3477_v37 = vshrl.u32 %v6030_v31, 4 }
 0x18a   : > { %7816 = vst [vmem:[#allocation20_spill] sm:$0xff] %v6086_v52  ;;  %v1569_v17 = vpop.f32.mrf.mxu1  ;;  %v6108_v56 = vadd.f32 %v1879_v41, %v1622_v3  ;;  %vm3813_vm12 = vcmp.ne.s32.totalorder %v6083_v36, 0  ;;  %vm3849_vm13 = vcmp.lt.s32.totalorder %v6083_v36, 0  ;;  %v6118_v27 = vadd.s32 18, %v6083_v36 }
 0x18b   : > { %v1626_v40 = vadd.f32 %v1569_v17, %v5851_v50  ;;  %v5009_v30 = vpop.f32.mrf.mxu0  ;;  %v6121_v50 = vsub.s32 %v5969_v19, %v3467_v59  ;;  %vm3818_vm14 = vcmp.ne.s32.totalorder %v6086_v52, 0  ;;  %vm3854_vm15 = vcmp.lt.s32.totalorder %v6086_v52, 0  ;;  %vm6154_vm2 = vmand %vm3849_vm13, %vm3813_vm12 }
 0x18c   : > { %v4975_v60 = vpop.f32.mrf.mxu1  ;;  %v6124_v17 = vadd.f32 %v5009_v30, %v1627_v0  ;;  %v6129_v31 = vadd.s32 18, %v6086_v52  ;;  %v3500_v44 = vmul.u32 18, %v3499_v6  ;;  %v3532_v12 = vshrl.u32 %v6057_v49, 4  ;;  %vm6166_vm3 = vmand %vm3854_vm15, %vm3818_vm14 }
 0x18d   : > { %7818 = vst [vmem:[#allocation22_spill] sm:$0xff] %v6121_v50  ;;  %v1631_v41 = vadd.f32 %v4975_v60, %v5856_v48  ;;  %v1892_v3 = vpop.f32.mrf.mxu0  ;;  %v6133_v63 = vadd.s32 72, %v5900_v9  ;;  %v3478_v0 = vmul.u32 18, %v3477_v37  ;;  %v3510_v59 = vshrl.u32 %v6072_v43, 4 }
 0x18e   : > { %v1582_v33 = vpop.f32.mrf.mxu1  ;;  %7819 = vst [vmem:[#allocation23_spill] sm:$0xff] %v6129_v31  ;;  %v6136_v48 = vadd.f32 %v1892_v3, %v1625_v21  ;;  %vm3816_vm0 = vcmp.ne.s32.totalorder %v6121_v50, 0  ;;  %vm3852_vm1 = vcmp.lt.s32.totalorder %v6121_v50, 0  ;;  %v6142_v6 = vadd.s32 112, %v5900_v9 }
 0x18f   : > { %v1629_v19 = vadd.f32 %v1582_v33, %v5862_v8  ;;  %v5010_v30 = vpop.f32.mrf.mxu0  ;;  %v6145_v49 = vadd.s32 96, %v5900_v9  ;;  %v6159_v21 = vadd.s32 18, %v6121_v50  ;;  %v3543_v37 = vshrl.u32 %v6093_v53, 4  ;;  %vm6184_vm4 = vmand %vm3852_vm1, %vm3816_vm0 }
 0x190   : > { %v4976_v60 = vpop.f32.mrf.mxu1  ;;  %v6148_v8 = vadd.f32 %v5010_v30, %v1628_v38  ;;  %v6171_v38 = vsub.s32 %v5991_v42, %v3500_v44  ;;  %v6174_v30 = vmul.u32.u64.low 3817748708, %v6133_v63  ;;  %v6175_v13 = vmul.u32.u64.high 3817748708, %v6133_v63, %v6174_v30 }
 0x191   : > { %v1632_v35 = vadd.f32 %v4976_v60, %v5866_v24  ;;  %7822 = vst [vmem:[#allocation24_spill] sm:$0xff] %v6159_v21  ;;  %v1895_v3 = vpop.f32.mrf.mxu0  ;;  %v7823_v24 = vmov 0  ;;  %v3533_v60 = vmul.u32 18, %v3532_v12  ;;  %v7827_v14 = vmov 0 }
 0x192   : > { %v1585_v33 = vpop.f32.mrf.mxu1  ;;  %v7824_v24 = vsel %vm6166_vm3, 4294967295, %v7823_v24  ;;  %7826 = vst [vmem:[#allocation26_spill] sm:$0xff] %v6171_v38  ;;  %v6178_v5 = vadd.f32 %v1895_v3, %v1626_v40  ;;  %v7828_v14 = vsel %vm6184_vm4, 4294967295, %v7827_v14  ;;  %v6189_v42 = vsub.s32 %v5998_v20, %v3478_v0 }
 0x193   : > { %7825 = vst [vmem:[#allocation25_spill] sm:$0xff] %v7824_v24  ;;  %v1630_v53 = vadd.f32 %v1585_v33, %v5869_v22  ;;  %7829 = vst [vmem:[#allocation27_spill] sm:$0xff] %v7828_v14  ;;  %v3511_v12 = vmul.u32 18, %v3510_v59  ;;  %v5013_v44 = vpop.f32.mrf.mxu0  ;;  %v6192_v30 = vmul.u32.u64.low 3817748708, %v6142_v6  ;;  %v6193_v45 = vmul.u32.u64.high 3817748708, %v6142_v6, %v6192_v30 }
 0x194   : > { %7830 = vst [vmem:[#allocation28_spill] sm:$0xff] %v6189_v42  ;;  %v5019_v10 = vpop.f32.mrf.mxu1  ;;  %v6196_v22 = vmul.u32.u64.low 3817748708, %v6145_v49  ;;  %v6197_v40 = vmul.u32.u64.high 3817748708, %v6145_v49, %v6196_v22  ;;  %v6199_v33 = vadd.f32 %v5013_v44, %v1631_v41  ;;  %v3544_v0 = vmul.u32 18, %v3543_v37 }
 0x195   : > { %v2251_v3 = vadd.f32 %v5019_v10, %v5875_v54  ;;  %v1908_v59 = vpop.f32.mrf.mxu0  ;;  %vm3819_vm5 = vcmp.ne.s32.totalorder %v6171_v38, 0  ;;  %v6216_v54 = vsub.s32 %v6020_v16, %v3533_v60  ;;  %vm3855_vm6 = vcmp.lt.s32.totalorder %v6171_v38, 0 }
 0x196   : > { %v2106_v29 = vpop.f32.mrf.mxu1  ;;  %v6218_v10 = vadd.f32 %v1908_v59, %v1629_v19  ;;  %v6223_v44 = vadd.s32 120, %v5900_v9  ;;  %v6226_v20 = vadd.s32 18, %v6171_v38  ;;  %vm3817_vm7 = vcmp.ne.s32.totalorder %v6189_v42, 0  ;;  %vm6259_vm14 = vmand %vm3855_vm6, %vm3819_vm5 }
 0x197   : > { %7831 = vst [vmem:[#allocation29_spill] sm:$0xff] %v6216_v54  ;;  %v2249_v37 = vadd.f32 %v2106_v29, %v5880_v55  ;;  %v5014_v22 = vpop.f32.mrf.mxu0  ;;  %vm3853_vm8 = vcmp.lt.s32.totalorder %v6189_v42, 0  ;;  %v6231_v16 = vsub.s32 %v6023_v46, %v3511_v12  ;;  %v6237_v29 = vadd.s32 18, %v6189_v42 }
 0x198   : > { %v5020_v30 = vpop.f32.mrf.mxu1  ;;  %7832 = vst [vmem:[#allocation30_spill] sm:$0xff] %v6226_v20  ;;  %v6233_v19 = vadd.f32 %v5014_v22, %v1632_v35  ;;  %v6240_v60 = vsub.s32 %v6039_v1, %v3544_v0  ;;  %vm3822_vm12 = vcmp.ne.s32.totalorder %v6216_v54, 0  ;;  %vm3858_vm13 = vcmp.lt.s32.totalorder %v6216_v54, 0  ;;  %vm6276_vm0 = vmand %vm3853_vm8, %vm3817_vm7 }
 0x199   : > { %7833 = vst [vmem:[#allocation31_spill] sm:$0xff] %v6231_v16  ;;  %v2252_v55 = vadd.f32 %v5020_v30, %v5883_v23  ;;  %7834 = vst [vmem:[#allocation32_spill] sm:$0xff] %v6237_v29  ;;  %v1911_v59 = vpop.f32.mrf.mxu0  ;;  %v3521_v50 = vshrl.u32 %v6175_v13, 4  ;;  %v6246_v46 = vadd.s32 104, %v5900_v9  ;;  %v7836_v22 = vmov 0 }
 0x19a   : > { %7835 = vst [vmem:[#allocation33_spill] sm:$0xff] %v6240_v60  ;;  %v2109_v41 = vpop.f32.mrf.mxu1  ;;  %v6248_v35 = vadd.f32 %v1911_v59, %v1630_v53  ;;  %v6252_v12 = vmul.u32.u64.low 3817748708, %v6223_v44  ;;  %v6253_v30 = vmul.u32.u64.high 3817748708, %v6223_v44, %v6252_v12  ;;  %v7837_v22 = vsel %vm6259_vm14, 4294967295, %v7836_v22  ;;  %vm6298_vm7 = vmand %vm3858_vm13, %vm3822_vm12 }
 0x19b   : > { %v2250_v23 = vadd.f32 %v2109_v41, %v5886_v39  ;;  %v5057_v0 = vpop.f32.mrf.mxu0  ;;  %7838 = vst [vmem:[#allocation34_spill] sm:$0xff] %v7837_v22  ;;  %v6264_v13 = vadd.s32 18, %v6216_v54  ;;  %vm3820_vm15 = vcmp.ne.s32.totalorder %v6231_v16, 0  ;;  %v3576_v39 = vshrl.u32 %v6193_v45, 4 }
 0x19c   : > { %v5023_v1 = vpop.f32.mrf.mxu1  ;;  %v3554_v53 = vshrl.u32 %v6197_v40, 4  ;;  %v6270_v59 = vadd.f32 %v5057_v0, %v2251_v3  ;;  %v7840_v12 = vmov 0  ;;  %vm3856_vm1 = vcmp.lt.s32.totalorder %v6231_v16, 0 }
 0x19d   : > { %7839 = vst [vmem:[#allocation35_spill] sm:$0xff] %v6264_v13  ;;  %v2255_v41 = vadd.f32 %v5023_v1, %v5891_v57  ;;  %v7841_v12 = vsel %vm6276_vm0, 4294967295, %v7840_v12  ;;  %vm3823_vm5 = vcmp.ne.s32.totalorder %v6240_v60, 0  ;;  %v2432_v45 = vpop.f32.mrf.mxu0  ;;  %vm3859_vm6 = vcmp.lt.s32.totalorder %v6240_v60, 0  ;;  %vm6313_vm8 = vmand %vm3856_vm1, %vm3820_vm15 }
 0x19e   : > { %7842 = vst [vmem:[#allocation36_spill] sm:$0xff] %v7841_v12  ;;  %v2122_v21 = vpop.f32.mrf.mxu1  ;;  %v3522_v40 = vmul.u32 18, %v3521_v50  ;;  %v6284_v57 = vmul.u32.u64.low 3817748708, %v6246_v46  ;;  %v6285_v3 = vmul.u32.u64.high 3817748708, %v6246_v46, %v6284_v57  ;;  %v6288_v0 = vadd.f32 %v2432_v45, %v2249_v37  ;;  %vm6327_vm12 = vmand %vm3859_vm6, %vm3823_vm5 }
 0x19f   : > { %v2253_v1 = vadd.f32 %v2122_v21, %v5895_v61  ;;  %v7843_v52 = vmov 0  ;;  %v6303_v50 = vadd.s32 18, %v6231_v16  ;;  %v5058_v61 = vpop.f32.mrf.mxu0  ;;  %v7847_v37 = vmov 0 }
 0x1a0   : > { %v7844_v52 = vsel %vm6298_vm7, 4294967295, %v7843_v52  ;;  %v5024_v57 = vpop.f32.mrf.mxu1  ;;  %v7848_v37 = vsel %vm6313_vm8, 4294967295, %v7847_v37  ;;  %v6318_v45 = vadd.s32 18, %v6240_v60  ;;  %v3577_v14 = vmul.u32 18, %v3576_v39 }
 0x1a1   : > { %7845 = vst [vmem:[#allocation37_spill] sm:$0xff] %v7844_v52  ;;  %7846 = vst [vmem:[#allocation38_spill] sm:$0xff] %v6303_v50  ;;  %v3555_v38 = vmul.u32 18, %v3554_v53  ;;  %v2256_v20 = vadd.f32 %v5024_v57, %v5898_v25  ;;  %v6321_v22 = vadd.f32 %v5058_v61, %v2252_v55  ;;  %v7851_v21 = vmov 0  ;;  %v2435_v53 = vpop.f32.mrf.mxu0 }
 0x1a2   : > { %7849 = vst [vmem:[#allocation39_spill] sm:$0xff] %v7848_v37  ;;  %7850 = vst [vmem:[#allocation40_spill] sm:$0xff] %v6318_v45  ;;  %v7852_v21 = vsel %vm6327_vm12, 4294967295, %v7851_v21  ;;  %v6332_v42 = vadd.s32 144, %v5900_v9  ;;  %v6335_v29 = vadd.s32 128, %v5900_v9  ;;  %v2125_v39 = vpop.f32.mrf.mxu1  ;;  %v6342_v55 = vsub.s32 %v6133_v63, %v3522_v40 }
 0x1a3   : > { %7853 = vst [vmem:[#allocation41_spill] sm:$0xff] %v7852_v21  ;;  %v6345_v57 = vadd.s32 152, %v5900_v9  ;;  %v6348_v61 = vadd.s32 136, %v5900_v9  ;;  %v2254_v12 = vadd.f32 %v2125_v39, %v5903_v4  ;;  %v6351_v31 = vadd.f32 %v2435_v53, %v2250_v23  ;;  %v5061_v63 = vpop.f32.mrf.mxu0 }
 0x1a4   : > { %7854 = vst [vmem:[#allocation42_spill] sm:$0xff] %v6342_v55  ;;  %v3587_v25 = vshrl.u32 %v6253_v30, 4  ;;  %v5027_v54 = vpop.f32.mrf.mxu1  ;;  %v6363_v13 = vsub.s32 %v6142_v6, %v3577_v14  ;;  %v6366_v4 = vsub.s32 %v6145_v49, %v3555_v38  ;;  %v6369_v23 = vadd.s32 176, %v5900_v9 }
 0x1a5   : > { %7855 = vst [vmem:[#allocation43_spill] sm:$0xff] %v6351_v31  ;;  %v2259_v39 = vadd.f32 %v5027_v54, %v5907_v15  ;;  %v6372_v53 = vadd.f32 %v5061_v63, %v2255_v41  ;;  %v6375_v30 = vmul.u32.u64.low 3817748708, %v6332_v42  ;;  %v6376_v24 = vmul.u32.u64.high 3817748708, %v6332_v42, %v6375_v30  ;;  %v2448_v21 = vpop.f32.mrf.mxu0 }
 0x1a6   : > { %7856 = vst [vmem:[#allocation44_spill] sm:$0xff] %v6363_v13  ;;  %7857 = vst [vmem:[#allocation45_spill] sm:$0xff] %v6366_v4  ;;  %v2138_v16 = vpop.f32.mrf.mxu1  ;;  %vm3821_vm13 = vcmp.ne.s32.totalorder %v6342_v55, 0  ;;  %vm3857_vm15 = vcmp.lt.s32.totalorder %v6342_v55, 0  ;;  %v3565_v14 = vshrl.u32 %v6285_v3, 4  ;;  %v6382_v6 = vadd.s32 160, %v5900_v9 }
 0x1a7   : > { %7858 = vst [vmem:[#allocation46_spill] sm:$0xff] %v6372_v53  ;;  %v2257_v49 = vadd.f32 %v2138_v16, %v5911_v32  ;;  %v6385_v15 = vadd.f32 %v2448_v21, %v2253_v1  ;;  %v6388_v38 = vadd.s32 18, %v6342_v55  ;;  %v3588_v54 = vmul.u32 18, %v3587_v25  ;;  %v5062_v63 = vpop.f32.mrf.mxu0  ;;  %vm6407_vm5 = vmand %vm3857_vm15, %vm3821_vm13 }
 0x1a8   : > { %v5028_v41 = vpop.f32.mrf.mxu1  ;;  %v6393_v30 = vmul.u32.u64.low 3817748708, %v6335_v29  ;;  %v6394_v3 = vmul.u32.u64.high 3817748708, %v6335_v29, %v6393_v30  ;;  %v6397_v60 = vadd.f32 %v5062_v63, %v2256_v20  ;;  %v6400_v32 = vadd.s32 18, %v6363_v13 }
 0x1a9   : > { %7859 = vst [vmem:[#allocation47_spill] sm:$0xff] %v6385_v15  ;;  %7860 = vst [vmem:[#allocation48_spill] sm:$0xff] %v6388_v38  ;;  %v2260_v40 = vadd.f32 %v5028_v41, %v5914_v18  ;;  %v2451_v1 = vpop.f32.mrf.mxu0  ;;  %v7863_v21 = vmov 0  ;;  %vm3860_vm1 = vcmp.lt.s32.totalorder %v6366_v4, 0  ;;  %v3566_v18 = vmul.u32 18, %v3565_v14 }
 0x1aa   : > { %7861 = vst [vmem:[#allocation49_spill] sm:$0xff] %v6397_v60  ;;  %7862 = vst [vmem:[#allocation50_spill] sm:$0xff] %v6400_v32  ;;  %v2141_v16 = vpop.f32.mrf.mxu1  ;;  %v7864_v21 = vsel %vm6407_vm5, 4294967295, %v7863_v21  ;;  %v6413_v20 = vmul.u32.u64.low 3817748708, %v6345_v57  ;;  %v6414_v25 = vmul.u32.u64.high 3817748708, %v6345_v57, %v6413_v20  ;;  %v6417_v63 = vadd.f32 %v2451_v1, %v2254_v12 }
 0x1ab   : > { %7865 = vst [vmem:[#allocation51_spill] sm:$0xff] %v7864_v21  ;;  %v2258_v41 = vadd.f32 %v2141_v16, %v5920_v28  ;;  %vm7867_vm6 = vcmp.ne.s32.totalorder %v6363_v13, 0  ;;  %vm7868_vm12 = vcmp.lt.s32.totalorder %v6363_v13, 0  ;;  %v7869_v30 = vmov 0  ;;  %v5065_v20 = vpop.f32.mrf.mxu0 }
 0x1ac   : > { %7866 = vst [vmem:[#allocation52_spill] sm:$0xff] %v6417_v63  ;;  %vm6423_vm8 = vmand %vm7868_vm12, %vm7867_vm6  ;;  %v6428_v45 = vsub.s32 %v6223_v44, %v3588_v54  ;;  %v6431_v14 = vadd.s32 184, %v5900_v9  ;;  %v5031_v50 = vpop.f32.mrf.mxu1  ;;  %v6434_v28 = vadd.s32 18, %v6366_v4  ;;  %v6441_v1 = vadd.s32 168, %v5900_v9 }
 0x1ad   : > { %v7870_v30 = vsel %vm6423_vm8, 4294967295, %v7869_v30  ;;  %v6437_v12 = vmul.u32.u64.low 3817748708, %v6348_v61  ;;  %v6438_v16 = vmul.u32.u64.high 3817748708, %v6348_v61, %v6437_v12  ;;  %v2263_v37 = vadd.f32 %v5031_v50, %v5926_v2  ;;  %v2464_v60 = vpop.f32.mrf.mxu0 }
 0x1ae   : > { %7871 = vst [vmem:[#allocation53_spill] sm:$0xff] %v7870_v30  ;;  %7872 = vst [vmem:[#allocation54_spill] sm:$0xff] %v6428_v45  ;;  %v6444_v52 = vadd.f32 %v5065_v20, %v2259_v39  ;;  %vm7875_vm12 = vcmp.ne.s32.totalorder %v6366_v4, 0  ;;  %v7876_v54 = vmov 0  ;;  %v3620_v12 = vshrl.u32 %v6376_v24, 4  ;;  %v2154_v63 = vpop.f32.mrf.mxu1 }
 0x1af   : > { %7873 = vst [vmem:[#allocation55_spill] sm:$0xff] %v6434_v28  ;;  %vm6454_vm13 = vmand %vm3860_vm1, %vm7875_vm12  ;;  %v6464_v50 = vsub.s32 %v6246_v46, %v3566_v18  ;;  %v6467_v39 = vadd.s32 208, %v5900_v9  ;;  %v6470_v20 = vadd.s32 192, %v5900_v9  ;;  %v2261_v44 = vadd.f32 %v2154_v63, %v5933_v34  ;;  %v5066_v30 = vpop.f32.mrf.mxu0 }
 0x1b0   : > { %7874 = vst [vmem:[#allocation56_spill] sm:$0xff] %v6444_v52  ;;  %v7877_v54 = vsel %vm6454_vm13, 4294967295, %v7876_v54  ;;  %v6473_v55 = vadd.f32 %v2464_v60, %v2257_v49  ;;  %vm3827_vm15 = vcmp.ne.s32.totalorder %v6428_v45, 0  ;;  %vm3863_vm1 = vcmp.lt.s32.totalorder %v6428_v45, 0  ;;  %v5032_v24 = vpop.f32.mrf.mxu1 }
 0x1b1   : > { %7878 = vst [vmem:[#allocation57_spill] sm:$0xff] %v7877_v54  ;;  %7879 = vst [vmem:[#allocation58_spill] sm:$0xff] %v6464_v50  ;;  %v3598_v18 = vshrl.u32 %v6394_v3, 4  ;;  %v6483_v2 = vadd.s32 216, %v5900_v9  ;;  %v6486_v34 = vadd.s32 200, %v5900_v9  ;;  %v2264_v60 = vadd.f32 %v5032_v24, %v5940_v7  ;;  %v2467_v38 = vpop.f32.mrf.mxu0 }
 0x1b2   : > { %7880 = vst [vmem:[#allocation59_spill] sm:$0xff] %v6473_v55  ;;  %v6489_v49 = vadd.f32 %v5066_v30, %v2260_v40  ;;  %v6492_v63 = vadd.s32 18, %v6428_v45  ;;  %v3621_v13 = vmul.u32 18, %v3620_v12  ;;  %v2157_v32 = vpop.f32.mrf.mxu1  ;;  %vm6496_vm6 = vmand %vm3863_vm1, %vm3827_vm15  ;;  %v7883_v3 = vmov 0 }
 0x1b3   : > { %v7884_v3 = vsel %vm6496_vm6, 4294967295, %v7883_v3  ;;  %vm3825_vm12 = vcmp.ne.s32.totalorder %v6464_v50, 0  ;;  %vm3861_vm13 = vcmp.lt.s32.totalorder %v6464_v50, 0  ;;  %v3631_v7 = vshrl.u32 %v6414_v25, 4  ;;  %v5069_v28 = vpop.f32.mrf.mxu0 }
 0x1b4   : > { %7881 = vst [vmem:[#allocation60_spill] sm:$0xff] %v6489_v49  ;;  %7882 = vst [vmem:[#allocation61_spill] sm:$0xff] %v6492_v63  ;;  %v6504_v40 = vadd.s32 240, %v5900_v9  ;;  %v2262_v30 = vadd.f32 %v2157_v32, %v5944_v26  ;;  %v6507_v12 = vadd.f32 %v2467_v38, %v2258_v41  ;;  %v5035_v4 = vpop.f32.mrf.mxu1  ;;  %v6514_v54 = vadd.s32 18, %v6464_v50 }
 0x1b5   : > { %7885 = vst [vmem:[#allocation62_spill] sm:$0xff] %v7884_v3  ;;  %v6510_v24 = vmul.u32.u64.low 3817748708, %v6369_v23  ;;  %v6511_v46 = vmul.u32.u64.high 3817748708, %v6369_v23, %v6510_v24  ;;  %v3599_v21 = vmul.u32 18, %v3598_v18  ;;  %v3609_v49 = vshrl.u32 %v6438_v16, 4  ;;  %vm6531_vm15 = vmand %vm3861_vm13, %vm3825_vm12 }
 0x1b6   : > { %7886 = vst [vmem:[#allocation63_spill] sm:$0xff] %v6507_v12  ;;  %7887 = vst [vmem:[#allocation64_spill] sm:$0xff] %v6514_v54  ;;  %v6518_v25 = vadd.s32 224, %v5900_v9  ;;  %v2267_v55 = vadd.f32 %v5035_v4, %v5953_v58  ;;  %v6521_v26 = vadd.f32 %v5069_v28, %v2263_v37  ;;  %v7889_v32 = vmov 0  ;;  %v2170_v16 = vpop.f32.mrf.mxu1  ;;  %v2480_v58 = vpop.f32.mrf.mxu0  ;;  %v7893_v24 = vld [vmem:[#allocation4_spill] sm:$0xff] }
 0x1b7   : > { %v7890_v32 = vsel %vm6531_vm15, 4294967295, %v7889_v32  ;;  %v6536_v41 = vsub.s32 %v6332_v42, %v3621_v13  ;;  %v3632_v37 = vmul.u32 18, %v3631_v7  ;;  %v6543_v18 = vadd.s32 248, %v5900_v9  ;;  %v7899_v7 = vld [vmem:[#allocation6_spill] sm:$0xff] }
 0x1b8   : > { %7888 = vst [vmem:[#allocation65_spill] sm:$0xff] %v6521_v26  ;;  %7891 = vst [vmem:[#allocation66_spill] sm:$0xff] %v7890_v32  ;;  %v6539_v4 = vmul.u32.u64.low 3817748708, %v6382_v6  ;;  %v6540_v28 = vmul.u32.u64.high 3817748708, %v6382_v6, %v6539_v4  ;;  %v2265_v38 = vadd.f32 %v2170_v16, %v7893_v24  ;;  %v6546_v45 = vadd.f32 %v2480_v58, %v2261_v44  ;;  %v5036_v42 = vpop.f32.mrf.mxu1  ;;  %v5070_v13 = vpop.f32.mrf.mxu0  ;;  %v7896_v44 = vld [vmem:[#allocation5_spill] sm:$0xff] }
 0x1b9   : > { %7892 = vst [vmem:[#allocation67_spill] sm:$0xff] %v6536_v41  ;;  %v6549_v63 = vmul.u32.u64.low 3817748708, %v6431_v14  ;;  %v6550_v3 = vmul.u32.u64.high 3817748708, %v6431_v14, %v6549_v63  ;;  %v6557_v4 = vsub.s32 %v6335_v29, %v3599_v21  ;;  %v3610_v26 = vmul.u32 18, %v3609_v49 }
 0x1ba   : > { %7894 = vst [vmem:[#allocation4_spill] sm:$0xff] %v6546_v45  ;;  %v6560_v12 = vadd.s32 232, %v5900_v9  ;;  %v2268_v16 = vadd.f32 %v5036_v42, %v7896_v44  ;;  %v6563_v58 = vadd.f32 %v5070_v13, %v2264_v60  ;;  %vm3830_vm13 = vcmp.ne.s32.totalorder %v6536_v41, 0  ;;  %v2173_v63 = vpop.f32.mrf.mxu1  ;;  %v2483_v24 = vpop.f32.mrf.mxu0 }
 0x1bb   : > { %7895 = vst [vmem:[#allocation68_spill] sm:$0xff] %v6557_v4  ;;  %vm3866_vm1 = vcmp.lt.s32.totalorder %v6536_v41, 0  ;;  %v6568_v32 = vadd.s32 18, %v6536_v41  ;;  %v6571_v29 = vsub.s32 %v6345_v57, %v3632_v37  ;;  %v2266_v42 = vadd.f32 %v2173_v63, %v7899_v7 }
 0x1bc   : > { %7897 = vst [vmem:[#allocation5_spill] sm:$0xff] %v6563_v58  ;;  %v6574_v21 = vmul.u32.u64.low 3817748708, %v6441_v1  ;;  %v6575_v49 = vmul.u32.u64.high 3817748708, %v6441_v1, %v6574_v21  ;;  %v6578_v60 = vadd.f32 %v2483_v24, %v2262_v30  ;;  %v3664_v13 = vshrl.u32 %v6511_v46, 4  ;;  %v5039_v50 = vpop.f32.mrf.mxu1  ;;  %v5073_v54 = vpop.f32.mrf.mxu0  ;;  %vm6599_vm15 = vmand %vm3866_vm1, %vm3830_vm13 }
 0x1bd   : > { %7898 = vst [vmem:[#allocation69_spill] sm:$0xff] %v6568_v32  ;;  %v6582_v44 = vadd.s32 272, %v5900_v9  ;;  %v6586_v57 = vsub.s32 %v6348_v61, %v3610_v26  ;;  %v6589_v37 = vmul.u32.u64.low 3817748708, %v6467_v39  ;;  %v6590_v58 = vmul.u32.u64.high 3817748708, %v6467_v39, %v6589_v37  ;;  %v7902_v21 = vld [vmem:[#allocation7_spill] sm:$0xff] }
 0x1be   : > { %7900 = vst [vmem:[#allocation6_spill] sm:$0xff] %v6578_v60  ;;  %v2271_v7 = vadd.f32 %v5039_v50, %v7902_v21  ;;  %v6593_v30 = vadd.f32 %v5073_v54, %v2267_v55  ;;  %v7904_v46 = vmov 0  ;;  %v2186_v26 = vpop.f32.mrf.mxu1  ;;  %v2496_v24 = vpop.f32.mrf.mxu0  ;;  %vm3864_vm12 = vcmp.lt.s32.totalorder %v6557_v4, 0  ;;  %v7907_v54 = vld [vmem:[#allocation9_spill] sm:$0xff] }
 0x1bf   : > { %7901 = vst [vmem:[#allocation70_spill] sm:$0xff] %v6586_v57  ;;  %v7905_v46 = vsel %vm6599_vm15, 4294967295, %v7904_v46  ;;  %v6604_v63 = vmul.u32.u64.low 3817748708, %v6470_v20  ;;  %v6605_v61 = vmul.u32.u64.high 3817748708, %v6470_v20, %v6604_v63  ;;  %v3642_v55 = vshrl.u32 %v6540_v28, 4 }
 0x1c0   : > { %7903 = vst [vmem:[#allocation7_spill] sm:$0xff] %v6593_v30  ;;  %7906 = vst [vmem:[#allocation71_spill] sm:$0xff] %v7905_v46  ;;  %v2269_v50 = vadd.f32 %v2186_v26, %v7907_v54  ;;  %v6612_v37 = vadd.f32 %v2496_v24, %v2265_v38  ;;  %v3665_v21 = vmul.u32 18, %v3664_v13  ;;  %v3675_v30 = vshrl.u32 %v6550_v3, 4  ;;  %v5040_v60 = vpop.f32.mrf.mxu1  ;;  %v5074_v45 = vpop.f32.mrf.mxu0  ;;  %v7909_v26 = vld [vmem:[#allocation11_spill] sm:$0xff]  ;;  %v7920_v46 = vld [vmem:[#allocation12_spill] sm:$0xff] }
 0x1c1   : > { %v6622_v28 = vadd.s32 256, %v5900_v9  ;;  %v2272_v38 = vadd.f32 %v5040_v60, %v7909_v26  ;;  %v6625_v24 = vadd.f32 %v5074_v45, %v2268_v16  ;;  %vm7911_vm8 = vcmp.ne.s32.totalorder %v6557_v4, 0 }
 0x1c2   : > { %7908 = vst [vmem:[#allocation9_spill] sm:$0xff] %v6612_v37  ;;  %vm6631_vm6 = vmand %vm3864_vm12, %vm7911_vm8  ;;  %v7912_v3 = vmov 0  ;;  %v6636_v13 = vadd.s32 18, %v6557_v4  ;;  %v6639_v54 = vadd.s32 280, %v5900_v9  ;;  %v2189_v63 = vpop.f32.mrf.mxu1  ;;  %v2499_v41 = vpop.f32.mrf.mxu0  ;;  %vm7914_vm1 = vcmp.ne.s32.totalorder %v6571_v29, 0 }
 0x1c3   : > { %7910 = vst [vmem:[#allocation11_spill] sm:$0xff] %v6625_v24  ;;  %v7913_v3 = vsel %vm6631_vm6, 4294967295, %v7912_v3  ;;  %vm7915_vm13 = vcmp.lt.s32.totalorder %v6571_v29, 0  ;;  %v7916_v45 = vmov 0  ;;  %v6650_v16 = vadd.s32 18, %v6571_v29 }
 0x1c4   : > { %vm6645_vm15 = vmand %vm7915_vm13, %vm7914_vm1  ;;  %v6653_v60 = vadd.s32 18, %v6586_v57  ;;  %v3643_v26 = vmul.u32 18, %v3642_v55  ;;  %v3653_v32 = vshrl.u32 %v6575_v49, 4  ;;  %v2270_v24 = vadd.f32 %v2189_v63, %v7920_v46  ;;  %v5043_v31 = vpop.f32.mrf.mxu1  ;;  %v5077_v55 = vpop.f32.mrf.mxu0  ;;  %v7927_v63 = vld [vmem:[#allocation13_spill] sm:$0xff] }
 0x1c5   : > { %v7917_v45 = vsel %vm6645_vm15, 4294967295, %v7916_v45  ;;  %v6657_v37 = vadd.f32 %v2499_v41, %v2266_v42  ;;  %vm7922_vm8 = vcmp.ne.s32.totalorder %v6586_v57, 0  ;;  %vm7923_vm12 = vcmp.lt.s32.totalorder %v6586_v57, 0 }
 0x1c6   : > { %7918 = vst [vmem:[#allocation72_spill] sm:$0xff] %v7917_v45  ;;  %7919 = vst [vmem:[#allocation73_spill] sm:$0xff] %v6653_v60  ;;  %v7924_v52 = vmov 0  ;;  %v6668_v15 = vsub.s32 %v6369_v23, %v3665_v21  ;;  %v3676_v53 = vmul.u32 18, %v3675_v30  ;;  %v3708_v49 = vshrl.u32 %v6590_v58, 4  ;;  %v2202_v21 = vpop.f32.mrf.mxu1  ;;  %v2512_v58 = vpop.f32.mrf.mxu0 }
 0x1c7   : > { %7921 = vst [vmem:[#allocation12_spill] sm:$0xff] %v6657_v37  ;;  %vm6663_vm13 = vmand %vm7923_vm12, %vm7922_vm8  ;;  %v3686_v46 = vshrl.u32 %v6605_v61, 4  ;;  %v6673_v41 = vmul.u32.u64.low 3817748708, %v6483_v2  ;;  %v6674_v42 = vmul.u32.u64.high 3817748708, %v6483_v2, %v6673_v41  ;;  %v2275_v37 = vadd.f32 %v5043_v31, %v7927_v63 }
 0x1c8   : > { %v7925_v52 = vsel %vm6663_vm13, 4294967295, %v7924_v52  ;;  %7926 = vst [vmem:[#allocation74_spill] sm:$0xff] %v6668_v15  ;;  %v6677_v36 = vadd.f32 %v5077_v55, %v2271_v7  ;;  %v6684_v30 = vadd.s32 264, %v5900_v9  ;;  %v6695_v7 = vsub.s32 %v6382_v6, %v3643_v26  ;;  %v7930_v41 = vld [vmem:[#allocation16_spill] sm:$0xff]  ;;  %v5044_v4 = vpop.f32.mrf.mxu1  ;;  %v5078_v45 = vpop.f32.mrf.mxu0 }
 0x1c9   : > { %v3654_v55 = vmul.u32 18, %v3653_v32  ;;  %v2273_v63 = vadd.f32 %v2202_v21, %v7930_v41  ;;  %v6698_v9 = vadd.f32 %v2512_v58, %v2269_v50  ;;  %v6706_v61 = vsub.s32 %v6431_v14, %v3676_v53 }
 0x1ca   : > { %7928 = vst [vmem:[#allocation13_spill] sm:$0xff] %v6677_v36  ;;  %7929 = vst [vmem:[#allocation75_spill] sm:$0xff] %v6684_v30  ;;  %v6701_v23 = vmul.u32.u64.low 3817748708, %v6486_v34  ;;  %v6702_v36 = vmul.u32.u64.high 3817748708, %v6486_v34, %v6701_v23  ;;  %v3709_v31 = vmul.u32 18, %v3708_v49  ;;  %v2276_v6 = vadd.f32 %v5044_v4, %v6089_v51  ;;  %v2205_v21 = vpop.f32.mrf.mxu1  ;;  %v2515_v58 = vpop.f32.mrf.mxu0 }
 0x1cb   : > { %v3687_v57 = vmul.u32 18, %v3686_v46  ;;  %v6709_v32 = vadd.f32 %v5078_v45, %v2272_v38  ;;  %v6712_v50 = vmul.u32.u64.low 3817748708, %v6504_v40  ;;  %v6713_v26 = vmul.u32.u64.high 3817748708, %v6504_v40, %v6712_v50 }
 0x1cc   : > { %v6717_v23 = vadd.s32 18, %v6668_v15  ;;  %v6721_v53 = vsub.s32 %v6441_v1, %v3654_v55  ;;  %v2274_v51 = vadd.f32 %v2205_v21, %v6108_v56  ;;  %v6724_v14 = vadd.f32 %v2515_v58, %v2270_v24  ;;  %v5047_v38 = vpop.f32.mrf.mxu1  ;;  %v5081_v45 = vpop.f32.mrf.mxu0 }
 0x1cd   : > { %7931 = vst [vmem:[#allocation16_spill] sm:$0xff] %v6709_v32  ;;  %v6728_v4 = vadd.s32 18, %v6695_v7  ;;  %v6733_v49 = vsub.s32 %v6467_v39, %v3709_v31  ;;  %v3719_v1 = vshrl.u32 %v6674_v42, 4  ;;  %v2279_v56 = vadd.f32 %v5047_v38, %v6124_v17 }
 0x1ce   : > { %7932 = vst [vmem:[#allocation76_spill] sm:$0xff] %v6717_v23  ;;  %7933 = vst [vmem:[#allocation77_spill] sm:$0xff] %v6724_v14  ;;  %v6737_v24 = vadd.f32 %v5081_v45, %v2275_v37  ;;  %v6740_v46 = vadd.s32 18, %v6706_v61  ;;  %v6743_v55 = vsub.s32 %v6470_v20, %v3687_v57  ;;  %v2218_v41 = vpop.f32.mrf.mxu1  ;;  %v2528_v50 = vpop.f32.mrf.mxu0  ;;  %vm7936_vm1 = vcmp.ne.s32.totalorder %v6668_v15, 0 }
 0x1cf   : > { %v6748_v39 = vmul.u32.u64.low 3817748708, %v6518_v25  ;;  %v6749_v31 = vmul.u32.u64.high 3817748708, %v6518_v25, %v6748_v39  ;;  %v2277_v17 = vadd.f32 %v2218_v41, %v6136_v48  ;;  %v6752_v37 = vadd.f32 %v2528_v50, %v2273_v63 }
 0x1d0   : > { %7934 = vst [vmem:[#allocation78_spill] sm:$0xff] %v6737_v24  ;;  %vm7937_vm12 = vcmp.lt.s32.totalorder %v6668_v15, 0  ;;  %v7938_v20 = vmov 0  ;;  %v6763_v57 = vadd.s32 18, %v6721_v53  ;;  %v3697_v42 = vshrl.u32 %v6702_v36, 4  ;;  %v5048_v21 = vpop.f32.mrf.mxu1  ;;  %v5082_v58 = vpop.f32.mrf.mxu0 }
 0x1d1   : > { %7935 = vst [vmem:[#allocation79_spill] sm:$0xff] %v6752_v37  ;;  %vm6758_vm15 = vmand %vm7937_vm12, %vm7936_vm1  ;;  %vm7941_vm13 = vcmp.ne.s32.totalorder %v6695_v7, 0  ;;  %vm7942_vm8 = vcmp.lt.s32.totalorder %v6695_v7, 0  ;;  %v7943_v48 = vmov 0  ;;  %v3720_v63 = vmul.u32 18, %v3719_v1 }
 0x1d2   : > { %v7939_v20 = vsel %vm6758_vm15, 4294967295, %v7938_v20  ;;  %vm6770_vm6 = vmand %vm7942_vm8, %vm7941_vm13  ;;  %v3752_v38 = vshrl.u32 %v6713_v26, 4  ;;  %v2280_v45 = vadd.f32 %v5048_v21, %v6148_v8  ;;  %v6778_v36 = vadd.f32 %v5082_v58, %v2276_v6  ;;  %v2221_v50 = vpop.f32.mrf.mxu1  ;;  %v2531_v1 = vpop.f32.mrf.mxu0 }
 0x1d3   : > { %7940 = vst [vmem:[#allocation80_spill] sm:$0xff] %v7939_v20  ;;  %v7944_v48 = vsel %vm6770_vm6, 4294967295, %v7943_v48  ;;  %vm7946_vm5 = vcmp.ne.s32.totalorder %v6706_v61, 0  ;;  %vm7947_vm7 = vcmp.lt.s32.totalorder %v6706_v61, 0  ;;  %v7948_v41 = vmov 0 }
 0x1d4   : > { %7945 = vst [vmem:[#allocation81_spill] sm:$0xff] %v6778_v36  ;;  %vm6784_vm0 = vmand %vm7947_vm7, %vm7946_vm5  ;;  %vm3836_vm13 = vcmp.ne.s32.totalorder %v6743_v55, 0  ;;  %vm3872_vm8 = vcmp.lt.s32.totalorder %v6743_v55, 0  ;;  %vm7950_vm12 = vcmp.ne.s32.totalorder %v6721_v53, 0  ;;  %vm7951_vm1 = vcmp.lt.s32.totalorder %v6721_v53, 0  ;;  %v5051_v14 = vpop.f32.mrf.mxu1  ;;  %v5085_v32 = vpop.f32.mrf.mxu0 }
 0x1d5   : > { %v7949_v41 = vsel %vm6784_vm0, 4294967295, %v7948_v41  ;;  %vm6794_vm14 = vmand %vm7951_vm1, %vm7950_vm12  ;;  %v7952_v8 = vmov 0  ;;  %v6799_v6 = vadd.s32 18, %v6733_v49  ;;  %v3730_v26 = vshrl.u32 %v6749_v31, 4 }
 0x1d6   : > { %v7953_v8 = vsel %vm6794_vm14, 4294967295, %v7952_v8  ;;  %v6803_v39 = vmul.u32.u64.low 3817748708, %v6543_v18  ;;  %v6804_v21 = vmul.u32.u64.high 3817748708, %v6543_v18, %v6803_v39  ;;  %v2278_v58 = vadd.f32 %v2221_v50, %v6178_v5  ;;  %vm6828_vm12 = vmand %vm3872_vm8, %vm3836_vm13  ;;  %v2234_v15 = vpop.f32.mrf.mxu1  ;;  %v2544_v23 = vpop.f32.mrf.mxu0 }
 0x1d7   : > { %v6807_v36 = vadd.f32 %v2531_v1, %v2274_v51  ;;  %vm7955_vm7 = vcmp.ne.s32.totalorder %v6733_v49, 0  ;;  %vm7956_vm5 = vcmp.lt.s32.totalorder %v6733_v49, 0  ;;  %v7957_v37 = vmov 0 }
 0x1d8   : > { %vm6813_vm1 = vmand %vm7956_vm5, %vm7955_vm7  ;;  %v6818_v24 = vadd.s32 18, %v6743_v55  ;;  %v3698_v31 = vmul.u32 18, %v3697_v42  ;;  %v7959_v51 = vmov 0  ;;  %v6833_v50 = vsub.s32 %v6483_v2, %v3720_v63 }
 0x1d9   : > { %7954 = vst [vmem:[#allocation82_spill] sm:$0xff] %v6807_v36  ;;  %v7958_v37 = vsel %vm6813_vm1, 4294967295, %v7957_v37  ;;  %v7960_v51 = vsel %vm6828_vm12, 4294967295, %v7959_v51  ;;  %v3753_v1 = vmul.u32 18, %v3752_v38  ;;  %v3731_v42 = vmul.u32 18, %v3730_v26  ;;  %v5052_v38 = vpop.f32.mrf.mxu1  ;;  %v5086_v26 = vpop.f32.mrf.mxu0 }
 0x1da   : > { %v2283_v39 = vadd.f32 %v5051_v14, %v6199_v33  ;;  %v6836_v36 = vadd.f32 %v5085_v32, %v2279_v56  ;;  %v6839_v20 = vmul.u32.u64.low 3817748708, %v6560_v12  ;;  %v6840_v5 = vmul.u32.u64.high 3817748708, %v6560_v12, %v6839_v20 }
 0x1db   : > { %v3763_v32 = vshrl.u32 %v6804_v21, 4  ;;  %v2281_v14 = vadd.f32 %v2234_v15, %v6218_v10  ;;  %v6856_v56 = vadd.f32 %v2544_v23, %v2277_v17  ;;  %v6868_v21 = vsub.s32 %v6486_v34, %v3698_v31  ;;  %v2237_v33 = vpop.f32.mrf.mxu1  ;;  %v2547_v2 = vpop.f32.mrf.mxu0 }
 0x1dc   : > { %v6871_v10 = vsub.s32 %v6504_v40, %v3753_v1  ;;  %v2284_v23 = vadd.f32 %v5052_v38, %v6233_v19  ;;  %v6874_v17 = vadd.f32 %v5086_v26, %v2280_v45  ;;  %v6877_v20 = vsub.s32 %v6518_v25, %v3731_v42 }
 0x1dd   : > { %7961 = vst [vmem:[#allocation83_spill] sm:$0xff] %v6856_v56  ;;  %7962 = vst [vmem:[#allocation84_spill] sm:$0xff] %v6868_v21  ;;  %v3764_v15 = vmul.u32 18, %v3763_v32  ;;  %v3741_v63 = vshrl.u32 %v6840_v5, 4  ;;  %v6882_v34 = vadd.s32 18, %v6833_v50  ;;  %v2282_v19 = vadd.f32 %v2237_v33, %v6248_v35  ;;  %v5089_v5 = vpop.f32.mrf.mxu0  ;;  %v5095_v42 = vpop.f32.mrf.mxu1 }
 0x1de   : > { %7963 = vst [vmem:[#allocation85_spill] sm:$0xff] %v6874_v17  ;;  %7964 = vst [vmem:[#allocation86_spill] sm:$0xff] %v6877_v20  ;;  %v6885_v40 = vmul.u32.u64.low 3817748708, %v6582_v44  ;;  %v6886_v31 = vmul.u32.u64.high 3817748708, %v6582_v44, %v6885_v40  ;;  %v6889_v45 = vadd.f32 %v2547_v2, %v2278_v58  ;;  %v6897_v32 = vadd.s32 18, %v6868_v21 }
 0x1df   : > { %v6892_v25 = vsub.s32 %v6543_v18, %v3764_v15  ;;  %v3742_v1 = vmul.u32 18, %v3741_v63  ;;  %v6900_v38 = vadd.f32 %v5089_v5, %v2283_v39  ;;  %v2560_v18 = vpop.f32.mrf.mxu0  ;;  %v2758_v58 = vpop.f32.mrf.mxu1  ;;  %vm7970_vm7 = vcmp.ne.s32.totalorder %v6833_v50, 0 }
 0x1e0   : > { %7965 = vst [vmem:[#allocation87_spill] sm:$0xff] %v6889_v45  ;;  %7967 = vst [vmem:[#allocation89_spill] sm:$0xff] %v6897_v32  ;;  %vm7971_vm5 = vcmp.lt.s32.totalorder %v6833_v50, 0  ;;  %v3796_v39 = vshrl.u32 %v6886_v31, 4  ;;  %v6918_v33 = vmul.u32.u64.low 3817748708, %v6622_v28  ;;  %v6919_v63 = vmul.u32.u64.high 3817748708, %v6622_v28, %v6918_v33 }
 0x1e1   : > { %7966 = vst [vmem:[#allocation88_spill] sm:$0xff] %v6892_v25  ;;  %7968 = vst [vmem:[#allocation90_spill] sm:$0xff] %v6900_v38  ;;  %v6905_v35 = vsub.s32 %v6560_v12, %v3742_v1  ;;  %v6921_v12 = vadd.f32 %v2560_v18, %v2281_v14  ;;  %vm7975_vm12 = vcmp.ne.s32.totalorder %v6868_v21, 0  ;;  %vm7976_vm13 = vcmp.lt.s32.totalorder %v6868_v21, 0  ;;  %v5090_v40 = vpop.f32.mrf.mxu0  ;;  %v5096_v31 = vpop.f32.mrf.mxu1 }
 0x1e2   : > { %vm6911_vm1 = vmand %vm7971_vm5, %vm7970_vm7  ;;  %v7977_v26 = vmov 0  ;;  %v6932_v15 = vadd.s32 18, %v6871_v10  ;;  %vm3843_vm7 = vcmp.ne.s32.totalorder %v6892_v25, 0  ;;  %vm7980_vm8 = vcmp.ne.s32.totalorder %v6871_v10, 0 }
 0x1e3   : > { %7969 = vst [vmem:[#allocation91_spill] sm:$0xff] %v6905_v35  ;;  %7974 = vst [vmem:[#allocation92_spill] sm:$0xff] %v6921_v12  ;;  %vm7981_vm0 = vcmp.lt.s32.totalorder %v6871_v10, 0  ;;  %v7982_v14 = vmov 0  ;;  %v6945_v1 = vadd.s32 18, %v6877_v20  ;;  %v6948_v5 = vadd.s32 18, %v6892_v25 }
 0x1e4   : > { %vm6927_vm14 = vmand %vm7976_vm13, %vm7975_vm12  ;;  %v3797_v18 = vmul.u32 18, %v3796_v39  ;;  %v6951_v33 = vadd.f32 %v5090_v40, %v2284_v23  ;;  %v7987_v60 = vsel %vm6045_vm9, %v6001_v62, %v5974_v47  ;;  %vm7990_vm13 = vcmp.ne.s32.totalorder %v6877_v20, 0  ;;  %v2563_v47 = vpop.f32.mrf.mxu0  ;;  %v2761_v62 = vpop.f32.mrf.mxu1  ;;  %v7996_v39 = vld [vmem:[#allocation14_spill] sm:$0xff]  ;;  %v7997_v40 = vld [vmem:[#allocation8_spill] sm:$0xff] }
 0x1e5   : > { %v7978_v26 = vsel %vm6927_vm14, 4294967295, %v7977_v26  ;;  %vm6940_vm6 = vmand %vm7981_vm0, %vm7980_vm8  ;;  %7984 = vst [vmem:[#allocation94_spill] sm:$0xff] %v6945_v1  ;;  %vm6958_vm0 = vcmp.lt.s32.totalorder %v7987_v60, 16  ;;  %vm7991_vm8 = vcmp.lt.s32.totalorder %v6877_v20, 0  ;;  %v7992_v38 = vmov 0  ;;  %v8042_v1 = vld [vmem:[#allocation49_spill] sm:$0xff] }
 0x1e6   : > { %7979 = vst [vmem:[#allocation93_spill] sm:$0xff] %v7978_v26  ;;  %v7983_v14 = vsel %vm6940_vm6, 4294967295, %v7982_v14  ;;  %7985 = vst [vmem:[#allocation95_spill] sm:$0xff] %v6948_v5  ;;  %vm3877_vm12 = vcmp.lt.s32.totalorder %v6905_v35, 0  ;;  %v6972_v11 = vmul.u32.u64.low 3817748708, %v6639_v54  ;;  %v6973_v23 = vmul.u32.u64.high 3817748708, %v6639_v54, %v6972_v11  ;;  %v5099_v32 = vpop.f32.mrf.mxu1  ;;  %v5133_v26 = vpop.f32.mrf.mxu0 }
 0x1e7   : > { %7986 = vst [vmem:[#allocation96_spill] sm:$0xff] %v6951_v33  ;;  %vm6966_vm5 = vmand %vm7991_vm8, %vm7990_vm13  ;;  %v7998_v33 = vsel %vm6066_vm10, %v7996_v39, %v7997_v40  ;;  %vm8001_vm13 = vcmp.lt.s32.totalorder %v6892_v25, 0  ;;  %v8002_v60 = vmov 0  ;;  %v3774_v39 = vshrl.u32 %v6919_v63, 4  ;;  %v8022_v25 = vld [vmem:[#allocation19_spill] sm:$0xff]  ;;  %v8052_v12 = vld [vmem:[#allocation30_spill] sm:$0xff] }
 0x1e8   : > { %v7993_v38 = vsel %vm6966_vm5, 4294967295, %v7992_v38  ;;  %vm6980_vm9 = vcmp.lt.s32.totalorder %v7998_v33, 16  ;;  %vm6996_vm8 = vmand %vm8001_vm13, %vm3843_vm7  ;;  %v7001_v33 = vsub.s32 %v6582_v44, %v3797_v18  ;;  %v2903_v40 = vadd.f32 %v5095_v42, %v6270_v59  ;;  %v8009_v44 = vld [vmem:[#allocation15_spill] sm:$0xff]  ;;  %v8010_v18 = vld [vmem:[#allocation10_spill] sm:$0xff]  ;;  %v2774_v11 = vpop.f32.mrf.mxu1 }
 0x1e9   : > { %7994 = vst [vmem:[#allocation97_spill] sm:$0xff] %v7993_v38  ;;  %v8003_v60 = vsel %vm6996_vm8, 4294967295, %v8002_v60  ;;  %v7005_v17 = vadd.f32 %v2563_v47, %v2282_v19  ;;  %v7012_v21 = vadd.s32 18, %v6905_v35  ;;  %v8011_v63 = vsel %vm6078_vm11, %v8009_v44, %v8010_v18  ;;  %v7047_v19 = vld [vmem:[%s7695_s3] ss:$0 sm:$0xff] }
 0x1ea   : > { %8004 = vst [vmem:[#allocation17_spill] sm:$0xff] %v8003_v60  ;;  %8005 = vst [vmem:[#allocation14_spill] sm:$0xff] %v7001_v33  ;;  %vm7020_vm10 = vcmp.lt.s32.totalorder %v8011_v63, 16  ;;  %vm8014_vm7 = vcmp.ne.s32.totalorder %v6905_v35, 0  ;;  %v8015_v42 = vmov 0  ;;  %vm3846_vm6 = vcmp.ne.s32.totalorder %v7001_v33, 0 }
 0x1eb   : > { %8006 = vst [vmem:[#allocation8_spill] sm:$0xff] %v7005_v17  ;;  %8007 = vst [vmem:[#allocation98_spill] sm:$0xff] %v7012_v21  ;;  %vm3882_vm11 = vcmp.lt.s32.totalorder %v7001_v33, 0  ;;  %v3775_v56 = vmul.u32 18, %v3774_v39  ;;  %v2901_v47 = vadd.f32 %v2758_v58, %v6288_v0  ;;  %v3229_v44 = vadd.f32 %v5133_v26, %v2903_v40  ;;  %v3084_v17 = vpop.f32.mrf.mxu0  ;;  %v8086_v21 = vld [vmem:[#allocation33_spill] sm:$0xff] }
 0x1ec   : > { %vm7032_vm13 = vmand %vm3877_vm12, %vm8014_vm7  ;;  %v3807_v63 = vshrl.u32 %v6973_v23, 4  ;;  %v7050_v20 = vadd.s32 18, %v7001_v33  ;;  %v7056_v58 = vmul.u32.u64.low 3817748708, %v6684_v30  ;;  %v7057_v26 = vmul.u32.u64.high 3817748708, %v6684_v30, %v7056_v58  ;;  %v8021_v23 = vld [vmem:[#allocation21_spill] sm:$0xff]  ;;  %v8033_v30 = vld [vmem:[#allocation20_spill] sm:$0xff] }
 0x1ed   : > { %v8016_v42 = vsel %vm7032_vm13, 4294967295, %v8015_v42  ;;  %v7053_v0 = vsub.s32 %v6622_v28, %v3775_v56  ;;  %v2904_v39 = vadd.f32 %v5096_v31, %v6321_v22  ;;  %v3266_v40 = vmul.f32 %v8021_v23, %v3229_v44  ;;  %vm7078_vm7 = vmand %vm3882_vm11, %vm3846_vm6  ;;  %v5134_v43 = vpop.f32.mrf.mxu0  ;;  %v8030_v31 = vld [vmem:[#allocation43_spill] sm:$0xff] }
 0x1ee   : > { %8017 = vst [vmem:[#allocation18_spill] sm:$0xff] %v8016_v42  ;;  %8018 = vst [vmem:[#allocation15_spill] sm:$0xff] %v7050_v20  ;;  %v3227_v18 = vadd.f32 %v3084_v17, %v2901_v47  ;;  %v8023_v5 = vsel %vm6154_vm2, %v6118_v27, %v8022_v25  ;;  %v8026_v22 = vmov 0  ;;  %v5100_v27 = vpop.f32.mrf.mxu1  ;;  %v3808_v25 = vmul.u32 18, %v3807_v63  ;;  %v8032_v28 = vld [vmem:[#allocation23_spill] sm:$0xff]  ;;  %v8040_v63 = vld [vmem:[#allocation46_spill] sm:$0xff] }
 0x1ef   : > { %8019 = vst [vmem:[#allocation10_spill] sm:$0xff] %v7053_v0  ;;  %8020 = vst [vmem:[#allocation99_spill] sm:$0xff] %v7057_v26  ;;  %vm7066_vm12 = vcmp.lt.s32.totalorder %v8023_v5, 16  ;;  %v8027_v22 = vsel %vm7078_vm7, 4294967295, %v8026_v22  ;;  %vm3844_vm2 = vcmp.ne.s32.totalorder %v7053_v0, 0  ;;  %vm3880_vm8 = vcmp.lt.s32.totalorder %v7053_v0, 0 }
 0x1f0   : > { %8028 = vst [vmem:[#allocation21_spill] sm:$0xff] %v8027_v22  ;;  %v7090_v17 = vadd.s32 18, %v7053_v0  ;;  %v2902_v5 = vadd.f32 %v2761_v62, %v8030_v31  ;;  %v3309_v56 = vadd.f32 %v7047_v19, %v3266_v40  ;;  %v3264_v47 = vmul.f32 %v8021_v23, %v3227_v18  ;;  %vm7104_vm11 = vmand %vm3880_vm8, %vm3844_vm2  ;;  %v8041_v31 = vld [vmem:[#allocation47_spill] sm:$0xff]  ;;  %v8050_v0 = vld [vmem:[#allocation34_spill] sm:$0xff] }
 0x1f1   : > { %v3230_v44 = vadd.f32 %v5134_v43, %v2904_v39  ;;  %v8034_v35 = vsel %vm6166_vm3, %v8032_v28, %v8033_v30  ;;  %v8037_v42 = vmov 0  ;;  %v2907_v62 = vadd.f32 %v5099_v32, %v8040_v63  ;;  %v2777_v39 = vpop.f32.mrf.mxu1  ;;  %v3087_v43 = vpop.f32.mrf.mxu0  ;;  %v8044_v30 = vld [vmem:[#allocation24_spill] sm:$0xff]  ;;  %v8065_v33 = vld [vmem:[#allocation59_spill] sm:$0xff] }
 0x1f2   : > { %8029 = vst [vmem:[#allocation19_spill] sm:$0xff] %v7090_v17  ;;  %vm7100_vm6 = vcmp.lt.s32.totalorder %v8034_v35, 16  ;;  %v8038_v42 = vsel %vm7104_vm11, 4294967295, %v8037_v42  ;;  %v2905_v40 = vadd.f32 %v2774_v11, %v8041_v31  ;;  %v2908_v18 = vadd.f32 %v5100_v27, %v8042_v1  ;;  %v8045_v35 = vld [vmem:[#allocation22_spill] sm:$0xff]  ;;  %3345 = vst [vmem:[%s7085_s29 + $0x10] sm:$0xff] %v3309_v56  ;;  %v8049_v27 = vld [vmem:[#allocation52_spill] sm:$0xff] }
 0x1f3   : > { %8039 = vst [vmem:[#allocation43_spill] sm:$0xff] %v8038_v42  ;;  %v8046_v28 = vsel %vm6184_vm4, %v8044_v30, %v8045_v35  ;;  %v3307_v1 = vadd.f32 %v7047_v19, %v3264_v47  ;;  %v3267_v11 = vmul.f32 %v8021_v23, %v3230_v44  ;;  %v7132_v63 = vsub.s32 %v6639_v54, %v3808_v25  ;;  %v5103_v35 = vpop.f32.mrf.mxu1  ;;  %v5137_v47 = vpop.f32.mrf.mxu0 }
 0x1f4   : > { %vm7116_vm3 = vcmp.lt.s32.totalorder %v8046_v28, 16  ;;  %v4102_v31 = vsel %vm6958_vm0, %v3309_v56, -inf  ;;  %v4179_v58 = vsel %vm6958_vm0, %v3309_v56, inf  ;;  %v3228_v30 = vadd.f32 %v3087_v43, %v2902_v5  ;;  %v8053_v5 = vld [vmem:[#allocation26_spill] sm:$0xff] }
 0x1f5   : > { %3343 = vst [vmem:[%s7085_s29] sm:$0xff] %v3307_v1  ;;  %v4100_v28 = vsel %vm6980_vm9, %v3307_v1, -inf  ;;  %v4177_v54 = vsel %vm6980_vm9, %v3307_v1, inf  ;;  %v3310_v25 = vadd.f32 %v7047_v19, %v3267_v11  ;;  %v2906_v32 = vadd.f32 %v2777_v39, %v8049_v27  ;;  %v2790_v45 = vpop.f32.mrf.mxu1  ;;  %v3100_v1 = vpop.f32.mrf.mxu0  ;;  %v8057_v11 = vld [vmem:[#allocation56_spill] sm:$0xff] }
 0x1f6   : > { %vm8051_vm4 = vnez %v8050_v0  ;;  %v4138_v44 = vmax.f32 %v4102_v31, %v4100_v28  ;;  %v4215_v26 = vmin.f32 %v4179_v58, %v4177_v54  ;;  %v3265_v17 = vmul.f32 %v8021_v23, %v3228_v30  ;;  %v8060_v31 = vld [vmem:[#allocation32_spill] sm:$0xff] }
 0x1f7   : > { %v8054_v56 = vsel %vm8051_vm4, %v8052_v12, %v8053_v5  ;;  %v3233_v42 = vadd.f32 %v5137_v47, %v2907_v62  ;;  %3346 = vst [vmem:[%s7085_s29 + $0x18] sm:$0xff] %v3310_v25  ;;  %v4103_v39 = vsel %vm7020_vm10, %v3310_v25, -inf  ;;  %v4180_v0 = vsel %vm7020_vm10, %v3310_v25, inf  ;;  %v8058_v5 = vld [vmem:[#allocation36_spill] sm:$0xff]  ;;  %v5138_v25 = vpop.f32.mrf.mxu0 }
 0x1f8   : > { %vm7151_vm0 = vcmp.lt.s32.totalorder %v8054_v56, 16  ;;  %v2911_v27 = vadd.f32 %v5103_v35, %v8057_v11  ;;  %v3231_v12 = vadd.f32 %v3100_v1, %v2905_v40  ;;  %vm8059_vm9 = vnez %v8058_v5  ;;  %v8061_v58 = vld [vmem:[#allocation28_spill] sm:$0xff]  ;;  %v5104_v56 = vpop.f32.mrf.mxu1 }
 0x1f9   : > { %v8062_v28 = vsel %vm8059_vm9, %v8060_v31, %v8061_v58  ;;  %v4136_v30 = vmax.f32 %v4103_v39, %v4138_v44  ;;  %v4213_v47 = vmin.f32 %v4180_v0, %v4215_v26  ;;  %v3308_v54 = vadd.f32 %v7047_v19, %v3265_v17  ;;  %v8066_v1 = vld [vmem:[#allocation60_spill] sm:$0xff]  ;;  %v8067_v31 = vld [vmem:[#allocation37_spill] sm:$0xff]  ;;  %v8069_v58 = vld [vmem:[#allocation35_spill] sm:$0xff] }
 0x1fa   : > { %vm7167_vm8 = vcmp.lt.s32.totalorder %v8062_v28, 16  ;;  %v3270_v59 = vmul.f32 %v8021_v23, %v3233_v42  ;;  %v2909_v35 = vadd.f32 %v2790_v45, %v8065_v33  ;;  %v3268_v40 = vmul.f32 %v8021_v23, %v3231_v12  ;;  %v8070_v28 = vld [vmem:[#allocation29_spill] sm:$0xff]  ;;  %v2793_v45 = vpop.f32.mrf.mxu1  ;;  %v8074_v39 = vld [vmem:[#allocation39_spill] sm:$0xff]  ;;  %v8076_v0 = vld [vmem:[#allocation38_spill] sm:$0xff] }
 0x1fb   : > { %v2912_v11 = vadd.f32 %v5104_v56, %v8066_v1  ;;  %v3234_v5 = vadd.f32 %v5138_v25, %v2908_v18  ;;  %vm8068_vm10 = vnez %v8067_v31  ;;  %3344 = vst [vmem:[%s7085_s29 + $0x8] sm:$0xff] %v3308_v54  ;;  %v4101_v42 = vsel %vm7066_vm12, %v3308_v54, -inf  ;;  %v3103_v18 = vpop.f32.mrf.mxu0  ;;  %v8077_v12 = vld [vmem:[#allocation31_spill] sm:$0xff]  ;;  %v8118_v26 = vld [vmem:[#allocation54_spill] sm:$0xff] }
 0x1fc   : > { %v8071_v44 = vsel %vm8068_vm10, %v8069_v58, %v8070_v28  ;;  %v4178_v33 = vsel %vm7066_vm12, %v3308_v54, inf  ;;  %v3313_v17 = vadd.f32 %v7047_v19, %v3270_v59  ;;  %vm8075_vm4 = vnez %v8074_v39 }
 0x1fd   : > { %vm7181_vm2 = vcmp.lt.s32.totalorder %v8071_v44, 16  ;;  %v8078_v56 = vsel %vm8075_vm4, %v8076_v0, %v8077_v12  ;;  %v7201_v1 = vadd.s32 18, %v7132_v63  ;;  %v4139_v31 = vmax.f32 %v4101_v42, %v4136_v30  ;;  %v8082_v44 = vld [vmem:[#allocation63_spill] sm:$0xff]  ;;  %v5107_v12 = vpop.f32.mrf.mxu1 }
 0x1fe   : > { %vm7196_vm9 = vcmp.lt.s32.totalorder %v8078_v56, 16  ;;  %v4216_v60 = vmin.f32 %v4178_v33, %v4213_v47  ;;  %v3311_v54 = vadd.f32 %v7047_v19, %v3268_v40  ;;  %v3271_v59 = vmul.f32 %v8021_v23, %v3234_v5  ;;  %3349 = vst [vmem:[%s7085_s29 + $0x30] sm:$0xff] %v3313_v17  ;;  %v5141_v56 = vpop.f32.mrf.mxu0  ;;  %v8083_v40 = vld [vmem:[#allocation41_spill] sm:$0xff]  ;;  %v8085_v5 = vld [vmem:[#allocation40_spill] sm:$0xff] }
 0x1ff   : > { %8081 = vst [vmem:[#allocation25_spill] sm:$0xff] %v7201_v1  ;;  %v4106_v58 = vsel %vm7100_vm6, %v3313_v17, -inf  ;;  %v4183_v28 = vsel %vm7100_vm6, %v3313_v17, inf  ;;  %v2910_v39 = vadd.f32 %v2793_v45, %v8082_v44  ;;  %v3232_v0 = vadd.f32 %v3103_v18, %v2906_v32  ;;  %v8090_v45 = vld [vmem:[#allocation65_spill] sm:$0xff] }
 0x200   : > { %v4137_v20 = vmax.f32 %v4106_v58, %v4139_v31  ;;  %v4214_v1 = vmin.f32 %v4183_v28, %v4216_v60  ;;  %3347 = vst [vmem:[%s7085_s29 + $0x20] sm:$0xff] %v3311_v54  ;;  %v4104_v30 = vsel %vm7116_vm3, %v3311_v54, -inf  ;;  %v4181_v47 = vsel %vm7116_vm3, %v3311_v54, inf  ;;  %v2806_v60 = vpop.f32.mrf.mxu1  ;;  %v3116_v58 = vpop.f32.mrf.mxu0  ;;  %v8091_v28 = vld [vmem:[#allocation4_spill] sm:$0xff] }
 0x201   : > { %vm8084_vm12 = vnez %v8083_v40  ;;  %v3314_v32 = vadd.f32 %v7047_v19, %v3271_v59  ;;  %v3269_v17 = vmul.f32 %v8021_v23, %v3232_v0  ;;  %v2915_v18 = vadd.f32 %v5107_v12, %v8090_v45 }
 0x202   : > { %v8087_v42 = vsel %vm8084_vm12, %v8085_v5, %v8086_v21  ;;  %v3237_v31 = vadd.f32 %v5141_v56, %v2911_v27  ;;  %v4142_v38 = vmax.f32 %v4104_v30, %v4137_v20  ;;  %v4219_v54 = vmin.f32 %v4181_v47, %v4214_v1  ;;  %v8092_v5 = vld [vmem:[#allocation51_spill] sm:$0xff]  ;;  %v8094_v21 = vld [vmem:[#allocation48_spill] sm:$0xff]  ;;  %v5108_v0 = vpop.f32.mrf.mxu1  ;;  %v5142_v12 = vpop.f32.mrf.mxu0  ;;  %v8099_v47 = vld [vmem:[#allocation5_spill] sm:$0xff] }
 0x203   : > { %vm7221_vm6 = vcmp.lt.s32.totalorder %v8087_v42, 16  ;;  %v2913_v44 = vadd.f32 %v2806_v60, %v8091_v28  ;;  %v3235_v40 = vadd.f32 %v3116_v58, %v2909_v35  ;;  %vm8093_vm3 = vnez %v8092_v5  ;;  %v8095_v42 = vld [vmem:[#allocation42_spill] sm:$0xff]  ;;  %3350 = vst [vmem:[%s7085_s29 + $0x38] sm:$0xff] %v3314_v32  ;;  %v8100_v60 = vld [vmem:[#allocation53_spill] sm:$0xff]  ;;  %v8103_v28 = vld [vmem:[#allocation44_spill] sm:$0xff] }
 0x204   : > { %v8096_v22 = vsel %vm8093_vm3, %v8094_v21, %v8095_v42  ;;  %v4107_v27 = vsel %vm7151_vm0, %v3314_v32, -inf  ;;  %v4184_v20 = vsel %vm7151_vm0, %v3314_v32, inf  ;;  %v3312_v1 = vadd.f32 %v7047_v19, %v3269_v17  ;;  %v8102_v58 = vld [vmem:[#allocation50_spill] sm:$0xff]  ;;  %v8107_v21 = vld [vmem:[#allocation57_spill] sm:$0xff]  ;;  %v8109_v42 = vld [vmem:[#allocation55_spill] sm:$0xff] }
 0x205   : > { %vm7234_vm10 = vcmp.lt.s32.totalorder %v8096_v22, 16  ;;  %v3274_v35 = vmul.f32 %v8021_v23, %v3237_v31  ;;  %v4140_v56 = vmax.f32 %v4107_v27, %v4142_v38  ;;  %v4217_v30 = vmin.f32 %v4184_v20, %v4219_v54  ;;  %v2809_v54 = vpop.f32.mrf.mxu1  ;;  %v8110_v27 = vld [vmem:[#allocation45_spill] sm:$0xff] }
 0x206   : > { %v3272_v22 = vmul.f32 %v8021_v23, %v3235_v40  ;;  %v2916_v45 = vadd.f32 %v5108_v0, %v8099_v47  ;;  %vm8101_vm4 = vnez %v8100_v60  ;;  %3348 = vst [vmem:[%s7085_s29 + $0x28] sm:$0xff] %v3312_v1  ;;  %v4105_v32 = vsel %vm7167_vm8, %v3312_v1, -inf  ;;  %v3119_v40 = vpop.f32.mrf.mxu0 }
 0x207   : > { %v8104_v5 = vsel %vm8101_vm4, %v8102_v58, %v8103_v28  ;;  %v4182_v17 = vsel %vm7167_vm8, %v3312_v1, inf  ;;  %v3317_v31 = vadd.f32 %v7047_v19, %v3274_v35  ;;  %v3238_v38 = vadd.f32 %v5142_v12, %v2912_v11  ;;  %v8114_v1 = vld [vmem:[#allocation6_spill] sm:$0xff] }
 0x208   : > { %vm7252_vm12 = vcmp.lt.s32.totalorder %v8104_v5, 16  ;;  %vm8108_vm0 = vnez %v8107_v21  ;;  %v4143_v47 = vmax.f32 %v4105_v32, %v4140_v56  ;;  %v4220_v60 = vmin.f32 %v4182_v17, %v4217_v30  ;;  %v5111_v5 = vpop.f32.mrf.mxu1  ;;  %v5145_v21 = vpop.f32.mrf.mxu0  ;;  %v8117_v32 = vld [vmem:[#allocation61_spill] sm:$0xff] }
 0x209   : > { %v8111_v20 = vsel %vm8108_vm0, %v8109_v42, %v8110_v27  ;;  %v3315_v62 = vadd.f32 %v7047_v19, %v3272_v22  ;;  %v2914_v58 = vadd.f32 %v2809_v54, %v8114_v1  ;;  %3353 = vst [vmem:[%s7085_s29 + $0x50] sm:$0xff] %v3317_v31  ;;  %v4110_v11 = vsel %vm7181_vm2, %v3317_v31, -inf  ;;  %v8115_v22 = vld [vmem:[#allocation62_spill] sm:$0xff]  ;;  %v8122_v54 = vld [vmem:[#allocation7_spill] sm:$0xff]  ;;  %v8123_v1 = vld [vmem:[#allocation9_spill] sm:$0xff] }
 0x20a   : > { %vm7267_vm3 = vcmp.lt.s32.totalorder %v8111_v20, 16  ;;  %v4187_v35 = vsel %vm7181_vm2, %v3317_v31, inf  ;;  %v3275_v12 = vmul.f32 %v8021_v23, %v3238_v38  ;;  %v3236_v28 = vadd.f32 %v3119_v40, %v2910_v39 }
 0x20b   : > { %v4141_v42 = vmax.f32 %v4110_v11, %v4143_v47  ;;  %v4218_v27 = vmin.f32 %v4187_v35, %v4220_v60  ;;  %3351 = vst [vmem:[%s7085_s29 + $0x40] sm:$0xff] %v3315_v62  ;;  %v4108_v56 = vsel %vm7196_vm9, %v3315_v62, -inf  ;;  %v4185_v30 = vsel %vm7196_vm9, %v3315_v62, inf  ;;  %v2822_v47 = vpop.f32.mrf.mxu1  ;;  %v3132_v60 = vpop.f32.mrf.mxu0 }
 0x20c   : > { %vm8116_vm8 = vnez %v8115_v22  ;;  %v3318_v39 = vadd.f32 %v7047_v19, %v3275_v12  ;;  %v3273_v38 = vmul.f32 %v8021_v23, %v3236_v28  ;;  %v2919_v40 = vadd.f32 %v5111_v5, %v8122_v54  ;;  %v8124_v22 = vld [vmem:[#allocation66_spill] sm:$0xff]  ;;  %v8131_v54 = vld [vmem:[#allocation11_spill] sm:$0xff] }
 0x20d   : > { %v8119_v17 = vsel %vm8116_vm8, %v8117_v32, %v8118_v26  ;;  %v3241_v20 = vadd.f32 %v5145_v21, %v2915_v18  ;;  %v4146_v25 = vmax.f32 %v4108_v56, %v4141_v42  ;;  %v4223_v62 = vmin.f32 %v4185_v30, %v4218_v27  ;;  %v8126_v32 = vld [vmem:[#allocation64_spill] sm:$0xff]  ;;  %v8127_v26 = vld [vmem:[#allocation58_spill] sm:$0xff]  ;;  %v5112_v21 = vpop.f32.mrf.mxu1  ;;  %v5146_v42 = vpop.f32.mrf.mxu0 }
 0x20e   : > { %vm7289_vm2 = vcmp.lt.s32.totalorder %v8119_v17, 16  ;;  %v2917_v11 = vadd.f32 %v2822_v47, %v8123_v1  ;;  %v3239_v35 = vadd.f32 %v3132_v60, %v2913_v44  ;;  %vm8125_vm9 = vnez %v8124_v22  ;;  %3354 = vst [vmem:[%s7085_s29 + $0x58] sm:$0xff] %v3318_v39  ;;  %v8132_v60 = vld [vmem:[#allocation71_spill] sm:$0xff]  ;;  %v8134_v1 = vld [vmem:[#allocation69_spill] sm:$0xff] }
 0x20f   : > { %v8128_v17 = vsel %vm8125_vm9, %v8126_v32, %v8127_v26  ;;  %v4111_v18 = vsel %vm7221_vm6, %v3318_v39, -inf  ;;  %v4188_v28 = vsel %vm7221_vm6, %v3318_v39, inf  ;;  %v3316_v5 = vadd.f32 %v7047_v19, %v3273_v38  ;;  %v8135_v22 = vld [vmem:[#allocation67_spill] sm:$0xff]  ;;  %v8140_v26 = vld [vmem:[#allocation68_spill] sm:$0xff] }
 0x210   : > { %vm7302_vm4 = vcmp.lt.s32.totalorder %v8128_v17, 16  ;;  %v3278_v44 = vmul.f32 %v8021_v23, %v3241_v20  ;;  %v4144_v27 = vmax.f32 %v4111_v18, %v4146_v25  ;;  %v4221_v56 = vmin.f32 %v4188_v28, %v4223_v62  ;;  %v2825_v62 = vpop.f32.mrf.mxu1 }
 0x211   : > { %v3276_v30 = vmul.f32 %v8021_v23, %v3239_v35  ;;  %v2920_v47 = vadd.f32 %v5112_v21, %v8131_v54  ;;  %vm8133_vm0 = vnez %v8132_v60  ;;  %3352 = vst [vmem:[%s7085_s29 + $0x48] sm:$0xff] %v3316_v5  ;;  %v4109_v39 = vsel %vm7234_vm10, %v3316_v5, -inf  ;;  %v3135_v35 = vpop.f32.mrf.mxu0 }
 0x212   : > { %v8136_v32 = vsel %vm8133_vm0, %v8134_v1, %v8135_v22  ;;  %v4186_v38 = vsel %vm7234_vm10, %v3316_v5, inf  ;;  %v3321_v20 = vadd.f32 %v7047_v19, %v3278_v44  ;;  %v3242_v25 = vadd.f32 %v5146_v42, %v2916_v45  ;;  %v8144_v5 = vld [vmem:[#allocation12_spill] sm:$0xff]  ;;  %v5115_v42 = vpop.f32.mrf.mxu1 }
 0x213   : > { %vm7320_vm8 = vcmp.lt.s32.totalorder %v8136_v32, 16  ;;  %vm8139_vm6 = vnez %v7913_v3  ;;  %v4147_v28 = vmax.f32 %v4109_v39, %v4144_v27  ;;  %v4224_v21 = vmin.f32 %v4186_v38, %v4221_v56  ;;  %v5149_v60 = vpop.f32.mrf.mxu0  ;;  %v8150_v38 = vld [vmem:[#allocation13_spill] sm:$0xff]  ;;  %v8214_v32 = vld [vmem:[#allocation88_spill] sm:$0xff] }
 0x214   : > { %v8141_v17 = vsel %vm8139_vm6, %v6636_v13, %v8140_v26  ;;  %v3319_v59 = vadd.f32 %v7047_v19, %v3276_v30  ;;  %v2918_v54 = vadd.f32 %v2825_v62, %v8144_v5  ;;  %3357 = vst [vmem:[%s7085_s29 + $0x70] sm:$0xff] %v3321_v20  ;;  %v4114_v45 = vsel %vm7252_vm12, %v3321_v20, -inf  ;;  %v8145_v30 = vld [vmem:[#allocation72_spill] sm:$0xff]  ;;  %v2838_v62 = vpop.f32.mrf.mxu1 }
 0x215   : > { %vm7335_vm9 = vcmp.lt.s32.totalorder %v8141_v17, 16  ;;  %v4191_v3 = vsel %vm7252_vm12, %v3321_v20, inf  ;;  %v3279_v44 = vmul.f32 %v8021_v23, %v3242_v25  ;;  %v3240_v13 = vadd.f32 %v3135_v35, %v2914_v58  ;;  %v3148_v35 = vpop.f32.mrf.mxu0 }
 0x216   : > { %v4145_v1 = vmax.f32 %v4114_v45, %v4147_v28  ;;  %v4222_v22 = vmin.f32 %v4191_v3, %v4224_v21  ;;  %3355 = vst [vmem:[%s7085_s29 + $0x60] sm:$0xff] %v3319_v59  ;;  %v4112_v27 = vsel %vm7267_vm3, %v3319_v59, -inf  ;;  %v4189_v56 = vsel %vm7267_vm3, %v3319_v59, inf }
 0x217   : > { %vm8146_vm10 = vnez %v8145_v30  ;;  %v3322_v58 = vadd.f32 %v7047_v19, %v3279_v44  ;;  %v3277_v39 = vmul.f32 %v8021_v23, %v3240_v13  ;;  %v2923_v20 = vadd.f32 %v5115_v42, %v8150_v38  ;;  %v8157_v42 = vld [vmem:[#allocation16_spill] sm:$0xff] }
 0x218   : > { %v8147_v43 = vsel %vm8146_vm10, %v6650_v16, %v6571_v29  ;;  %v3245_v25 = vadd.f32 %v5149_v60, %v2919_v40  ;;  %v4150_v0 = vmax.f32 %v4112_v27, %v4145_v1  ;;  %v4227_v26 = vmin.f32 %v4189_v56, %v4222_v22  ;;  %v8152_v29 = vld [vmem:[#allocation73_spill] sm:$0xff]  ;;  %v8153_v16 = vld [vmem:[#allocation70_spill] sm:$0xff]  ;;  %v8159_v22 = vld [vmem:[#allocation76_spill] sm:$0xff] }
 0x219   : > { %vm7357_vm12 = vcmp.lt.s32.totalorder %v8147_v43, 16  ;;  %v2921_v17 = vadd.f32 %v2838_v62, %v6698_v9  ;;  %v3243_v28 = vadd.f32 %v3148_v35, %v2917_v11  ;;  %vm8151_vm3 = vnez %v7925_v52  ;;  %3358 = vst [vmem:[%s7085_s29 + $0x78] sm:$0xff] %v3322_v58  ;;  %v5116_v11 = vpop.f32.mrf.mxu1  ;;  %v5150_v52 = vpop.f32.mrf.mxu0  ;;  %v8160_v27 = vld [vmem:[#allocation74_spill] sm:$0xff] }
 0x21a   : > { %v8154_v21 = vsel %vm8151_vm3, %v8152_v29, %v8153_v16  ;;  %v4115_v40 = vsel %vm7289_vm2, %v3322_v58, -inf  ;;  %v4192_v5 = vsel %vm7289_vm2, %v3322_v58, inf  ;;  %v3320_v45 = vadd.f32 %v7047_v19, %v3277_v39 }
 0x21b   : > { %vm7370_vm0 = vcmp.lt.s32.totalorder %v8154_v21, 16  ;;  %v3282_v9 = vmul.f32 %v8021_v23, %v3245_v25  ;;  %v4148_v3 = vmax.f32 %v4115_v40, %v4150_v0  ;;  %v4225_v44 = vmin.f32 %v4192_v5, %v4227_v26  ;;  %v2841_v38 = vpop.f32.mrf.mxu1  ;;  %v3151_v25 = vpop.f32.mrf.mxu0 }
 0x21c   : > { %v3280_v13 = vmul.f32 %v8021_v23, %v3243_v28  ;;  %v2924_v60 = vadd.f32 %v5116_v11, %v8157_v42  ;;  %v8161_v56 = vsel %vm6758_vm15, %v8159_v22, %v8160_v27  ;;  %3356 = vst [vmem:[%s7085_s29 + $0x68] sm:$0xff] %v3320_v45  ;;  %v4113_v30 = vsel %vm7302_vm4, %v3320_v45, -inf  ;;  %v8168_v28 = vld [vmem:[#allocation77_spill] sm:$0xff]  ;;  %v8174_v27 = vld [vmem:[#allocation79_spill] sm:$0xff] }
 0x21d   : > { %vm7388_vm6 = vcmp.lt.s32.totalorder %v8161_v56, 16  ;;  %v4190_v43 = vsel %vm7302_vm4, %v3320_v45, inf  ;;  %v3325_v58 = vadd.f32 %v7047_v19, %v3282_v9  ;;  %v3246_v39 = vadd.f32 %v5150_v52, %v2920_v47  ;;  %v5153_v21 = vpop.f32.mrf.mxu0 }
 0x21e   : > { %vm8164_vm2 = vnez %v7944_v48  ;;  %v4151_v0 = vmax.f32 %v4113_v30, %v4148_v3  ;;  %v4228_v26 = vmin.f32 %v4190_v43, %v4225_v44  ;;  %v3323_v12 = vadd.f32 %v7047_v19, %v3280_v13  ;;  %v8173_v3 = vld [vmem:[#allocation78_spill] sm:$0xff] }
 0x21f   : > { %v8165_v62 = vsel %vm8164_vm2, %v6728_v4, %v6695_v7  ;;  %v2922_v29 = vadd.f32 %v2841_v38, %v8168_v28  ;;  %3361 = vst [vmem:[%s7085_s29 + $0x90] sm:$0xff] %v3325_v58  ;;  %v4118_v47 = vsel %vm7320_vm8, %v3325_v58, -inf  ;;  %v4195_v48 = vsel %vm7320_vm8, %v3325_v58, inf  ;;  %v5119_v4 = vpop.f32.mrf.mxu1  ;;  %v3164_v1 = vpop.f32.mrf.mxu0 }
 0x220   : > { %vm7403_vm15 = vcmp.lt.s32.totalorder %v8165_v62, 16  ;;  %v3283_v16 = vmul.f32 %v8021_v23, %v3246_v39  ;;  %v3244_v7 = vadd.f32 %v3151_v25, %v2918_v54  ;;  %v4149_v40 = vmax.f32 %v4118_v47, %v4151_v0  ;;  %3359 = vst [vmem:[%s7085_s29 + $0x80] sm:$0xff] %v3323_v12 }
 0x221   : > { %v4226_v5 = vmin.f32 %v4195_v48, %v4228_v26  ;;  %v4116_v45 = vsel %vm7335_vm9, %v3323_v12, -inf  ;;  %v4193_v9 = vsel %vm7335_vm9, %v3323_v12, inf  ;;  %vm8169_vm4 = vnez %v7949_v41  ;;  %v2854_v42 = vpop.f32.mrf.mxu1 }
 0x222   : > { %v8170_v33 = vsel %vm8169_vm4, %v6740_v46, %v6706_v61  ;;  %v3326_v54 = vadd.f32 %v7047_v19, %v3283_v16  ;;  %v3281_v52 = vmul.f32 %v8021_v23, %v3244_v7  ;;  %v2927_v44 = vadd.f32 %v5119_v4, %v8173_v3  ;;  %v8188_v7 = vld [vmem:[#allocation82_spill] sm:$0xff] }
 0x223   : > { %vm7425_vm8 = vcmp.lt.s32.totalorder %v8170_v33, 16  ;;  %v3249_v13 = vadd.f32 %v5153_v21, %v2923_v20  ;;  %v4154_v18 = vmax.f32 %v4116_v45, %v4149_v40  ;;  %v4231_v22 = vmin.f32 %v4193_v9, %v4226_v5  ;;  %v5120_v58 = vpop.f32.mrf.mxu1 }
 0x224   : > { %v2925_v41 = vadd.f32 %v2854_v42, %v8174_v27  ;;  %v3247_v56 = vadd.f32 %v3164_v1, %v2921_v17  ;;  %vm8175_vm9 = vnez %v7953_v8  ;;  %3362 = vst [vmem:[%s7085_s29 + $0x98] sm:$0xff] %v3326_v54  ;;  %v4119_v20 = vsel %vm7357_vm12, %v3326_v54, -inf  ;;  %v5154_v8 = vpop.f32.mrf.mxu0 }
 0x225   : > { %v8176_v61 = vsel %vm8175_vm9, %v6763_v57, %v6721_v53  ;;  %v4196_v30 = vsel %vm7357_vm12, %v3326_v54, inf  ;;  %v3324_v43 = vadd.f32 %v7047_v19, %v3281_v52  ;;  %v3286_v17 = vmul.f32 %v8021_v23, %v3249_v13  ;;  %v8179_v57 = vld [vmem:[#allocation81_spill] sm:$0xff]  ;;  %v2857_v47 = vpop.f32.mrf.mxu1 }
 0x226   : > { %vm7438_vm10 = vcmp.lt.s32.totalorder %v8176_v61, 16  ;;  %v4152_v39 = vmax.f32 %v4119_v20, %v4154_v18  ;;  %v4229_v38 = vmin.f32 %v4196_v30, %v4231_v22  ;;  %v3284_v53 = vmul.f32 %v8021_v23, %v3247_v56  ;;  %v8192_v22 = vld [vmem:[#allocation83_spill] sm:$0xff]  ;;  %v8219_v56 = vld [vmem:[#allocation92_spill] sm:$0xff] }
 0x227   : > { %v2928_v25 = vadd.f32 %v5120_v58, %v8179_v57  ;;  %vm8180_vm3 = vnez %v7958_v37  ;;  %3360 = vst [vmem:[%s7085_s29 + $0x88] sm:$0xff] %v3324_v43  ;;  %v4117_v0 = vsel %vm7370_vm0, %v3324_v43, -inf  ;;  %v4194_v26 = vsel %vm7370_vm0, %v3324_v43, inf  ;;  %v3167_v37 = vpop.f32.mrf.mxu0 }
 0x228   : > { %v8181_v62 = vsel %vm8180_vm3, %v6799_v6, %v6733_v49  ;;  %v3329_v12 = vadd.f32 %v7047_v19, %v3286_v17  ;;  %v3250_v28 = vadd.f32 %v5154_v8, %v2924_v60  ;;  %vm8184_vm12 = vnez %v7960_v51 }
 0x229   : > { %vm7456_vm2 = vcmp.lt.s32.totalorder %v8181_v62, 16  ;;  %v8185_v49 = vsel %vm8184_vm12, %v6818_v24, %v6743_v55  ;;  %v4155_v48 = vmax.f32 %v4117_v0, %v4152_v39  ;;  %v4232_v16 = vmin.f32 %v4194_v26, %v4229_v38  ;;  %v5123_v55 = vpop.f32.mrf.mxu1  ;;  %v5157_v40 = vpop.f32.mrf.mxu0  ;;  %v8199_v38 = vld [vmem:[#allocation85_spill] sm:$0xff] }
 0x22a   : > { %vm7471_vm4 = vcmp.lt.s32.totalorder %v8185_v49, 16  ;;  %v3327_v59 = vadd.f32 %v7047_v19, %v3284_v53  ;;  %v2926_v4 = vadd.f32 %v2857_v47, %v8188_v7  ;;  %3365 = vst [vmem:[%s7085_s29 + $0xb0] sm:$0xff] %v3329_v12  ;;  %v4122_v60 = vsel %vm7388_vm6, %v3329_v12, -inf }
 0x22b   : > { %v4199_v51 = vsel %vm7388_vm6, %v3329_v12, inf  ;;  %v3287_v21 = vmul.f32 %v8021_v23, %v3250_v28  ;;  %v3248_v24 = vadd.f32 %v3167_v37, %v2922_v29  ;;  %v4153_v5 = vmax.f32 %v4122_v60, %v4155_v48  ;;  %v2870_v42 = vpop.f32.mrf.mxu1  ;;  %v3180_v1 = vpop.f32.mrf.mxu0 }
 0x22c   : > { %v4230_v45 = vmin.f32 %v4199_v51, %v4232_v16  ;;  %3363 = vst [vmem:[%s7085_s29 + $0xa0] sm:$0xff] %v3327_v59  ;;  %v4120_v9 = vsel %vm7403_vm15, %v3327_v59, -inf  ;;  %v4197_v33 = vsel %vm7403_vm15, %v3327_v59, inf  ;;  %v8189_v31 = vsel %vm6911_vm1, %v6882_v34, %v6833_v50  ;;  %v8194_v50 = vld [vmem:[#allocation89_spill] sm:$0xff]  ;;  %v8195_v34 = vld [vmem:[#allocation84_spill] sm:$0xff]  ;;  %v8210_v59 = vld [vmem:[#allocation87_spill] sm:$0xff] }
 0x22d   : > { %vm7493_vm0 = vcmp.lt.s32.totalorder %v8189_v31, 16  ;;  %v3330_v29 = vadd.f32 %v7047_v19, %v3287_v21  ;;  %v3285_v52 = vmul.f32 %v8021_v23, %v3248_v24  ;;  %v2931_v3 = vadd.f32 %v5123_v55, %v6836_v36  ;;  %v5124_v43 = vpop.f32.mrf.mxu1  ;;  %v5158_v17 = vpop.f32.mrf.mxu0  ;;  %v8213_v31 = vld [vmem:[#allocation95_spill] sm:$0xff] }
 0x22e   : > { %v3253_v13 = vadd.f32 %v5157_v40, %v2927_v44  ;;  %v4158_v35 = vmax.f32 %v4120_v9, %v4153_v5  ;;  %v4235_v18 = vmin.f32 %v4197_v33, %v4230_v45  ;;  %v2929_v2 = vadd.f32 %v2870_v42, %v8192_v22  ;;  %v8211_v33 = vld [vmem:[#allocation17_spill] sm:$0xff]  ;;  %v8218_v42 = vld [vmem:[#allocation90_spill] sm:$0xff] }
 0x22f   : > { %v3251_v27 = vadd.f32 %v3180_v1, %v2925_v41  ;;  %v8196_v61 = vsel %vm6927_vm14, %v8194_v50, %v8195_v34  ;;  %3366 = vst [vmem:[%s7085_s29 + $0xb8] sm:$0xff] %v3330_v29  ;;  %v4123_v36 = vsel %vm7425_vm8, %v3330_v29, -inf  ;;  %v4200_v44 = vsel %vm7425_vm8, %v3330_v29, inf  ;;  %v2873_v28 = vpop.f32.mrf.mxu1 }
 0x230   : > { %vm7506_vm1 = vcmp.lt.s32.totalorder %v8196_v61, 16  ;;  %v3328_v30 = vadd.f32 %v7047_v19, %v3285_v52  ;;  %v3290_v41 = vmul.f32 %v8021_v23, %v3253_v13  ;;  %vm3847_vm14 = vcmp.ne.s32.totalorder %v7132_v63, 0 }
 0x231   : > { %vm3883_vm6 = vcmp.lt.s32.totalorder %v7132_v63, 0  ;;  %v4156_v58 = vmax.f32 %v4123_v36, %v4158_v35  ;;  %v4233_v8 = vmin.f32 %v4200_v44, %v4235_v18  ;;  %v3288_v39 = vmul.f32 %v8021_v23, %v3251_v27  ;;  %v5127_v24 = vpop.f32.mrf.mxu1  ;;  %v8221_v36 = vld [vmem:[#allocation98_spill] sm:$0xff]  ;;  %v8222_v44 = vld [vmem:[#allocation91_spill] sm:$0xff] }
 0x232   : > { %v2932_v53 = vadd.f32 %v5124_v43, %v8199_v38  ;;  %vm8200_vm15 = vnez %v7983_v14  ;;  %3364 = vst [vmem:[%s7085_s29 + $0xa8] sm:$0xff] %v3328_v30  ;;  %v4121_v62 = vsel %vm7438_vm10, %v3328_v30, -inf  ;;  %v4198_v0 = vsel %vm7438_vm10, %v3328_v30, inf  ;;  %v3183_v14 = vpop.f32.mrf.mxu0 }
 0x233   : > { %v8201_v11 = vsel %vm8200_vm15, %v6932_v15, %v6871_v10  ;;  %v3333_v26 = vadd.f32 %v7047_v19, %v3290_v41  ;;  %v3254_v12 = vadd.f32 %v5158_v17, %v2928_v25  ;;  %v8205_v10 = vld [vmem:[#allocation94_spill] sm:$0xff]  ;;  %v4159_v48 = vmax.f32 %v4121_v62, %v4156_v58  ;;  %v2886_v18 = vpop.f32.mrf.mxu1  ;;  %v8226_v62 = vld [vmem:[#allocation96_spill] sm:$0xff] }
 0x234   : > { %vm7526_vm8 = vcmp.lt.s32.totalorder %v8201_v11, 16  ;;  %v8206_v15 = vld [vmem:[#allocation86_spill] sm:$0xff]  ;;  %v4236_v16 = vmin.f32 %v4198_v0, %v4233_v8  ;;  %v3331_v46 = vadd.f32 %v7047_v19, %v3288_v39  ;;  %v2930_v7 = vadd.f32 %v2873_v28, %v8210_v59  ;;  %v5161_v55 = vpop.f32.mrf.mxu0  ;;  %v8234_v59 = vld [vmem:[#allocation19_spill] sm:$0xff] }
 0x235   : > { %v8207_v37 = vsel %vm6966_vm5, %v8205_v10, %v8206_v15  ;;  %3369 = vst [vmem:[%s7085_s29 + $0xd0] sm:$0xff] %v3333_v26  ;;  %v4126_v25 = vsel %vm7456_vm2, %v3333_v26, -inf  ;;  %v4203_v60 = vsel %vm7456_vm2, %v3333_v26, inf  ;;  %v3291_v51 = vmul.f32 %v8021_v23, %v3254_v12  ;;  %v5128_v58 = vpop.f32.mrf.mxu1  ;;  %v8228_v12 = vld [vmem:[#allocation15_spill] sm:$0xff]  ;;  %v8229_v28 = vld [vmem:[#allocation14_spill] sm:$0xff]  ;;  %vm7619_vm2 = vmand %vm3883_vm6, %vm3847_vm14 }
 0x236   : > { %vm7541_vm9 = vcmp.lt.s32.totalorder %v8207_v37, 16  ;;  %v3252_v21 = vadd.f32 %v3183_v14, %v2926_v4  ;;  %v4157_v40 = vmax.f32 %v4126_v25, %v4159_v48  ;;  %v4234_v5 = vmin.f32 %v4203_v60, %v4236_v16  ;;  %3367 = vst [vmem:[%s7085_s29 + $0xc0] sm:$0xff] %v3331_v46  ;;  %v3196_v22 = vpop.f32.mrf.mxu0  ;;  %v8235_v25 = vld [vmem:[#allocation10_spill] sm:$0xff] }
 0x237   : > { %v4124_v45 = vsel %vm7471_vm4, %v3331_v46, -inf  ;;  %v4201_v9 = vsel %vm7471_vm4, %v3331_v46, inf  ;;  %vm8212_vm5 = vnez %v8211_v33  ;;  %v3334_v4 = vadd.f32 %v7047_v19, %v3291_v51  ;;  %v2889_v48 = vpop.f32.mrf.mxu1 }
 0x238   : > { %v8215_v29 = vsel %vm8212_vm5, %v8213_v31, %v8214_v32  ;;  %v3289_v13 = vmul.f32 %v8021_v23, %v3252_v21  ;;  %v2935_v1 = vadd.f32 %v5127_v24, %v8218_v42  ;;  %v3257_v35 = vadd.f32 %v5161_v55, %v2931_v3  ;;  %v5162_v8 = vpop.f32.mrf.mxu0  ;;  %v8239_v55 = vld [vmem:[#allocation8_spill] sm:$0xff] }
 0x239   : > { %vm7563_vm10 = vcmp.lt.s32.totalorder %v8215_v29, 16  ;;  %v4162_v6 = vmax.f32 %v4124_v45, %v4157_v40  ;;  %v4239_v27 = vmin.f32 %v4201_v9, %v4234_v5  ;;  %v2933_v50 = vadd.f32 %v2886_v18, %v8219_v56  ;;  %3370 = vst [vmem:[%s7085_s29 + $0xd8] sm:$0xff] %v3334_v4 }
 0x23a   : > { %v3255_v34 = vadd.f32 %v3196_v22, %v2929_v2  ;;  %v8223_v30 = vsel %vm7032_vm13, %v8221_v36, %v8222_v44  ;;  %v4127_v3 = vsel %vm7493_vm0, %v3334_v4, -inf  ;;  %v4204_v43 = vsel %vm7493_vm0, %v3334_v4, inf  ;;  %v3199_v16 = vpop.f32.mrf.mxu0  ;;  %v8242_v22 = vld [vmem:[#allocation25_spill] sm:$0xff] }
 0x23b   : > { %vm7576_vm3 = vcmp.lt.s32.totalorder %v8223_v30, 16  ;;  %v3332_v17 = vadd.f32 %v7047_v19, %v3289_v13  ;;  %v3294_v2 = vmul.f32 %v8021_v23, %v3257_v35  ;;  %v4160_v39 = vmax.f32 %v4127_v3, %v4162_v6 }
 0x23c   : > { %v4237_v38 = vmin.f32 %v4204_v43, %v4239_v27  ;;  %v3292_v11 = vmul.f32 %v8021_v23, %v3255_v34  ;;  %v2936_v0 = vadd.f32 %v5128_v58, %v8226_v62  ;;  %v8230_v14 = vsel %vm7078_vm7, %v8228_v12, %v8229_v28  ;;  %v5165_v31 = vpop.f32.mrf.mxu0  ;;  %v8245_v58 = vld [vmem:[#allocation99_spill] sm:$0xff] }
 0x23d   : > { %vm7594_vm13 = vcmp.lt.s32.totalorder %v8230_v14, 16  ;;  %3368 = vst [vmem:[%s7085_s29 + $0xc8] sm:$0xff] %v3332_v17  ;;  %v4125_v47 = vsel %vm7506_vm1, %v3332_v17, -inf  ;;  %v4202_v10 = vsel %vm7506_vm1, %v3332_v17, inf  ;;  %v3337_v15 = vadd.f32 %v7047_v19, %v3294_v2  ;;  %v8247_v28 = vld [vmem:[#allocation75_spill] sm:$0xff] }
 0x23e   : > { %v3258_v37 = vadd.f32 %v5162_v8, %v2932_v53  ;;  %v8236_v60 = vsel %vm7104_vm11, %v8234_v59, %v8235_v25  ;;  %v4163_v21 = vmax.f32 %v4125_v47, %v4160_v39  ;;  %v4240_v24 = vmin.f32 %v4202_v10, %v4237_v38  ;;  %v3212_v18 = vpop.f32.mrf.mxu0 }
 0x23f   : > { %vm7609_vm7 = vcmp.lt.s32.totalorder %v8236_v60, 16  ;;  %v3335_v20 = vadd.f32 %v7047_v19, %v3292_v11  ;;  %v2934_v40 = vadd.f32 %v2889_v48, %v8239_v55  ;;  %3373 = vst [vmem:[%s7085_s29 + $0xf0] sm:$0xff] %v3337_v15  ;;  %v4130_v5 = vsel %vm7526_vm8, %v3337_v15, -inf }
 0x240   : > { %v4207_v45 = vsel %vm7526_vm8, %v3337_v15, inf  ;;  %v3295_v9 = vmul.f32 %v8021_v23, %v3258_v37  ;;  %v3256_v33 = vadd.f32 %v3199_v16, %v2930_v7  ;;  %v4161_v32 = vmax.f32 %v4130_v5, %v4163_v21 }
 0x241   : > { %v4238_v29 = vmin.f32 %v4207_v45, %v4240_v24  ;;  %3371 = vst [vmem:[%s7085_s29 + $0xe0] sm:$0xff] %v3335_v20  ;;  %v4128_v4 = vsel %vm7541_vm9, %v3335_v20, -inf  ;;  %v4205_v13 = vsel %vm7541_vm9, %v3335_v20, inf  ;;  %v3261_v57 = vadd.f32 %v5165_v31, %v2935_v1 }
 0x242   : > { %v3338_v42 = vadd.f32 %v7047_v19, %v3295_v9  ;;  %v3293_v35 = vmul.f32 %v8021_v23, %v3256_v33  ;;  %v3991_v7 = vsel %vm7619_vm2, %v8242_v22, %v7132_v63  ;;  %v4166_v6 = vmax.f32 %v4128_v4, %v4161_v32  ;;  %v5166_v63 = vpop.f32.mrf.mxu0 }
 0x243   : > { %v4243_v27 = vmin.f32 %v4205_v13, %v4238_v29  ;;  %v3259_v56 = vadd.f32 %v3212_v18, %v2933_v50  ;;  %vm7640_vm11 = vcmp.lt.s32.totalorder %v3991_v7, 16  ;;  %v3298_v36 = vmul.f32 %v8021_v23, %v3261_v57 }
 0x244   : > { %3374 = vst [vmem:[%s7085_s29 + $0xf8] sm:$0xff] %v3338_v42  ;;  %v4131_v49 = vsel %vm7563_vm10, %v3338_v42, -inf  ;;  %v4208_v1 = vsel %vm7563_vm10, %v3338_v42, inf  ;;  %v3336_v61 = vadd.f32 %v7047_v19, %v3293_v35  ;;  %v3262_v3 = vadd.f32 %v5166_v63, %v2936_v0  ;;  %v3215_v2 = vpop.f32.mrf.mxu0 }
 0x245   : > { %v4164_v44 = vmax.f32 %v4131_v49, %v4166_v6  ;;  %v4241_v30 = vmin.f32 %v4208_v1, %v4243_v27  ;;  %v3296_v50 = vmul.f32 %v8021_v23, %v3259_v56  ;;  %v3341_v17 = vadd.f32 %v7047_v19, %v3298_v36 }
 0x246   : > { %3372 = vst [vmem:[%s7085_s29 + $0xe8] sm:$0xff] %v3336_v61  ;;  %v4129_v43 = vsel %vm7576_vm3, %v3336_v61, -inf  ;;  %v4206_v52 = vsel %vm7576_vm3, %v3336_v61, inf  ;;  %v8246_v8 = vshrl.u32 %v8245_v58, 4  ;;  %v3299_v0 = vmul.f32 %v8021_v23, %v3262_v3 }
 0x247   : > { %v4167_v38 = vmax.f32 %v4129_v43, %v4164_v44  ;;  %v4244_v11 = vmin.f32 %v4206_v52, %v4241_v30  ;;  %v3339_v62 = vadd.f32 %v7047_v19, %v3296_v50  ;;  %3377 = vst [vmem:[%s7085_s29 + $0x110] sm:$0xff] %v3341_v17  ;;  %v4134_v26 = vsel %vm7594_vm13, %v3341_v17, -inf }
 0x248   : > { %v3786_v39 = vmul.u32 18, %v8246_v8  ;;  %v4211_v41 = vsel %vm7594_vm13, %v3341_v17, inf  ;;  %v3260_v12 = vadd.f32 %v3215_v2, %v2934_v40  ;;  %v3342_v48 = vadd.f32 %v7047_v19, %v3299_v0 }
 0x249   : > { %v4169_v47 = vmax.f32 %v4134_v26, %v4167_v38  ;;  %v4246_v10 = vmin.f32 %v4211_v41, %v4244_v11  ;;  %3375 = vst [vmem:[%s7085_s29 + $0x100] sm:$0xff] %v3339_v62  ;;  %v4132_v15 = vsel %vm7609_vm7, %v3339_v62, -inf  ;;  %v4209_v37 = vsel %vm7609_vm7, %v3339_v62, inf }
 0x24a   : > { %v3787_v14 = vsub.s32 %v8247_v28, %v3786_v39  ;;  %v3297_v16 = vmul.f32 %v8021_v23, %v3260_v12  ;;  %3378 = vst [vmem:[%s7085_s29 + $0x118] sm:$0xff] %v3342_v48  ;;  %v4135_v25 = vsel %vm7640_vm11, %v3342_v48, -inf  ;;  %v4212_v60 = vsel %vm7640_vm11, %v3342_v48, inf }
 0x24b   : > { %v4165_v54 = vmax.f32 %v4132_v15, %v4169_v47  ;;  %v4242_v46 = vmin.f32 %v4209_v37, %v4246_v10 }
 0x24c   : > { %vm3845_vm12 = vcmp.ne.s32.totalorder %v3787_v14, 0  ;;  %vm3881_vm4 = vcmp.lt.s32.totalorder %v3787_v14, 0  ;;  %v3953_v59 = vadd.s32 18, %v3787_v14  ;;  %v3340_v51 = vadd.f32 %v7047_v19, %v3297_v16 }
 0x24d   : > { %vm3917_vm0 = vmand %vm3881_vm4, %vm3845_vm12  ;;  %v4168_v21 = vmax.f32 %v4135_v25, %v4165_v54  ;;  %v4245_v24 = vmin.f32 %v4212_v60, %v4242_v46 }
 0x24e   : > { %v3989_v20 = vsel %vm3917_vm0, %v3953_v59, %v3787_v14  ;;  %3376 = vst [vmem:[%s7085_s29 + $0x108] sm:$0xff] %v3340_v51 }
 0x24f   : > { %vm4025_vm1 = vcmp.lt.s32.totalorder %v3989_v20, 16 }
 0x250   : > { %v4133_v23 = vsel %vm4025_vm1, %v3340_v51, -inf  ;;  %v4210_v55 = vsel %vm4025_vm1, %v3340_v51, inf }
 0x251   : > { %v4170_v40 = vmax.f32 %v4168_v21, %v4133_v23  ;;  %v4247_v53 = vmin.f32 %v4245_v24, %v4210_v55 }
 0x253   : > { %v4171_v5 = vrot.slane %v4170_v40, 4  ;;  %v4248_v45 = vrot.slane %v4247_v53, 4 }
 0x255   : > { %v4172_v9 = vmax.f32 %v4170_v40, %v4171_v5  ;;  %v4249_v33 = vmin.f32 %v4247_v53, %v4248_v45 }
 0x257   : > { %v4173_v31 = vrot.slane %v4172_v9, 2  ;;  %v4250_v32 = vrot.slane %v4249_v33, 2 }
 0x259   : > { %v4174_v29 = vmax.f32 %v4172_v9, %v4173_v31  ;;  %v4251_v4 = vmin.f32 %v4249_v33, %v4250_v32 }
 0x25b   : > { %v4175_v19 = vrot.slane %v4174_v29, 1  ;;  %v4252_v13 = vrot.slane %v4251_v4, 1 }
 0x25d   : > { %v4176_v42 = vmax.f32 %v4174_v29, %v4175_v19  ;;  %v4253_v35 = vmin.f32 %v4251_v4, %v4252_v13 }
 0x25f   : > { %4254 = vst [vmem:[%s269_s9] sm:$0xff] %v4176_v42  ;;  %4255 = vst [vmem:[%s273_s12] sm:$0xff] %v4253_v35 }
 0x260 PF: > { %s18_s23 = sadd.s32 1, %s5267_s23  }
 0x261   : > { %p15_p4 = scmp.ge.s32.totalorder %s18_s23, 4  }
 0x263   :  { %17 = sbr.rel (!%p15_p4) target bundleno = 2 (0x2), region = 98 }

</bundles_post_ra>
